<compile_context>
chip_gen: v7x
topology: tpu7x:2x2x1
jax: 0.10.0
libtpu: 0.0.40
codegen_flags: <defaults>
</compile_context>

<pallas_src>
import functools

import jax
import jax.numpy as jnp
from jax import lax
from jax.experimental import pallas as pl
from jax.experimental.pallas import tpu as pltpu


def _zero_map(nd):
    return lambda b: (0,) * nd


# ---------------------------------------------------------------------------
# Fused transformer decoder layer (one pallas_call per layer)
# ---------------------------------------------------------------------------

def _decoder_layer_kernel(x_ref, mem_ref,
                          wqkv_ref, bqkv_ref, wo1_ref, bo1_ref, g1_ref, be1_ref,
                          wq2_ref, bq2_ref, wkv2_ref, bkv2_ref, wo2_ref, bo2_ref,
                          g2_ref, be2_ref,
                          wf1_ref, bf1_ref, wf2_ref, bf2_ref, g3_ref, be3_ref,
                          o_ref, *, n_heads):
    D = x_ref.shape[-1]
    dh = D // n_heads
    scale = 1.0 / (dh ** 0.5)

    def layernorm(v, g_ref, b_ref):
        mu = jnp.mean(v, axis=-1, keepdims=True)
        vc = v - mu
        var = jnp.mean(vc * vc, axis=-1, keepdims=True)
        return vc * lax.rsqrt(var + 1e-5) * g_ref[...] + b_ref[...]

    def mh_attention(q, k, v, wo_ref, bo_ref):
        # All heads in one body; output projection folded in per head:
        #   concat(heads) @ Wo == sum_h head_h @ Wo[h*dh:(h+1)*dh, :]
        out = None
        for h in range(n_heads):
            qh = q[:, h * dh:(h + 1) * dh] * scale          # scale the small operand
            kh = k[:, h * dh:(h + 1) * dh]
            vh = v[:, h * dh:(h + 1) * dh]
            s = lax.dot_general(qh, kh, (((1,), (1,)), ((), ())),
                                preferred_element_type=jnp.float32)  # (Sq, Sk)
            m = jnp.max(s, axis=-1, keepdims=True)
            p = jnp.exp(s - m)
            denom = jnp.sum(p, axis=-1, keepdims=True)
            p = p * pl.reciprocal(denom, approx=True)        # EUP, not VPU divide
            oh = jnp.dot(p, vh, preferred_element_type=jnp.float32)
            ph = jnp.dot(oh, wo_ref[h * dh:(h + 1) * dh, :],
                         preferred_element_type=jnp.float32)
            out = ph if out is None else out + ph
        return out + bo_ref[...]

    x = x_ref[0]                                             # (S, D)
    mem = mem_ref[0]                                         # (Sk, D)

    # --- self-attention: fused QKV projection + residual + LN1 ---
    qkv = jnp.dot(x, wqkv_ref[...], preferred_element_type=jnp.float32) + bqkv_ref[...]
    a = mh_attention(qkv[:, 0:D], qkv[:, D:2 * D], qkv[:, 2 * D:3 * D],
                     wo1_ref, bo1_ref)
    x = layernorm(x + a, g1_ref, be1_ref)

    # --- cross-attention: fused KV projection of memory + residual + LN2 ---
    q = jnp.dot(x, wq2_ref[...], preferred_element_type=jnp.float32) + bq2_ref[...]
    kv = jnp.dot(mem, wkv2_ref[...], preferred_element_type=jnp.float32) + bkv2_ref[...]
    a = mh_attention(q, kv[:, 0:D], kv[:, D:2 * D], wo2_ref, bo2_ref)
    x = layernorm(x + a, g2_ref, be2_ref)

    # --- FFN (ReLU) + residual + LN3 ---
    h1 = jnp.maximum(jnp.dot(x, wf1_ref[...], preferred_element_type=jnp.float32)
                     + bf1_ref[...], 0.0)
    h2 = jnp.dot(h1, wf2_ref[...], preferred_element_type=jnp.float32) + bf2_ref[...]
    x = layernorm(x + h2, g3_ref, be3_ref)

    o_ref[0] = x


_W_ORDER = ['wqkv', 'bqkv', 'wo1', 'bo1', 'g1', 'be1',
            'wq2', 'bq2', 'wkv2', 'bkv2', 'wo2', 'bo2', 'g2', 'be2',
            'wf1', 'bf1', 'wf2', 'bf2', 'g3', 'be3']


def decoder_layer(x, mem, lp, n_heads):
    B, S, D = x.shape
    Sk = mem.shape[1]
    wlist = [lp[k] for k in _W_ORDER]
    kern = functools.partial(_decoder_layer_kernel, n_heads=n_heads)
    in_specs = [pl.BlockSpec((1, S, D), lambda b: (b, 0, 0)),
                pl.BlockSpec((1, Sk, D), lambda b: (b, 0, 0))]
    in_specs += [pl.BlockSpec(w.shape, _zero_map(w.ndim)) for w in wlist]
    return pl.pallas_call(
        kern,
        out_shape=jax.ShapeDtypeStruct((B, S, D), jnp.float32),
        grid=(B,),
        in_specs=in_specs,
        out_specs=pl.BlockSpec((1, S, D), lambda b: (b, 0, 0)),
        compiler_params=pltpu.CompilerParams(dimension_semantics=("parallel",)),
    )(x, mem, *wlist)


# ---------------------------------------------------------------------------
# Fused stride-1 conv kernels (tap-accumulation over a flattened padded plane)
#
# The padded NHWC image (Hp, Wp, Cin) is passed flattened as (Hp*Wp, Cin).
# Output row r of the accumulator corresponds to output pixel (r // Wp, r % Wp)
# (entries with r % Wp >= Wo are don't-cares sliced away by the wrapper).
# A conv tap (i, j) is then simply a contiguous row-slice at offset i*Wp + j.
# ---------------------------------------------------------------------------

def _conv_taps_kernel(x_ref, w_ref, b_ref, o_ref, *, taps, wp, n_rows, relu):
    xb = x_ref[0]                                            # (Nflat, Cin)
    cout = w_ref.shape[-1]
    acc = jnp.zeros((n_rows, cout), jnp.float32)
    for t, (i, j) in enumerate(taps):
        off = i * wp + j
        acc = acc + jnp.dot(xb[off:off + n_rows, :], w_ref[t],
                            preferred_element_type=jnp.float32)
    y = acc + b_ref[...]
    if relu:
        y = jnp.maximum(y, 0.0)
    o_ref[0] = y


def conv2d_taps(x_nhwc, w_taps, b_row, kh, kw, padding, relu=False):
    """Stride-1 conv, NHWC, fully fused (taps + bias + optional ReLU) in one kernel."""
    B, H, W, Cin = x_nhwc.shape
    Cout = w_taps.shape[-1]
    xp = jnp.pad(x_nhwc, ((0, 0), (padding, padding), (padding, padding), (0, 0)))
    Hp, Wp = H + 2 * padding, W + 2 * padding
    Ho, Wo = Hp - kh + 1, Wp - kw + 1
    n_rows = Ho * Wp
    flat = xp.reshape(B, Hp * Wp, Cin)
    if kw > 1:
        flat = jnp.pad(flat, ((0, 0), (0, kw - 1), (0, 0)))   # tail guard rows
    Nflat = flat.shape[1]
    taps = tuple((i, j) for i in range(kh) for j in range(kw))
    kern = functools.partial(_conv_taps_kernel, taps=taps, wp=Wp,
                             n_rows=n_rows, relu=relu)
    out_flat = pl.pallas_call(
        kern,
        out_shape=jax.ShapeDtypeStruct((B, n_rows, Cout), jnp.float32),
        grid=(B,),
        in_specs=[pl.BlockSpec((1, Nflat, Cin), lambda b: (b, 0, 0)),
                  pl.BlockSpec(w_taps.shape, _zero_map(3)),
                  pl.BlockSpec(b_row.shape, _zero_map(2))],
        out_specs=pl.BlockSpec((1, n_rows, Cout), lambda b: (b, 0, 0)),
        compiler_params=pltpu.CompilerParams(dimension_semantics=("parallel",)),
    )(flat, w_taps, b_row)
    return out_flat.reshape(B, Ho, Wp, Cout)[:, :, :Wo, :]


def _basic_block_kernel(xp_ref, w1_ref, b1_ref, w2_ref, b2_ref, ws_ref, bs_ref,
                        mask_ref, o_ref, scr_ref, *, taps, wp, n_rows):
    xb = xp_ref[0]                                           # (Nflat, 2C)
    cmid = w1_ref.shape[-1]
    cout = w2_ref.shape[-1]

    # conv1 3x3 + bias + ReLU
    acc1 = jnp.zeros((n_rows, cmid), jnp.float32)
    for t, (i, j) in enumerate(taps):
        off = i * wp + j
        acc1 = acc1 + jnp.dot(xb[off:off + n_rows, :], w1_ref[t],
                              preferred_element_type=jnp.float32)
    h1 = jnp.maximum(acc1 + b1_ref[...], 0.0) * mask_ref[...]   # zero pad columns

    # re-pad conv1 output (same flat layout, row stride wp) in VMEM scratch
    scr_ref[...] = jnp.zeros_like(scr_ref)
    scr_ref[wp + 1:wp + 1 + n_rows, :] = h1
    scr = scr_ref[...]

    # conv2 3x3 + bias
    acc2 = jnp.zeros((n_rows, cout), jnp.float32)
    for t, (i, j) in enumerate(taps):
        off = i * wp + j
        acc2 = acc2 + jnp.dot(scr[off:off + n_rows, :], w2_ref[t],
                              preferred_element_type=jnp.float32)
    acc2 = acc2 + b2_ref[...]

    # 1x1 shortcut == a single tap at offset wp+1 on the padded input; + add + ReLU
    sc = jnp.dot(xb[wp + 1:wp + 1 + n_rows, :], ws_ref[0],
                 preferred_element_type=jnp.float32) + bs_ref[...]
    o_ref[0] = jnp.maximum(acc2 + sc, 0.0)


def basic_block(x_nhwc, rp, padding):
    """conv3x3+ReLU -> conv3x3 -> +1x1 shortcut -> ReLU, all in ONE pallas_call.

    BatchNorm is assumed identity (eval mode, default running stats)."""
    B, H, W, Cin = x_nhwc.shape
    Cmid = rp['w1'].shape[-1]
    Cout = rp['w2'].shape[-1]
    xp = jnp.pad(x_nhwc, ((0, 0), (padding, padding), (padding, padding), (0, 0)))
    Hp, Wp = H + 2 * padding, W + 2 * padding
    n_rows = H * Wp
    flat = jnp.pad(xp.reshape(B, Hp * Wp, Cin), ((0, 0), (0, 2), (0, 0)))
    Nflat = flat.shape[1]
    taps = tuple((i, j) for i in range(3) for j in range(3))
    # validity mask of the flat layout (1.0 where column < W, else 0.0)
    col = jnp.arange(n_rows, dtype=jnp.int32) % Wp
    mask = (col < W).astype(jnp.float32).reshape(n_rows, 1)
    scr_rows = Hp * Wp + 2
    kern = functools.partial(_basic_block_kernel, taps=taps, wp=Wp, n_rows=n_rows)
    out_flat = pl.pallas_call(
        kern,
        out_shape=jax.ShapeDtypeStruct((B, n_rows, Cout), jnp.float32),
        grid=(B,),
        in_specs=[pl.BlockSpec((1, Nflat, Cin), lambda b: (b, 0, 0)),
                  pl.BlockSpec(rp['w1'].shape, _zero_map(3)),
                  pl.BlockSpec(rp['b1'].shape, _zero_map(2)),
                  pl.BlockSpec(rp['w2'].shape, _zero_map(3)),
                  pl.BlockSpec(rp['b2'].shape, _zero_map(2)),
                  pl.BlockSpec(rp['ws'].shape, _zero_map(3)),
                  pl.BlockSpec(rp['bs'].shape, _zero_map(2)),
                  pl.BlockSpec((n_rows, 1), _zero_map(2))],
        out_specs=pl.BlockSpec((1, n_rows, Cout), lambda b: (b, 0, 0)),
        scratch_shapes=[pltpu.VMEM((scr_rows, Cmid), jnp.float32)],
        compiler_params=pltpu.CompilerParams(dimension_semantics=("parallel",)),
    )(flat, rp['w1'], rp['b1'], rp['w2'], rp['b2'], rp['ws'], rp['bs'], mask)
    return out_flat.reshape(B, H, Wp, Cout)[:, :, :W, :]


# ---------------------------------------------------------------------------
# TransDecoderBlock.forward
# ---------------------------------------------------------------------------

def trans_decoder_block(x, r_context, t_context, params, cfg):
    assert cfg['stride'] == 1 and cfg['padding'] == 1  # TODO(synk): general stride/pad
    p = cfg['patch_dim'] ** 2

    # Upsample: nearest-2x (XLA glue) + fused 3x3 conv kernel
    x = jnp.repeat(jnp.repeat(x, 2, axis=2), 2, axis=3)            # NCHW
    x_nhwc = jnp.transpose(x, (0, 2, 3, 1))
    up = params['upsample']
    x_nhwc = conv2d_taps(x_nhwc, up['w'], up['b'], kh=3, kw=3, padding=1)
    x = jnp.transpose(x_nhwc, (0, 3, 1, 2))                        # NCHW
    B, C, H, W = x.shape

    # Patchify exactly as the PyTorch code: raw row-major reshape + permute
    xt = x.reshape(B, C * p, (H * W) // p).transpose(0, 2, 1)      # (B, S, D)

    # Transformer decoder: one fused Pallas kernel per layer
    for lp in params['transformer']:
        xt = decoder_layer(xt, t_context, lp, cfg['n_heads'])

    x = xt.transpose(0, 2, 1).reshape(B, C, H, W)

    # ResNet BasicBlock on concat(x, r_context): single fused Pallas kernel
    xcat = jnp.concatenate([x, r_context], axis=1)                 # (B, 2C, H, W)
    xcat_nhwc = jnp.transpose(xcat, (0, 2, 3, 1))
    out_nhwc = basic_block(xcat_nhwc, params['resnet'], padding=cfg['padding'])
    return jnp.transpose(out_nhwc, (0, 3, 1, 2))                   # NCHW


# ---------------------------------------------------------------------------
# Deterministic parameter init (weights already in kernel layouts)
# ---------------------------------------------------------------------------

def init_params(key, cfg):
    C = cfg['in_channels']
    Cout = cfg['out_channels']
    D = cfg['patch_dim'] ** 2 * C
    F = cfg['dim_ff']
    keys = iter(jax.random.split(key, 64))

    def w(shape, scale=0.02):
        return jax.random.normal(next(keys), shape, jnp.float32) * scale

    def zeros(n):
        return jnp.zeros((1, n), jnp.float32)

    def ones(n):
        return jnp.ones((1, n), jnp.float32)

    layers = []
    for _ in range(cfg['num_layers']):
        layers.append(dict(
            wqkv=w((D, 3 * D)), bqkv=zeros(3 * D),                  # fused QKV
            wo1=w((D, D)), bo1=zeros(D), g1=ones(D), be1=zeros(D),
            wq2=w((D, D)), bq2=zeros(D),
            wkv2=w((D, 2 * D)), bkv2=zeros(2 * D),                  # fused KV
            wo2=w((D, D)), bo2=zeros(D), g2=ones(D), be2=zeros(D),
            wf1=w((D, F)), bf1=zeros(F),
            wf2=w((F, D)), bf2=zeros(D), g3=ones(D), be3=zeros(D)))

    return dict(
        # Conv weights stored as (kh*kw, Cin, Cout) tap matrices; with a real
        # checkpoint the (Cout,Cin,kh,kw) -> (kh*kw,Cin,Cout) transpose is done
        # once at load time, never in the forward pass.
        upsample=dict(w=w((9, C, C)), b=zeros(C)),
        transformer=layers,
        resnet=dict(w1=w((9, 2 * C, Cout)), b1=zeros(Cout),
                    w2=w((9, Cout, Cout)), b2=zeros(Cout),
                    ws=w((1, 2 * C, Cout)), bs=zeros(Cout)))


# ---------------------------------------------------------------------------

if __name__ == "__main__":
    cfg = dict(in_channels=4, out_channels=8, patch_dim=2, n_heads=2,
               stride=1, padding=1, resnet_bias=True, dim_ff=32, num_layers=1)

    key = jax.random.PRNGKey(0)
    k1, k2, k3, kp = jax.random.split(key, 4)

    B, C, H0, W0 = 2, cfg['in_channels'], 8, 8
    D = cfg['patch_dim'] ** 2 * C
    S_ctx = 32

    x = jax.random.normal(k1, (B, C, H0, W0), jnp.float32)
    r_context = jax.random.normal(k2, (B, C, 2 * H0, 2 * W0), jnp.float32)
    t_context = jax.random.normal(k3, (B, S_ctx, D), jnp.float32)

    params = init_params(kp, cfg)

    fwd = jax.jit(lambda a, r, t, prm: trans_decoder_block(a, r, t, prm, cfg))
    out = fwd(x, r_context, t_context, params)
    out = jax.block_until_ready(out)

    assert out.shape == (B, cfg['out_channels'], 2 * H0, 2 * W0), out.shape
    assert jnp.all(jnp.isfinite(out))
    print("KERNEL_OK")
</pallas_src>

<mosaic_0001>
module attributes {stable_mosaic.version = 11 : i64} {
  func.func @_conv_taps_kernel(%arg0: i32, %arg1: memref<1x326x4xf32, #tpu.memory_space<vmem>>, %arg2: memref<9x4x4xf32, #tpu.memory_space<vmem>>, %arg3: memref<1x4xf32, #tpu.memory_space<vmem>>, %arg4: memref<1x288x4xf32, #tpu.memory_space<vmem>>) attributes {dimension_semantics = [#tpu.dimension_semantics<parallel>], iteration_bounds = array<i64: 2>, scalar_prefetch = 0 : i64, scratch_operands = 0 : i64, tpu.core_type = #tpu.core_type<tc>, window_params = [{transform_indices = @transform_0, window_bounds = array<i64: 1, 326, 4>}, {pipeline_mode = #tpu.pipeline_mode<synchronous>, transform_indices = @transform_1, window_bounds = array<i64: 9, 4, 4>}, {pipeline_mode = #tpu.pipeline_mode<synchronous>, transform_indices = @transform_2, window_bounds = array<i64: 1, 4>}, {transform_indices = @transform_3, window_bounds = array<i64: 1, 288, 4>}]} {
    %c0 = arith.constant 0 : index
    %c0_0 = arith.constant 0 : index
    %c0_1 = arith.constant 0 : index
    %0 = vector.load %arg1[%c0, %c0_0, %c0_1] : memref<1x326x4xf32, #tpu.memory_space<vmem>>, vector<1x326x4xf32>
    %1 = vector.shape_cast %0 : vector<1x326x4xf32> to vector<326x4xf32>
    %cst = arith.constant 0.000000e+00 : f32
    %2 = vector.broadcast %cst : f32 to vector<288x4xf32>
    %3 = vector.extract_strided_slice %1 {offsets = [0, 0], sizes = [288, 4], strides = [1, 1]} : vector<326x4xf32> to vector<288x4xf32>
    %c0_2 = arith.constant 0 : index
    %c0_3 = arith.constant 0 : index
    %c0_4 = arith.constant 0 : index
    %4 = vector.load %arg2[%c0_2, %c0_3, %c0_4] : memref<9x4x4xf32, #tpu.memory_space<vmem>>, vector<1x4x4xf32>
    %5 = vector.shape_cast %4 : vector<1x4x4xf32> to vector<4x4xf32>
    %cst_5 = arith.constant dense<0.000000e+00> : vector<288x4xf32>
    %6 = tpu.matmul %3, %5, %cst_5 {dimension_numbers = #tpu.dot_dimension_numbers<[1], [0], [0], [1], [0, 0, 1, 1], [], []>} : vector<288x4xf32>, vector<4x4xf32>, vector<288x4xf32> -> vector<288x4xf32>
    %7 = arith.addf %2, %6 : vector<288x4xf32>
    %8 = vector.extract_strided_slice %1 {offsets = [1, 0], sizes = [288, 4], strides = [1, 1]} : vector<326x4xf32> to vector<288x4xf32>
    %c1 = arith.constant 1 : index
    %c0_6 = arith.constant 0 : index
    %c0_7 = arith.constant 0 : index
    %9 = vector.load %arg2[%c1, %c0_6, %c0_7] : memref<9x4x4xf32, #tpu.memory_space<vmem>>, vector<1x4x4xf32>
    %10 = vector.shape_cast %9 : vector<1x4x4xf32> to vector<4x4xf32>
    %cst_8 = arith.constant dense<0.000000e+00> : vector<288x4xf32>
    %11 = tpu.matmul %8, %10, %cst_8 {dimension_numbers = #tpu.dot_dimension_numbers<[1], [0], [0], [1], [0, 0, 1, 1], [], []>} : vector<288x4xf32>, vector<4x4xf32>, vector<288x4xf32> -> vector<288x4xf32>
    %12 = arith.addf %7, %11 : vector<288x4xf32>
    %13 = vector.extract_strided_slice %1 {offsets = [2, 0], sizes = [288, 4], strides = [1, 1]} : vector<326x4xf32> to vector<288x4xf32>
    %c2 = arith.constant 2 : index
    %c0_9 = arith.constant 0 : index
    %c0_10 = arith.constant 0 : index
    %14 = vector.load %arg2[%c2, %c0_9, %c0_10] : memref<9x4x4xf32, #tpu.memory_space<vmem>>, vector<1x4x4xf32>
    %15 = vector.shape_cast %14 : vector<1x4x4xf32> to vector<4x4xf32>
    %cst_11 = arith.constant dense<0.000000e+00> : vector<288x4xf32>
    %16 = tpu.matmul %13, %15, %cst_11 {dimension_numbers = #tpu.dot_dimension_numbers<[1], [0], [0], [1], [0, 0, 1, 1], [], []>} : vector<288x4xf32>, vector<4x4xf32>, vector<288x4xf32> -> vector<288x4xf32>
    %17 = arith.addf %12, %16 : vector<288x4xf32>
    %18 = vector.extract_strided_slice %1 {offsets = [18, 0], sizes = [288, 4], strides = [1, 1]} : vector<326x4xf32> to vector<288x4xf32>
    %c3 = arith.constant 3 : index
    %c0_12 = arith.constant 0 : index
    %c0_13 = arith.constant 0 : index
    %19 = vector.load %arg2[%c3, %c0_12, %c0_13] : memref<9x4x4xf32, #tpu.memory_space<vmem>>, vector<1x4x4xf32>
    %20 = vector.shape_cast %19 : vector<1x4x4xf32> to vector<4x4xf32>
    %cst_14 = arith.constant dense<0.000000e+00> : vector<288x4xf32>
    %21 = tpu.matmul %18, %20, %cst_14 {dimension_numbers = #tpu.dot_dimension_numbers<[1], [0], [0], [1], [0, 0, 1, 1], [], []>} : vector<288x4xf32>, vector<4x4xf32>, vector<288x4xf32> -> vector<288x4xf32>
    %22 = arith.addf %17, %21 : vector<288x4xf32>
    %23 = vector.extract_strided_slice %1 {offsets = [19, 0], sizes = [288, 4], strides = [1, 1]} : vector<326x4xf32> to vector<288x4xf32>
    %c4 = arith.constant 4 : index
    %c0_15 = arith.constant 0 : index
    %c0_16 = arith.constant 0 : index
    %24 = vector.load %arg2[%c4, %c0_15, %c0_16] : memref<9x4x4xf32, #tpu.memory_space<vmem>>, vector<1x4x4xf32>
    %25 = vector.shape_cast %24 : vector<1x4x4xf32> to vector<4x4xf32>
    %cst_17 = arith.constant dense<0.000000e+00> : vector<288x4xf32>
    %26 = tpu.matmul %23, %25, %cst_17 {dimension_numbers = #tpu.dot_dimension_numbers<[1], [0], [0], [1], [0, 0, 1, 1], [], []>} : vector<288x4xf32>, vector<4x4xf32>, vector<288x4xf32> -> vector<288x4xf32>
    %27 = arith.addf %22, %26 : vector<288x4xf32>
    %28 = vector.extract_strided_slice %1 {offsets = [20, 0], sizes = [288, 4], strides = [1, 1]} : vector<326x4xf32> to vector<288x4xf32>
    %c5 = arith.constant 5 : index
    %c0_18 = arith.constant 0 : index
    %c0_19 = arith.constant 0 : index
    %29 = vector.load %arg2[%c5, %c0_18, %c0_19] : memref<9x4x4xf32, #tpu.memory_space<vmem>>, vector<1x4x4xf32>
    %30 = vector.shape_cast %29 : vector<1x4x4xf32> to vector<4x4xf32>
    %cst_20 = arith.constant dense<0.000000e+00> : vector<288x4xf32>
    %31 = tpu.matmul %28, %30, %cst_20 {dimension_numbers = #tpu.dot_dimension_numbers<[1], [0], [0], [1], [0, 0, 1, 1], [], []>} : vector<288x4xf32>, vector<4x4xf32>, vector<288x4xf32> -> vector<288x4xf32>
    %32 = arith.addf %27, %31 : vector<288x4xf32>
    %33 = vector.extract_strided_slice %1 {offsets = [36, 0], sizes = [288, 4], strides = [1, 1]} : vector<326x4xf32> to vector<288x4xf32>
    %c6 = arith.constant 6 : index
    %c0_21 = arith.constant 0 : index
    %c0_22 = arith.constant 0 : index
    %34 = vector.load %arg2[%c6, %c0_21, %c0_22] : memref<9x4x4xf32, #tpu.memory_space<vmem>>, vector<1x4x4xf32>
    %35 = vector.shape_cast %34 : vector<1x4x4xf32> to vector<4x4xf32>
    %cst_23 = arith.constant dense<0.000000e+00> : vector<288x4xf32>
    %36 = tpu.matmul %33, %35, %cst_23 {dimension_numbers = #tpu.dot_dimension_numbers<[1], [0], [0], [1], [0, 0, 1, 1], [], []>} : vector<288x4xf32>, vector<4x4xf32>, vector<288x4xf32> -> vector<288x4xf32>
    %37 = arith.addf %32, %36 : vector<288x4xf32>
    %38 = vector.extract_strided_slice %1 {offsets = [37, 0], sizes = [288, 4], strides = [1, 1]} : vector<326x4xf32> to vector<288x4xf32>
    %c7 = arith.constant 7 : index
    %c0_24 = arith.constant 0 : index
    %c0_25 = arith.constant 0 : index
    %39 = vector.load %arg2[%c7, %c0_24, %c0_25] : memref<9x4x4xf32, #tpu.memory_space<vmem>>, vector<1x4x4xf32>
    %40 = vector.shape_cast %39 : vector<1x4x4xf32> to vector<4x4xf32>
    %cst_26 = arith.constant dense<0.000000e+00> : vector<288x4xf32>
    %41 = tpu.matmul %38, %40, %cst_26 {dimension_numbers = #tpu.dot_dimension_numbers<[1], [0], [0], [1], [0, 0, 1, 1], [], []>} : vector<288x4xf32>, vector<4x4xf32>, vector<288x4xf32> -> vector<288x4xf32>
    %42 = arith.addf %37, %41 : vector<288x4xf32>
    %43 = vector.extract_strided_slice %1 {offsets = [38, 0], sizes = [288, 4], strides = [1, 1]} : vector<326x4xf32> to vector<288x4xf32>
    %c8 = arith.constant 8 : index
    %c0_27 = arith.constant 0 : index
    %c0_28 = arith.constant 0 : index
    %44 = vector.load %arg2[%c8, %c0_27, %c0_28] : memref<9x4x4xf32, #tpu.memory_space<vmem>>, vector<1x4x4xf32>
    %45 = vector.shape_cast %44 : vector<1x4x4xf32> to vector<4x4xf32>
    %cst_29 = arith.constant dense<0.000000e+00> : vector<288x4xf32>
    %46 = tpu.matmul %43, %45, %cst_29 {dimension_numbers = #tpu.dot_dimension_numbers<[1], [0], [0], [1], [0, 0, 1, 1], [], []>} : vector<288x4xf32>, vector<4x4xf32>, vector<288x4xf32> -> vector<288x4xf32>
    %47 = arith.addf %42, %46 : vector<288x4xf32>
    %c0_30 = arith.constant 0 : index
    %c0_31 = arith.constant 0 : index
    %48 = vector.load %arg3[%c0_30, %c0_31] : memref<1x4xf32, #tpu.memory_space<vmem>>, vector<1x4xf32>
    %49 = vector.broadcast %48 : vector<1x4xf32> to vector<288x4xf32>
    %50 = arith.addf %47, %49 : vector<288x4xf32>
    %c0_32 = arith.constant 0 : index
    %c0_33 = arith.constant 0 : index
    %c0_34 = arith.constant 0 : index
    %51 = vector.load %arg4[%c0_32, %c0_33, %c0_34] : memref<1x288x4xf32, #tpu.memory_space<vmem>>, vector<1x288x4xf32>
    %52 = vector.shape_cast %51 : vector<1x288x4xf32> to vector<288x4xf32>
    %53 = vector.shape_cast %50 : vector<288x4xf32> to vector<1x288x4xf32>
    tpu.vector_store %arg4[%c0_32, %c0_33, %c0_34], %53 {strides = array<i32>} : memref<1x288x4xf32, #tpu.memory_space<vmem>>, vector<1x288x4xf32>,
    return
  }
  func.func @transform_0(%arg0: i32) -> (i32, i32, i32) {
    %c0_i32 = arith.constant 0 : i32
    %c0_i32_0 = arith.constant 0 : i32
    %c0_i32_1 = arith.constant 0 : i32
    return %arg0, %c0_i32, %c0_i32_0 : i32, i32, i32
  }
  func.func @transform_1(%arg0: i32) -> (i32, i32, i32) {
    %c0_i32 = arith.constant 0 : i32
    %c0_i32_0 = arith.constant 0 : i32
    %c0_i32_1 = arith.constant 0 : i32
    %c0_i32_2 = arith.constant 0 : i32
    return %c0_i32, %c0_i32_0, %c0_i32_1 : i32, i32, i32
  }
  func.func @transform_2(%arg0: i32) -> (i32, i32) {
    %c0_i32 = arith.constant 0 : i32
    %c0_i32_0 = arith.constant 0 : i32
    %c0_i32_1 = arith.constant 0 : i32
    return %c0_i32, %c0_i32_0 : i32, i32
  }
  func.func @transform_3(%arg0: i32) -> (i32, i32, i32) {
    %c0_i32 = arith.constant 0 : i32
    %c0_i32_0 = arith.constant 0 : i32
    %c0_i32_1 = arith.constant 0 : i32
    return %arg0, %c0_i32, %c0_i32_0 : i32, i32, i32
  }
}

module attributes {stable_mosaic.version = 11 : i64} {
  func.func @_decoder_layer_kernel(%arg0: i32, %arg1: memref<1x64x16xf32, #tpu.memory_space<vmem>>, %arg2: memref<1x32x16xf32, #tpu.memory_space<vmem>>, %arg3: memref<16x48xf32, #tpu.memory_space<vmem>>, %arg4: memref<1x48xf32, #tpu.memory_space<vmem>>, %arg5: memref<16x16xf32, #tpu.memory_space<vmem>>, %arg6: memref<1x16xf32, #tpu.memory_space<vmem>>, %arg7: memref<1x16xf32, #tpu.memory_space<vmem>>, %arg8: memref<1x16xf32, #tpu.memory_space<vmem>>, %arg9: memref<16x16xf32, #tpu.memory_space<vmem>>, %arg10: memref<1x16xf32, #tpu.memory_space<vmem>>, %arg11: memref<16x32xf32, #tpu.memory_space<vmem>>, %arg12: memref<1x32xf32, #tpu.memory_space<vmem>>, %arg13: memref<16x16xf32, #tpu.memory_space<vmem>>, %arg14: memref<1x16xf32, #tpu.memory_space<vmem>>, %arg15: memref<1x16xf32, #tpu.memory_space<vmem>>, %arg16: memref<1x16xf32, #tpu.memory_space<vmem>>, %arg17: memref<16x32xf32, #tpu.memory_space<vmem>>, %arg18: memref<1x32xf32, #tpu.memory_space<vmem>>, %arg19: memref<32x16xf32, #tpu.memory_space<vmem>>, %arg20: memref<1x16xf32, #tpu.memory_space<vmem>>, %arg21: memref<1x16xf32, #tpu.memory_space<vmem>>, %arg22: memref<1x16xf32, #tpu.memory_space<vmem>>, %arg23: memref<1x64x16xf32, #tpu.memory_space<vmem>>) attributes {dimension_semantics = [#tpu.dimension_semantics<parallel>], iteration_bounds = array<i64: 2>, scalar_prefetch = 0 : i64, scratch_operands = 0 : i64, tpu.core_type = #tpu.core_type<tc>, window_params = [{transform_indices = @transform_0, window_bounds = array<i64: 1, 64, 16>}, {transform_indices = @transform_1, window_bounds = array<i64: 1, 32, 16>}, {pipeline_mode = #tpu.pipeline_mode<synchronous>, transform_indices = @transform_2, window_bounds = array<i64: 16, 48>}, {pipeline_mode = #tpu.pipeline_mode<synchronous>, transform_indices = @transform_3, window_bounds = array<i64: 1, 48>}, {pipeline_mode = #tpu.pipeline_mode<synchronous>, transform_indices = @transform_4, window_bounds = array<i64: 16, 16>}, {pipeline_mode = #tpu.pipeline_mode<synchronous>, transform_indices = @transform_5, window_bounds = array<i64: 1, 16>}, {pipeline_mode = #tpu.pipeline_mode<synchronous>, transform_indices = @transform_6, window_bounds = array<i64: 1, 16>}, {pipeline_mode = #tpu.pipeline_mode<synchronous>, transform_indices = @transform_7, window_bounds = array<i64: 1, 16>}, {pipeline_mode = #tpu.pipeline_mode<synchronous>, transform_indices = @transform_8, window_bounds = array<i64: 16, 16>}, {pipeline_mode = #tpu.pipeline_mode<synchronous>, transform_indices = @transform_9, window_bounds = array<i64: 1, 16>}, {pipeline_mode = #tpu.pipeline_mode<synchronous>, transform_indices = @transform_10, window_bounds = array<i64: 16, 32>}, {pipeline_mode = #tpu.pipeline_mode<synchronous>, transform_indices = @transform_11, window_bounds = array<i64: 1, 32>}, {pipeline_mode = #tpu.pipeline_mode<synchronous>, transform_indices = @transform_12, window_bounds = array<i64: 16, 16>}, {pipeline_mode = #tpu.pipeline_mode<synchronous>, transform_indices = @transform_13, window_bounds = array<i64: 1, 16>}, {pipeline_mode = #tpu.pipeline_mode<synchronous>, transform_indices = @transform_14, window_bounds = array<i64: 1, 16>}, {pipeline_mode = #tpu.pipeline_mode<synchronous>, transform_indices = @transform_15, window_bounds = array<i64: 1, 16>}, {pipeline_mode = #tpu.pipeline_mode<synchronous>, transform_indices = @transform_16, window_bounds = array<i64: 16, 32>}, {pipeline_mode = #tpu.pipeline_mode<synchronous>, transform_indices = @transform_17, window_bounds = array<i64: 1, 32>}, {pipeline_mode = #tpu.pipeline_mode<synchronous>, transform_indices = @transform_18, window_bounds = array<i64: 32, 16>}, {pipeline_mode = #tpu.pipeline_mode<synchronous>, transform_indices = @transform_19, window_bounds = array<i64: 1, 16>}, {pipeline_mode = #tpu.pipeline_mode<synchronous>, transform_indices = @transform_20, window_bounds = array<i64: 1, 16>}, {pipeline_mode = #tpu.pipeline_mode<synchronous>, transform_indices = @transform_21, window_bounds = array<i64: 1, 16>}, {transform_indices = @transform_22, window_bounds = array<i64: 1, 64, 16>}]} {
    %c0 = arith.constant 0 : index
    %c0_0 = arith.constant 0 : index
    %c0_1 = arith.constant 0 : index
    %0 = vector.load %arg1[%c0, %c0_0, %c0_1] : memref<1x64x16xf32, #tpu.memory_space<vmem>>, vector<1x64x16xf32>
    %1 = vector.shape_cast %0 : vector<1x64x16xf32> to vector<64x16xf32>
    %c0_2 = arith.constant 0 : index
    %c0_3 = arith.constant 0 : index
    %c0_4 = arith.constant 0 : index
    %2 = vector.load %arg2[%c0_2, %c0_3, %c0_4] : memref<1x32x16xf32, #tpu.memory_space<vmem>>, vector<1x32x16xf32>
    %3 = vector.shape_cast %2 : vector<1x32x16xf32> to vector<32x16xf32>
    %c0_5 = arith.constant 0 : index
    %c0_6 = arith.constant 0 : index
    %4 = vector.load %arg3[%c0_5, %c0_6] : memref<16x48xf32, #tpu.memory_space<vmem>>, vector<16x48xf32>
    %cst = arith.constant dense<0.000000e+00> : vector<64x48xf32>
    %5 = tpu.matmul %1, %4, %cst {dimension_numbers = #tpu.dot_dimension_numbers<[1], [0], [0], [1], [0, 0, 1, 1], [], []>} : vector<64x16xf32>, vector<16x48xf32>, vector<64x48xf32> -> vector<64x48xf32>
    %c0_7 = arith.constant 0 : index
    %c0_8 = arith.constant 0 : index
    %6 = vector.load %arg4[%c0_7, %c0_8] : memref<1x48xf32, #tpu.memory_space<vmem>>, vector<1x48xf32>
    %7 = vector.broadcast %6 : vector<1x48xf32> to vector<64x48xf32>
    %8 = arith.addf %5, %7 : vector<64x48xf32>
    %9 = vector.extract_strided_slice %8 {offsets = [0, 0], sizes = [64, 16], strides = [1, 1]} : vector<64x48xf32> to vector<64x16xf32>
    %10 = vector.extract_strided_slice %8 {offsets = [0, 16], sizes = [64, 16], strides = [1, 1]} : vector<64x48xf32> to vector<64x16xf32>
    %11 = vector.extract_strided_slice %8 {offsets = [0, 32], sizes = [64, 16], strides = [1, 1]} : vector<64x48xf32> to vector<64x16xf32>
    %12 = vector.extract_strided_slice %9 {offsets = [0, 0], sizes = [64, 8], strides = [1, 1]} : vector<64x16xf32> to vector<64x8xf32>
    %cst_9 = arith.constant 0.353553385 : f32
    %13 = vector.broadcast %cst_9 : f32 to vector<64x8xf32>
    %14 = arith.mulf %12, %13 : vector<64x8xf32>
    %15 = vector.extract_strided_slice %10 {offsets = [0, 0], sizes = [64, 8], strides = [1, 1]} : vector<64x16xf32> to vector<64x8xf32>
    %16 = vector.extract_strided_slice %11 {offsets = [0, 0], sizes = [64, 8], strides = [1, 1]} : vector<64x16xf32> to vector<64x8xf32>
    %cst_10 = arith.constant dense<0.000000e+00> : vector<64x64xf32>
    %17 = tpu.matmul %14, %15, %cst_10 {dimension_numbers = #tpu.dot_dimension_numbers<[1], [1], [0], [0], [0, 0, 1, 0], [], []>} : vector<64x8xf32>, vector<64x8xf32>, vector<64x64xf32> -> vector<64x64xf32>
    %cst_11 = arith.constant dense<0xFF800000> : vector<64xf32>
    %18 = vector.multi_reduction <maximumf>, %17, %cst_11 [1] : vector<64x64xf32> to vector<64xf32>
    %19 = vector.shape_cast %18 : vector<64xf32> to vector<64x1xf32>
    %20 = vector.broadcast %19 : vector<64x1xf32> to vector<64x64xf32>
    %21 = arith.subf %17, %20 : vector<64x64xf32>
    %22 = math.exp %21 : vector<64x64xf32>
    %cst_12 = arith.constant dense<0.000000e+00> : vector<64xf32>
    %23 = vector.multi_reduction <add>, %22, %cst_12 [1] : vector<64x64xf32> to vector<64xf32>
    %24 = vector.shape_cast %23 : vector<64xf32> to vector<64x1xf32>
    %25 = tpu.reciprocal %24 {approx = true} : vector<64x1xf32> -> vector<64x1xf32>
    %26 = vector.broadcast %25 : vector<64x1xf32> to vector<64x64xf32>
    %27 = arith.mulf %22, %26 : vector<64x64xf32>
    %cst_13 = arith.constant dense<0.000000e+00> : vector<64x8xf32>
    %28 = tpu.matmul %27, %16, %cst_13 {dimension_numbers = #tpu.dot_dimension_numbers<[1], [0], [0], [1], [0, 0, 1, 1], [], []>} : vector<64x64xf32>, vector<64x8xf32>, vector<64x8xf32> -> vector<64x8xf32>
    %c0_14 = arith.constant 0 : index
    %c0_15 = arith.constant 0 : index
    %29 = vector.load %arg5[%c0_14, %c0_15] : memref<16x16xf32, #tpu.memory_space<vmem>>, vector<8x16xf32>
    %cst_16 = arith.constant dense<0.000000e+00> : vector<64x16xf32>
    %30 = tpu.matmul %28, %29, %cst_16 {dimension_numbers = #tpu.dot_dimension_numbers<[1], [0], [0], [1], [0, 0, 1, 1], [], []>} : vector<64x8xf32>, vector<8x16xf32>, vector<64x16xf32> -> vector<64x16xf32>
    %31 = vector.extract_strided_slice %9 {offsets = [0, 8], sizes = [64, 8], strides = [1, 1]} : vector<64x16xf32> to vector<64x8xf32>
    %cst_17 = arith.constant 0.353553385 : f32
    %32 = vector.broadcast %cst_17 : f32 to vector<64x8xf32>
    %33 = arith.mulf %31, %32 : vector<64x8xf32>
    %34 = vector.extract_strided_slice %10 {offsets = [0, 8], sizes = [64, 8], strides = [1, 1]} : vector<64x16xf32> to vector<64x8xf32>
    %35 = vector.extract_strided_slice %11 {offsets = [0, 8], sizes = [64, 8], strides = [1, 1]} : vector<64x16xf32> to vector<64x8xf32>
    %cst_18 = arith.constant dense<0.000000e+00> : vector<64x64xf32>
    %36 = tpu.matmul %33, %34, %cst_18 {dimension_numbers = #tpu.dot_dimension_numbers<[1], [1], [0], [0], [0, 0, 1, 0], [], []>} : vector<64x8xf32>, vector<64x8xf32>, vector<64x64xf32> -> vector<64x64xf32>
    %cst_19 = arith.constant dense<0xFF800000> : vector<64xf32>
    %37 = vector.multi_reduction <maximumf>, %36, %cst_19 [1] : vector<64x64xf32> to vector<64xf32>
    %38 = vector.shape_cast %37 : vector<64xf32> to vector<64x1xf32>
    %39 = vector.broadcast %38 : vector<64x1xf32> to vector<64x64xf32>
    %40 = arith.subf %36, %39 : vector<64x64xf32>
    %41 = math.exp %40 : vector<64x64xf32>
    %cst_20 = arith.constant dense<0.000000e+00> : vector<64xf32>
    %42 = vector.multi_reduction <add>, %41, %cst_20 [1] : vector<64x64xf32> to vector<64xf32>
    %43 = vector.shape_cast %42 : vector<64xf32> to vector<64x1xf32>
    %44 = tpu.reciprocal %43 {approx = true} : vector<64x1xf32> -> vector<64x1xf32>
    %45 = vector.broadcast %44 : vector<64x1xf32> to vector<64x64xf32>
    %46 = arith.mulf %41, %45 : vector<64x64xf32>
    %cst_21 = arith.constant dense<0.000000e+00> : vector<64x8xf32>
    %47 = tpu.matmul %46, %35, %cst_21 {dimension_numbers = #tpu.dot_dimension_numbers<[1], [0], [0], [1], [0, 0, 1, 1], [], []>} : vector<64x64xf32>, vector<64x8xf32>, vector<64x8xf32> -> vector<64x8xf32>
    %c8 = arith.constant 8 : index
    %c0_22 = arith.constant 0 : index
    %48 = vector.load %arg5[%c8, %c0_22] : memref<16x16xf32, #tpu.memory_space<vmem>>, vector<8x16xf32>
    %cst_23 = arith.constant dense<0.000000e+00> : vector<64x16xf32>
    %49 = tpu.matmul %47, %48, %cst_23 {dimension_numbers = #tpu.dot_dimension_numbers<[1], [0], [0], [1], [0, 0, 1, 1], [], []>} : vector<64x8xf32>, vector<8x16xf32>, vector<64x16xf32> -> vector<64x16xf32>
    %50 = arith.addf %30, %49 : vector<64x16xf32>
    %c0_24 = arith.constant 0 : index
    %c0_25 = arith.constant 0 : index
    %51 = vector.load %arg6[%c0_24, %c0_25] : memref<1x16xf32, #tpu.memory_space<vmem>>, vector<1x16xf32>
    %52 = vector.broadcast %51 : vector<1x16xf32> to vector<64x16xf32>
    %53 = arith.addf %50, %52 : vector<64x16xf32>
    %54 = arith.addf %1, %53 : vector<64x16xf32>
    %cst_26 = arith.constant dense<0.000000e+00> : vector<64xf32>
    %55 = vector.multi_reduction <add>, %54, %cst_26 [1] : vector<64x16xf32> to vector<64xf32>
    %56 = vector.shape_cast %55 : vector<64xf32> to vector<64x1xf32>
    %cst_27 = arith.constant 1.600000e+01 : f32
    %57 = vector.broadcast %cst_27 : f32 to vector<64x1xf32>
    %58 = arith.divf %56, %57 : vector<64x1xf32>
    %59 = vector.broadcast %58 : vector<64x1xf32> to vector<64x16xf32>
    %60 = arith.subf %54, %59 : vector<64x16xf32>
    %61 = arith.mulf %60, %60 : vector<64x16xf32>
    %cst_28 = arith.constant dense<0.000000e+00> : vector<64xf32>
    %62 = vector.multi_reduction <add>, %61, %cst_28 [1] : vector<64x16xf32> to vector<64xf32>
    %63 = vector.shape_cast %62 : vector<64xf32> to vector<64x1xf32>
    %cst_29 = arith.constant 1.600000e+01 : f32
    %64 = vector.broadcast %cst_29 : f32 to vector<64x1xf32>
    %65 = arith.divf %63, %64 : vector<64x1xf32>
    %cst_30 = arith.constant 9.99999974E-6 : f32
    %66 = vector.broadcast %cst_30 : f32 to vector<64x1xf32>
    %67 = arith.addf %65, %66 : vector<64x1xf32>
    %68 = math.rsqrt %67 : vector<64x1xf32>
    %69 = vector.broadcast %68 : vector<64x1xf32> to vector<64x16xf32>
    %70 = arith.mulf %60, %69 : vector<64x16xf32>
    %c0_31 = arith.constant 0 : index
    %c0_32 = arith.constant 0 : index
    %71 = vector.load %arg7[%c0_31, %c0_32] : memref<1x16xf32, #tpu.memory_space<vmem>>, vector<1x16xf32>
    %72 = vector.broadcast %71 : vector<1x16xf32> to vector<64x16xf32>
    %73 = arith.mulf %70, %72 : vector<64x16xf32>
    %c0_33 = arith.constant 0 : index
    %c0_34 = arith.constant 0 : index
    %74 = vector.load %arg8[%c0_33, %c0_34] : memref<1x16xf32, #tpu.memory_space<vmem>>, vector<1x16xf32>
    %75 = vector.broadcast %74 : vector<1x16xf32> to vector<64x16xf32>
    %76 = arith.addf %73, %75 : vector<64x16xf32>
    %c0_35 = arith.constant 0 : index
    %c0_36 = arith.constant 0 : index
    %77 = vector.load %arg9[%c0_35, %c0_36] : memref<16x16xf32, #tpu.memory_space<vmem>>, vector<16x16xf32>
    %cst_37 = arith.constant dense<0.000000e+00> : vector<64x16xf32>
    %78 = tpu.matmul %76, %77, %cst_37 {dimension_numbers = #tpu.dot_dimension_numbers<[1], [0], [0], [1], [0, 0, 1, 1], [], []>} : vector<64x16xf32>, vector<16x16xf32>, vector<64x16xf32> -> vector<64x16xf32>
    %c0_38 = arith.constant 0 : index
    %c0_39 = arith.constant 0 : index
    %79 = vector.load %arg10[%c0_38, %c0_39] : memref<1x16xf32, #tpu.memory_space<vmem>>, vector<1x16xf32>
    %80 = vector.broadcast %79 : vector<1x16xf32> to vector<64x16xf32>
    %81 = arith.addf %78, %80 : vector<64x16xf32>
    %c0_40 = arith.constant 0 : index
    %c0_41 = arith.constant 0 : index
    %82 = vector.load %arg11[%c0_40, %c0_41] : memref<16x32xf32, #tpu.memory_space<vmem>>, vector<16x32xf32>
    %cst_42 = arith.constant dense<0.000000e+00> : vector<32x32xf32>
    %83 = tpu.matmul %3, %82, %cst_42 {dimension_numbers = #tpu.dot_dimension_numbers<[1], [0], [0], [1], [0, 0, 1, 1], [], []>} : vector<32x16xf32>, vector<16x32xf32>, vector<32x32xf32> -> vector<32x32xf32>
    %c0_43 = arith.constant 0 : index
    %c0_44 = arith.constant 0 : index
    %84 = vector.load %arg12[%c0_43, %c0_44] : memref<1x32xf32, #tpu.memory_space<vmem>>, vector<1x32xf32>
    %85 = vector.broadcast %84 : vector<1x32xf32> to vector<32x32xf32>
    %86 = arith.addf %83, %85 : vector<32x32xf32>
    %87 = vector.extract_strided_slice %86 {offsets = [0, 0], sizes = [32, 16], strides = [1, 1]} : vector<32x32xf32> to vector<32x16xf32>
    %88 = vector.extract_strided_slice %86 {offsets = [0, 16], sizes = [32, 16], strides = [1, 1]} : vector<32x32xf32> to vector<32x16xf32>
    %89 = vector.extract_strided_slice %81 {offsets = [0, 0], sizes = [64, 8], strides = [1, 1]} : vector<64x16xf32> to vector<64x8xf32>
    %cst_45 = arith.constant 0.353553385 : f32
    %90 = vector.broadcast %cst_45 : f32 to vector<64x8xf32>
    %91 = arith.mulf %89, %90 : vector<64x8xf32>
    %92 = vector.extract_strided_slice %87 {offsets = [0, 0], sizes = [32, 8], strides = [1, 1]} : vector<32x16xf32> to vector<32x8xf32>
    %93 = vector.extract_strided_slice %88 {offsets = [0, 0], sizes = [32, 8], strides = [1, 1]} : vector<32x16xf32> to vector<32x8xf32>
    %cst_46 = arith.constant dense<0.000000e+00> : vector<64x32xf32>
    %94 = tpu.matmul %91, %92, %cst_46 {dimension_numbers = #tpu.dot_dimension_numbers<[1], [1], [0], [0], [0, 0, 1, 0], [], []>} : vector<64x8xf32>, vector<32x8xf32>, vector<64x32xf32> -> vector<64x32xf32>
    %cst_47 = arith.constant dense<0xFF800000> : vector<64xf32>
    %95 = vector.multi_reduction <maximumf>, %94, %cst_47 [1] : vector<64x32xf32> to vector<64xf32>
    %96 = vector.shape_cast %95 : vector<64xf32> to vector<64x1xf32>
    %97 = vector.broadcast %96 : vector<64x1xf32> to vector<64x32xf32>
    %98 = arith.subf %94, %97 : vector<64x32xf32>
    %99 = math.exp %98 : vector<64x32xf32>
    %cst_48 = arith.constant dense<0.000000e+00> : vector<64xf32>
    %100 = vector.multi_reduction <add>, %99, %cst_48 [1] : vector<64x32xf32> to vector<64xf32>
    %101 = vector.shape_cast %100 : vector<64xf32> to vector<64x1xf32>
    %102 = tpu.reciprocal %101 {approx = true} : vector<64x1xf32> -> vector<64x1xf32>
    %103 = vector.broadcast %102 : vector<64x1xf32> to vector<64x32xf32>
    %104 = arith.mulf %99, %103 : vector<64x32xf32>
    %cst_49 = arith.constant dense<0.000000e+00> : vector<64x8xf32>
    %105 = tpu.matmul %104, %93, %cst_49 {dimension_numbers = #tpu.dot_dimension_numbers<[1], [0], [0], [1], [0, 0, 1, 1], [], []>} : vector<64x32xf32>, vector<32x8xf32>, vector<64x8xf32> -> vector<64x8xf32>
    %c0_50 = arith.constant 0 : index
    %c0_51 = arith.constant 0 : index
    %106 = vector.load %arg13[%c0_50, %c0_51] : memref<16x16xf32, #tpu.memory_space<vmem>>, vector<8x16xf32>
    %cst_52 = arith.constant dense<0.000000e+00> : vector<64x16xf32>
    %107 = tpu.matmul %105, %106, %cst_52 {dimension_numbers = #tpu.dot_dimension_numbers<[1], [0], [0], [1], [0, 0, 1, 1], [], []>} : vector<64x8xf32>, vector<8x16xf32>, vector<64x16xf32> -> vector<64x16xf32>
    %108 = vector.extract_strided_slice %81 {offsets = [0, 8], sizes = [64, 8], strides = [1, 1]} : vector<64x16xf32> to vector<64x8xf32>
    %cst_53 = arith.constant 0.353553385 : f32
    %109 = vector.broadcast %cst_53 : f32 to vector<64x8xf32>
    %110 = arith.mulf %108, %109 : vector<64x8xf32>
    %111 = vector.extract_strided_slice %87 {offsets = [0, 8], sizes = [32, 8], strides = [1, 1]} : vector<32x16xf32> to vector<32x8xf32>
    %112 = vector.extract_strided_slice %88 {offsets = [0, 8], sizes = [32, 8], strides = [1, 1]} : vector<32x16xf32> to vector<32x8xf32>
    %cst_54 = arith.constant dense<0.000000e+00> : vector<64x32xf32>
    %113 = tpu.matmul %110, %111, %cst_54 {dimension_numbers = #tpu.dot_dimension_numbers<[1], [1], [0], [0], [0, 0, 1, 0], [], []>} : vector<64x8xf32>, vector<32x8xf32>, vector<64x32xf32> -> vector<64x32xf32>
    %cst_55 = arith.constant dense<0xFF800000> : vector<64xf32>
    %114 = vector.multi_reduction <maximumf>, %113, %cst_55 [1] : vector<64x32xf32> to vector<64xf32>
    %115 = vector.shape_cast %114 : vector<64xf32> to vector<64x1xf32>
    %116 = vector.broadcast %115 : vector<64x1xf32> to vector<64x32xf32>
    %117 = arith.subf %113, %116 : vector<64x32xf32>
    %118 = math.exp %117 : vector<64x32xf32>
    %cst_56 = arith.constant dense<0.000000e+00> : vector<64xf32>
    %119 = vector.multi_reduction <add>, %118, %cst_56 [1] : vector<64x32xf32> to vector<64xf32>
    %120 = vector.shape_cast %119 : vector<64xf32> to vector<64x1xf32>
    %121 = tpu.reciprocal %120 {approx = true} : vector<64x1xf32> -> vector<64x1xf32>
    %122 = vector.broadcast %121 : vector<64x1xf32> to vector<64x32xf32>
    %123 = arith.mulf %118, %122 : vector<64x32xf32>
    %cst_57 = arith.constant dense<0.000000e+00> : vector<64x8xf32>
    %124 = tpu.matmul %123, %112, %cst_57 {dimension_numbers = #tpu.dot_dimension_numbers<[1], [0], [0], [1], [0, 0, 1, 1], [], []>} : vector<64x32xf32>, vector<32x8xf32>, vector<64x8xf32> -> vector<64x8xf32>
    %c8_58 = arith.constant 8 : index
    %c0_59 = arith.constant 0 : index
    %125 = vector.load %arg13[%c8_58, %c0_59] : memref<16x16xf32, #tpu.memory_space<vmem>>, vector<8x16xf32>
    %cst_60 = arith.constant dense<0.000000e+00> : vector<64x16xf32>
    %126 = tpu.matmul %124, %125, %cst_60 {dimension_numbers = #tpu.dot_dimension_numbers<[1], [0], [0], [1], [0, 0, 1, 1], [], []>} : vector<64x8xf32>, vector<8x16xf32>, vector<64x16xf32> -> vector<64x16xf32>
    %127 = arith.addf %107, %126 : vector<64x16xf32>
    %c0_61 = arith.constant 0 : index
    %c0_62 = arith.constant 0 : index
    %128 = vector.load %arg14[%c0_61, %c0_62] : memref<1x16xf32, #tpu.memory_space<vmem>>, vector<1x16xf32>
    %129 = vector.broadcast %128 : vector<1x16xf32> to vector<64x16xf32>
    %130 = arith.addf %127, %129 : vector<64x16xf32>
    %131 = arith.addf %76, %130 : vector<64x16xf32>
    %cst_63 = arith.constant dense<0.000000e+00> : vector<64xf32>
    %132 = vector.multi_reduction <add>, %131, %cst_63 [1] : vector<64x16xf32> to vector<64xf32>
    %133 = vector.shape_cast %132 : vector<64xf32> to vector<64x1xf32>
    %cst_64 = arith.constant 1.600000e+01 : f32
    %134 = vector.broadcast %cst_64 : f32 to vector<64x1xf32>
    %135 = arith.divf %133, %134 : vector<64x1xf32>
    %136 = vector.broadcast %135 : vector<64x1xf32> to vector<64x16xf32>
    %137 = arith.subf %131, %136 : vector<64x16xf32>
    %138 = arith.mulf %137, %137 : vector<64x16xf32>
    %cst_65 = arith.constant dense<0.000000e+00> : vector<64xf32>
    %139 = vector.multi_reduction <add>, %138, %cst_65 [1] : vector<64x16xf32> to vector<64xf32>
    %140 = vector.shape_cast %139 : vector<64xf32> to vector<64x1xf32>
    %cst_66 = arith.constant 1.600000e+01 : f32
    %141 = vector.broadcast %cst_66 : f32 to vector<64x1xf32>
    %142 = arith.divf %140, %141 : vector<64x1xf32>
    %cst_67 = arith.constant 9.99999974E-6 : f32
    %143 = vector.broadcast %cst_67 : f32 to vector<64x1xf32>
    %144 = arith.addf %142, %143 : vector<64x1xf32>
    %145 = math.rsqrt %144 : vector<64x1xf32>
    %146 = vector.broadcast %145 : vector<64x1xf32> to vector<64x16xf32>
    %147 = arith.mulf %137, %146 : vector<64x16xf32>
    %c0_68 = arith.constant 0 : index
    %c0_69 = arith.constant 0 : index
    %148 = vector.load %arg15[%c0_68, %c0_69] : memref<1x16xf32, #tpu.memory_space<vmem>>, vector<1x16xf32>
    %149 = vector.broadcast %148 : vector<1x16xf32> to vector<64x16xf32>
    %150 = arith.mulf %147, %149 : vector<64x16xf32>
    %c0_70 = arith.constant 0 : index
    %c0_71 = arith.constant 0 : index
    %151 = vector.load %arg16[%c0_70, %c0_71] : memref<1x16xf32, #tpu.memory_space<vmem>>, vector<1x16xf32>
    %152 = vector.broadcast %151 : vector<1x16xf32> to vector<64x16xf32>
    %153 = arith.addf %150, %152 : vector<64x16xf32>
    %c0_72 = arith.constant 0 : index
    %c0_73 = arith.constant 0 : index
    %154 = vector.load %arg17[%c0_72, %c0_73] : memref<16x32xf32, #tpu.memory_space<vmem>>, vector<16x32xf32>
    %cst_74 = arith.constant dense<0.000000e+00> : vector<64x32xf32>
    %155 = tpu.matmul %153, %154, %cst_74 {dimension_numbers = #tpu.dot_dimension_numbers<[1], [0], [0], [1], [0, 0, 1, 1], [], []>} : vector<64x16xf32>, vector<16x32xf32>, vector<64x32xf32> -> vector<64x32xf32>
    %c0_75 = arith.constant 0 : index
    %c0_76 = arith.constant 0 : index
    %156 = vector.load %arg18[%c0_75, %c0_76] : memref<1x32xf32, #tpu.memory_space<vmem>>, vector<1x32xf32>
    %157 = vector.broadcast %156 : vector<1x32xf32> to vector<64x32xf32>
    %158 = arith.addf %155, %157 : vector<64x32xf32>
    %cst_77 = arith.constant 0.000000e+00 : f32
    %159 = vector.broadcast %cst_77 : f32 to vector<64x32xf32>
    %160 = arith.maximumf %158, %159 : vector<64x32xf32>
    %c0_78 = arith.constant 0 : index
    %c0_79 = arith.constant 0 : index
    %161 = vector.load %arg19[%c0_78, %c0_79] : memref<32x16xf32, #tpu.memory_space<vmem>>, vector<32x16xf32>
    %cst_80 = arith.constant dense<0.000000e+00> : vector<64x16xf32>
    %162 = tpu.matmul %160, %161, %cst_80 {dimension_numbers = #tpu.dot_dimension_numbers<[1], [0], [0], [1], [0, 0, 1, 1], [], []>} : vector<64x32xf32>, vector<32x16xf32>, vector<64x16xf32> -> vector<64x16xf32>
    %c0_81 = arith.constant 0 : index
    %c0_82 = arith.constant 0 : index
    %163 = vector.load %arg20[%c0_81, %c0_82] : memref<1x16xf32, #tpu.memory_space<vmem>>, vector<1x16xf32>
    %164 = vector.broadcast %163 : vector<1x16xf32> to vector<64x16xf32>
    %165 = arith.addf %162, %164 : vector<64x16xf32>
    %166 = arith.addf %153, %165 : vector<64x16xf32>
    %cst_83 = arith.constant dense<0.000000e+00> : vector<64xf32>
    %167 = vector.multi_reduction <add>, %166, %cst_83 [1] : vector<64x16xf32> to vector<64xf32>
    %168 = vector.shape_cast %167 : vector<64xf32> to vector<64x1xf32>
    %cst_84 = arith.constant 1.600000e+01 : f32
    %169 = vector.broadcast %cst_84 : f32 to vector<64x1xf32>
    %170 = arith.divf %168, %169 : vector<64x1xf32>
    %171 = vector.broadcast %170 : vector<64x1xf32> to vector<64x16xf32>
    %172 = arith.subf %166, %171 : vector<64x16xf32>
    %173 = arith.mulf %172, %172 : vector<64x16xf32>
    %cst_85 = arith.constant dense<0.000000e+00> : vector<64xf32>
    %174 = vector.multi_reduction <add>, %173, %cst_85 [1] : vector<64x16xf32> to vector<64xf32>
    %175 = vector.shape_cast %174 : vector<64xf32> to vector<64x1xf32>
    %cst_86 = arith.constant 1.600000e+01 : f32
    %176 = vector.broadcast %cst_86 : f32 to vector<64x1xf32>
    %177 = arith.divf %175, %176 : vector<64x1xf32>
    %cst_87 = arith.constant 9.99999974E-6 : f32
    %178 = vector.broadcast %cst_87 : f32 to vector<64x1xf32>
    %179 = arith.addf %177, %178 : vector<64x1xf32>
    %180 = math.rsqrt %179 : vector<64x1xf32>
    %181 = vector.broadcast %180 : vector<64x1xf32> to vector<64x16xf32>
    %182 = arith.mulf %172, %181 : vector<64x16xf32>
    %c0_88 = arith.constant 0 : index
    %c0_89 = arith.constant 0 : index
    %183 = vector.load %arg21[%c0_88, %c0_89] : memref<1x16xf32, #tpu.memory_space<vmem>>, vector<1x16xf32>
    %184 = vector.broadcast %183 : vector<1x16xf32> to vector<64x16xf32>
    %185 = arith.mulf %182, %184 : vector<64x16xf32>
    %c0_90 = arith.constant 0 : index
    %c0_91 = arith.constant 0 : index
    %186 = vector.load %arg22[%c0_90, %c0_91] : memref<1x16xf32, #tpu.memory_space<vmem>>, vector<1x16xf32>
    %187 = vector.broadcast %186 : vector<1x16xf32> to vector<64x16xf32>
    %188 = arith.addf %185, %187 : vector<64x16xf32>
    %c0_92 = arith.constant 0 : index
    %c0_93 = arith.constant 0 : index
    %c0_94 = arith.constant 0 : index
    %189 = vector.load %arg23[%c0_92, %c0_93, %c0_94] : memref<1x64x16xf32, #tpu.memory_space<vmem>>, vector<1x64x16xf32>
    %190 = vector.shape_cast %189 : vector<1x64x16xf32> to vector<64x16xf32>
    %191 = vector.shape_cast %188 : vector<64x16xf32> to vector<1x64x16xf32>
    tpu.vector_store %arg23[%c0_92, %c0_93, %c0_94], %191 {strides = array<i32>} : memref<1x64x16xf32, #tpu.memory_space<vmem>>, vector<1x64x16xf32>,
    return
  }
  func.func @transform_0(%arg0: i32) -> (i32, i32, i32) {
    %c0_i32 = arith.constant 0 : i32
    %c0_i32_0 = arith.constant 0 : i32
    %c0_i32_1 = arith.constant 0 : i32
    return %arg0, %c0_i32, %c0_i32_0 : i32, i32, i32
  }
  func.func @transform_1(%arg0: i32) -> (i32, i32, i32) {
    %c0_i32 = arith.constant 0 : i32
    %c0_i32_0 = arith.constant 0 : i32
    %c0_i32_1 = arith.constant 0 : i32
    return %arg0, %c0_i32, %c0_i32_0 : i32, i32, i32
  }
  func.func @transform_2(%arg0: i32) -> (i32, i32) {
    %c0_i32 = arith.constant 0 : i32
    %c0_i32_0 = arith.constant 0 : i32
    %c0_i32_1 = arith.constant 0 : i32
    return %c0_i32, %c0_i32_0 : i32, i32
  }
  func.func @transform_3(%arg0: i32) -> (i32, i32) {
    %c0_i32 = arith.constant 0 : i32
    %c0_i32_0 = arith.constant 0 : i32
    %c0_i32_1 = arith.constant 0 : i32
    return %c0_i32, %c0_i32_0 : i32, i32
  }
  func.func @transform_4(%arg0: i32) -> (i32, i32) {
    %c0_i32 = arith.constant 0 : i32
    %c0_i32_0 = arith.constant 0 : i32
    %c0_i32_1 = arith.constant 0 : i32
    return %c0_i32, %c0_i32_0 : i32, i32
  }
  func.func @transform_5(%arg0: i32) -> (i32, i32) {
    %c0_i32 = arith.constant 0 : i32
    %c0_i32_0 = arith.constant 0 : i32
    %c0_i32_1 = arith.constant 0 : i32
    return %c0_i32, %c0_i32_0 : i32, i32
  }
  func.func @transform_6(%arg0: i32) -> (i32, i32) {
    %c0_i32 = arith.constant 0 : i32
    %c0_i32_0 = arith.constant 0 : i32
    %c0_i32_1 = arith.constant 0 : i32
    return %c0_i32, %c0_i32_0 : i32, i32
  }
  func.func @transform_7(%arg0: i32) -> (i32, i32) {
    %c0_i32 = arith.constant 0 : i32
    %c0_i32_0 = arith.constant 0 : i32
    %c0_i32_1 = arith.constant 0 : i32
    return %c0_i32, %c0_i32_0 : i32, i32
  }
  func.func @transform_8(%arg0: i32) -> (i32, i32) {
    %c0_i32 = arith.constant 0 : i32
    %c0_i32_0 = arith.constant 0 : i32
    %c0_i32_1 = arith.constant 0 : i32
    return %c0_i32, %c0_i32_0 : i32, i32
  }
  func.func @transform_9(%arg0: i32) -> (i32, i32) {
    %c0_i32 = arith.constant 0 : i32
    %c0_i32_0 = arith.constant 0 : i32
    %c0_i32_1 = arith.constant 0 : i32
    return %c0_i32, %c0_i32_0 : i32, i32
  }
  func.func @transform_10(%arg0: i32) -> (i32, i32) {
    %c0_i32 = arith.constant 0 : i32
    %c0_i32_0 = arith.constant 0 : i32
    %c0_i32_1 = arith.constant 0 : i32
    return %c0_i32, %c0_i32_0 : i32, i32
  }
  func.func @transform_11(%arg0: i32) -> (i32, i32) {
    %c0_i32 = arith.constant 0 : i32
    %c0_i32_0 = arith.constant 0 : i32
    %c0_i32_1 = arith.constant 0 : i32
    return %c0_i32, %c0_i32_0 : i32, i32
  }
  func.func @transform_12(%arg0: i32) -> (i32, i32) {
    %c0_i32 = arith.constant 0 : i32
    %c0_i32_0 = arith.constant 0 : i32
    %c0_i32_1 = arith.constant 0 : i32
    return %c0_i32, %c0_i32_0 : i32, i32
  }
  func.func @transform_13(%arg0: i32) -> (i32, i32) {
    %c0_i32 = arith.constant 0 : i32
    %c0_i32_0 = arith.constant 0 : i32
    %c0_i32_1 = arith.constant 0 : i32
    return %c0_i32, %c0_i32_0 : i32, i32
  }
  func.func @transform_14(%arg0: i32) -> (i32, i32) {
    %c0_i32 = arith.constant 0 : i32
    %c0_i32_0 = arith.constant 0 : i32
    %c0_i32_1 = arith.constant 0 : i32
    return %c0_i32, %c0_i32_0 : i32, i32
  }
  func.func @transform_15(%arg0: i32) -> (i32, i32) {
    %c0_i32 = arith.constant 0 : i32
    %c0_i32_0 = arith.constant 0 : i32
    %c0_i32_1 = arith.constant 0 : i32
    return %c0_i32, %c0_i32_0 : i32, i32
  }
  func.func @transform_16(%arg0: i32) -> (i32, i32) {
    %c0_i32 = arith.constant 0 : i32
    %c0_i32_0 = arith.constant 0 : i32
    %c0_i32_1 = arith.constant 0 : i32
    return %c0_i32, %c0_i32_0 : i32, i32
  }
  func.func @transform_17(%arg0: i32) -> (i32, i32) {
    %c0_i32 = arith.constant 0 : i32
    %c0_i32_0 = arith.constant 0 : i32
    %c0_i32_1 = arith.constant 0 : i32
    return %c0_i32, %c0_i32_0 : i32, i32
  }
  func.func @transform_18(%arg0: i32) -> (i32, i32) {
    %c0_i32 = arith.constant 0 : i32
    %c0_i32_0 = arith.constant 0 : i32
    %c0_i32_1 = arith.constant 0 : i32
    return %c0_i32, %c0_i32_0 : i32, i32
  }
  func.func @transform_19(%arg0: i32) -> (i32, i32) {
    %c0_i32 = arith.constant 0 : i32
    %c0_i32_0 = arith.constant 0 : i32
    %c0_i32_1 = arith.constant 0 : i32
    return %c0_i32, %c0_i32_0 : i32, i32
  }
  func.func @transform_20(%arg0: i32) -> (i32, i32) {
    %c0_i32 = arith.constant 0 : i32
    %c0_i32_0 = arith.constant 0 : i32
    %c0_i32_1 = arith.constant 0 : i32
    return %c0_i32, %c0_i32_0 : i32, i32
  }
  func.func @transform_21(%arg0: i32) -> (i32, i32) {
    %c0_i32 = arith.constant 0 : i32
    %c0_i32_0 = arith.constant 0 : i32
    %c0_i32_1 = arith.constant 0 : i32
    return %c0_i32, %c0_i32_0 : i32, i32
  }
  func.func @transform_22(%arg0: i32) -> (i32, i32, i32) {
    %c0_i32 = arith.constant 0 : i32
    %c0_i32_0 = arith.constant 0 : i32
    %c0_i32_1 = arith.constant 0 : i32
    return %arg0, %c0_i32, %c0_i32_0 : i32, i32, i32
  }
}

module attributes {stable_mosaic.version = 11 : i64} {
  func.func @_basic_block_kernel(%arg0: i32, %arg1: memref<1x326x8xf32, #tpu.memory_space<vmem>>, %arg2: memref<9x8x8xf32, #tpu.memory_space<vmem>>, %arg3: memref<1x8xf32, #tpu.memory_space<vmem>>, %arg4: memref<9x8x8xf32, #tpu.memory_space<vmem>>, %arg5: memref<1x8xf32, #tpu.memory_space<vmem>>, %arg6: memref<1x8x8xf32, #tpu.memory_space<vmem>>, %arg7: memref<1x8xf32, #tpu.memory_space<vmem>>, %arg8: memref<288x1xf32, #tpu.memory_space<vmem>>, %arg9: memref<1x288x8xf32, #tpu.memory_space<vmem>>, %arg10: memref<326x8xf32, #tpu.memory_space<vmem>>) attributes {dimension_semantics = [#tpu.dimension_semantics<parallel>], iteration_bounds = array<i64: 2>, scalar_prefetch = 0 : i64, scratch_operands = 1 : i64, tpu.core_type = #tpu.core_type<tc>, window_params = [{transform_indices = @transform_0, window_bounds = array<i64: 1, 326, 8>}, {pipeline_mode = #tpu.pipeline_mode<synchronous>, transform_indices = @transform_1, window_bounds = array<i64: 9, 8, 8>}, {pipeline_mode = #tpu.pipeline_mode<synchronous>, transform_indices = @transform_2, window_bounds = array<i64: 1, 8>}, {pipeline_mode = #tpu.pipeline_mode<synchronous>, transform_indices = @transform_3, window_bounds = array<i64: 9, 8, 8>}, {pipeline_mode = #tpu.pipeline_mode<synchronous>, transform_indices = @transform_4, window_bounds = array<i64: 1, 8>}, {pipeline_mode = #tpu.pipeline_mode<synchronous>, transform_indices = @transform_5, window_bounds = array<i64: 1, 8, 8>}, {pipeline_mode = #tpu.pipeline_mode<synchronous>, transform_indices = @transform_6, window_bounds = array<i64: 1, 8>}, {pipeline_mode = #tpu.pipeline_mode<synchronous>, transform_indices = @transform_7, window_bounds = array<i64: 288, 1>}, {transform_indices = @transform_8, window_bounds = array<i64: 1, 288, 8>}]} {
    %c0 = arith.constant 0 : index
    %c0_0 = arith.constant 0 : index
    %c0_1 = arith.constant 0 : index
    %0 = vector.load %arg1[%c0, %c0_0, %c0_1] : memref<1x326x8xf32, #tpu.memory_space<vmem>>, vector<1x326x8xf32>
    %1 = vector.shape_cast %0 : vector<1x326x8xf32> to vector<326x8xf32>
    %cst = arith.constant 0.000000e+00 : f32
    %2 = vector.broadcast %cst : f32 to vector<288x8xf32>
    %3 = vector.extract_strided_slice %1 {offsets = [0, 0], sizes = [288, 8], strides = [1, 1]} : vector<326x8xf32> to vector<288x8xf32>
    %c0_2 = arith.constant 0 : index
    %c0_3 = arith.constant 0 : index
    %c0_4 = arith.constant 0 : index
    %4 = vector.load %arg2[%c0_2, %c0_3, %c0_4] : memref<9x8x8xf32, #tpu.memory_space<vmem>>, vector<1x8x8xf32>
    %5 = vector.shape_cast %4 : vector<1x8x8xf32> to vector<8x8xf32>
    %cst_5 = arith.constant dense<0.000000e+00> : vector<288x8xf32>
    %6 = tpu.matmul %3, %5, %cst_5 {dimension_numbers = #tpu.dot_dimension_numbers<[1], [0], [0], [1], [0, 0, 1, 1], [], []>} : vector<288x8xf32>, vector<8x8xf32>, vector<288x8xf32> -> vector<288x8xf32>
    %7 = arith.addf %2, %6 : vector<288x8xf32>
    %8 = vector.extract_strided_slice %1 {offsets = [1, 0], sizes = [288, 8], strides = [1, 1]} : vector<326x8xf32> to vector<288x8xf32>
    %c1 = arith.constant 1 : index
    %c0_6 = arith.constant 0 : index
    %c0_7 = arith.constant 0 : index
    %9 = vector.load %arg2[%c1, %c0_6, %c0_7] : memref<9x8x8xf32, #tpu.memory_space<vmem>>, vector<1x8x8xf32>
    %10 = vector.shape_cast %9 : vector<1x8x8xf32> to vector<8x8xf32>
    %cst_8 = arith.constant dense<0.000000e+00> : vector<288x8xf32>
    %11 = tpu.matmul %8, %10, %cst_8 {dimension_numbers = #tpu.dot_dimension_numbers<[1], [0], [0], [1], [0, 0, 1, 1], [], []>} : vector<288x8xf32>, vector<8x8xf32>, vector<288x8xf32> -> vector<288x8xf32>
    %12 = arith.addf %7, %11 : vector<288x8xf32>
    %13 = vector.extract_strided_slice %1 {offsets = [2, 0], sizes = [288, 8], strides = [1, 1]} : vector<326x8xf32> to vector<288x8xf32>
    %c2 = arith.constant 2 : index
    %c0_9 = arith.constant 0 : index
    %c0_10 = arith.constant 0 : index
    %14 = vector.load %arg2[%c2, %c0_9, %c0_10] : memref<9x8x8xf32, #tpu.memory_space<vmem>>, vector<1x8x8xf32>
    %15 = vector.shape_cast %14 : vector<1x8x8xf32> to vector<8x8xf32>
    %cst_11 = arith.constant dense<0.000000e+00> : vector<288x8xf32>
    %16 = tpu.matmul %13, %15, %cst_11 {dimension_numbers = #tpu.dot_dimension_numbers<[1], [0], [0], [1], [0, 0, 1, 1], [], []>} : vector<288x8xf32>, vector<8x8xf32>, vector<288x8xf32> -> vector<288x8xf32>
    %17 = arith.addf %12, %16 : vector<288x8xf32>
    %18 = vector.extract_strided_slice %1 {offsets = [18, 0], sizes = [288, 8], strides = [1, 1]} : vector<326x8xf32> to vector<288x8xf32>
    %c3 = arith.constant 3 : index
    %c0_12 = arith.constant 0 : index
    %c0_13 = arith.constant 0 : index
    %19 = vector.load %arg2[%c3, %c0_12, %c0_13] : memref<9x8x8xf32, #tpu.memory_space<vmem>>, vector<1x8x8xf32>
    %20 = vector.shape_cast %19 : vector<1x8x8xf32> to vector<8x8xf32>
    %cst_14 = arith.constant dense<0.000000e+00> : vector<288x8xf32>
    %21 = tpu.matmul %18, %20, %cst_14 {dimension_numbers = #tpu.dot_dimension_numbers<[1], [0], [0], [1], [0, 0, 1, 1], [], []>} : vector<288x8xf32>, vector<8x8xf32>, vector<288x8xf32> -> vector<288x8xf32>
    %22 = arith.addf %17, %21 : vector<288x8xf32>
    %23 = vector.extract_strided_slice %1 {offsets = [19, 0], sizes = [288, 8], strides = [1, 1]} : vector<326x8xf32> to vector<288x8xf32>
    %c4 = arith.constant 4 : index
    %c0_15 = arith.constant 0 : index
    %c0_16 = arith.constant 0 : index
    %24 = vector.load %arg2[%c4, %c0_15, %c0_16] : memref<9x8x8xf32, #tpu.memory_space<vmem>>, vector<1x8x8xf32>
    %25 = vector.shape_cast %24 : vector<1x8x8xf32> to vector<8x8xf32>
    %cst_17 = arith.constant dense<0.000000e+00> : vector<288x8xf32>
    %26 = tpu.matmul %23, %25, %cst_17 {dimension_numbers = #tpu.dot_dimension_numbers<[1], [0], [0], [1], [0, 0, 1, 1], [], []>} : vector<288x8xf32>, vector<8x8xf32>, vector<288x8xf32> -> vector<288x8xf32>
    %27 = arith.addf %22, %26 : vector<288x8xf32>
    %28 = vector.extract_strided_slice %1 {offsets = [20, 0], sizes = [288, 8], strides = [1, 1]} : vector<326x8xf32> to vector<288x8xf32>
    %c5 = arith.constant 5 : index
    %c0_18 = arith.constant 0 : index
    %c0_19 = arith.constant 0 : index
    %29 = vector.load %arg2[%c5, %c0_18, %c0_19] : memref<9x8x8xf32, #tpu.memory_space<vmem>>, vector<1x8x8xf32>
    %30 = vector.shape_cast %29 : vector<1x8x8xf32> to vector<8x8xf32>
    %cst_20 = arith.constant dense<0.000000e+00> : vector<288x8xf32>
    %31 = tpu.matmul %28, %30, %cst_20 {dimension_numbers = #tpu.dot_dimension_numbers<[1], [0], [0], [1], [0, 0, 1, 1], [], []>} : vector<288x8xf32>, vector<8x8xf32>, vector<288x8xf32> -> vector<288x8xf32>
    %32 = arith.addf %27, %31 : vector<288x8xf32>
    %33 = vector.extract_strided_slice %1 {offsets = [36, 0], sizes = [288, 8], strides = [1, 1]} : vector<326x8xf32> to vector<288x8xf32>
    %c6 = arith.constant 6 : index
    %c0_21 = arith.constant 0 : index
    %c0_22 = arith.constant 0 : index
    %34 = vector.load %arg2[%c6, %c0_21, %c0_22] : memref<9x8x8xf32, #tpu.memory_space<vmem>>, vector<1x8x8xf32>
    %35 = vector.shape_cast %34 : vector<1x8x8xf32> to vector<8x8xf32>
    %cst_23 = arith.constant dense<0.000000e+00> : vector<288x8xf32>
    %36 = tpu.matmul %33, %35, %cst_23 {dimension_numbers = #tpu.dot_dimension_numbers<[1], [0], [0], [1], [0, 0, 1, 1], [], []>} : vector<288x8xf32>, vector<8x8xf32>, vector<288x8xf32> -> vector<288x8xf32>
    %37 = arith.addf %32, %36 : vector<288x8xf32>
    %38 = vector.extract_strided_slice %1 {offsets = [37, 0], sizes = [288, 8], strides = [1, 1]} : vector<326x8xf32> to vector<288x8xf32>
    %c7 = arith.constant 7 : index
    %c0_24 = arith.constant 0 : index
    %c0_25 = arith.constant 0 : index
    %39 = vector.load %arg2[%c7, %c0_24, %c0_25] : memref<9x8x8xf32, #tpu.memory_space<vmem>>, vector<1x8x8xf32>
    %40 = vector.shape_cast %39 : vector<1x8x8xf32> to vector<8x8xf32>
    %cst_26 = arith.constant dense<0.000000e+00> : vector<288x8xf32>
    %41 = tpu.matmul %38, %40, %cst_26 {dimension_numbers = #tpu.dot_dimension_numbers<[1], [0], [0], [1], [0, 0, 1, 1], [], []>} : vector<288x8xf32>, vector<8x8xf32>, vector<288x8xf32> -> vector<288x8xf32>
    %42 = arith.addf %37, %41 : vector<288x8xf32>
    %43 = vector.extract_strided_slice %1 {offsets = [38, 0], sizes = [288, 8], strides = [1, 1]} : vector<326x8xf32> to vector<288x8xf32>
    %c8 = arith.constant 8 : index
    %c0_27 = arith.constant 0 : index
    %c0_28 = arith.constant 0 : index
    %44 = vector.load %arg2[%c8, %c0_27, %c0_28] : memref<9x8x8xf32, #tpu.memory_space<vmem>>, vector<1x8x8xf32>
    %45 = vector.shape_cast %44 : vector<1x8x8xf32> to vector<8x8xf32>
    %cst_29 = arith.constant dense<0.000000e+00> : vector<288x8xf32>
    %46 = tpu.matmul %43, %45, %cst_29 {dimension_numbers = #tpu.dot_dimension_numbers<[1], [0], [0], [1], [0, 0, 1, 1], [], []>} : vector<288x8xf32>, vector<8x8xf32>, vector<288x8xf32> -> vector<288x8xf32>
    %47 = arith.addf %42, %46 : vector<288x8xf32>
    %c0_30 = arith.constant 0 : index
    %c0_31 = arith.constant 0 : index
    %48 = vector.load %arg3[%c0_30, %c0_31] : memref<1x8xf32, #tpu.memory_space<vmem>>, vector<1x8xf32>
    %49 = vector.broadcast %48 : vector<1x8xf32> to vector<288x8xf32>
    %50 = arith.addf %47, %49 : vector<288x8xf32>
    %cst_32 = arith.constant 0.000000e+00 : f32
    %51 = vector.broadcast %cst_32 : f32 to vector<288x8xf32>
    %52 = arith.maximumf %50, %51 : vector<288x8xf32>
    %c0_33 = arith.constant 0 : index
    %c0_34 = arith.constant 0 : index
    %53 = vector.load %arg8[%c0_33, %c0_34] : memref<288x1xf32, #tpu.memory_space<vmem>>, vector<288x1xf32>
    %54 = vector.broadcast %53 : vector<288x1xf32> to vector<288x8xf32>
    %55 = arith.mulf %52, %54 : vector<288x8xf32>
    %cst_35 = arith.constant 0.000000e+00 : f32
    %56 = vector.broadcast %cst_35 : f32 to vector<326x8xf32>
    %c0_36 = arith.constant 0 : index
    %c0_37 = arith.constant 0 : index
    %57 = vector.load %arg10[%c0_36, %c0_37] : memref<326x8xf32, #tpu.memory_space<vmem>>, vector<326x8xf32>
    tpu.vector_store %arg10[%c0_36, %c0_37], %56 {strides = array<i32>} : memref<326x8xf32, #tpu.memory_space<vmem>>, vector<326x8xf32>,
    %c19 = arith.constant 19 : index
    %c0_38 = arith.constant 0 : index
    %58 = vector.load %arg10[%c19, %c0_38] : memref<326x8xf32, #tpu.memory_space<vmem>>, vector<288x8xf32>
    tpu.vector_store %arg10[%c19, %c0_38], %55 {strides = array<i32>} : memref<326x8xf32, #tpu.memory_space<vmem>>, vector<288x8xf32>,
    %c0_39 = arith.constant 0 : index
    %c0_40 = arith.constant 0 : index
    %59 = vector.load %arg10[%c0_39, %c0_40] : memref<326x8xf32, #tpu.memory_space<vmem>>, vector<326x8xf32>
    %cst_41 = arith.constant 0.000000e+00 : f32
    %60 = vector.broadcast %cst_41 : f32 to vector<288x8xf32>
    %61 = vector.extract_strided_slice %59 {offsets = [0, 0], sizes = [288, 8], strides = [1, 1]} : vector<326x8xf32> to vector<288x8xf32>
    %c0_42 = arith.constant 0 : index
    %c0_43 = arith.constant 0 : index
    %c0_44 = arith.constant 0 : index
    %62 = vector.load %arg4[%c0_42, %c0_43, %c0_44] : memref<9x8x8xf32, #tpu.memory_space<vmem>>, vector<1x8x8xf32>
    %63 = vector.shape_cast %62 : vector<1x8x8xf32> to vector<8x8xf32>
    %cst_45 = arith.constant dense<0.000000e+00> : vector<288x8xf32>
    %64 = tpu.matmul %61, %63, %cst_45 {dimension_numbers = #tpu.dot_dimension_numbers<[1], [0], [0], [1], [0, 0, 1, 1], [], []>} : vector<288x8xf32>, vector<8x8xf32>, vector<288x8xf32> -> vector<288x8xf32>
    %65 = arith.addf %60, %64 : vector<288x8xf32>
    %66 = vector.extract_strided_slice %59 {offsets = [1, 0], sizes = [288, 8], strides = [1, 1]} : vector<326x8xf32> to vector<288x8xf32>
    %c1_46 = arith.constant 1 : index
    %c0_47 = arith.constant 0 : index
    %c0_48 = arith.constant 0 : index
    %67 = vector.load %arg4[%c1_46, %c0_47, %c0_48] : memref<9x8x8xf32, #tpu.memory_space<vmem>>, vector<1x8x8xf32>
    %68 = vector.shape_cast %67 : vector<1x8x8xf32> to vector<8x8xf32>
    %cst_49 = arith.constant dense<0.000000e+00> : vector<288x8xf32>
    %69 = tpu.matmul %66, %68, %cst_49 {dimension_numbers = #tpu.dot_dimension_numbers<[1], [0], [0], [1], [0, 0, 1, 1], [], []>} : vector<288x8xf32>, vector<8x8xf32>, vector<288x8xf32> -> vector<288x8xf32>
    %70 = arith.addf %65, %69 : vector<288x8xf32>
    %71 = vector.extract_strided_slice %59 {offsets = [2, 0], sizes = [288, 8], strides = [1, 1]} : vector<326x8xf32> to vector<288x8xf32>
    %c2_50 = arith.constant 2 : index
    %c0_51 = arith.constant 0 : index
    %c0_52 = arith.constant 0 : index
    %72 = vector.load %arg4[%c2_50, %c0_51, %c0_52] : memref<9x8x8xf32, #tpu.memory_space<vmem>>, vector<1x8x8xf32>
    %73 = vector.shape_cast %72 : vector<1x8x8xf32> to vector<8x8xf32>
    %cst_53 = arith.constant dense<0.000000e+00> : vector<288x8xf32>
    %74 = tpu.matmul %71, %73, %cst_53 {dimension_numbers = #tpu.dot_dimension_numbers<[1], [0], [0], [1], [0, 0, 1, 1], [], []>} : vector<288x8xf32>, vector<8x8xf32>, vector<288x8xf32> -> vector<288x8xf32>
    %75 = arith.addf %70, %74 : vector<288x8xf32>
    %76 = vector.extract_strided_slice %59 {offsets = [18, 0], sizes = [288, 8], strides = [1, 1]} : vector<326x8xf32> to vector<288x8xf32>
    %c3_54 = arith.constant 3 : index
    %c0_55 = arith.constant 0 : index
    %c0_56 = arith.constant 0 : index
    %77 = vector.load %arg4[%c3_54, %c0_55, %c0_56] : memref<9x8x8xf32, #tpu.memory_space<vmem>>, vector<1x8x8xf32>
    %78 = vector.shape_cast %77 : vector<1x8x8xf32> to vector<8x8xf32>
    %cst_57 = arith.constant dense<0.000000e+00> : vector<288x8xf32>
    %79 = tpu.matmul %76, %78, %cst_57 {dimension_numbers = #tpu.dot_dimension_numbers<[1], [0], [0], [1], [0, 0, 1, 1], [], []>} : vector<288x8xf32>, vector<8x8xf32>, vector<288x8xf32> -> vector<288x8xf32>
    %80 = arith.addf %75, %79 : vector<288x8xf32>
    %81 = vector.extract_strided_slice %59 {offsets = [19, 0], sizes = [288, 8], strides = [1, 1]} : vector<326x8xf32> to vector<288x8xf32>
    %c4_58 = arith.constant 4 : index
    %c0_59 = arith.constant 0 : index
    %c0_60 = arith.constant 0 : index
    %82 = vector.load %arg4[%c4_58, %c0_59, %c0_60] : memref<9x8x8xf32, #tpu.memory_space<vmem>>, vector<1x8x8xf32>
    %83 = vector.shape_cast %82 : vector<1x8x8xf32> to vector<8x8xf32>
    %cst_61 = arith.constant dense<0.000000e+00> : vector<288x8xf32>
    %84 = tpu.matmul %81, %83, %cst_61 {dimension_numbers = #tpu.dot_dimension_numbers<[1], [0], [0], [1], [0, 0, 1, 1], [], []>} : vector<288x8xf32>, vector<8x8xf32>, vector<288x8xf32> -> vector<288x8xf32>
    %85 = arith.addf %80, %84 : vector<288x8xf32>
    %86 = vector.extract_strided_slice %59 {offsets = [20, 0], sizes = [288, 8], strides = [1, 1]} : vector<326x8xf32> to vector<288x8xf32>
    %c5_62 = arith.constant 5 : index
    %c0_63 = arith.constant 0 : index
    %c0_64 = arith.constant 0 : index
    %87 = vector.load %arg4[%c5_62, %c0_63, %c0_64] : memref<9x8x8xf32, #tpu.memory_space<vmem>>, vector<1x8x8xf32>
    %88 = vector.shape_cast %87 : vector<1x8x8xf32> to vector<8x8xf32>
    %cst_65 = arith.constant dense<0.000000e+00> : vector<288x8xf32>
    %89 = tpu.matmul %86, %88, %cst_65 {dimension_numbers = #tpu.dot_dimension_numbers<[1], [0], [0], [1], [0, 0, 1, 1], [], []>} : vector<288x8xf32>, vector<8x8xf32>, vector<288x8xf32> -> vector<288x8xf32>
    %90 = arith.addf %85, %89 : vector<288x8xf32>
    %91 = vector.extract_strided_slice %59 {offsets = [36, 0], sizes = [288, 8], strides = [1, 1]} : vector<326x8xf32> to vector<288x8xf32>
    %c6_66 = arith.constant 6 : index
    %c0_67 = arith.constant 0 : index
    %c0_68 = arith.constant 0 : index
    %92 = vector.load %arg4[%c6_66, %c0_67, %c0_68] : memref<9x8x8xf32, #tpu.memory_space<vmem>>, vector<1x8x8xf32>
    %93 = vector.shape_cast %92 : vector<1x8x8xf32> to vector<8x8xf32>
    %cst_69 = arith.constant dense<0.000000e+00> : vector<288x8xf32>
    %94 = tpu.matmul %91, %93, %cst_69 {dimension_numbers = #tpu.dot_dimension_numbers<[1], [0], [0], [1], [0, 0, 1, 1], [], []>} : vector<288x8xf32>, vector<8x8xf32>, vector<288x8xf32> -> vector<288x8xf32>
    %95 = arith.addf %90, %94 : vector<288x8xf32>
    %96 = vector.extract_strided_slice %59 {offsets = [37, 0], sizes = [288, 8], strides = [1, 1]} : vector<326x8xf32> to vector<288x8xf32>
    %c7_70 = arith.constant 7 : index
    %c0_71 = arith.constant 0 : index
    %c0_72 = arith.constant 0 : index
    %97 = vector.load %arg4[%c7_70, %c0_71, %c0_72] : memref<9x8x8xf32, #tpu.memory_space<vmem>>, vector<1x8x8xf32>
    %98 = vector.shape_cast %97 : vector<1x8x8xf32> to vector<8x8xf32>
    %cst_73 = arith.constant dense<0.000000e+00> : vector<288x8xf32>
    %99 = tpu.matmul %96, %98, %cst_73 {dimension_numbers = #tpu.dot_dimension_numbers<[1], [0], [0], [1], [0, 0, 1, 1], [], []>} : vector<288x8xf32>, vector<8x8xf32>, vector<288x8xf32> -> vector<288x8xf32>
    %100 = arith.addf %95, %99 : vector<288x8xf32>
    %101 = vector.extract_strided_slice %59 {offsets = [38, 0], sizes = [288, 8], strides = [1, 1]} : vector<326x8xf32> to vector<288x8xf32>
    %c8_74 = arith.constant 8 : index
    %c0_75 = arith.constant 0 : index
    %c0_76 = arith.constant 0 : index
    %102 = vector.load %arg4[%c8_74, %c0_75, %c0_76] : memref<9x8x8xf32, #tpu.memory_space<vmem>>, vector<1x8x8xf32>
    %103 = vector.shape_cast %102 : vector<1x8x8xf32> to vector<8x8xf32>
    %cst_77 = arith.constant dense<0.000000e+00> : vector<288x8xf32>
    %104 = tpu.matmul %101, %103, %cst_77 {dimension_numbers = #tpu.dot_dimension_numbers<[1], [0], [0], [1], [0, 0, 1, 1], [], []>} : vector<288x8xf32>, vector<8x8xf32>, vector<288x8xf32> -> vector<288x8xf32>
    %105 = arith.addf %100, %104 : vector<288x8xf32>
    %c0_78 = arith.constant 0 : index
    %c0_79 = arith.constant 0 : index
    %106 = vector.load %arg5[%c0_78, %c0_79] : memref<1x8xf32, #tpu.memory_space<vmem>>, vector<1x8xf32>
    %107 = vector.broadcast %106 : vector<1x8xf32> to vector<288x8xf32>
    %108 = arith.addf %105, %107 : vector<288x8xf32>
    %109 = vector.extract_strided_slice %1 {offsets = [19, 0], sizes = [288, 8], strides = [1, 1]} : vector<326x8xf32> to vector<288x8xf32>
    %c0_80 = arith.constant 0 : index
    %c0_81 = arith.constant 0 : index
    %c0_82 = arith.constant 0 : index
    %110 = vector.load %arg6[%c0_80, %c0_81, %c0_82] : memref<1x8x8xf32, #tpu.memory_space<vmem>>, vector<1x8x8xf32>
    %111 = vector.shape_cast %110 : vector<1x8x8xf32> to vector<8x8xf32>
    %cst_83 = arith.constant dense<0.000000e+00> : vector<288x8xf32>
    %112 = tpu.matmul %109, %111, %cst_83 {dimension_numbers = #tpu.dot_dimension_numbers<[1], [0], [0], [1], [0, 0, 1, 1], [], []>} : vector<288x8xf32>, vector<8x8xf32>, vector<288x8xf32> -> vector<288x8xf32>
    %c0_84 = arith.constant 0 : index
    %c0_85 = arith.constant 0 : index
    %113 = vector.load %arg7[%c0_84, %c0_85] : memref<1x8xf32, #tpu.memory_space<vmem>>, vector<1x8xf32>
    %114 = vector.broadcast %113 : vector<1x8xf32> to vector<288x8xf32>
    %115 = arith.addf %112, %114 : vector<288x8xf32>
    %116 = arith.addf %108, %115 : vector<288x8xf32>
    %cst_86 = arith.constant 0.000000e+00 : f32
    %117 = vector.broadcast %cst_86 : f32 to vector<288x8xf32>
    %118 = arith.maximumf %116, %117 : vector<288x8xf32>
    %c0_87 = arith.constant 0 : index
    %c0_88 = arith.constant 0 : index
    %c0_89 = arith.constant 0 : index
    %119 = vector.load %arg9[%c0_87, %c0_88, %c0_89] : memref<1x288x8xf32, #tpu.memory_space<vmem>>, vector<1x288x8xf32>
    %120 = vector.shape_cast %119 : vector<1x288x8xf32> to vector<288x8xf32>
    %121 = vector.shape_cast %118 : vector<288x8xf32> to vector<1x288x8xf32>
    tpu.vector_store %arg9[%c0_87, %c0_88, %c0_89], %121 {strides = array<i32>} : memref<1x288x8xf32, #tpu.memory_space<vmem>>, vector<1x288x8xf32>,
    return
  }
  func.func @transform_0(%arg0: i32) -> (i32, i32, i32) {
    %c0_i32 = arith.constant 0 : i32
    %c0_i32_0 = arith.constant 0 : i32
    %c0_i32_1 = arith.constant 0 : i32
    return %arg0, %c0_i32, %c0_i32_0 : i32, i32, i32
  }
  func.func @transform_1(%arg0: i32) -> (i32, i32, i32) {
    %c0_i32 = arith.constant 0 : i32
    %c0_i32_0 = arith.constant 0 : i32
    %c0_i32_1 = arith.constant 0 : i32
    %c0_i32_2 = arith.constant 0 : i32
    return %c0_i32, %c0_i32_0, %c0_i32_1 : i32, i32, i32
  }
  func.func @transform_2(%arg0: i32) -> (i32, i32) {
    %c0_i32 = arith.constant 0 : i32
    %c0_i32_0 = arith.constant 0 : i32
    %c0_i32_1 = arith.constant 0 : i32
    return %c0_i32, %c0_i32_0 : i32, i32
  }
  func.func @transform_3(%arg0: i32) -> (i32, i32, i32) {
    %c0_i32 = arith.constant 0 : i32
    %c0_i32_0 = arith.constant 0 : i32
    %c0_i32_1 = arith.constant 0 : i32
    %c0_i32_2 = arith.constant 0 : i32
    return %c0_i32, %c0_i32_0, %c0_i32_1 : i32, i32, i32
  }
  func.func @transform_4(%arg0: i32) -> (i32, i32) {
    %c0_i32 = arith.constant 0 : i32
    %c0_i32_0 = arith.constant 0 : i32
    %c0_i32_1 = arith.constant 0 : i32
    return %c0_i32, %c0_i32_0 : i32, i32
  }
  func.func @transform_5(%arg0: i32) -> (i32, i32, i32) {
    %c0_i32 = arith.constant 0 : i32
    %c0_i32_0 = arith.constant 0 : i32
    %c0_i32_1 = arith.constant 0 : i32
    %c0_i32_2 = arith.constant 0 : i32
    return %c0_i32, %c0_i32_0, %c0_i32_1 : i32, i32, i32
  }
  func.func @transform_6(%arg0: i32) -> (i32, i32) {
    %c0_i32 = arith.constant 0 : i32
    %c0_i32_0 = arith.constant 0 : i32
    %c0_i32_1 = arith.constant 0 : i32
    return %c0_i32, %c0_i32_0 : i32, i32
  }
  func.func @transform_7(%arg0: i32) -> (i32, i32) {
    %c0_i32 = arith.constant 0 : i32
    %c0_i32_0 = arith.constant 0 : i32
    %c0_i32_1 = arith.constant 0 : i32
    return %c0_i32, %c0_i32_0 : i32, i32
  }
  func.func @transform_8(%arg0: i32) -> (i32, i32, i32) {
    %c0_i32 = arith.constant 0 : i32
    %c0_i32_0 = arith.constant 0 : i32
    %c0_i32_1 = arith.constant 0 : i32
    return %arg0, %c0_i32, %c0_i32_0 : i32, i32, i32
  }
}

</mosaic_0001>

<bundles_post_ra>
// kernel: _lambda_.3
= control target key start
LH: loop header
LB: loop body
LE: loop exit
PB: predicated region body
PF: predicated region fallthrough
CT: control target
= control target key end

     0   :  { %s5403_s12 = smov 0   ;;  %s6825_s0 = inlined_call_operand.vmem [shape: f32[2,326,4], index: 0, kind: input, shape index: {}]   ;;  %s6826_s1 = inlined_call_operand.vmem [shape: f32[9,4,4], index: 1, kind: input, shape index: {}]   ;;  %s6827_s2 = inlined_call_operand.vmem [shape: f32[1,4], index: 2, kind: input, shape index: {}]   ;;  %s6828_s3 = inlined_call_operand.vmem [shape: f32[2,288,4], index: 3, kind: output, shape index: {}]  }
   0x1 LB: > { %s3853_s13 = sadd.s32 4294967295, %s5381_s12   ;;  %p3857_p0 = scmp.ge.s32.totalorder %s5381_s12, 1  ;;  %s5381_s12 = sphi %s5403_s12, %s13_s12  }
   0x2   : > { %p137_p1 = scmp.lt.s32.totalorder %s5381_s12, 3 }
   0x4   : > { %p138_p2 = pnand %p3857_p0, %p137_p1 }
   0x6   : > { %141 = sbr.rel (%p138_p2) target bundleno = 563 (0x233), region = 32 }
   0xd   : > { %v3860_v0 = vld [vmem:[%s6826_s1 + $0x4] sm:$0xf]  ;;  %vm399_vm0 = vcmask 1043456   ;;  %v5417_v1 = vld [vmem:[%s6826_s1 + $0x10] sm:$0xf]  ;;  %p161_p3 = scmp.lt.s32.totalorder %s3853_s13, 1 }
   0xe   : > { %6851 = vst [vmem:[#allocation2_spill] sm:$0xff] %v5417_v1  ;;  %4537 = vmatprep.subr.msk.mxu1 %vm399_vm0, %v3860_v0  ;;  %4761 = vmatprep.subr.msk.mxu0 %vm399_vm0, %v5417_v1  ;;  %v212_v2 = vld [vmem:[%s6826_s1] sm:$0xf]  ;;  %v4049_v3 = vld [vmem:[%s6826_s1 + $0x14] sm:$0xf]  ;;  %vm252_vm1 = vcmask 1046528  }
   0xf   : > { %4538 = vmatpush3.msk.msra.mxu1 %vm399_vm0, %v3860_v0  ;;  %4762 = vmatpush3.msk.msra.mxu0 %vm399_vm0, %v5417_v1  ;;  %s6887_s13 = smov (!%p161_p3, %s3853_s13), 1  ;;  %vm326_vm2 = vcmask 31744   ;;  %vm1698_vm3 = vcmask 1044480   ;;  %v5499_v34 = vld [vmem:[%s6826_s1 + $0x18] sm:$0xf]  ;;  %vm970_vm4 = vcmask 1045504  }
  0x10   : > { %4593 = vmatprep.subr.msk.mxu1 %vm399_vm0, %v212_v2  ;;  %4817 = vmatprep.subr.msk.mxu0 %vm399_vm0, %v4049_v3  ;;  %s5331_s22 = smul.u32 328, %s6887_s13  ;;  %v5516_v42 = vld [vmem:[%s6826_s1 + $0x8] sm:$0xf]  ;;  %vm2857_vm5 = vcmask 1042432   ;;  %vm3289_vm6 = vcmask 1041408  }
  0x11   : > { %s5332_s11 = smul.u32 288, %s6887_s13 }
  0x12   : > { %s5439_s25 = scalar_lea.vmem %s6825_s0, %s5331_s22 }
  0x13   : > { %v5442_v4 = vld [vmem:[%s5439_s25] sm:$0xff]  ;;  %v5445_v5 = vld [vmem:[%s5439_s25 + $0x8] sm:$0xff]  ;;  %v5448_v6 = vld [vmem:[%s5439_s25 + $0x10] sm:$0xff]  ;;  %s6708_s18 = scalar_lea.vmem %s6828_s3, %s5332_s11 }
  0x14   : > { %v253_v7 = vrot.slane %v5442_v4, 1  ;;  %v254_v8 = vrot.slane %v5445_v5, 1  ;;  %v5453_v9 = vld [vmem:[%s5439_s25 + $0x18] sm:$0xff]  ;;  %v1699_v10 = vrot.slane %v5448_v6, 3  ;;  %v256_v11 = vrot.slane %v5448_v6, 1  ;;  %v5458_v12 = vld [vmem:[%s5439_s25 + $0x20] sm:$0xff] }
  0x15   : > { %v1700_v13 = vrot.slane %v5453_v9, 3  ;;  %v1702_v14 = vrot.slane %v5458_v12, 3  ;;  %v258_v15 = vrot.slane %v5453_v9, 1  ;;  %v5464_v16 = vld [vmem:[%s5439_s25 + $0x28] sm:$0xff]  ;;  %v260_v17 = vrot.slane %v5458_v12, 1  ;;  %v5468_v18 = vld [vmem:[%s5439_s25 + $0x30] sm:$0xff] }
  0x16   : > { %v255_v19 = vsel %vm252_vm1, %v253_v7, %v254_v8  ;;  %v257_v20 = vsel %vm252_vm1, %v254_v8, %v256_v11  ;;  %v1704_v21 = vrot.slane %v5464_v16, 3  ;;  %v1706_v22 = vrot.slane %v5468_v18, 3  ;;  %v5475_v23 = vld [vmem:[%s5439_s25 + $0x38] sm:$0xff]  ;;  %v5482_v27 = vld [vmem:[%s5439_s25 + $0x40] sm:$0xff]  ;;  %v5490_v31 = vld [vmem:[%s5439_s25 + $0x48] sm:$0xff] }
  0x17   : > { %4539 = vmatprep.mubr.msk.f32.mxu1 %vm326_vm2, %v255_v19  ;;  %v1701_v24 = vsel %vm1698_vm3, %v1699_v10, %v1700_v13  ;;  %v1703_v25 = vsel %vm1698_vm3, %v1700_v13, %v1702_v14  ;;  %v259_v26 = vsel %vm252_vm1, %v256_v11, %v258_v15  ;;  %v262_v29 = vrot.slane %v5464_v16, 1  ;;  %v5511_v41 = vld [vmem:[%s5439_s25 + $0x50] sm:$0xff]  ;;  %v5520_v43 = vld [vmem:[%s5439_s25 + $0x58] sm:$0xff]  ;;  %v5538_v52 = vld [vmem:[%s5439_s25 + $0x60] sm:$0xff] }
  0x18   : > { %4763 = vmatprep.mubr.msk.f32.mxu0 %vm326_vm2, %v1701_v24  ;;  %4540 = vmatmul.mubr.msk.f32.vlgmr.msra.gmra.mrb[0].mxu1 %vm326_vm2, %v257_v20  ;;  %v1705_v28 = vsel %vm1698_vm3, %v1702_v14, %v1704_v21  ;;  %v1708_v30 = vrot.slane %v5475_v23, 3  ;;  %v261_v32 = vsel %vm252_vm1, %v258_v15, %v260_v17  ;;  %v264_v33 = vrot.slane %v5468_v18, 1  ;;  %6852 = vst [vmem:[#allocation3_spill] sm:$0xff] %v5511_v41  ;;  %v5542_v53 = vld [vmem:[%s5439_s25 + $0x68] sm:$0xff]  ;;  %v5556_v62 = vld [vmem:[%s5439_s25 + $0x70] sm:$0xff]  ;;  %v5560_v63 = vld [vmem:[%s5439_s25 + $0x78] sm:$0xff] }
  0x19   : > { %4594 = vmatpush3.msk.msra.mxu1 %vm399_vm0, %v212_v2  ;;  %4764 = vmatmul.mubr.msk.f32.vlgmr.msra.gmra.mrb[0].mxu0 %vm326_vm2, %v1703_v25  ;;  %v1707_v35 = vsel %vm1698_vm3, %v1704_v21, %v1706_v22  ;;  %v263_v36 = vsel %vm252_vm1, %v260_v17, %v262_v29  ;;  %v1710_v37 = vrot.slane %v5482_v27, 3  ;;  %v266_v38 = vrot.slane %v5475_v23, 1  ;;  %6853 = vst [vmem:[#allocation4_spill] sm:$0xff] %v5520_v43  ;;  %v5574_v14 = vld [vmem:[%s5439_s25 + $0x80] sm:$0xff]  ;;  %v5578_v15 = vld [vmem:[%s5439_s25 + $0x88] sm:$0xff] }
  0x1a   : > { %4818 = vmatpush3.msk.msra.mxu0 %vm399_vm0, %v4049_v3  ;;  %4542 = vmatprep.mubr.msk.f32.mxu1 %vm326_vm2, %v259_v26  ;;  %v1709_v39 = vsel %vm1698_vm3, %v1706_v22, %v1708_v30  ;;  %v1712_v40 = vrot.slane %v5490_v31, 3  ;;  %v265_v44 = vsel %vm252_vm1, %v262_v29, %v264_v33  ;;  %v268_v45 = vrot.slane %v5482_v27, 1  ;;  %v5596_v29 = vld [vmem:[%s5439_s25 + $0x98] sm:$0xff] }
  0x1b   : > { %4766 = vmatprep.mubr.msk.f32.mxu0 %vm326_vm2, %v1705_v28  ;;  %4873 = vmatprep.subr.msk.mxu0 %vm399_vm0, %v5499_v34  ;;  %v1711_v46 = vsel %vm1698_vm3, %v1708_v30, %v1710_v37  ;;  %v267_v47 = vsel %vm252_vm1, %v264_v33, %v266_v38  ;;  %v1714_v48 = vrot.slane %v5511_v41, 3  ;;  %v270_v49 = vrot.slane %v5490_v31, 1  ;;  %v5592_v28 = vld [vmem:[%s5439_s25 + $0x90] sm:$0xff] }
  0x1c   : > { %4543 = vmatmul.mubr.msk.f32.gmra.mrb[2].mxu1 %vm326_vm2, %v261_v32  ;;  %4649 = vmatprep.subr.msk.mxu1 %vm399_vm0, %v5516_v42  ;;  %v1713_v50 = vsel %vm1698_vm3, %v1710_v37, %v1712_v40  ;;  %v1716_v51 = vrot.slane %v5520_v43, 3  ;;  %v269_v54 = vsel %vm252_vm1, %v266_v38, %v268_v45  ;;  %v272_v55 = vrot.slane %v5511_v41, 1 }
  0x1d   : > { %4767 = vmatmul.mubr.msk.f32.gmra.mrb[2].mxu0 %vm326_vm2, %v1707_v35  ;;  %4545 = vmatprep.mubr.msk.f32.mxu1 %vm326_vm2, %v263_v36  ;;  %v1715_v56 = vsel %vm1698_vm3, %v1712_v40, %v1714_v48  ;;  %v271_v57 = vsel %vm252_vm1, %v268_v45, %v270_v49  ;;  %v1718_v58 = vrot.slane %v5538_v52, 3  ;;  %v274_v59 = vrot.slane %v5520_v43, 1  ;;  %v5610_v40 = vld [vmem:[%s5439_s25 + $0xa0] sm:$0xff] }
  0x1e   : > { %4769 = vmatprep.mubr.msk.f32.mxu0 %vm326_vm2, %v1709_v39  ;;  %v1717_v60 = vsel %vm1698_vm3, %v1714_v48, %v1716_v51  ;;  %v1720_v61 = vrot.slane %v5542_v53, 3  ;;  %v273_v0 = vsel %vm252_vm1, %v270_v49, %v272_v55  ;;  %v276_v2 = vrot.slane %v5538_v52, 1 }
  0x1f   : > { %v1719_v3 = vsel %vm1698_vm3, %v1716_v51, %v1718_v58  ;;  %v275_v7 = vsel %vm252_vm1, %v272_v55, %v274_v59  ;;  %v1722_v8 = vrot.slane %v5556_v62, 3  ;;  %v278_v10 = vrot.slane %v5542_v53, 1  ;;  %v5626_v55 = vld [vmem:[%s5439_s25 + $0xa8] sm:$0xff] }
  0x20   : > { %4546 = vmatmul.mubr.msk.f32.gmra.mrb[4].mxu1 %vm326_vm2, %v265_v44  ;;  %v1721_v11 = vsel %vm1698_vm3, %v1718_v58, %v1720_v61  ;;  %v1724_v13 = vrot.slane %v5560_v63, 3  ;;  %v277_v17 = vsel %vm252_vm1, %v274_v59, %v276_v2  ;;  %v280_v19 = vrot.slane %v5556_v62, 1 }
  0x21   : > { %4770 = vmatmul.mubr.msk.f32.gmra.mrb[4].mxu0 %vm326_vm2, %v1711_v46  ;;  %4548 = vmatprep.mubr.msk.f32.mxu1 %vm326_vm2, %v267_v47  ;;  %v1723_v20 = vsel %vm1698_vm3, %v1720_v61, %v1722_v8  ;;  %v279_v21 = vsel %vm252_vm1, %v276_v2, %v278_v10  ;;  %v1726_v22 = vrot.slane %v5574_v14, 3  ;;  %v282_v24 = vrot.slane %v5560_v63, 1 }
  0x22   : > { %4772 = vmatprep.mubr.msk.f32.mxu0 %vm326_vm2, %v1713_v50  ;;  %v1725_v25 = vsel %vm1698_vm3, %v1722_v8, %v1724_v13  ;;  %v1728_v26 = vrot.slane %v5578_v15, 3  ;;  %v281_v30 = vsel %vm252_vm1, %v278_v10, %v280_v19  ;;  %v284_v32 = vrot.slane %v5574_v14, 1 }
  0x23   : > { %v1727_v33 = vsel %vm1698_vm3, %v1724_v13, %v1726_v22  ;;  %v283_v35 = vsel %vm252_vm1, %v280_v19, %v282_v24  ;;  %v1730_v36 = vrot.slane %v5592_v28, 3  ;;  %v286_v37 = vrot.slane %v5578_v15, 1 }
  0x24   : > { %4549 = vmatmul.mubr.msk.f32.gmra.mrb[6].mxu1 %vm326_vm2, %v269_v54  ;;  %v1729_v38 = vsel %vm1698_vm3, %v1726_v22, %v1728_v26  ;;  %v1732_v39 = vrot.slane %v5596_v29, 3  ;;  %v285_v44 = vsel %vm252_vm1, %v282_v24, %v284_v32  ;;  %v288_v45 = vrot.slane %v5592_v28, 1  ;;  %v5666_v24 = vld [vmem:[%s5439_s25 + $0xc8] sm:$0xff] }
  0x25   : > { %4773 = vmatmul.mubr.msk.f32.gmra.mrb[6].mxu0 %vm326_vm2, %v1715_v56  ;;  %4551 = vmatprep.mubr.msk.f32.mxu1 %vm326_vm2, %v271_v57  ;;  %v1731_v46 = vsel %vm1698_vm3, %v1728_v26, %v1730_v36  ;;  %v287_v47 = vsel %vm252_vm1, %v284_v32, %v286_v37  ;;  %v6829_v48 = vrot.slane %v5610_v40, 3  ;;  %v290_v49 = vrot.slane %v5596_v29, 1 }
  0x26   : > { %4775 = vmatprep.mubr.msk.f32.mxu0 %vm326_vm2, %v1717_v60  ;;  %v1733_v50 = vsel %vm1698_vm3, %v1730_v36, %v1732_v39  ;;  %v2130_v51 = vrot.slane %v5448_v6, 4  ;;  %v2131_v54 = vrot.slane %v5453_v9, 4  ;;  %v289_v56 = vsel %vm252_vm1, %v286_v37, %v288_v45  ;;  %v5689_v37 = vld [vmem:[%s5439_s25 + $0xd0] sm:$0xff] }
  0x27   : > { %v292_v57 = vrot.slane %v5610_v40, 1  ;;  %v1735_v58 = vsel %vm1698_vm3, %v1732_v39, %v6829_v48  ;;  %v291_v59 = vsel %vm252_vm1, %v288_v45, %v290_v49  ;;  %v2133_v60 = vrot.slane %v5458_v12, 4  ;;  %v5696_v39 = vld [vmem:[%s5439_s25 + $0xd8] sm:$0xff]  ;;  %v5811_v48 = vld [vmem:[%s5439_s25 + $0x120] sm:$0xff] }
  0x28   : > { %4552 = vmatmul.mubr.msk.f32.gmra.mrb[8].mxu1 %vm326_vm2, %v273_v0  ;;  %v294_v61 = vrot.slane %v5626_v55, 1  ;;  %v5641_v0 = vld [vmem:[%s5439_s25 + $0xb0] sm:$0xff]  ;;  %v2132_v2 = vsel %vm399_vm0, %v2130_v51, %v2131_v54  ;;  %v2139_v22 = vrot.slane %v5475_v23, 4  ;;  %v302_v36 = vrot.slane %v5666_v24, 1  ;;  %v5715_v51 = vld [vmem:[%s5439_s25 + $0xe0] sm:$0xff] }
  0x29   : > { %4776 = vmatmul.mubr.msk.f32.gmra.mrb[8].mxu0 %vm326_vm2, %v1719_v3  ;;  %4554 = vmatprep.mubr.msk.f32.mxu1 %vm326_vm2, %v275_v7  ;;  %v2135_v3 = vrot.slane %v5464_v16, 4  ;;  %v5646_v7 = vld [vmem:[%s5439_s25 + $0xb8] sm:$0xff]  ;;  %v293_v8 = vsel %vm252_vm1, %v290_v49, %v292_v57  ;;  %v296_v10 = vrot.slane %v5641_v0, 1  ;;  %v304_v45 = vrot.slane %v5689_v37, 1 }
  0x2a   : > { %4778 = vmatprep.mubr.msk.f32.mxu0 %vm326_vm2, %v1721_v11  ;;  %v2134_v11 = vsel %vm399_vm0, %v2131_v54, %v2133_v60  ;;  %v295_v13 = vsel %vm252_vm1, %v292_v57, %v294_v61  ;;  %v298_v19 = vrot.slane %v5646_v7, 1  ;;  %v2145_v49 = vrot.slane %v5511_v41, 4  ;;  %v5722_v57 = vld [vmem:[%s5439_s25 + $0xe8] sm:$0xff] }
  0x2b   : > { %v297_v26 = vsel %vm252_vm1, %v294_v61, %v296_v10 }
  0x2c   : > { %4555 = vmatmul.mubr.msk.f32.gmra.mrb[10].mxu1 %vm326_vm2, %v277_v17  ;;  %v2137_v17 = vrot.slane %v5468_v18, 4 }
  0x2d   : > { %4779 = vmatmul.mubr.msk.f32.gmra.mrb[10].mxu0 %vm326_vm2, %v1723_v20  ;;  %4557 = vmatprep.mubr.msk.f32.mxu1 %vm326_vm2, %v279_v21  ;;  %v5659_v20 = vld [vmem:[%s5439_s25 + $0xc0] sm:$0xff]  ;;  %v5662_v21 = vsel %vm399_vm0, %v2133_v60, %v2135_v3 }
  0x2e   : > { %4781 = vmatprep.mubr.msk.f32.mxu0 %vm326_vm2, %v1725_v25  ;;  %v5672_v25 = vld [vmem:[%s6826_s1 + $0x1c] sm:$0xf]  ;;  %v5683_v32 = vsel %vm399_vm0, %v2135_v3, %v2137_v17  ;;  %v310_v3 = vrot.slane %v5722_v57, 1 }
  0x30   : > { %4558 = vmatmul.mubr.msk.f32.gmra.mrb[12].mxu1 %vm326_vm2, %v281_v30  ;;  %v300_v30 = vrot.slane %v5659_v20, 1 }
  0x31   : > { %4782 = vmatmul.mubr.msk.f32.gmra.mrb[12].mxu0 %vm326_vm2, %v1727_v33  ;;  %4560 = vmatprep.mubr.msk.f32.mxu1 %vm326_vm2, %v283_v35  ;;  %v299_v33 = vsel %vm252_vm1, %v296_v10, %v298_v19  ;;  %v2141_v35 = vrot.slane %v5482_v27, 4 }
  0x32   : > { %4784 = vmatprep.mubr.msk.f32.mxu0 %vm326_vm2, %v1729_v38  ;;  %v5692_v38 = vsel %vm399_vm0, %v2137_v17, %v2139_v22 }
  0x34   : > { %4561 = vmatmul.mubr.msk.f32.gmra.mrb[14].mxu1 %vm326_vm2, %v285_v44  ;;  %v301_v44 = vsel %vm252_vm1, %v298_v19, %v300_v30 }
  0x35   : > { %4785 = vmatmul.mubr.msk.f32.gmra.mrb[14].mxu0 %vm326_vm2, %v1731_v46  ;;  %4563 = vmatprep.mubr.msk.f32.mxu1 %vm326_vm2, %v287_v47  ;;  %v5709_v46 = vsel %vm399_vm0, %v2139_v22, %v2141_v35  ;;  %v303_v47 = vsel %vm252_vm1, %v300_v30, %v302_v36  ;;  %v2153_v30 = vrot.slane %v5556_v62, 4 }
  0x36   : > { %4787 = vmatprep.mubr.msk.f32.mxu0 %vm326_vm2, %v1733_v50  ;;  %v306_v50 = vrot.slane %v5696_v39, 1 }
  0x38   : > { %4564 = vmatmul.mubr.msk.f32.gmra.mrb[16].mxu1 %vm326_vm2, %v289_v56  ;;  %v2147_v56 = vrot.slane %v5520_v43, 4  ;;  %v307_v61 = vsel %vm252_vm1, %v304_v45, %v306_v50 }
  0x39   : > { %4788 = vmatmul.mubr.msk.f32.gmra.mrb[16].mxu0 %vm326_vm2, %v1735_v58  ;;  %4566 = vmatprep.mubr.msk.f32.mxu1 %vm326_vm2, %v291_v59  ;;  %v305_v58 = vsel %vm252_vm1, %v302_v36, %v304_v45  ;;  %v308_v59 = vrot.slane %v5715_v51, 1 }
  0x3a   : > { %4819 = vmatprep.mubr.msk.f32.mxu0 %vm326_vm2, %v2132_v2  ;;  %v2149_v2 = vrot.slane %v5538_v52, 4  ;;  %v5742_v10 = vsel %vm399_vm0, %v2145_v49, %v2147_v56 }
  0x3b   : > { %v309_v17 = vsel %vm252_vm1, %v306_v50, %v308_v59 }
  0x3c   : > { %4567 = vmatmul.mubr.msk.f32.gmra.mrb[18].mxu1 %vm326_vm2, %v293_v8  ;;  %v5739_v8 = vld [vmem:[%s5439_s25 + $0xf0] sm:$0xff]  ;;  %v5757_v22 = vsel %vm399_vm0, %v2147_v56, %v2149_v2  ;;  %v2157_v56 = vrot.slane %v5574_v14, 4 }
  0x3d   : > { %4820 = vmatmul.mubr.msk.f32.vlgmr.msra.gmra.mrb[0].mxu0 %vm326_vm2, %v2134_v11  ;;  %4569 = vmatprep.mubr.msk.f32.mxu1 %vm326_vm2, %v295_v13  ;;  %v2151_v11 = vrot.slane %v5542_v53, 4  ;;  %v5746_v13 = vld [vmem:[%s5439_s25 + $0xf8] sm:$0xff]  ;;  %v312_v19 = vrot.slane %v5739_v8, 1 }
  0x3e   : > { %4874 = vmatpush3.msk.msra.mxu0 %vm399_vm0, %v5499_v34  ;;  %4822 = vmatprep.mubr.msk.f32.mxu0 %vm326_vm2, %v5662_v21  ;;  %v2143_v34 = vrot.slane %v5490_v31, 4 }
  0x3f   : > { %4929 = vmatprep.subr.msk.mxu0 %vm399_vm0, %v5672_v25  ;;  %v5766_v36 = vsel %vm399_vm0, %v2149_v2, %v2151_v11  ;;  %v313_v45 = vsel %vm252_vm1, %v310_v3, %v312_v19  ;;  %v2159_v2 = vrot.slane %v5578_v15, 4 }
  0x40   : > { %4570 = vmatmul.mubr.msk.f32.gmra.mrb[20].mxu1 %vm326_vm2, %v297_v26  ;;  %v5718_v54 = vsel %vm399_vm0, %v2141_v35, %v2143_v34  ;;  %v5733_v60 = vsel %vm399_vm0, %v2143_v34, %v2145_v49  ;;  %v311_v26 = vsel %vm252_vm1, %v308_v59, %v310_v3  ;;  %v5763_v35 = vld [vmem:[%s5439_s25 + $0x100] sm:$0xff]  ;;  %v2155_v34 = vrot.slane %v5560_v63, 4  ;;  %v5787_v59 = vld [vmem:[%s5439_s25 + $0x110] sm:$0xff]  ;;  %v5794_v3 = vld [vmem:[%s5439_s25 + $0x118] sm:$0xff] }
  0x41   : > { %4823 = vmatmul.mubr.msk.f32.gmra.mrb[2].mxu0 %vm326_vm2, %v5683_v32  ;;  %4572 = vmatprep.mubr.msk.f32.mxu1 %vm326_vm2, %v299_v33  ;;  %v314_v33 = vrot.slane %v5746_v13, 1  ;;  %v5781_v49 = vsel %vm399_vm0, %v2151_v11, %v2153_v30 }
  0x42   : > { %4825 = vmatprep.mubr.msk.f32.mxu0 %vm326_vm2, %v5692_v38 }
  0x43   : > { %v315_v50 = vsel %vm252_vm1, %v312_v19, %v314_v33  ;;  %v5805_v19 = vsel %vm399_vm0, %v2155_v34, %v2157_v56 }
  0x44   : > { %4573 = vmatmul.mubr.msk.f32.gmra.mrb[22].mxu1 %vm326_vm2, %v301_v44  ;;  %v5770_v44 = vld [vmem:[%s5439_s25 + $0x108] sm:$0xff]  ;;  %6855 = vst [vmem:[#allocation6_spill] sm:$0xff] %v5805_v19 }
  0x45   : > { %4826 = vmatmul.mubr.msk.f32.gmra.mrb[4].mxu0 %vm326_vm2, %v5709_v46  ;;  %4575 = vmatprep.mubr.msk.f32.mxu1 %vm326_vm2, %v303_v47  ;;  %v316_v47 = vrot.slane %v5763_v35, 1 }
  0x46   : > { %4828 = vmatprep.mubr.msk.f32.mxu0 %vm326_vm2, %v5718_v54 }
  0x47   : > { %v317_v11 = vsel %vm252_vm1, %v314_v33, %v316_v47  ;;  %v2163_v33 = vrot.slane %v5596_v29, 4 }
  0x48   : > { %4576 = vmatmul.mubr.msk.f32.gmra.mrb[24].mxu1 %vm326_vm2, %v305_v58  ;;  %v318_v58 = vrot.slane %v5770_v44, 1 }
  0x49   : > { %4829 = vmatmul.mubr.msk.f32.gmra.mrb[6].mxu0 %vm326_vm2, %v5733_v60  ;;  %4578 = vmatprep.mubr.msk.f32.mxu1 %vm326_vm2, %v307_v61  ;;  %v5790_v61 = vsel %vm399_vm0, %v2153_v30, %v2155_v34  ;;  %v2161_v30 = vrot.slane %v5592_v28, 4 }
  0x4a   : > { %4831 = vmatprep.mubr.msk.f32.mxu0 %vm326_vm2, %v5742_v10  ;;  %6854 = vst [vmem:[#allocation5_spill] sm:$0xff] %v5790_v61 }
  0x4b   : > { %v5826_v1 = vsel %vm399_vm0, %v2159_v2, %v2161_v30 }
  0x4c   : > { %4579 = vmatmul.mubr.msk.f32.gmra.mrb[26].mxu1 %vm326_vm2, %v309_v17  ;;  %v320_v17 = vrot.slane %v5787_v59, 1 }
  0x4d   : > { %4832 = vmatmul.mubr.msk.f32.gmra.mrb[8].mxu0 %vm326_vm2, %v5757_v22  ;;  %4581 = vmatprep.mubr.msk.f32.mxu1 %vm326_vm2, %v311_v26  ;;  %v319_v26 = vsel %vm252_vm1, %v316_v47, %v318_v58  ;;  %v324_v47 = vrot.slane %v5811_v48, 1 }
  0x4e   : > { %4834 = vmatprep.mubr.msk.f32.mxu0 %vm326_vm2, %v5766_v36  ;;  %v321_v34 = vsel %vm252_vm1, %v318_v58, %v320_v17 }
  0x50   : > { %4582 = vmatmul.mubr.msk.f32.gmra.mrb[28].mxu1 %vm326_vm2, %v313_v45  ;;  %v322_v45 = vrot.slane %v5794_v3, 1 }
  0x51   : > { %4835 = vmatmul.mubr.msk.f32.gmra.mrb[10].mxu0 %vm326_vm2, %v5781_v49  ;;  %4584 = vmatprep.mubr.msk.f32.mxu1 %vm326_vm2, %v315_v50  ;;  %v5814_v50 = vsel %vm399_vm0, %v2157_v56, %v2159_v2 }
  0x52   : > { %4837 = vmatprep.mubr.msk.f32.mxu0 %vm326_vm2, %v5790_v61  ;;  %v323_v56 = vsel %vm252_vm1, %v320_v17, %v322_v45  ;;  %v2165_v61 = vrot.slane %v5610_v40, 4  ;;  %v325_v58 = vsel %vm252_vm1, %v322_v45, %v324_v47  ;;  %v2169_v17 = vrot.slane %v5641_v0, 4  ;;  %v5869_v47 = vld [vmem:[%s6826_s1 + $0xc] sm:$0xf] }
  0x53   : > { %6856 = vst [vmem:[#allocation7_spill] sm:$0xff] %v5869_v47 }
  0x54   : > { %4585 = vmatmul.mubr.msk.f32.gmra.mrb[30].mxu1 %vm326_vm2, %v317_v11  ;;  %v5831_v11 = vsel %vm399_vm0, %v2161_v30, %v2163_v33  ;;  %v5842_v2 = vsel %vm399_vm0, %v2163_v33, %v2165_v61  ;;  %v2171_v30 = vrot.slane %v5646_v7, 4  ;;  %v2173_v33 = vrot.slane %v5659_v20, 4 }
  0x55   : > { %4838 = vmatmul.mubr.msk.f32.gmra.mrb[12].mxu0 %vm326_vm2, %v5805_v19  ;;  %4587 = vmatprep.mubr.msk.f32.mxu1 %vm326_vm2, %v319_v26  ;;  %v2167_v19 = vrot.slane %v5626_v55, 4 }
  0x56   : > { %4840 = vmatprep.mubr.msk.f32.mxu0 %vm326_vm2, %v5814_v50 }
  0x57   : > { %v5846_v26 = vsel %vm399_vm0, %v2165_v61, %v2167_v19  ;;  %v5857_v45 = vsel %vm399_vm0, %v2167_v19, %v2169_v17  ;;  %v5861_v61 = vsel %vm399_vm0, %v2169_v17, %v2171_v30  ;;  %v5880_v19 = vsel %vm399_vm0, %v2171_v30, %v2173_v33 }
  0x58   : > { %4588 = vmatmul.mubr.msk.f32.gmra.mrb[32].mxu1 %vm326_vm2, %v321_v34  ;;  %v2175_v34 = vrot.slane %v5666_v24, 4  ;;  %6857 = vst [vmem:[#allocation8_spill] sm:$0xff] %v5880_v19  ;;  %v2179_v17 = vrot.slane %v5696_v39, 4  ;;  %v2181_v30 = vrot.slane %v5715_v51, 4 }
  0x59   : > { %4841 = vmatmul.mubr.msk.f32.gmra.mrb[14].mxu0 %vm326_vm2, %v5826_v1  ;;  %4590 = vmatprep.mubr.msk.f32.mxu1 %vm326_vm2, %v323_v56  ;;  %v2177_v56 = vrot.slane %v5689_v37, 4 }
  0x5a   : > { %4843 = vmatprep.mubr.msk.f32.mxu0 %vm326_vm2, %v5831_v11 }
  0x5c   : > { %4591 = vmatmul.mubr.msk.f32.gmra.mrb[34].mxu1 %vm326_vm2, %v325_v58  ;;  %v5884_v58 = vsel %vm399_vm0, %v2173_v33, %v2175_v34  ;;  %v5902_v33 = vsel %vm399_vm0, %v2177_v56, %v2179_v17 }
  0x5d   : > { %4844 = vmatmul.mubr.msk.f32.gmra.mrb[16].mxu0 %vm326_vm2, %v5842_v2  ;;  %4595 = vmatprep.mubr.msk.f32.mxu1 %vm326_vm2, %v5442_v4  ;;  %6858 = vst [vmem:[#allocation9_spill] sm:$0xff] %v5884_v58  ;;  %6860 = vst [vmem:[#allocation11_spill] sm:$0xff] %v5902_v33 }
  0x5e   : > { %4846 = vmatprep.mubr.msk.f32.mxu0 %vm326_vm2, %v5846_v26 }
  0x60   : > { %4596 = vmatmul.mubr.msk.f32.vlgmr.msra.gmra.mrb[0].mxu1 %vm326_vm2, %v5445_v5 }
  0x61   : > { %4650 = vmatpush3.msk.msra.mxu1 %vm399_vm0, %v5516_v42  ;;  %4847 = vmatmul.mubr.msk.f32.gmra.mrb[18].mxu0 %vm326_vm2, %v5857_v45  ;;  %v5898_v42 = vsel %vm399_vm0, %v2175_v34, %v2177_v56  ;;  %v5914_v34 = vsel %vm399_vm0, %v2179_v17, %v2181_v30  ;;  %v2185_v56 = vrot.slane %v5739_v8, 4 }
  0x62   : > { %4598 = vmatprep.mubr.msk.f32.mxu1 %vm326_vm2, %v5448_v6  ;;  %4849 = vmatprep.mubr.msk.f32.mxu0 %vm326_vm2, %v5861_v61  ;;  %6859 = vst [vmem:[#allocation10_spill] sm:$0xff] %v5898_v42  ;;  %6861 = vst [vmem:[#allocation12_spill] sm:$0xff] %v5914_v34 }
  0x63   : > { %4705 = vmatprep.subr.msk.mxu1 %vm399_vm0, %v5869_v47  ;;  %v2183_v47 = vrot.slane %v5722_v57, 4 }
  0x64   : > { %4599 = vmatmul.mubr.msk.f32.gmra.mrb[2].mxu1 %vm326_vm2, %v5453_v9 }
  0x65   : > { %4850 = vmatmul.mubr.msk.f32.gmra.mrb[20].mxu0 %vm326_vm2, %v5880_v19  ;;  %4601 = vmatprep.mubr.msk.f32.mxu1 %vm326_vm2, %v5458_v12  ;;  %v2187_v19 = vrot.slane %v5746_v13, 4  ;;  %v5930_v17 = vsel %vm399_vm0, %v2183_v47, %v2185_v56 }
  0x66   : > { %4852 = vmatprep.mubr.msk.f32.mxu0 %vm326_vm2, %v5884_v58  ;;  %v5918_v58 = vsel %vm399_vm0, %v2181_v30, %v2183_v47  ;;  %6863 = vst [vmem:[#allocation14_spill] sm:$0xff] %v5930_v17  ;;  %v2189_v30 = vrot.slane %v5763_v35, 4 }
  0x67   : > { %6862 = vst [vmem:[#allocation13_spill] sm:$0xff] %v5918_v58 }
  0x68   : > { %4602 = vmatmul.mubr.msk.f32.gmra.mrb[4].mxu1 %vm326_vm2, %v5464_v16  ;;  %v5946_v47 = vsel %vm399_vm0, %v2187_v19, %v2189_v30 }
  0x69   : > { %4853 = vmatmul.mubr.msk.f32.gmra.mrb[22].mxu0 %vm326_vm2, %v5898_v42  ;;  %4604 = vmatprep.mubr.msk.f32.mxu1 %vm326_vm2, %v5468_v18  ;;  %v2191_v42 = vrot.slane %v5770_v44, 4 }
  0x6a   : > { %4855 = vmatprep.mubr.msk.f32.mxu0 %vm326_vm2, %v5902_v33  ;;  %v5934_v33 = vsel %vm399_vm0, %v2185_v56, %v2187_v19  ;;  %v2193_v56 = vrot.slane %v5787_v59, 4 }
  0x6b   : > { %6864 = vst [vmem:[#allocation15_spill] sm:$0xff] %v5934_v33 }
  0x6c   : > { %4605 = vmatmul.mubr.msk.f32.gmra.mrb[6].mxu1 %vm326_vm2, %v5475_v23  ;;  %v5965_v19 = vsel %vm399_vm0, %v2191_v42, %v2193_v56 }
  0x6d   : > { %4856 = vmatmul.mubr.msk.f32.gmra.mrb[24].mxu0 %vm326_vm2, %v5914_v34  ;;  %4607 = vmatprep.mubr.msk.f32.mxu1 %vm326_vm2, %v5482_v27  ;;  %v2195_v34 = vrot.slane %v5794_v3, 4 }
  0x6e   : > { %4858 = vmatprep.mubr.msk.f32.mxu0 %vm326_vm2, %v5918_v58  ;;  %v5950_v58 = vsel %vm399_vm0, %v2189_v30, %v2191_v42  ;;  %v2197_v30 = vrot.slane %v5811_v48, 4 }
  0x70   : > { %4608 = vmatmul.mubr.msk.f32.gmra.mrb[8].mxu1 %vm326_vm2, %v5490_v31  ;;  %v5984_v42 = vsel %vm399_vm0, %v2195_v34, %v2197_v30 }
  0x71   : > { %4859 = vmatmul.mubr.msk.f32.gmra.mrb[26].mxu0 %vm326_vm2, %v5930_v17  ;;  %4610 = vmatprep.mubr.msk.f32.mxu1 %vm326_vm2, %v5511_v41  ;;  %v5956_v17 = vld [vmem:[%s5439_s25 + $0x128] sm:$0xff]  ;;  %v5973_v41 = vld [vmem:[%s5439_s25 + $0x130] sm:$0xff] }
  0x72   : > { %4861 = vmatprep.mubr.msk.f32.mxu0 %vm326_vm2, %v5934_v33  ;;  %6865 = vst [vmem:[#allocation16_spill] sm:$0xff] %v5956_v17  ;;  %v5969_v33 = vsel %vm399_vm0, %v2193_v56, %v2195_v34  ;;  %v2201_v56 = vrot.slane %v5973_v41, 4 }
  0x74   : > { %4611 = vmatmul.mubr.msk.f32.gmra.mrb[10].mxu1 %vm326_vm2, %v5520_v43  ;;  %v2199_v43 = vrot.slane %v5956_v17, 4 }
  0x75   : > { %4862 = vmatmul.mubr.msk.f32.gmra.mrb[28].mxu0 %vm326_vm2, %v5946_v47  ;;  %4613 = vmatprep.mubr.msk.f32.mxu1 %vm326_vm2, %v5538_v52 }
  0x76   : > { %4864 = vmatprep.mubr.msk.f32.mxu0 %vm326_vm2, %v5950_v58  ;;  %v5988_v17 = vsel %vm399_vm0, %v2197_v30, %v2199_v43  ;;  %v6001_v34 = vsel %vm399_vm0, %v2199_v43, %v2201_v56  ;;  %v6016_v43 = vld [vmem:[%s6826_s1 + $0x20] sm:$0xf]  ;;  %v6873_v30 = vld [vmem:[#allocation11_spill] sm:$0xff] }
  0x78   : > { %4614 = vmatmul.mubr.msk.f32.gmra.mrb[12].mxu1 %vm326_vm2, %v5542_v53 }
  0x79   : > { %4865 = vmatmul.mubr.msk.f32.gmra.mrb[30].mxu0 %vm326_vm2, %v5965_v19  ;;  %4616 = vmatprep.mubr.msk.f32.mxu1 %vm326_vm2, %v5556_v62 }
  0x7a   : > { %4867 = vmatprep.mubr.msk.f32.mxu0 %vm326_vm2, %v5969_v33 }
  0x7c   : > { %4617 = vmatmul.mubr.msk.f32.gmra.mrb[14].mxu1 %vm326_vm2, %v5560_v63 }
  0x7d   : > { %4868 = vmatmul.mubr.msk.f32.gmra.mrb[32].mxu0 %vm326_vm2, %v5984_v42  ;;  %4619 = vmatprep.mubr.msk.f32.mxu1 %vm326_vm2, %v5574_v14 }
  0x7e   : > { %4870 = vmatprep.mubr.msk.f32.mxu0 %vm326_vm2, %v5988_v17 }
  0x80   : > { %4620 = vmatmul.mubr.msk.f32.gmra.mrb[16].mxu1 %vm326_vm2, %v5578_v15 }
  0x81   : > { %4871 = vmatmul.mubr.msk.f32.gmra.mrb[34].mxu0 %vm326_vm2, %v6001_v34  ;;  %4622 = vmatprep.mubr.msk.f32.mxu1 %vm326_vm2, %v5592_v28 }
  0x82   : > { %4875 = vmatprep.mubr.msk.f32.mxu0 %vm326_vm2, %v5662_v21  ;;  %v6866_v21 = vld [vmem:[#allocation5_spill] sm:$0xff] }
  0x84   : > { %4623 = vmatmul.mubr.msk.f32.gmra.mrb[18].mxu1 %vm326_vm2, %v5596_v29 }
  0x85   : > { %4876 = vmatmul.mubr.msk.f32.vlgmr.msra.gmra.mrb[0].mxu0 %vm326_vm2, %v5683_v32  ;;  %4625 = vmatprep.mubr.msk.f32.mxu1 %vm326_vm2, %v5610_v40  ;;  %v971_v32 = vrot.slane %v5442_v4, 2  ;;  %v976_v4 = vrot.slane %v5453_v9, 2  ;;  %v6868_v9 = vld [vmem:[#allocation7_spill] sm:$0xff] }
  0x86   : > { %4930 = vmatpush3.msk.msra.mxu0 %vm399_vm0, %v5672_v25  ;;  %4878 = vmatprep.mubr.msk.f32.mxu0 %vm326_vm2, %v5692_v38  ;;  %v6867_v25 = vld [vmem:[#allocation6_spill] sm:$0xff]  ;;  %v972_v38 = vrot.slane %v5445_v5, 2 }
  0x87   : > { %4985 = vmatprep.subr.msk.mxu0 %vm399_vm0, %v6016_v43 }
  0x88   : > { %4626 = vmatmul.mubr.msk.f32.gmra.mrb[20].mxu1 %vm326_vm2, %v5626_v55 }
  0x89   : > { %4879 = vmatmul.mubr.msk.f32.gmra.mrb[2].mxu0 %vm326_vm2, %v5709_v46  ;;  %4628 = vmatprep.mubr.msk.f32.mxu1 %vm326_vm2, %v5641_v0  ;;  %v973_v46 = vsel %vm970_vm4, %v971_v32, %v972_v38  ;;  %v6874_v32 = vld [vmem:[#allocation12_spill] sm:$0xff] }
  0x8a   : > { %4881 = vmatprep.mubr.msk.f32.mxu0 %vm326_vm2, %v5718_v54  ;;  %v978_v54 = vrot.slane %v5458_v12, 2 }
  0x8c   : > { %4629 = vmatmul.mubr.msk.f32.gmra.mrb[22].mxu1 %vm326_vm2, %v5646_v7 }
  0x8d   : > { %4882 = vmatmul.mubr.msk.f32.gmra.mrb[4].mxu0 %vm326_vm2, %v5733_v60  ;;  %4631 = vmatprep.mubr.msk.f32.mxu1 %vm326_vm2, %v5659_v20 }
  0x8e   : > { %4884 = vmatprep.mubr.msk.f32.mxu0 %vm326_vm2, %v5742_v10  ;;  %v6869_v10 = vld [vmem:[#allocation8_spill] sm:$0xff] }
  0x90   : > { %4632 = vmatmul.mubr.msk.f32.gmra.mrb[24].mxu1 %vm326_vm2, %v5666_v24 }
  0x91   : > { %4885 = vmatmul.mubr.msk.f32.gmra.mrb[6].mxu0 %vm326_vm2, %v5757_v22  ;;  %4634 = vmatprep.mubr.msk.f32.mxu1 %vm326_vm2, %v5689_v37  ;;  %v6108_v22 = vsel %vm970_vm4, %v976_v4, %v978_v54 }
  0x92   : > { %4887 = vmatprep.mubr.msk.f32.mxu0 %vm326_vm2, %v5766_v36  ;;  %v982_v36 = vrot.slane %v5468_v18, 2 }
  0x94   : > { %4635 = vmatmul.mubr.msk.f32.gmra.mrb[26].mxu1 %vm326_vm2, %v5696_v39 }
  0x95   : > { %4888 = vmatmul.mubr.msk.f32.gmra.mrb[8].mxu0 %vm326_vm2, %v5781_v49  ;;  %4637 = vmatprep.mubr.msk.f32.mxu1 %vm326_vm2, %v5715_v51  ;;  %v6870_v49 = vld [vmem:[#allocation9_spill] sm:$0xff] }
  0x96   : > { %4890 = vmatprep.mubr.msk.f32.mxu0 %vm326_vm2, %v6866_v21 }
  0x98   : > { %4638 = vmatmul.mubr.msk.f32.gmra.mrb[28].mxu1 %vm326_vm2, %v5722_v57 }
  0x99   : > { %4891 = vmatmul.mubr.msk.f32.gmra.mrb[10].mxu0 %vm326_vm2, %v6867_v25  ;;  %4640 = vmatprep.mubr.msk.f32.mxu1 %vm326_vm2, %v5739_v8  ;;  %v988_v25 = vrot.slane %v5490_v31, 2 }
  0x9a   : > { %4893 = vmatprep.mubr.msk.f32.mxu0 %vm326_vm2, %v5814_v50 }
  0x9c   : > { %4641 = vmatmul.mubr.msk.f32.gmra.mrb[30].mxu1 %vm326_vm2, %v5746_v13 }
  0x9d   : > { %4894 = vmatmul.mubr.msk.f32.gmra.mrb[12].mxu0 %vm326_vm2, %v5826_v1  ;;  %4643 = vmatprep.mubr.msk.f32.mxu1 %vm326_vm2, %v5763_v35  ;;  %v974_v1 = vrot.slane %v5448_v6, 2  ;;  %v980_v6 = vrot.slane %v5464_v16, 2 }
  0x9e   : > { %4896 = vmatprep.mubr.msk.f32.mxu0 %vm326_vm2, %v5831_v11  ;;  %v984_v11 = vrot.slane %v5475_v23, 2 }
  0x9f   : > { %v975_v5 = vsel %vm970_vm4, %v972_v38, %v974_v1  ;;  %v6100_v60 = vsel %vm970_vm4, %v974_v1, %v976_v4  ;;  %v6116_v50 = vsel %vm970_vm4, %v978_v54, %v980_v6  ;;  %v6875_v1 = vld [vmem:[#allocation3_spill] sm:$0xff]  ;;  %v6876_v4 = vld [vmem:[#allocation13_spill] sm:$0xff]  ;;  %v6877_v54 = vld [vmem:[#allocation4_spill] sm:$0xff] }
  0xa0   : > { %4644 = vmatmul.mubr.msk.f32.gmra.mrb[32].mxu1 %vm326_vm2, %v5770_v44  ;;  %v6134_v21 = vsel %vm970_vm4, %v982_v36, %v984_v11 }
  0xa1   : > { %4897 = vmatmul.mubr.msk.f32.gmra.mrb[14].mxu0 %vm326_vm2, %v5842_v2  ;;  %4646 = vmatprep.mubr.msk.f32.mxu1 %vm326_vm2, %v5787_v59  ;;  %v6871_v2 = vld [vmem:[#allocation2_spill] sm:$0xff] }
  0xa2   : > { %4899 = vmatprep.mubr.msk.f32.mxu0 %vm326_vm2, %v5846_v26  ;;  %v6872_v26 = vld [vmem:[#allocation10_spill] sm:$0xff] }
  0xa4   : > { %4647 = vmatmul.mubr.msk.f32.gmra.mrb[34].mxu1 %vm326_vm2, %v5794_v3 }
  0xa5   : > { %4900 = vmatmul.mubr.msk.f32.gmra.mrb[16].mxu0 %vm326_vm2, %v5857_v45  ;;  %4651 = vmatprep.mubr.msk.f32.mxu1 %vm326_vm2, %v973_v46  ;;  %v6128_v45 = vsel %vm970_vm4, %v980_v6, %v982_v36  ;;  %v990_v46 = vrot.slane %v6875_v1, 2  ;;  %v992_v6 = vrot.slane %v6877_v54, 2  ;;  %v994_v36 = vrot.slane %v5538_v52, 2 }
  0xa6   : > { %4902 = vmatprep.mubr.msk.f32.mxu0 %vm326_vm2, %v5861_v61  ;;  %v986_v61 = vrot.slane %v5482_v27, 2 }
  0xa8   : > { %4652 = vmatmul.mubr.msk.f32.vlgmr.msra.gmra.mrb[0].mxu1 %vm326_vm2, %v975_v5  ;;  %v6144_v38 = vsel %vm970_vm4, %v984_v11, %v986_v61  ;;  %v6150_v5 = vsel %vm970_vm4, %v986_v61, %v988_v25  ;;  %v6166_v11 = vsel %vm970_vm4, %v990_v46, %v992_v6  ;;  %v998_v61 = vrot.slane %v5556_v62, 2 }
  0xa9   : > { %4706 = vmatpush3.msk.msra.mxu1 %vm399_vm0, %v6868_v9  ;;  %4903 = vmatmul.mubr.msk.f32.gmra.mrb[18].mxu0 %vm326_vm2, %v6869_v10  ;;  %v6878_v9 = vld [vmem:[#allocation14_spill] sm:$0xff]  ;;  %v6160_v10 = vsel %vm970_vm4, %v988_v25, %v990_v46  ;;  %v1000_v25 = vrot.slane %v5560_v63, 2 }
  0xaa   : > { %4654 = vmatprep.mubr.msk.f32.mxu1 %vm326_vm2, %v6100_v60  ;;  %4905 = vmatprep.mubr.msk.f32.mxu0 %vm326_vm2, %v6870_v49  ;;  %v6879_v49 = vld [vmem:[#allocation15_spill] sm:$0xff] }
  0xab   : > { %5041 = vmatprep.subr.msk.mxu1 %vm399_vm0, %v6871_v2  ;;  %v996_v2 = vrot.slane %v5542_v53, 2  ;;  %v6201_v46 = vsel %vm970_vm4, %v998_v61, %v1000_v25 }
  0xac   : > { %4655 = vmatmul.mubr.msk.f32.gmra.mrb[2].mxu1 %vm326_vm2, %v6108_v22 }
  0xad   : > { %4906 = vmatmul.mubr.msk.f32.gmra.mrb[20].mxu0 %vm326_vm2, %v6872_v26  ;;  %4657 = vmatprep.mubr.msk.f32.mxu1 %vm326_vm2, %v6116_v50  ;;  %v6176_v26 = vsel %vm970_vm4, %v992_v6, %v994_v36 }
  0xae   : > { %4908 = vmatprep.mubr.msk.f32.mxu0 %vm326_vm2, %v6873_v30  ;;  %v6182_v30 = vsel %vm970_vm4, %v994_v36, %v996_v2 }
  0xb0   : > { %4658 = vmatmul.mubr.msk.f32.gmra.mrb[4].mxu1 %vm326_vm2, %v6128_v45 }
  0xb1   : > { %4909 = vmatmul.mubr.msk.f32.gmra.mrb[22].mxu0 %vm326_vm2, %v6874_v32  ;;  %4660 = vmatprep.mubr.msk.f32.mxu1 %vm326_vm2, %v6134_v21  ;;  %v6195_v32 = vsel %vm970_vm4, %v996_v2, %v998_v61  ;;  %v1008_v2 = vrot.slane %v5596_v29, 2  ;;  %v2858_v61 = vrot.slane %v5458_v12, 5 }
  0xb2   : > { %4911 = vmatprep.mubr.msk.f32.mxu0 %vm326_vm2, %v6876_v4  ;;  %v1004_v4 = vrot.slane %v5578_v15, 2 }
  0xb4   : > { %4661 = vmatmul.mubr.msk.f32.gmra.mrb[6].mxu1 %vm326_vm2, %v6144_v38 }
  0xb5   : > { %4912 = vmatmul.mubr.msk.f32.gmra.mrb[24].mxu0 %vm326_vm2, %v6878_v9  ;;  %4663 = vmatprep.mubr.msk.f32.mxu1 %vm326_vm2, %v6150_v5  ;;  %v6206_v9 = vld [vmem:[%s5439_s25 + $0x140] sm:$0x3f] }
  0xb6   : > { %4914 = vmatprep.mubr.msk.f32.mxu0 %vm326_vm2, %v6879_v49  ;;  %6880 = vst [vmem:[#allocation5_spill] sm:$0xff] %v6206_v9  ;;  %v2565_v49 = vrot.slane %v6206_v9, 4  ;;  %v1012_v9 = vrot.slane %v5626_v55, 2 }
  0xb8   : > { %4664 = vmatmul.mubr.msk.f32.gmra.mrb[8].mxu1 %vm326_vm2, %v6160_v10 }
  0xb9   : > { %4915 = vmatmul.mubr.msk.f32.gmra.mrb[26].mxu0 %vm326_vm2, %v5946_v47  ;;  %4666 = vmatprep.mubr.msk.f32.mxu1 %vm326_vm2, %v6166_v11  ;;  %v6188_v47 = vld [vmem:[%s5439_s25 + $0x138] sm:$0xff] }
  0xba   : > { %4917 = vmatprep.mubr.msk.f32.mxu0 %vm326_vm2, %v5950_v58  ;;  %v1002_v58 = vrot.slane %v5574_v14, 2  ;;  %v2563_v6 = vrot.slane %v6188_v47, 4 }
  0xbc   : > { %4667 = vmatmul.mubr.msk.f32.gmra.mrb[10].mxu1 %vm326_vm2, %v6176_v26  ;;  %v6221_v36 = vsel %vm970_vm4, %v1002_v58, %v1004_v4  ;;  %v2566_v12 = vsel %vm399_vm0, %v2563_v6, %v2565_v49  ;;  %v1016_v49 = vrot.slane %v5646_v7, 2 }
  0xbd   : > { %4918 = vmatmul.mubr.msk.f32.gmra.mrb[28].mxu0 %vm326_vm2, %v5965_v19  ;;  %4669 = vmatprep.mubr.msk.f32.mxu1 %vm326_vm2, %v6182_v30  ;;  %v1006_v19 = vrot.slane %v5592_v28, 2  ;;  %6881 = vst [vmem:[#allocation6_spill] sm:$0xff] %v6221_v36 }
  0xbe   : > { %4920 = vmatprep.mubr.msk.f32.mxu0 %vm326_vm2, %v5969_v33  ;;  %v6215_v33 = vsel %vm970_vm4, %v1000_v25, %v1002_v58  ;;  %v2859_v25 = vrot.slane %v5464_v16, 5  ;;  %v1010_v58 = vrot.slane %v5610_v40, 2 }
  0xbf   : > { %v6243_v16 = vsel %vm970_vm4, %v1006_v19, %v1008_v2 }
  0xc0   : > { %4670 = vmatmul.mubr.msk.f32.gmra.mrb[12].mxu1 %vm326_vm2, %v6195_v32 }
  0xc1   : > { %4921 = vmatmul.mubr.msk.f32.gmra.mrb[30].mxu0 %vm326_vm2, %v5984_v42  ;;  %4672 = vmatprep.mubr.msk.f32.mxu1 %vm326_vm2, %v6201_v46  ;;  %v2564_v42 = vsel %vm399_vm0, %v2201_v56, %v2563_v6  ;;  %v2861_v56 = vrot.slane %v5468_v18, 5  ;;  %v1014_v6 = vrot.slane %v5641_v0, 2 }
  0xc2   : > { %4923 = vmatprep.mubr.msk.f32.mxu0 %vm326_vm2, %v5988_v17  ;;  %v6237_v17 = vsel %vm970_vm4, %v1004_v4, %v1006_v19  ;;  %v6255_v4 = vsel %vm970_vm4, %v1008_v2, %v1010_v58  ;;  %v6261_v19 = vsel %vm970_vm4, %v1010_v58, %v1012_v9  ;;  %v2869_v58 = vrot.slane %v6875_v1, 5 }
  0xc3   : > { %v2862_v18 = vsel %vm2857_vm5, %v2859_v25, %v2861_v56  ;;  %v6273_v2 = vsel %vm970_vm4, %v1012_v9, %v1014_v6  ;;  %v2871_v9 = vrot.slane %v6877_v54, 5  ;;  %v2873_v54 = vrot.slane %v5538_v52, 5 }
  0xc4   : > { %4673 = vmatmul.mubr.msk.f32.gmra.mrb[14].mxu1 %vm326_vm2, %v6215_v33 }
  0xc5   : > { %4924 = vmatmul.mubr.msk.f32.gmra.mrb[32].mxu0 %vm326_vm2, %v6001_v34  ;;  %4675 = vmatprep.mubr.msk.f32.mxu1 %vm326_vm2, %v6221_v36  ;;  %v2860_v34 = vsel %vm2857_vm5, %v2858_v61, %v2859_v25  ;;  %v2863_v36 = vrot.slane %v5475_v23, 5  ;;  %v2865_v23 = vrot.slane %v5482_v27, 5  ;;  %v2867_v61 = vrot.slane %v5490_v31, 5 }
  0xc6   : > { %4926 = vmatprep.mubr.msk.f32.mxu0 %vm326_vm2, %v2564_v42  ;;  %v1018_v25 = vrot.slane %v5659_v20, 2  ;;  %v6281_v31 = vsel %vm970_vm4, %v1014_v6, %v1016_v49  ;;  %v1024_v6 = vrot.slane %v5696_v39, 2  ;;  %v2874_v52 = vsel %vm2857_vm5, %v2871_v9, %v2873_v54 }
  0xc7   : > { %v2864_v42 = vsel %vm2857_vm5, %v2861_v56, %v2863_v36  ;;  %v2866_v27 = vsel %vm2857_vm5, %v2863_v36, %v2865_v23  ;;  %v2868_v56 = vsel %vm2857_vm5, %v2865_v23, %v2867_v61  ;;  %v1022_v36 = vrot.slane %v5689_v37, 2 }
  0xc8   : > { %4676 = vmatmul.mubr.msk.f32.gmra.mrb[16].mxu1 %vm326_vm2, %v6237_v17  ;;  %v2870_v1 = vsel %vm2857_vm5, %v2867_v61, %v2869_v58  ;;  %v2875_v23 = vrot.slane %v5542_v53, 5  ;;  %v2877_v53 = vrot.slane %v5556_v62, 5 }
  0xc9   : > { %4927 = vmatmul.mubr.msk.f32.gmra.mrb[34].mxu0 %vm326_vm2, %v2566_v12  ;;  %4678 = vmatprep.mubr.msk.f32.mxu1 %vm326_vm2, %v6243_v16  ;;  %v1020_v12 = vrot.slane %v5666_v24, 2  ;;  %v6317_v61 = vsel %vm970_vm4, %v1022_v36, %v1024_v6 }
  0xca   : > { %4931 = vmatprep.mubr.msk.f32.mxu0 %vm326_vm2, %v2860_v34  ;;  %v2878_v62 = vsel %vm2857_vm5, %v2875_v23, %v2877_v53 }
  0xcb   : > { %v6299_v34 = vsel %vm970_vm4, %v1018_v25, %v1020_v12 }
  0xcc   : > { %4679 = vmatmul.mubr.msk.f32.gmra.mrb[18].mxu1 %vm326_vm2, %v6255_v4 }
  0xcd   : > { %4932 = vmatmul.mubr.msk.f32.vlgmr.msra.gmra.mrb[0].mxu0 %vm326_vm2, %v2862_v18  ;;  %4681 = vmatprep.mubr.msk.f32.mxu1 %vm326_vm2, %v6261_v19  ;;  %v2872_v18 = vsel %vm2857_vm5, %v2869_v58, %v2871_v9  ;;  %v2879_v58 = vrot.slane %v5560_v63, 5  ;;  %v2881_v63 = vrot.slane %v5574_v14, 5 }
  0xce   : > { %4986 = vmatpush3.msk.msra.mxu0 %vm399_vm0, %v6016_v43  ;;  %4934 = vmatprep.mubr.msk.f32.mxu0 %vm326_vm2, %v2864_v42  ;;  %v6293_v43 = vsel %vm970_vm4, %v1016_v49, %v1018_v25  ;;  %v6311_v49 = vsel %vm970_vm4, %v1020_v12, %v1022_v36  ;;  %v1026_v42 = vrot.slane %v5715_v51, 2  ;;  %v1028_v25 = vrot.slane %v5722_v57, 2 }
  0xcf   : > { %v1032_v36 = vrot.slane %v5746_v13, 2  ;;  %v2882_v14 = vsel %vm2857_vm5, %v2879_v58, %v2881_v63 }
  0xd0   : > { %4682 = vmatmul.mubr.msk.f32.gmra.mrb[20].mxu1 %vm326_vm2, %v6273_v2  ;;  %v6329_v12 = vsel %vm970_vm4, %v1024_v6, %v1026_v42  ;;  %v6335_v9 = vsel %vm970_vm4, %v1026_v42, %v1028_v25  ;;  %v1036_v42 = vrot.slane %v5770_v44, 2 }
  0xd1   : > { %4935 = vmatmul.mubr.msk.f32.gmra.mrb[2].mxu0 %vm326_vm2, %v2866_v27  ;;  %4684 = vmatprep.mubr.msk.f32.mxu1 %vm326_vm2, %v6281_v31  ;;  %v2876_v27 = vsel %vm2857_vm5, %v2873_v54, %v2875_v23  ;;  %v2883_v54 = vrot.slane %v5578_v15, 5  ;;  %v2885_v15 = vrot.slane %v5592_v28, 5 }
  0xd2   : > { %4937 = vmatprep.mubr.msk.f32.mxu0 %vm326_vm2, %v2868_v56  ;;  %v1030_v56 = vrot.slane %v5739_v8, 2 }
  0xd3   : > { %v2886_v28 = vsel %vm2857_vm5, %v2883_v54, %v2885_v15 }
  0xd4   : > { %4685 = vmatmul.mubr.msk.f32.gmra.mrb[22].mxu1 %vm326_vm2, %v6293_v43  ;;  %v6347_v6 = vsel %vm970_vm4, %v1028_v25, %v1030_v56  ;;  %v6353_v23 = vsel %vm970_vm4, %v1030_v56, %v1032_v36  ;;  %v1040_v56 = vrot.slane %v5794_v3, 2 }
  0xd5   : > { %4938 = vmatmul.mubr.msk.f32.gmra.mrb[4].mxu0 %vm326_vm2, %v2870_v1  ;;  %4687 = vmatprep.mubr.msk.f32.mxu1 %vm326_vm2, %v6299_v34  ;;  %v2880_v1 = vsel %vm2857_vm5, %v2877_v53, %v2879_v58  ;;  %v2887_v53 = vrot.slane %v5596_v29, 5  ;;  %v2889_v29 = vrot.slane %v5610_v40, 5 }
  0xd6   : > { %4940 = vmatprep.mubr.msk.f32.mxu0 %vm326_vm2, %v2872_v18  ;;  %v1034_v18 = vrot.slane %v5763_v35, 2 }
  0xd8   : > { %4688 = vmatmul.mubr.msk.f32.gmra.mrb[24].mxu1 %vm326_vm2, %v6311_v49  ;;  %v6365_v25 = vsel %vm970_vm4, %v1032_v36, %v1034_v18  ;;  %v6371_v58 = vsel %vm970_vm4, %v1034_v18, %v1036_v42 }
  0xd9   : > { %4941 = vmatmul.mubr.msk.f32.gmra.mrb[6].mxu0 %vm326_vm2, %v2874_v52  ;;  %4690 = vmatprep.mubr.msk.f32.mxu1 %vm326_vm2, %v6317_v61  ;;  %v2884_v52 = vsel %vm2857_vm5, %v2881_v63, %v2883_v54  ;;  %v2891_v63 = vrot.slane %v5626_v55, 5  ;;  %v2890_v54 = vsel %vm2857_vm5, %v2887_v53, %v2889_v29  ;;  %v2893_v55 = vrot.slane %v5641_v0, 5 }
  0xda   : > { %4943 = vmatprep.mubr.msk.f32.mxu0 %vm326_vm2, %v2876_v27  ;;  %v1038_v27 = vrot.slane %v5787_v59, 2 }
  0xdb   : > { %v2894_v0 = vsel %vm2857_vm5, %v2891_v63, %v2893_v55 }
  0xdc   : > { %4691 = vmatmul.mubr.msk.f32.gmra.mrb[26].mxu1 %vm326_vm2, %v6329_v12  ;;  %v6383_v36 = vsel %vm970_vm4, %v1036_v42, %v1038_v27  ;;  %v6389_v18 = vsel %vm970_vm4, %v1038_v27, %v1040_v56 }
  0xdd   : > { %4944 = vmatmul.mubr.msk.f32.gmra.mrb[8].mxu0 %vm326_vm2, %v2878_v62  ;;  %4693 = vmatprep.mubr.msk.f32.mxu1 %vm326_vm2, %v6335_v9  ;;  %v2888_v62 = vsel %vm2857_vm5, %v2885_v15, %v2887_v53  ;;  %v2895_v15 = vrot.slane %v5646_v7, 5  ;;  %v2899_v53 = vrot.slane %v5666_v24, 5  ;;  %v5341_v24 = vld [vmem:[%s6826_s1 + $0x10] sm:$0xf] }
  0xde   : > { %4946 = vmatprep.mubr.msk.f32.mxu0 %vm326_vm2, %v2880_v1  ;;  %v1042_v1 = vrot.slane %v5811_v48, 2 }
  0xdf   : > { %v2896_v7 = vsel %vm2857_vm5, %v2893_v55, %v2895_v15  ;;  %v6884_v55 = vld [vmem:[#allocation5_spill] sm:$0xff] }
  0xe0   : > { %4694 = vmatmul.mubr.msk.f32.gmra.mrb[28].mxu1 %vm326_vm2, %v6347_v6  ;;  %v6402_v42 = vsel %vm970_vm4, %v1040_v56, %v1042_v1  ;;  %v2909_v56 = vrot.slane %v5739_v8, 5 }
  0xe1   : > { %4947 = vmatmul.mubr.msk.f32.gmra.mrb[10].mxu0 %vm326_vm2, %v2882_v14  ;;  %4696 = vmatprep.mubr.msk.f32.mxu1 %vm326_vm2, %v6353_v23  ;;  %v2892_v14 = vsel %vm2857_vm5, %v2889_v29, %v2891_v63  ;;  %v2903_v29 = vrot.slane %v5696_v39, 5  ;;  %v2905_v39 = vrot.slane %v5715_v51, 5 }
  0xe2   : > { %4949 = vmatprep.mubr.msk.f32.mxu0 %vm326_vm2, %v2884_v52  ;;  %v2897_v52 = vrot.slane %v5659_v20, 5 }
  0xe4   : > { %4697 = vmatmul.mubr.msk.f32.gmra.mrb[30].mxu1 %vm326_vm2, %v6365_v25  ;;  %v2898_v27 = vsel %vm2857_vm5, %v2895_v15, %v2897_v52  ;;  %v2900_v20 = vsel %vm2857_vm5, %v2897_v52, %v2899_v53 }
  0xe5   : > { %4950 = vmatmul.mubr.msk.f32.gmra.mrb[12].mxu0 %vm326_vm2, %v2886_v28  ;;  %4699 = vmatprep.mubr.msk.f32.mxu1 %vm326_vm2, %v6371_v58  ;;  %v2901_v28 = vrot.slane %v5689_v37, 5 }
  0xe6   : > { %4952 = vmatprep.mubr.msk.f32.mxu0 %vm326_vm2, %v2888_v62  ;;  %v2911_v62 = vrot.slane %v5746_v13, 5 }
  0xe7   : > { %v2902_v37 = vsel %vm2857_vm5, %v2899_v53, %v2901_v28 }
  0xe8   : > { %4700 = vmatmul.mubr.msk.f32.gmra.mrb[32].mxu1 %vm326_vm2, %v6383_v36  ;;  %v2912_v8 = vsel %vm2857_vm5, %v2909_v56, %v2911_v62 }
  0xe9   : > { %4953 = vmatmul.mubr.msk.f32.gmra.mrb[14].mxu0 %vm326_vm2, %v2890_v54  ;;  %4702 = vmatprep.mubr.msk.f32.mxu1 %vm326_vm2, %v6389_v18  ;;  %v2927_v54 = vrot.slane %v6188_v47, 5 }
  0xea   : > { %4955 = vmatprep.mubr.msk.f32.mxu0 %vm326_vm2, %v2892_v14  ;;  %v2929_v14 = vrot.slane %v6884_v55, 5 }
  0xec   : > { %4703 = vmatmul.mubr.msk.f32.gmra.mrb[34].mxu1 %vm326_vm2, %v6402_v42 }
  0xed   : > { %4956 = vmatmul.mubr.msk.f32.gmra.mrb[16].mxu0 %vm326_vm2, %v2894_v0  ;;  %4707 = vmatprep.mubr.msk.f32.mxu1 %vm326_vm2, %v6100_v60  ;;  %v2904_v60 = vsel %vm2857_vm5, %v2901_v28, %v2903_v29  ;;  %v5342_v0 = vld [vmem:[%s5439_s25 + $0x20] sm:$0xff] }
  0xee   : > { %4958 = vmatprep.mubr.msk.f32.mxu0 %vm326_vm2, %v2896_v7  ;;  %v3290_v52 = vrot.slane %v5342_v0, 6  ;;  %v5343_v7 = vld [vmem:[%s5439_s25 + $0x28] sm:$0xff] }
  0xef   : > { %v3291_v53 = vrot.slane %v5343_v7, 6  ;;  %v5360_v7 = vld [vmem:[%s5439_s25 + $0xb0] sm:$0xff] }
  0xf0   : > { %4708 = vmatmul.mubr.msk.f32.vlgmr.msra.gmra.mrb[0].mxu1 %vm326_vm2, %v6108_v22  ;;  %v2907_v22 = vrot.slane %v5722_v57, 5 }
  0xf1   : > { %5042 = vmatpush3.msk.msra.mxu1 %vm399_vm0, %v5341_v24  ;;  %4959 = vmatmul.mubr.msk.f32.gmra.mrb[18].mxu0 %vm326_vm2, %v2898_v27  ;;  %v5344_v27 = vld [vmem:[%s5439_s25 + $0x30] sm:$0xff] }
  0xf2   : > { %4710 = vmatprep.mubr.msk.f32.mxu1 %vm326_vm2, %v6116_v50  ;;  %4961 = vmatprep.mubr.msk.f32.mxu0 %vm326_vm2, %v2900_v20  ;;  %v2906_v50 = vsel %vm2857_vm5, %v2903_v29, %v2905_v39  ;;  %v2908_v51 = vsel %vm2857_vm5, %v2905_v39, %v2907_v22  ;;  %v2910_v57 = vsel %vm2857_vm5, %v2907_v22, %v2909_v56  ;;  %v3293_v28 = vrot.slane %v5344_v27, 6  ;;  %v5345_v29 = vld [vmem:[%s5439_s25 + $0x38] sm:$0xff] }
  0xf3   : > { %v3292_v20 = vsel %vm3289_vm6, %v3290_v52, %v3291_v53  ;;  %v3295_v24 = vrot.slane %v5345_v29, 6  ;;  %v5361_v27 = vld [vmem:[%s5439_s25 + $0xb8] sm:$0xff] }
  0xf4   : > { %4711 = vmatmul.mubr.msk.f32.gmra.mrb[2].mxu1 %vm326_vm2, %v6128_v45  ;;  %v2913_v45 = vrot.slane %v5763_v35, 5 }
  0xf5   : > { %4962 = vmatmul.mubr.msk.f32.gmra.mrb[20].mxu0 %vm326_vm2, %v2902_v37  ;;  %4713 = vmatprep.mubr.msk.f32.mxu1 %vm326_vm2, %v6134_v21  ;;  %v2915_v21 = vrot.slane %v5770_v44, 5  ;;  %v3296_v39 = vsel %vm3289_vm6, %v3293_v28, %v3295_v24 }
  0xf6   : > { %4964 = vmatprep.mubr.msk.f32.mxu0 %vm326_vm2, %v2904_v60  ;;  %v2914_v13 = vsel %vm2857_vm5, %v2911_v62, %v2913_v45  ;;  %v5347_v60 = vld [vmem:[%s5439_s25 + $0x48] sm:$0xff] }
  0xf7   : > { %v2916_v35 = vsel %vm2857_vm5, %v2913_v45, %v2915_v21  ;;  %v3299_v22 = vrot.slane %v5347_v60, 6 }
  0xf8   : > { %4714 = vmatmul.mubr.msk.f32.gmra.mrb[4].mxu1 %vm326_vm2, %v6144_v38  ;;  %v2917_v38 = vrot.slane %v5787_v59, 5 }
  0xf9   : > { %4965 = vmatmul.mubr.msk.f32.gmra.mrb[22].mxu0 %vm326_vm2, %v2906_v50  ;;  %4716 = vmatprep.mubr.msk.f32.mxu1 %vm326_vm2, %v6150_v5  ;;  %v2919_v5 = vrot.slane %v5794_v3, 5 }
  0xfa   : > { %4967 = vmatprep.mubr.msk.f32.mxu0 %vm326_vm2, %v2908_v51  ;;  %v2918_v44 = vsel %vm2857_vm5, %v2915_v21, %v2917_v38  ;;  %v5349_v51 = vld [vmem:[%s5439_s25 + $0x58] sm:$0xff] }
  0xfb   : > { %v2920_v59 = vsel %vm2857_vm5, %v2917_v38, %v2919_v5  ;;  %v3303_v62 = vrot.slane %v5349_v51, 6 }
  0xfc   : > { %4717 = vmatmul.mubr.msk.f32.gmra.mrb[6].mxu1 %vm326_vm2, %v6160_v10  ;;  %v2921_v10 = vrot.slane %v5811_v48, 5 }
  0xfd   : > { %4968 = vmatmul.mubr.msk.f32.gmra.mrb[24].mxu0 %vm326_vm2, %v2910_v57  ;;  %4719 = vmatprep.mubr.msk.f32.mxu1 %vm326_vm2, %v6166_v11  ;;  %v6882_v11 = vld [vmem:[#allocation16_spill] sm:$0xff] }
  0xfe   : > { %4970 = vmatprep.mubr.msk.f32.mxu0 %vm326_vm2, %v2912_v8  ;;  %v2923_v63 = vrot.slane %v6882_v11, 5  ;;  %v2922_v3 = vsel %vm2857_vm5, %v2919_v5, %v2921_v10  ;;  %v5351_v8 = vld [vmem:[%s5439_s25 + $0x68] sm:$0xff] }
  0xff   : > { %v3307_v21 = vrot.slane %v5351_v8, 6 }
 0x100   : > { %4720 = vmatmul.mubr.msk.f32.gmra.mrb[8].mxu1 %vm326_vm2, %v6176_v26  ;;  %v2925_v26 = vrot.slane %v5973_v41, 5 }
 0x101   : > { %4971 = vmatmul.mubr.msk.f32.gmra.mrb[26].mxu0 %vm326_vm2, %v2914_v13  ;;  %4722 = vmatprep.mubr.msk.f32.mxu1 %vm326_vm2, %v6182_v30  ;;  %v2924_v30 = vsel %vm2857_vm5, %v2921_v10, %v2923_v63 }
 0x102   : > { %4973 = vmatprep.mubr.msk.f32.mxu0 %vm326_vm2, %v2916_v35  ;;  %v2928_v15 = vsel %vm2857_vm5, %v2925_v26, %v2927_v54  ;;  %v5353_v35 = vld [vmem:[%s5439_s25 + $0x78] sm:$0xff] }
 0x103   : > { %v3311_v5 = vrot.slane %v5353_v35, 6 }
 0x104   : > { %4723 = vmatmul.mubr.msk.f32.gmra.mrb[10].mxu1 %vm326_vm2, %v6195_v32  ;;  %v6883_v32 = vld [vmem:[#allocation6_spill] sm:$0xff] }
 0x105   : > { %4974 = vmatmul.mubr.msk.f32.gmra.mrb[28].mxu0 %vm326_vm2, %v2918_v44  ;;  %4725 = vmatprep.mubr.msk.f32.mxu1 %vm326_vm2, %v6201_v46  ;;  %v2926_v46 = vsel %vm2857_vm5, %v2923_v63, %v2925_v26 }
 0x106   : > { %4976 = vmatprep.mubr.msk.f32.mxu0 %vm326_vm2, %v2920_v59  ;;  %v5355_v59 = vld [vmem:[%s5439_s25 + $0x88] sm:$0xff] }
 0x107   : > { %v3315_v63 = vrot.slane %v5355_v59, 6 }
 0x108   : > { %4726 = vmatmul.mubr.msk.f32.gmra.mrb[12].mxu1 %vm326_vm2, %v6215_v33  ;;  %v2930_v33 = vsel %vm2857_vm5, %v2927_v54, %v2929_v14 }
 0x109   : > { %4977 = vmatmul.mubr.msk.f32.gmra.mrb[30].mxu0 %vm326_vm2, %v2922_v3  ;;  %4728 = vmatprep.mubr.msk.f32.mxu1 %vm326_vm2, %v6883_v32 }
 0x10a   : > { %4979 = vmatprep.mubr.msk.f32.mxu0 %vm326_vm2, %v2924_v30  ;;  %v5357_v30 = vld [vmem:[%s5439_s25 + $0x98] sm:$0xff] }
 0x10b   : > { %v3319_v54 = vrot.slane %v5357_v30, 6 }
 0x10c   : > { %4729 = vmatmul.mubr.msk.f32.gmra.mrb[14].mxu1 %vm326_vm2, %v6237_v17  ;;  %v3294_v17 = vsel %vm3289_vm6, %v3291_v53, %v3293_v28  ;;  %v3325_v53 = vrot.slane %v5360_v7, 6  ;;  %v3327_v28 = vrot.slane %v5361_v27, 6 }
 0x10d   : > { %4980 = vmatmul.mubr.msk.f32.gmra.mrb[32].mxu0 %vm326_vm2, %v2926_v46  ;;  %4731 = vmatprep.mubr.msk.f32.mxu1 %vm326_vm2, %v6243_v16  ;;  %v5346_v16 = vld [vmem:[%s5439_s25 + $0x40] sm:$0xff]  ;;  %v1404_v46 = vrot.slane %v6882_v11, 2 }
 0x10e   : > { %4982 = vmatprep.mubr.msk.f32.mxu0 %vm326_vm2, %v2928_v15  ;;  %v3297_v37 = vrot.slane %v5346_v16, 6  ;;  %v5359_v15 = vld [vmem:[%s5439_s25 + $0xa8] sm:$0xff]  ;;  %v1740_v16 = vrot.slane %v5361_v27, 3 }
 0x10f   : > { %v3323_v0 = vrot.slane %v5359_v15, 6  ;;  %v1405_v52 = vsel %vm970_vm4, %v1042_v1, %v1404_v46 }
 0x110   : > { %4732 = vmatmul.mubr.msk.f32.gmra.mrb[16].mxu1 %vm326_vm2, %v6255_v4  ;;  %v3298_v4 = vsel %vm3289_vm6, %v3295_v24, %v3297_v37  ;;  %v3300_v56 = vsel %vm3289_vm6, %v3297_v37, %v3299_v22  ;;  %v5362_v24 = vld [vmem:[%s5439_s25 + $0xc0] sm:$0xff]  ;;  %v5363_v37 = vld [vmem:[%s5439_s25 + $0xc8] sm:$0xff] }
 0x111   : > { %4983 = vmatmul.mubr.msk.f32.gmra.mrb[34].mxu0 %vm326_vm2, %v2930_v33  ;;  %4734 = vmatprep.mubr.msk.f32.mxu1 %vm326_vm2, %v6261_v19  ;;  %v5348_v19 = vld [vmem:[%s5439_s25 + $0x50] sm:$0xff]  ;;  %v1736_v33 = vrot.slane %v5359_v15, 3  ;;  %v3326_v1 = vsel %vm3289_vm6, %v3323_v0, %v3325_v53  ;;  %v5371_v15 = vld [vmem:[%s5439_s25 + $0x108] sm:$0xff] }
 0x112   : > { %4987 = vmatprep.mubr.msk.f32.mxu0 %vm326_vm2, %v3292_v20  ;;  %v3301_v50 = vrot.slane %v5348_v19, 6  ;;  %v6885_v20 = vrot.slane %v5610_v40, 3  ;;  %v1742_v40 = vrot.slane %v5362_v24, 3  ;;  %v5364_v19 = vld [vmem:[%s5439_s25 + $0xd0] sm:$0xff] }
 0x114   : > { %4735 = vmatmul.mubr.msk.f32.gmra.mrb[18].mxu1 %vm326_vm2, %v6273_v2  ;;  %v3302_v2 = vsel %vm3289_vm6, %v3299_v22, %v3301_v50  ;;  %v3304_v45 = vsel %vm3289_vm6, %v3301_v50, %v3303_v62  ;;  %v1737_v29 = vsel %vm1698_vm3, %v6885_v20, %v1736_v33  ;;  %v3333_v50 = vrot.slane %v5364_v19, 6 }
 0x115   : > { %4988 = vmatmul.mubr.msk.f32.vlgmr.msra.gmra.mrb[0].mxu0 %vm326_vm2, %v3294_v17  ;;  %4737 = vmatprep.mubr.msk.f32.mxu1 %vm326_vm2, %v6281_v31  ;;  %v5350_v31 = vld [vmem:[%s5439_s25 + $0x60] sm:$0xff]  ;;  %v3329_v17 = vrot.slane %v5362_v24, 6 }
 0x116   : > { %4990 = vmatprep.mubr.msk.f32.mxu0 %vm326_vm2, %v3296_v39  ;;  %v3305_v57 = vrot.slane %v5350_v31, 6  ;;  %v3331_v39 = vrot.slane %v5363_v37, 6  ;;  %v1743_v31 = vsel %vm1698_vm3, %v1740_v16, %v1742_v40  ;;  %v5374_v24 = vld [vmem:[%s5439_s25 + $0x120] sm:$0xff] }
 0x117   : > { %v3330_v22 = vsel %vm3289_vm6, %v3327_v28, %v3329_v17 }
 0x118   : > { %4738 = vmatmul.mubr.msk.f32.gmra.mrb[20].mxu1 %vm326_vm2, %v6293_v43  ;;  %v3306_v43 = vsel %vm3289_vm6, %v3303_v62, %v3305_v57  ;;  %v3308_v38 = vsel %vm3289_vm6, %v3305_v57, %v3307_v21  ;;  %v3332_v51 = vsel %vm3289_vm6, %v3329_v17, %v3331_v39  ;;  %v5365_v62 = vld [vmem:[%s5439_s25 + $0xd8] sm:$0xff]  ;;  %v1746_v57 = vrot.slane %v5364_v19, 3 }
 0x119   : > { %4991 = vmatmul.mubr.msk.f32.gmra.mrb[2].mxu0 %vm326_vm2, %v3298_v4  ;;  %4740 = vmatprep.mubr.msk.f32.mxu1 %vm326_vm2, %v6299_v34  ;;  %v5352_v34 = vld [vmem:[%s5439_s25 + $0x70] sm:$0xff]  ;;  %v3353_v17 = vrot.slane %v5374_v24, 6  ;;  %v1768_v19 = vrot.slane %v6882_v11, 3 }
 0x11a   : > { %4993 = vmatprep.mubr.msk.f32.mxu0 %vm326_vm2, %v3300_v56  ;;  %v3309_v13 = vrot.slane %v5352_v34, 6  ;;  %v1744_v56 = vrot.slane %v5363_v37, 3  ;;  %v1748_v34 = vrot.slane %v5365_v62, 3  ;;  %v3355_v37 = vrot.slane %v6882_v11, 6 }
 0x11c   : > { %4741 = vmatmul.mubr.msk.f32.gmra.mrb[22].mxu1 %vm326_vm2, %v6311_v49  ;;  %v3310_v49 = vsel %vm3289_vm6, %v3307_v21, %v3309_v13  ;;  %v3312_v10 = vsel %vm3289_vm6, %v3309_v13, %v3311_v5  ;;  %v1745_v8 = vsel %vm1698_vm3, %v1742_v40, %v1744_v56  ;;  %v5366_v21 = vld [vmem:[%s5439_s25 + $0xe0] sm:$0xff] }
 0x11d   : > { %4994 = vmatmul.mubr.msk.f32.gmra.mrb[4].mxu0 %vm326_vm2, %v3302_v2  ;;  %4743 = vmatprep.mubr.msk.f32.mxu1 %vm326_vm2, %v6317_v61  ;;  %v5354_v61 = vld [vmem:[%s5439_s25 + $0x80] sm:$0xff]  ;;  %v3335_v2 = vrot.slane %v5365_v62, 6  ;;  %v1770_v62 = vrot.slane %v5973_v41, 3 }
 0x11e   : > { %4996 = vmatprep.mubr.msk.f32.mxu0 %vm326_vm2, %v3304_v45  ;;  %v3313_v44 = vrot.slane %v5354_v61, 6  ;;  %v3334_v45 = vsel %vm3289_vm6, %v3331_v39, %v3333_v50 }
 0x11f   : > { %v3336_v13 = vsel %vm3289_vm6, %v3333_v50, %v3335_v2  ;;  %v3356_v50 = vsel %vm3289_vm6, %v3353_v17, %v3355_v37 }
 0x120   : > { %4744 = vmatmul.mubr.msk.f32.gmra.mrb[24].mxu1 %vm326_vm2, %v6329_v12  ;;  %v3314_v12 = vsel %vm3289_vm6, %v3311_v5, %v3313_v44  ;;  %v3316_v26 = vsel %vm3289_vm6, %v3313_v44, %v3315_v63  ;;  %v1747_v5 = vsel %vm1698_vm3, %v1744_v56, %v1746_v57  ;;  %v1749_v44 = vsel %vm1698_vm3, %v1746_v57, %v1748_v34 }
 0x121   : > { %4997 = vmatmul.mubr.msk.f32.gmra.mrb[6].mxu0 %vm326_vm2, %v3306_v43  ;;  %4746 = vmatprep.mubr.msk.f32.mxu1 %vm326_vm2, %v6335_v9  ;;  %v5356_v9 = vld [vmem:[%s5439_s25 + $0x90] sm:$0xff]  ;;  %v3337_v43 = vrot.slane %v5366_v21, 6  ;;  %v3359_v56 = vrot.slane %v6188_v47, 6  ;;  %v1771_v57 = vsel %vm1698_vm3, %v1768_v19, %v1770_v62 }
 0x122   : > { %4999 = vmatprep.mubr.msk.f32.mxu0 %vm326_vm2, %v3308_v38  ;;  %v3317_v3 = vrot.slane %v5356_v9, 6  ;;  %v5367_v38 = vld [vmem:[%s5439_s25 + $0xe8] sm:$0xff]  ;;  %v5369_v9 = vld [vmem:[%s5439_s25 + $0xf8] sm:$0xff] }
 0x123   : > { %v3339_v35 = vrot.slane %v5367_v38, 6  ;;  %v3338_v61 = vsel %vm3289_vm6, %v3335_v2, %v3337_v43 }
 0x124   : > { %4747 = vmatmul.mubr.msk.f32.gmra.mrb[26].mxu1 %vm326_vm2, %v6347_v6  ;;  %v3318_v6 = vsel %vm3289_vm6, %v3315_v63, %v3317_v3  ;;  %v3320_v14 = vsel %vm3289_vm6, %v3317_v3, %v3319_v54  ;;  %v1752_v63 = vrot.slane %v5367_v38, 3  ;;  %v3343_v3 = vrot.slane %v5369_v9, 6 }
 0x125   : > { %5000 = vmatmul.mubr.msk.f32.gmra.mrb[8].mxu0 %vm326_vm2, %v3310_v49  ;;  %4749 = vmatprep.mubr.msk.f32.mxu1 %vm326_vm2, %v6353_v23  ;;  %v5358_v23 = vld [vmem:[%s5439_s25 + $0xa0] sm:$0xff]  ;;  %v1750_v49 = vrot.slane %v5366_v21, 3 }
 0x126   : > { %5002 = vmatprep.mubr.msk.f32.mxu0 %vm326_vm2, %v3312_v10  ;;  %v3321_v32 = vrot.slane %v5358_v23, 6  ;;  %v5368_v10 = vld [vmem:[%s5439_s25 + $0xf0] sm:$0xff]  ;;  %v5370_v23 = vld [vmem:[%s5439_s25 + $0x100] sm:$0xff] }
 0x127   : > { %v3341_v59 = vrot.slane %v5368_v10, 6  ;;  %v1754_v30 = vrot.slane %v5368_v10, 3 }
 0x128   : > { %4750 = vmatmul.mubr.msk.f32.gmra.mrb[28].mxu1 %vm326_vm2, %v6365_v25  ;;  %v1406_v25 = vrot.slane %v5973_v41, 2 }
 0x129   : > { %5003 = vmatmul.mubr.msk.f32.gmra.mrb[10].mxu0 %vm326_vm2, %v3314_v12  ;;  %4752 = vmatprep.mubr.msk.f32.mxu1 %vm326_vm2, %v6371_v58  ;;  %v3322_v58 = vsel %vm3289_vm6, %v3319_v54, %v3321_v32  ;;  %v3340_v12 = vsel %vm3289_vm6, %v3337_v43, %v3339_v35  ;;  %v3342_v54 = vsel %vm3289_vm6, %v3339_v35, %v3341_v59 }
 0x12a   : > { %5005 = vmatprep.mubr.msk.f32.mxu0 %vm326_vm2, %v3316_v26  ;;  %v1407_v48 = vsel %vm970_vm4, %v1404_v46, %v1406_v25  ;;  %v1751_v26 = vsel %vm1698_vm3, %v1748_v34, %v1750_v49  ;;  %v1756_v46 = vrot.slane %v5369_v9, 3  ;;  %v1755_v25 = vsel %vm1698_vm3, %v1752_v63, %v1754_v30 }
 0x12c   : > { %4753 = vmatmul.mubr.msk.f32.gmra.mrb[30].mxu1 %vm326_vm2, %v6383_v36  ;;  %v3324_v36 = vsel %vm3289_vm6, %v3321_v32, %v3323_v0  ;;  %v3345_v32 = vrot.slane %v5370_v23, 6  ;;  %v3347_v0 = vrot.slane %v5371_v15, 6 }
 0x12d   : > { %5006 = vmatmul.mubr.msk.f32.gmra.mrb[12].mxu0 %vm326_vm2, %v3318_v6  ;;  %4755 = vmatprep.mubr.msk.f32.mxu1 %vm326_vm2, %v6389_v18  ;;  %v1738_v18 = vrot.slane %v5360_v7, 3  ;;  %v1753_v6 = vsel %vm1698_vm3, %v1750_v49, %v1752_v63  ;;  %v1757_v7 = vsel %vm1698_vm3, %v1754_v30, %v1756_v46 }
 0x12e   : > { %5008 = vmatprep.mubr.msk.f32.mxu0 %vm326_vm2, %v3320_v14  ;;  %v3344_v14 = vsel %vm3289_vm6, %v3341_v59, %v3343_v3  ;;  %v3348_v27 = vsel %vm3289_vm6, %v3345_v32, %v3347_v0 }
 0x12f   : > { %v1739_v60 = vsel %vm1698_vm3, %v1736_v33, %v1738_v18  ;;  %v1741_v4 = vsel %vm1698_vm3, %v1738_v18, %v1740_v16 }
 0x130   : > { %4756 = vmatmul.mubr.msk.f32.gmra.mrb[32].mxu1 %vm326_vm2, %v6402_v42  ;;  %v3328_v42 = vsel %vm3289_vm6, %v3325_v53, %v3327_v28  ;;  %v5372_v53 = vld [vmem:[%s5439_s25 + $0x110] sm:$0xff]  ;;  %v5373_v28 = vld [vmem:[%s5439_s25 + $0x118] sm:$0xff] }
 0x131   : > { %5009 = vmatmul.mubr.msk.f32.gmra.mrb[14].mxu0 %vm326_vm2, %v3322_v58  ;;  %4758 = vmatprep.mubr.msk.f32.mxu1 %vm326_vm2, %v1405_v52  ;;  %v1758_v58 = vrot.slane %v5370_v23, 3  ;;  %v3346_v52 = vsel %vm3289_vm6, %v3343_v3, %v3345_v32  ;;  %v3349_v33 = vrot.slane %v5372_v53, 6  ;;  %v1764_v16 = vrot.slane %v5373_v28, 3 }
 0x132   : > { %5011 = vmatprep.mubr.msk.f32.mxu0 %vm326_vm2, %v3324_v36  ;;  %v1760_v36 = vrot.slane %v5371_v15, 3 }
 0x133   : > { %v1759_v18 = vsel %vm1698_vm3, %v1756_v46, %v1758_v58  ;;  %v3350_v20 = vsel %vm3289_vm6, %v3347_v0, %v3349_v33 }
 0x134   : > { %4759 = vmatmul.mubr.msk.f32.gmra.mrb[34].mxu1 %vm326_vm2, %v1407_v48  ;;  %v3351_v48 = vrot.slane %v5373_v28, 6 }
 0x135   : > { %5012 = vmatmul.mubr.msk.f32.gmra.mrb[16].mxu0 %vm326_vm2, %v3326_v1  ;;  %4790 = vmatprep.mubr.msk.f32.mxu1 %vm326_vm2, %v1737_v29  ;;  %v1762_v1 = vrot.slane %v5372_v53, 3  ;;  %v1761_v29 = vsel %vm1698_vm3, %v1758_v58, %v1760_v36 }
 0x136   : > { %5014 = vmatprep.mubr.msk.f32.mxu0 %vm326_vm2, %v3328_v42  ;;  %v3352_v42 = vsel %vm3289_vm6, %v3349_v33, %v3351_v48  ;;  %v3354_v40 = vsel %vm3289_vm6, %v3351_v48, %v3353_v17 }
 0x137   : > { %v1763_v39 = vsel %vm1698_vm3, %v1760_v36, %v1762_v1 }
 0x138   : > { %4791 = vmatmul.mubr.msk.f32.vlgmr.msra.gmra.mrb[18].mxu1 %vm326_vm2, %v1739_v60  ;;  %v1766_v60 = vrot.slane %v5374_v24, 3 }
 0x139   : > { %5015 = vmatmul.mubr.msk.f32.gmra.mrb[18].mxu0 %vm326_vm2, %v3330_v22  ;;  %4793 = vmatprep.mubr.msk.f32.mxu1 %vm326_vm2, %v1741_v4  ;;  %v1765_v22 = vsel %vm1698_vm3, %v1762_v1, %v1764_v16  ;;  %v3357_v4 = vrot.slane %v5973_v41, 6 }
 0x13a   : > { %5017 = vmatprep.mubr.msk.f32.mxu0 %vm326_vm2, %v3332_v51  ;;  %v1767_v51 = vsel %vm1698_vm3, %v1764_v16, %v1766_v60  ;;  %v1769_v11 = vsel %vm1698_vm3, %v1766_v60, %v1768_v19 }
 0x13b   : > { %v3358_v2 = vsel %vm3289_vm6, %v3355_v37, %v3357_v4  ;;  %v3360_v47 = vsel %vm3289_vm6, %v3357_v4, %v3359_v56 }
 0x13c   : > { %4794 = vmatmul.mubr.msk.f32.gmra.mrb[20].mxu1 %vm326_vm2, %v1743_v31  ;;  %v3361_v31 = vrot.slane %v6884_v55, 6 }
 0x13d   : > { %5018 = vmatmul.mubr.msk.f32.gmra.mrb[20].mxu0 %vm326_vm2, %v3334_v45  ;;  %4796 = vmatprep.mubr.msk.f32.mxu1 %vm326_vm2, %v1745_v8 }
 0x13e   : > { %5020 = vmatprep.mubr.msk.f32.mxu0 %vm326_vm2, %v3336_v13  ;;  %v3362_v41 = vsel %vm3289_vm6, %v3359_v56, %v3361_v31 }
 0x140   : > { %4797 = vmatmul.mubr.msk.f32.gmra.mrb[22].mxu1 %vm326_vm2, %v1747_v5 }
 0x141   : > { %5021 = vmatmul.mubr.msk.f32.gmra.mrb[22].mxu0 %vm326_vm2, %v3338_v61  ;;  %4799 = vmatprep.mubr.msk.f32.mxu1 %vm326_vm2, %v1749_v44 }
 0x142   : > { %5023 = vmatprep.mubr.msk.f32.mxu0 %vm326_vm2, %v3340_v12 }
 0x144   : > { %4800 = vmatmul.mubr.msk.f32.gmra.mrb[24].mxu1 %vm326_vm2, %v1751_v26  ;;  %v6703_v26 = vld [vmem:[%s6827_s2] ss:$0 sm:$0xff] }
 0x145   : > { %5024 = vmatmul.mubr.msk.f32.gmra.mrb[24].mxu0 %vm326_vm2, %v3342_v54  ;;  %4802 = vmatprep.mubr.msk.f32.mxu1 %vm326_vm2, %v1753_v6 }
 0x146   : > { %5026 = vmatprep.mubr.msk.f32.mxu0 %vm326_vm2, %v3344_v14 }
 0x148   : > { %4803 = vmatmul.mubr.msk.f32.gmra.mrb[26].mxu1 %vm326_vm2, %v1755_v25 }
 0x149   : > { %5027 = vmatmul.mubr.msk.f32.gmra.mrb[26].mxu0 %vm326_vm2, %v3346_v52  ;;  %4805 = vmatprep.mubr.msk.f32.mxu1 %vm326_vm2, %v1757_v7 }
 0x14a   : > { %5029 = vmatprep.mubr.msk.f32.mxu0 %vm326_vm2, %v3348_v27 }
 0x14c   : > { %4806 = vmatmul.mubr.msk.f32.gmra.mrb[28].mxu1 %vm326_vm2, %v1759_v18 }
 0x14d   : > { %5030 = vmatmul.mubr.msk.f32.gmra.mrb[28].mxu0 %vm326_vm2, %v3350_v20  ;;  %4808 = vmatprep.mubr.msk.f32.mxu1 %vm326_vm2, %v1761_v29 }
 0x14e   : > { %5032 = vmatprep.mubr.msk.f32.mxu0 %vm326_vm2, %v3352_v42 }
 0x150   : > { %4809 = vmatmul.mubr.msk.f32.gmra.mrb[30].mxu1 %vm326_vm2, %v1763_v39 }
 0x151   : > { %5033 = vmatmul.mubr.msk.f32.gmra.mrb[30].mxu0 %vm326_vm2, %v3354_v40  ;;  %4811 = vmatprep.mubr.msk.f32.mxu1 %vm326_vm2, %v1765_v22 }
 0x152   : > { %5035 = vmatprep.mubr.msk.f32.mxu0 %vm326_vm2, %v3356_v50 }
 0x154   : > { %4812 = vmatmul.mubr.msk.f32.gmra.mrb[32].mxu1 %vm326_vm2, %v1767_v51 }
 0x155   : > { %5036 = vmatmul.mubr.msk.f32.gmra.mrb[32].mxu0 %vm326_vm2, %v3358_v2  ;;  %4814 = vmatprep.mubr.msk.f32.mxu1 %vm326_vm2, %v1769_v11 }
 0x156   : > { %5038 = vmatprep.mubr.msk.f32.mxu0 %vm326_vm2, %v3360_v47 }
 0x158   : > { %4815 = vmatmul.mubr.msk.f32.gmra.mrb[34].mxu1 %vm326_vm2, %v1771_v57 }
 0x159   : > { %5039 = vmatmul.mubr.msk.f32.gmra.mrb[34].mxu0 %vm326_vm2, %v3362_v41 }
 0x1c3   : > { %v4709_v45 = vpop.f32.mrb[0].mxu1 }
 0x1c4   : > { %v1481_v55 = vpop.f32.mrb[1].mxu1 }
 0x1c7   : > { %v4712_v8 = vpop.f32.mrb[2].mxu1 }
 0x1c8   : > { %v1491_v21 = vpop.f32.mrb[3].mxu1 }
 0x1cb   : > { %v4715_v43 = vpop.f32.mrb[4].mxu1 }
 0x1cc   : > { %v1501_v34 = vpop.f32.mrb[5].mxu1 }
 0x1cf   : > { %v4718_v13 = vpop.f32.mrb[6].mxu1 }
 0x1d0   : > { %v1511_v38 = vpop.f32.mrb[7].mxu1 }
 0x1d3   : > { %v4721_v35 = vpop.f32.mrb[8].mxu1 }
 0x1d4   : > { %v1521_v5 = vpop.f32.mrb[9].mxu1 }
 0x1d7   : > { %v4724_v49 = vpop.f32.mrb[10].mxu1 }
 0x1d8   : > { %v1531_v61 = vpop.f32.mrb[11].mxu1 }
 0x1db   : > { %v4727_v44 = vpop.f32.mrb[12].mxu1 }
 0x1dc   : > { %v1541_v10 = vpop.f32.mrb[13].mxu1 }
 0x1df   : > { %v6691_v59 = vpop.f32.mrb[14].mxu1 }
 0x1e0   : > { %v6693_v63 = vpop.f32.mrb[15].mxu1 }
 0x1e3   : > { %v6695_v12 = vpop.f32.mrb[16].mxu1 }
 0x1e4   : > { %v6697_v9 = vpop.f32.mrb[17].mxu1 }
 0x1e8   : > { %v4989_v3 = vpop.f32.mrb[0].mxu0 }
 0x1e9   : > { %v5043_v30 = vadd.f32 %v4989_v3, %v4709_v45  ;;  %v3504_v54 = vpop.f32.mrb[1].mxu0 }
 0x1ea   : > { %v5044_v6 = vadd.f32 %v3504_v54, %v1481_v55 }
 0x1eb   : > { %v3727_v23 = vadd.f32 %v5043_v30, %v6703_v26 }
 0x1ec   : > { %v3726_v32 = vadd.f32 %v5044_v6, %v6703_v26  ;;  %v4992_v46 = vpop.f32.mrb[2].mxu0 }
 0x1ed   : > { %3763 = vst.msk [vmem:[%s6708_s18 + $0x8] sm:$0xff] %vm326_vm2, %v3727_v23  ;;  %v5045_v14 = vadd.f32 %v4992_v46, %v4712_v8  ;;  %v3514_v15 = vpop.f32.mrb[3].mxu0 }
 0x1ee   : > { %3762 = vst.msk [vmem:[%s6708_s18] sm:$0xff] %vm326_vm2, %v3726_v32  ;;  %v5046_v0 = vadd.f32 %v3514_v15, %v1491_v21 }
 0x1ef   : > { %v3729_v25 = vadd.f32 %v5045_v14, %v6703_v26 }
 0x1f0   : > { %v3728_v58 = vadd.f32 %v5046_v0, %v6703_v26  ;;  %v4995_v52 = vpop.f32.mrb[4].mxu0 }
 0x1f1   : > { %3765 = vst.msk [vmem:[%s6708_s18 + $0x18] sm:$0xff] %vm326_vm2, %v3729_v25  ;;  %v5047_v7 = vadd.f32 %v4995_v52, %v4715_v43  ;;  %v3524_v53 = vpop.f32.mrb[5].mxu0 }
 0x1f2   : > { %3764 = vst.msk [vmem:[%s6708_s18 + $0x10] sm:$0xff] %vm326_vm2, %v3728_v58  ;;  %v5048_v33 = vadd.f32 %v3524_v53, %v1501_v34 }
 0x1f3   : > { %v3731_v36 = vadd.f32 %v5047_v7, %v6703_v26 }
 0x1f4   : > { %v3730_v27 = vadd.f32 %v5048_v33, %v6703_v26  ;;  %v4998_v28 = vpop.f32.mrb[6].mxu0 }
 0x1f5   : > { %3767 = vst.msk [vmem:[%s6708_s18 + $0x28] sm:$0xff] %vm326_vm2, %v3731_v36  ;;  %v5049_v48 = vadd.f32 %v4998_v28, %v4718_v13  ;;  %v3534_v18 = vpop.f32.mrb[7].mxu0 }
 0x1f6   : > { %3766 = vst.msk [vmem:[%s6708_s18 + $0x20] sm:$0xff] %vm326_vm2, %v3730_v27  ;;  %v5050_v1 = vadd.f32 %v3534_v18, %v1511_v38 }
 0x1f7   : > { %v3733_v20 = vadd.f32 %v5049_v48, %v6703_v26 }
 0x1f8   : > { %v3732_v29 = vadd.f32 %v5050_v1, %v6703_v26  ;;  %v5001_v24 = vpop.f32.mrb[8].mxu0 }
 0x1f9   : > { %3769 = vst.msk [vmem:[%s6708_s18 + $0x38] sm:$0xff] %vm326_vm2, %v3733_v20  ;;  %v5051_v17 = vadd.f32 %v5001_v24, %v4721_v35  ;;  %v3544_v16 = vpop.f32.mrb[9].mxu0 }
 0x1fa   : > { %3768 = vst.msk [vmem:[%s6708_s18 + $0x30] sm:$0xff] %vm326_vm2, %v3732_v29  ;;  %v5052_v42 = vadd.f32 %v3544_v16, %v1521_v5 }
 0x1fb   : > { %v3735_v37 = vadd.f32 %v5051_v17, %v6703_v26 }
 0x1fc   : > { %v3734_v39 = vadd.f32 %v5052_v42, %v6703_v26  ;;  %v5004_v60 = vpop.f32.mrb[10].mxu0 }
 0x1fd   : > { %3771 = vst.msk [vmem:[%s6708_s18 + $0x48] sm:$0xff] %vm326_vm2, %v3735_v37  ;;  %v5053_v40 = vadd.f32 %v5004_v60, %v4724_v49  ;;  %v3554_v22 = vpop.f32.mrb[11].mxu0 }
 0x1fe   : > { %3770 = vst.msk [vmem:[%s6708_s18 + $0x40] sm:$0xff] %vm326_vm2, %v3734_v39  ;;  %v5054_v4 = vadd.f32 %v3554_v22, %v1531_v61 }
 0x1ff   : > { %v3737_v19 = vadd.f32 %v5053_v40, %v6703_v26 }
 0x200   : > { %v3736_v50 = vadd.f32 %v5054_v4, %v6703_v26  ;;  %v5007_v56 = vpop.f32.mrb[12].mxu0 }
 0x201   : > { %3773 = vst.msk [vmem:[%s6708_s18 + $0x58] sm:$0xff] %vm326_vm2, %v3737_v19  ;;  %v5055_v51 = vadd.f32 %v5007_v56, %v4727_v44  ;;  %v3564_v62 = vpop.f32.mrb[13].mxu0 }
 0x202   : > { %3772 = vst.msk [vmem:[%s6708_s18 + $0x50] sm:$0xff] %vm326_vm2, %v3736_v50  ;;  %v5056_v2 = vadd.f32 %v3564_v62, %v1541_v10 }
 0x203   : > { %v3739_v11 = vadd.f32 %v5055_v51, %v6703_v26 }
 0x204   : > { %v3738_v31 = vadd.f32 %v5056_v2, %v6703_v26  ;;  %v5010_v47 = vpop.f32.mrb[14].mxu0 }
 0x205   : > { %3775 = vst.msk [vmem:[%s6708_s18 + $0x68] sm:$0xff] %vm326_vm2, %v3739_v11  ;;  %v5057_v57 = vadd.f32 %v5010_v47, %v6691_v59  ;;  %v3574_v41 = vpop.f32.mrb[15].mxu0 }
 0x206   : > { %3774 = vst.msk [vmem:[%s6708_s18 + $0x60] sm:$0xff] %vm326_vm2, %v3738_v31  ;;  %v5058_v45 = vadd.f32 %v3574_v41, %v6693_v63 }
 0x207   : > { %v3741_v55 = vadd.f32 %v5057_v57, %v6703_v26 }
 0x208   : > { %v3740_v8 = vadd.f32 %v5058_v45, %v6703_v26  ;;  %v5013_v21 = vpop.f32.mrb[16].mxu0 }
 0x209   : > { %3777 = vst.msk [vmem:[%s6708_s18 + $0x78] sm:$0xff] %vm326_vm2, %v3741_v55  ;;  %v5059_v43 = vadd.f32 %v5013_v21, %v6695_v12  ;;  %v3584_v34 = vpop.f32.mrb[17].mxu0 }
 0x20a   : > { %3776 = vst.msk [vmem:[%s6708_s18 + $0x70] sm:$0xff] %vm326_vm2, %v3740_v8  ;;  %v5060_v13 = vadd.f32 %v3584_v34, %v6697_v9 }
 0x20b   : > { %v3743_v38 = vadd.f32 %v5059_v43, %v6703_v26  ;;  %v4792_v35 = vpop.f32.mrb[18].mxu1 }
 0x20c   : > { %v3742_v5 = vadd.f32 %v5060_v13, %v6703_v26  ;;  %v5016_v49 = vpop.f32.mrb[18].mxu0  ;;  %v2003_v61 = vpop.f32.mrb[19].mxu1 }
 0x20d   : > { %3779 = vst.msk [vmem:[%s6708_s18 + $0x88] sm:$0xff] %vm326_vm2, %v3743_v38  ;;  %v5061_v44 = vadd.f32 %v5016_v49, %v4792_v35  ;;  %v3594_v10 = vpop.f32.mrb[19].mxu0 }
 0x20e   : > { %3778 = vst.msk [vmem:[%s6708_s18 + $0x80] sm:$0xff] %vm326_vm2, %v3742_v5  ;;  %v5062_v59 = vadd.f32 %v3594_v10, %v2003_v61 }
 0x20f   : > { %v3745_v63 = vadd.f32 %v5061_v44, %v6703_v26  ;;  %v4795_v12 = vpop.f32.mrb[20].mxu1 }
 0x210   : > { %v3744_v9 = vadd.f32 %v5062_v59, %v6703_v26  ;;  %v5019_v3 = vpop.f32.mrb[20].mxu0  ;;  %v2013_v30 = vpop.f32.mrb[21].mxu1 }
 0x211   : > { %3781 = vst.msk [vmem:[%s6708_s18 + $0x98] sm:$0xff] %vm326_vm2, %v3745_v63  ;;  %v5063_v54 = vadd.f32 %v5019_v3, %v4795_v12  ;;  %v3604_v6 = vpop.f32.mrb[21].mxu0 }
 0x212   : > { %3780 = vst.msk [vmem:[%s6708_s18 + $0x90] sm:$0xff] %vm326_vm2, %v3744_v9  ;;  %v5064_v23 = vadd.f32 %v3604_v6, %v2013_v30 }
 0x213   : > { %v3747_v32 = vadd.f32 %v5063_v54, %v6703_v26  ;;  %v4798_v46 = vpop.f32.mrb[22].mxu1 }
 0x214   : > { %v3746_v14 = vadd.f32 %v5064_v23, %v6703_v26  ;;  %v5022_v15 = vpop.f32.mrb[22].mxu0  ;;  %v2023_v0 = vpop.f32.mrb[23].mxu1 }
 0x215   : > { %3783 = vst.msk [vmem:[%s6708_s18 + $0xa8] sm:$0xff] %vm326_vm2, %v3747_v32  ;;  %v5065_v25 = vadd.f32 %v5022_v15, %v4798_v46  ;;  %v3614_v58 = vpop.f32.mrb[23].mxu0 }
 0x216   : > { %3782 = vst.msk [vmem:[%s6708_s18 + $0xa0] sm:$0xff] %vm326_vm2, %v3746_v14  ;;  %v5066_v52 = vadd.f32 %v3614_v58, %v2023_v0 }
 0x217   : > { %v3749_v7 = vadd.f32 %v5065_v25, %v6703_v26  ;;  %v4801_v53 = vpop.f32.mrb[24].mxu1 }
 0x218   : > { %v3748_v33 = vadd.f32 %v5066_v52, %v6703_v26  ;;  %v5025_v36 = vpop.f32.mrb[24].mxu0  ;;  %v2033_v27 = vpop.f32.mrb[25].mxu1 }
 0x219   : > { %3785 = vst.msk [vmem:[%s6708_s18 + $0xb8] sm:$0xff] %vm326_vm2, %v3749_v7  ;;  %v5067_v28 = vadd.f32 %v5025_v36, %v4801_v53  ;;  %v3624_v48 = vpop.f32.mrb[25].mxu0 }
 0x21a   : > { %3784 = vst.msk [vmem:[%s6708_s18 + $0xb0] sm:$0xff] %vm326_vm2, %v3748_v33  ;;  %v5068_v18 = vadd.f32 %v3624_v48, %v2033_v27 }
 0x21b   : > { %v3751_v1 = vadd.f32 %v5067_v28, %v6703_v26  ;;  %v4804_v20 = vpop.f32.mrb[26].mxu1 }
 0x21c   : > { %v3750_v29 = vadd.f32 %v5068_v18, %v6703_v26  ;;  %v5028_v24 = vpop.f32.mrb[26].mxu0  ;;  %v2043_v17 = vpop.f32.mrb[27].mxu1 }
 0x21d   : > { %3787 = vst.msk [vmem:[%s6708_s18 + $0xc8] sm:$0xff] %vm326_vm2, %v3751_v1  ;;  %v5069_v16 = vadd.f32 %v5028_v24, %v4804_v20  ;;  %v3634_v42 = vpop.f32.mrb[27].mxu0 }
 0x21e   : > { %3786 = vst.msk [vmem:[%s6708_s18 + $0xc0] sm:$0xff] %vm326_vm2, %v3750_v29  ;;  %v5070_v37 = vadd.f32 %v3634_v42, %v2043_v17 }
 0x21f   : > { %v3753_v39 = vadd.f32 %v5069_v16, %v6703_v26  ;;  %v4807_v60 = vpop.f32.mrb[28].mxu1 }
 0x220   : > { %v3752_v40 = vadd.f32 %v5070_v37, %v6703_v26  ;;  %v5031_v22 = vpop.f32.mrb[28].mxu0  ;;  %v2053_v4 = vpop.f32.mrb[29].mxu1 }
 0x221   : > { %3789 = vst.msk [vmem:[%s6708_s18 + $0xd8] sm:$0xff] %vm326_vm2, %v3753_v39  ;;  %v5071_v19 = vadd.f32 %v5031_v22, %v4807_v60  ;;  %v3644_v50 = vpop.f32.mrb[29].mxu0 }
 0x222   : > { %3788 = vst.msk [vmem:[%s6708_s18 + $0xd0] sm:$0xff] %vm326_vm2, %v3752_v40  ;;  %v5072_v56 = vadd.f32 %v3644_v50, %v2053_v4 }
 0x223   : > { %v3755_v51 = vadd.f32 %v5071_v19, %v6703_v26  ;;  %v4810_v62 = vpop.f32.mrb[30].mxu1 }
 0x224   : > { %v3754_v2 = vadd.f32 %v5072_v56, %v6703_v26  ;;  %v5034_v11 = vpop.f32.mrb[30].mxu0  ;;  %v2063_v31 = vpop.f32.mrb[31].mxu1 }
 0x225   : > { %3791 = vst.msk [vmem:[%s6708_s18 + $0xe8] sm:$0xff] %vm326_vm2, %v3755_v51  ;;  %v5073_v47 = vadd.f32 %v5034_v11, %v4810_v62  ;;  %v3654_v57 = vpop.f32.mrb[31].mxu0 }
 0x226   : > { %3790 = vst.msk [vmem:[%s6708_s18 + $0xe0] sm:$0xff] %vm326_vm2, %v3754_v2  ;;  %v5074_v41 = vadd.f32 %v3654_v57, %v2063_v31 }
 0x227   : > { %v3757_v45 = vadd.f32 %v5073_v47, %v6703_v26  ;;  %v4813_v55 = vpop.f32.mrb[32].mxu1 }
 0x228   : > { %v3756_v8 = vadd.f32 %v5074_v41, %v6703_v26  ;;  %v5037_v21 = vpop.f32.mrb[32].mxu0  ;;  %v2073_v43 = vpop.f32.mrb[33].mxu1 }
 0x229   : > { %3793 = vst.msk [vmem:[%s6708_s18 + $0xf8] sm:$0xff] %vm326_vm2, %v3757_v45  ;;  %v5075_v34 = vadd.f32 %v5037_v21, %v4813_v55  ;;  %v3664_v13 = vpop.f32.mrb[33].mxu0 }
 0x22a   : > { %3792 = vst.msk [vmem:[%s6708_s18 + $0xf0] sm:$0xff] %vm326_vm2, %v3756_v8  ;;  %v5076_v38 = vadd.f32 %v3664_v13, %v2073_v43 }
 0x22b   : > { %v3759_v35 = vadd.f32 %v5075_v34, %v6703_v26  ;;  %v4816_v5 = vpop.f32.mrb[34].mxu1 }
 0x22c   : > { %v3758_v49 = vadd.f32 %v5076_v38, %v6703_v26  ;;  %v5040_v61 = vpop.f32.mrb[34].mxu0  ;;  %v2083_v44 = vpop.f32.mrb[35].mxu1 }
 0x22d   : > { %3795 = vst.msk [vmem:[%s6708_s18 + $0x108] sm:$0xff] %vm326_vm2, %v3759_v35  ;;  %v5077_v10 = vadd.f32 %v5040_v61, %v4816_v5  ;;  %v3674_v59 = vpop.f32.mrb[35].mxu0 }
 0x22e   : > { %3794 = vst.msk [vmem:[%s6708_s18 + $0x100] sm:$0xff] %vm326_vm2, %v3758_v49  ;;  %v5078_v63 = vadd.f32 %v3674_v59, %v2083_v44 }
 0x22f   : > { %v3761_v12 = vadd.f32 %v5077_v10, %v6703_v26 }
 0x230   : > { %v3760_v9 = vadd.f32 %v5078_v63, %v6703_v26 }
 0x231   : > { %3797 = vst.msk [vmem:[%s6708_s18 + $0x118] sm:$0xff] %vm326_vm2, %v3761_v12 }
 0x232   : > { %3796 = vst.msk [vmem:[%s6708_s18 + $0x110] sm:$0xff] %vm326_vm2, %v3760_v9 }
 0x233 PF: > { %s13_s12 = sadd.s32 1, %s5381_s12  }
 0x234   : > { %p10_p4 = scmp.ge.s32.totalorder %s13_s12, 4  }
 0x236   :  { %12 = sbr.rel (!%p10_p4) target bundleno = 1 (0x1), region = 70 }

// kernel: _lambda_.4
= control target key start
LH: loop header
LB: loop body
LE: loop exit
PB: predicated region body
PF: predicated region fallthrough
CT: control target
= control target key end

     0   :  { %s6253_s0 = inlined_call_operand.vmem [shape: f32[2,64,16], index: 0, kind: input, shape index: {}]   ;;  %s6254_s1 = inlined_call_operand.vmem [shape: f32[2,32,16], index: 1, kind: input, shape index: {}]   ;;  %s6255_s2 = inlined_call_operand.vmem [shape: f32[16,48], index: 2, kind: input, shape index: {}]   ;;  %s6256_s3 = inlined_call_operand.vmem [shape: f32[1,48], index: 3, kind: input, shape index: {}]   ;;  %s6257_s4 = inlined_call_operand.vmem [shape: f32[16,16], index: 4, kind: input, shape index: {}]   ;;  %s6258_s5 = inlined_call_operand.vmem [shape: f32[1,16], index: 5, kind: input, shape index: {}]   ;;  %s6259_s6 = inlined_call_operand.vmem [shape: f32[1,16], index: 6, kind: input, shape index: {}]   ;;  %s6260_s7 = inlined_call_operand.vmem [shape: f32[1,16], index: 7, kind: input, shape index: {}]   ;;  %s6261_s8 = inlined_call_operand.vmem [shape: f32[16,16], index: 8, kind: input, shape index: {}]   ;;  %s6262_s9 = inlined_call_operand.vmem [shape: f32[1,16], index: 9, kind: input, shape index: {}]   ;;  %s6263_s10 = inlined_call_operand.vmem [shape: f32[16,32], index: 10, kind: input, shape index: {}]   ;;  %s6264_s11 = inlined_call_operand.vmem [shape: f32[1,32], index: 11, kind: input, shape index: {}]   ;;  %s6265_s12 = inlined_call_operand.vmem [shape: f32[16,16], index: 12, kind: input, shape index: {}]   ;;  %s6266_s13 = inlined_call_operand.vmem [shape: f32[1,16], index: 13, kind: input, shape index: {}]   ;;  %s6267_s14 = inlined_call_operand.vmem [shape: f32[1,16], index: 14, kind: input, shape index: {}]   ;;  %s6268_s15 = inlined_call_operand.vmem [shape: f32[1,16], index: 15, kind: input, shape index: {}]   ;;  %s6269_s16 = inlined_call_operand.vmem [shape: f32[16,32], index: 16, kind: input, shape index: {}]   ;;  %s6270_s17 = inlined_call_operand.vmem [shape: f32[1,32], index: 17, kind: input, shape index: {}]   ;;  %s6271_s18 = inlined_call_operand.vmem [shape: f32[32,16], index: 18, kind: input, shape index: {}]   ;;  %s6272_s19 = inlined_call_operand.vmem [shape: f32[1,16], index: 19, kind: input, shape index: {}]   ;;  %s6273_s20 = inlined_call_operand.vmem [shape: f32[1,16], index: 20, kind: input, shape index: {}]   ;;  %s6274_s21 = inlined_call_operand.vmem [shape: f32[1,16], index: 21, kind: input, shape index: {}]   ;;  %s6275_s22 = inlined_call_operand.vmem [shape: f32[2,64,16], index: 22, kind: output, shape index: {}]  }
   0x1   :  { %6279 = sst [smem:[#allocation2_spill]] %s6253_s0 }
   0x2   :  { %6280 = sst [smem:[#allocation3_spill]] %s6254_s1 }
   0x3   :  { %6281 = sst [smem:[#allocation4_spill]] %s6255_s2 }
   0x4   :  { %6282 = sst [smem:[#allocation5_spill]] %s6256_s3  ;;  %s5323_s3 = smov 0  }
   0x5   :  { %6283 = sst [smem:[#allocation6_spill]] %s6257_s4 }
   0x6   :  { %6284 = sst [smem:[#allocation7_spill]] %s6258_s5 }
   0x7   :  { %6285 = sst [smem:[#allocation8_spill]] %s6259_s6 }
   0x8 LB: > { %s4028_s28 = sadd.s32 4294967295, %s5201_s3   ;;  %p4032_p0 = scmp.ge.s32.totalorder %s5201_s3, 1  ;;  %s5201_s3 = sphi %s5323_s3, %s32_s3  }
   0x9   : > { %p622_p1 = scmp.lt.s32.totalorder %s5201_s3, 3 }
   0xb   : > { %p623_p2 = pnand %p4032_p0, %p622_p1 }
   0xc   : > { %s6286_s4 = sld [smem:[#allocation4_spill]] (!%p623_p2)  ;;  %p689_p3 = scmp.lt.s32.totalorder (!%p623_p2), %s4028_s28, 1  ;;  %vm725_vm0 = vcmask (!%p623_p2), 130048   ;;  %vm887_vm1 = vcmask (!%p623_p2), 64512   ;;  %vm1033_vm3 = vcmask (!%p623_p2), 523264   ;;  %vm2496_vm4 = vcmask (!%p623_p2), 261120  }
   0xd   : > { %626 = sbr.rel (%p623_p2) target bundleno = 5270 (0x1496), region = 108  ;;  %s6287_s6 = sld [smem:[#allocation2_spill]] (!%p623_p2)  ;;  %vm5409_vm2 = vmpackc.low (!%p623_p2), %vm887_vm1, %vm887_vm1 }
   0xe   : > { %s6288_s27 = sld [smem:[#allocation5_spill]] (!%p623_p2)  ;;  %s5203_s29 = smov (!%p623_p2), 112  }
   0xf   : > { %s5204_s30 = smov (!%p623_p2), 96   ;;  %s5205_s0 = smov (!%p623_p2), 104  }
  0x10   : > { %s5206_s23 = smov (!%p623_p2), 120   ;;  %s5207_s5 = smov (!%p623_p2), 88  }
  0x11   : > { %s6291_s26 = sld [smem:[#allocation6_spill]] (!%p623_p2)  ;;  %s6292_s24 = sld [smem:[#allocation7_spill]] (!%p623_p2) }
  0x12   : > { %v716_v0 = vld [vmem:[%s6286_s4] sm:$0xff] (!%p623_p2)  ;;  %v717_v1 = vld [vmem:[%s6286_s4 + $0x8] sm:$0xff] (!%p623_p2) }
  0x13   : > { %v4735_v2 = vpack.c.bf16 (!%p623_p2), %v717_v1, %v716_v0 }
  0x14   : > { %s6297_s28 = smov (!%p689_p3, %s4028_s28), 1  ;;  %v4039_v11 = vld [vmem:[%s6288_s27] ss:$0 sm:$0xff] }
  0x15   : > { %4736 = vmatprep.subr.bf16.mxu0 %v4735_v2  ;;  %s6278_s1 = sshll.u32 %s6297_s28, 6  ;;  %s6295_s2 = sshll.u32 %s6297_s28, 6 }
  0x16   : > { %4738 = vmatpush3.bf16.msra.mxu0 %v4735_v2  ;;  %s5345_s25 = scalar_lea.vmem %s6287_s6, %s6278_s1  ;;  %s6293_s6 = sld [smem:[#allocation8_spill]] }
  0x17   : > { %v5348_v3 = vld [vmem:[%s5345_s25] sm:$0xff]  ;;  %v5351_v4 = vld [vmem:[%s5345_s25 + $0x8] sm:$0xff]  ;;  %v5354_v5 = vld [vmem:[%s5345_s25 + $0x10] sm:$0xff]  ;;  %s6294_s1 = sld [smem:[#allocation3_spill]] }
  0x18   : > { %4413 = vmatprep.mubr.msk.f32.mxu0 %vm725_vm0, %v5348_v3  ;;  %v5363_v6 = vld [vmem:[%s5345_s25 + $0x18] sm:$0xff]  ;;  %v5366_v7 = vld [vmem:[%s5345_s25 + $0x20] sm:$0xff]  ;;  %v5373_v8 = vld [vmem:[%s5345_s25 + $0x28] sm:$0xff] }
  0x19   : > { %4414 = vmatmul.mubr.msk.f32.vlgmr.msra.gmra.mrb[0].mxu0 %vm725_vm0, %v5351_v4  ;;  %v710_v9 = vld [vmem:[%s5345_s25 + $0x30] sm:$0xff]  ;;  %v5380_v10 = vld [vmem:[%s5345_s25 + $0x38] sm:$0xff] }
  0x1a   : > { %4416 = vmatprep.mubr.msk.f32.mxu0 %vm725_vm0, %v5354_v5 }
  0x1d   : > { %4417 = vmatmul.mubr.msk.f32.gmra.mrb[2].mxu0 %vm725_vm0, %v5363_v6 }
  0x1e   : > { %4419 = vmatprep.mubr.msk.f32.mxu0 %vm725_vm0, %v5366_v7 }
  0x21   : > { %4420 = vmatmul.mubr.msk.f32.gmra.mrb[4].mxu0 %vm725_vm0, %v5373_v8 }
  0x22   : > { %4422 = vmatprep.mubr.msk.f32.mxu0 %vm725_vm0, %v710_v9 }
  0x25   : > { %4423 = vmatmul.mubr.msk.f32.gmra.mrb[6].mxu0 %vm725_vm0, %v5380_v10 }
  0xec   : > { %v4415_v12 = vpop.f32.mrb[0].mxu0 }
  0xed   : > { %v822_v13 = vadd.f32 %v4415_v12, %v4039_v11  ;;  %v816_v14 = vpop.f32.mrb[1].mxu0 }
  0xee   : > { %v817_v15 = vadd.f32 %v4039_v11, %v816_v14 }
  0xef   : > { %v5429_v50 = vmul.f32 0.35355338, %v822_v13 }
  0xf0   : > { %v5387_v16 = vpack.i.bf16 %v822_v13, %v817_v15  ;;  %v5389_v17 = vmul.f32 0.35355338, %v817_v15  ;;  %v4418_v18 = vpop.f32.mrb[2].mxu0 }
  0xf1   : > { %v832_v19 = vadd.f32 %v4418_v18, %v4039_v11  ;;  %v826_v20 = vpop.f32.mrb[3].mxu0 }
  0xf2   : > { %4909 = vrot.lane.b32.xlu0 %v5387_v16, %s5203_s29  ;;  %4441 = vmatprep.mubr.msk.f32.mxu1 %vm887_vm1, %v5389_v17  ;;  %v827_v21 = vadd.f32 %v4039_v11, %v826_v20 }
  0xf3   : > { %v5437_v52 = vmul.f32 0.35355338, %v832_v19 }
  0xf4   : > { %v5395_v22 = vpack.i.bf16 %v832_v19, %v827_v21  ;;  %v4421_v23 = vpop.f32.mrb[4].mxu0  ;;  %v5431_v51 = vmul.f32 0.35355338, %v827_v21 }
  0xf5   : > { %v842_v24 = vadd.f32 %v4421_v23, %v4039_v11  ;;  %v836_v25 = vpop.f32.mrb[5].mxu0 }
  0xf6   : > { %4914 = vrot.lane.b32.xlu0 %v5395_v22, %s5203_s29  ;;  %v837_v26 = vadd.f32 %v4039_v11, %v836_v25 }
  0xf7   : > { %v5445_v54 = vmul.f32 0.35355338, %v842_v24 }
  0xf8   : > { %v5399_v27 = vpack.i.bf16 %v842_v24, %v837_v26  ;;  %v4424_v28 = vpop.f32.mrb[6].mxu0  ;;  %v5439_v53 = vmul.f32 0.35355338, %v837_v26 }
  0xf9   : > { %v852_v29 = vadd.f32 %v4424_v28, %v4039_v11  ;;  %v846_v30 = vpop.f32.mrb[7].mxu0 }
  0xfa   : > { %4919 = vrot.lane.b32.xlu1 %v5399_v27, %s5203_s29  ;;  %v847_v31 = vadd.f32 %v4039_v11, %v846_v30 }
  0xfb   : > { %v5453_v56 = vmul.f32 0.35355338, %v852_v29 }
  0xfc   : > { %v5403_v32 = vpack.i.bf16 %v852_v29, %v847_v31  ;;  %v5447_v55 = vmul.f32 0.35355338, %v847_v31 }
  0xfe   : > { %4924 = vrot.lane.b32.xlu1 %v5403_v32, %s5203_s29 }
 0x164   : > { %v4910_v33 = vpop.permute.xlu0 %4909 }
 0x165   : > { %v4912_v34 = vunpack.i.h.bf16 %v4910_v33  ;;  %v4911_v35 = vunpack.i.l.bf16 %v4910_v33 }
 0x167   : > { %v4739_v37 = vpack.c.bf16 %v4912_v34, %v4911_v35 }
 0x168   : > { %v4915_v38 = vpop.permute.xlu0 %4914 }
 0x169   : > { %4741 = vmatprep.subr.msk.bf16.mxu1 %vm5409_vm2, %v4739_v37  ;;  %v4917_v39 = vunpack.i.h.bf16 %v4915_v38  ;;  %v4916_v40 = vunpack.i.l.bf16 %v4915_v38 }
 0x16a   : > { %4744 = vmatpush3.bf16.xpose.msk.msra.mxu1 %vm5409_vm2, %v4739_v37 }
 0x16b   : > { %v4745_v41 = vpack.c.bf16 %v4917_v39, %v4916_v40 }
 0x16c   : > { %v4920_v42 = vpop.permute.xlu1 %4919 }
 0x16d   : > { %4747 = vmatprep.subr.msk.bf16.mxu1 %vm5409_vm2, %v4745_v41  ;;  %v4922_v43 = vunpack.i.h.bf16 %v4920_v42  ;;  %v4921_v44 = vunpack.i.l.bf16 %v4920_v42 }
 0x16f   : > { %v4751_v45 = vpack.c.bf16 %v4922_v43, %v4921_v44 }
 0x170   : > { %v4925_v46 = vpop.permute.xlu1 %4924 }
 0x171   : > { %v4927_v47 = vunpack.i.h.bf16 %v4925_v46  ;;  %v4926_v48 = vunpack.i.l.bf16 %v4925_v46 }
 0x172   : > { %4750 = vmatpush3.bf16.xpose.msk.msra.mxu1 %vm5409_vm2, %v4745_v41 }
 0x173   : > { %4753 = vmatprep.subr.msk.bf16.mxu1 %vm5409_vm2, %v4751_v45  ;;  %v4757_v49 = vpack.c.bf16 %v4927_v47, %v4926_v48 }
 0x17a   : > { %4756 = vmatpush3.bf16.xpose.msk.msra.mxu1 %vm5409_vm2, %v4751_v45 }
 0x17b   : > { %4759 = vmatprep.subr.msk.bf16.mxu1 %vm5409_vm2, %v4757_v49 }
 0x182   : > { %4762 = vmatpush3.bf16.xpose.msk.msra.mxu1 %vm5409_vm2, %v4757_v49 }
 0x189   : > { %4442 = vmatmul.mubr.msk.f32.vlgmr.msra.gmra.mrb[0].mxu1 %vm887_vm1, %v5429_v50 }
 0x18a   : > { %4444 = vmatprep.mubr.msk.f32.mxu1 %vm887_vm1, %v5431_v51 }
 0x18d   : > { %4445 = vmatmul.mubr.msk.f32.gmra.mrb[2].mxu1 %vm887_vm1, %v5437_v52 }
 0x18e   : > { %4447 = vmatprep.mubr.msk.f32.mxu1 %vm887_vm1, %v5439_v53 }
 0x191   : > { %4448 = vmatmul.mubr.msk.f32.gmra.mrb[4].mxu1 %vm887_vm1, %v5445_v54 }
 0x192   : > { %4450 = vmatprep.mubr.msk.f32.mxu1 %vm887_vm1, %v5447_v55 }
 0x195   : > { %4451 = vmatmul.mubr.msk.f32.gmra.mrb[6].mxu1 %vm887_vm1, %v5453_v56 }
 0x25c   : > { %v4443_v57 = vpop.f32.mrb[0].mxu1 }
 0x25d   : > { %v994_v58 = vpop.f32.mrb[1].mxu1  ;;  %v1037_v59 = vsel %vm1033_vm3, %v4443_v57, -inf }
 0x25e   : > { %1038 = vmax.xlane.f32.xlu1 %v1037_v59  ;;  %v1034_v60 = vsel %vm1033_vm3, %v994_v58, -inf }
 0x25f   : > { %1035 = vmax.xlane.f32.xlu0 %v1034_v60 }
 0x260   : > { %v5459_v61 = vpop.f32.mrb[2].mxu1 }
 0x261   : > { %v1004_v62 = vpop.f32.mrb[3].mxu1  ;;  %v1043_v63 = vsel %vm1033_vm3, %v5459_v61, -inf }
 0x262   : > { %v1040_v2 = vsel %vm1033_vm3, %v1004_v62, -inf }
 0x263   : > { %1044 = vmax.xlane.f32.xlu0 %v1043_v63 }
 0x264   : > { %v4449_v0 = vpop.f32.mrb[4].mxu1 }
 0x265   : > { %v5463_v1 = vpop.f32.mrb[5].mxu1  ;;  %v1049_v12 = vsel %vm1033_vm3, %v4449_v0, -inf }
 0x266   : > { %v1046_v14 = vsel %vm1033_vm3, %v5463_v1, -inf }
 0x267   : > { %1041 = vmax.xlane.f32.xlu0 %v1040_v2 }
 0x268   : > { %v5466_v9 = vpop.f32.mrb[6].mxu1 }
 0x269   : > { %v5468_v11 = vpop.f32.mrb[7].mxu1  ;;  %v1055_v13 = vsel %vm1033_vm3, %v5466_v9, -inf }
 0x26a   : > { %v1052_v15 = vsel %vm1033_vm3, %v5468_v11, -inf }
 0x26b   : > { %1050 = vmax.xlane.f32.xlu0 %v1049_v12 }
 0x26f   : > { %4929 = vrot.lane.b32.xlu1 %v5387_v16, %s5204_s30  ;;  %1056 = vmax.xlane.f32.xlu0 %v1055_v13 }
 0x285   : > { %4934 = vrot.lane.b32.xlu0 %v5395_v22, %s5204_s30 }
 0x293   : > { %1047 = vmax.xlane.f32.xlu1 %v1046_v14 }
 0x2a4   : > { %4939 = vrot.lane.b32.xlu1 %v5399_v27, %s5204_s30 }
 0x2c8   : > { %1053 = vmax.xlane.f32.xlu1 %v1052_v15 }
 0x2d9   : > { %4944 = vrot.lane.b32.xlu1 %v5403_v32, %s5204_s30  ;;  %s4211_s30 = sshll.u32 %s6297_s28, 5 }
 0x2eb   : > { %v1039_v18 = vpop.xlane.xlu1 %1038 }
 0x2ec   : > { %v1059_v19 = vsub.f32 %v4443_v57, %v1039_v18  ;;  %v1036_v20 = vpop.xlane.xlu0 %1035 }
 0x2ed   : > { %v1058_v21 = vsub.f32 %v994_v58, %v1036_v20 }
 0x2ee   : > { %v1068_v23 = vmul.f32 1.442695, %v1059_v19 }
 0x2ef   : > { %v1066_v24 = vmul.f32 1.442695, %v1058_v21  ;;  %v4930_v25 = vpop.permute.xlu1 %4929 }
 0x2f0   : > { %5018 = vpow2.f32 %v1068_v23  ;;  %v4932_v26 = vunpack.i.h.bf16 %v4930_v25  ;;  %v4931_v28 = vunpack.i.l.bf16 %v4930_v25  ;;  %v1045_v29 = vpop.xlane.xlu0 %1044 }
 0x2f1   : > { %5020 = vpow2.f32 %v1066_v24  ;;  %v1061_v59 = vsub.f32 %v5459_v61, %v1045_v29 }
 0x2f2   : > { %v4763_v30 = vpack.c.bf16 %v4932_v26, %v4931_v28 }
 0x2f4   : > { %4764 = vmatprep.subr.bf16.mxu0 %v4763_v30  ;;  %v1042_v31 = vpop.xlane.xlu0 %1041 }
 0x2f5   : > { %v1060_v33 = vsub.f32 %v1004_v62, %v1042_v31  ;;  %4766 = vmatpush3.bf16.msra.mxu0 %v4763_v30  ;;  %v1072_v62 = vmul.f32 1.442695, %v1061_v59 }
 0x2f7   : > { %v1070_v34 = vmul.f32 1.442695, %v1060_v33 }
 0x2f8   : > { %v1051_v35 = vpop.xlane.xlu0 %1050 }
 0x2f9   : > { %5022 = vpow2.f32 %v1070_v34  ;;  %v1063_v37 = vsub.f32 %v4449_v0, %v1051_v35 }
 0x2fa   : > { %v5481_v38 = vpop.eup %5018 }
 0x2fb   : > { %v5483_v39 = vpop.eup %5020  ;;  %v1076_v40 = vmul.f32 1.442695, %v1063_v37  ;;  %v1085_v41 = vsel %vm1033_vm3, %v5481_v38, 0.0 }
 0x2fc   : > { %1086 = vadd.xlane.f32.xlu0 %v1085_v41  ;;  %v1057_v42 = vpop.xlane.xlu0 %1056  ;;  %v1082_v43 = vsel %vm1033_vm3, %v5483_v39, 0.0 }
 0x2fd   : > { %5024 = vpow2.f32 %v1076_v40  ;;  %1083 = vadd.xlane.f32.xlu1 %v1082_v43  ;;  %v1065_v60 = vsub.f32 %v5466_v9, %v1057_v42 }
 0x2fe   : > { %5026 = vpow2.f32 %v1072_v62 }
 0x2ff   : > { %v1080_v2 = vmul.f32 1.442695, %v1065_v60 }
 0x300   : > { %v4935_v44 = vpop.permute.xlu0 %4934 }
 0x301   : > { %v4937_v45 = vunpack.i.h.bf16 %v4935_v44  ;;  %v4936_v46 = vunpack.i.l.bf16 %v4935_v44 }
 0x303   : > { %v5489_v47 = vpop.eup %5022  ;;  %v4767_v48 = vpack.c.bf16 %v4937_v45, %v4936_v46 }
 0x304   : > { %v1088_v49 = vsel %vm1033_vm3, %v5489_v47, 0.0 }
 0x305   : > { %1089 = vadd.xlane.f32.xlu0 %v1088_v49  ;;  %4768 = vmatprep.subr.bf16.mxu0 %v4767_v48 }
 0x306   : > { %4770 = vmatpush3.bf16.msra.mxu0 %v4767_v48 }
 0x307   : > { %v5493_v57 = vpop.eup %5024 }
 0x308   : > { %v1097_v58 = vsel %vm1033_vm3, %v5493_v57, 0.0  ;;  %v5502_v19 = vpop.eup %5026 }
 0x309   : > { %1098 = vadd.xlane.f32.xlu0 %v1097_v58 }
 0x30e   : > { %4949 = vrot.lane.b32.xlu1 %v5387_v16, %s5205_s0 }
 0x320   : > { %v1048_v63 = vpop.xlane.xlu1 %1047 }
 0x321   : > { %v1062_v0 = vsub.f32 %v5463_v1, %v1048_v63  ;;  %v1091_v1 = vsel %vm1033_vm3, %v5502_v19, 0.0 }
 0x323   : > { %v1074_v12 = vmul.f32 1.442695, %v1062_v0 }
 0x324   : > { %v4940_v13 = vpop.permute.xlu1 %4939 }
 0x325   : > { %5028 = vpow2.f32 %v1074_v12  ;;  %v4942_v14 = vunpack.i.h.bf16 %v4940_v13  ;;  %v4941_v15 = vunpack.i.l.bf16 %v4940_v13 }
 0x326   : > { %5030 = vpow2.f32 %v1080_v2 }
 0x327   : > { %v4771_v18 = vpack.c.bf16 %v4942_v14, %v4941_v15 }
 0x329   : > { %4772 = vmatprep.subr.bf16.mxu0 %v4771_v18 }
 0x32a   : > { %4774 = vmatpush3.bf16.msra.mxu0 %v4771_v18 }
 0x32f   : > { %v5504_v61 = vpop.eup %5028 }
 0x330   : > { %v1094_v9 = vsel %vm1033_vm3, %v5504_v61, 0.0  ;;  %v5508_v20 = vpop.eup %5030 }
 0x331   : > { %1095 = vadd.xlane.f32.xlu0 %v1094_v9  ;;  %v1103_v21 = vsel %vm1033_vm3, %v5508_v20, 0.0 }
 0x332   : > { %1092 = vadd.xlane.f32.xlu1 %v1091_v1 }
 0x335   : > { %1104 = vadd.xlane.f32.xlu0 %v1103_v21 }
 0x343   : > { %4959 = vrot.lane.b32.xlu1 %v5399_v27, %s5205_s0 }
 0x347   : > { %4964 = vrot.lane.b32.xlu1 %v5403_v32, %s5205_s0 }
 0x34b   : > { %1276 = vrot.lane.b32.xlu1 %v5389_v17, %s5206_s23 }
 0x34f   : > { %1278 = vrot.lane.b32.xlu1 %v5429_v50, %s5206_s23 }
 0x353   : > { %1282 = vrot.lane.b32.xlu1 %v5437_v52, %s5206_s23 }
 0x355   : > { %v1054_v23 = vpop.xlane.xlu1 %1053 }
 0x356   : > { %v1064_v24 = vsub.f32 %v5468_v11, %v1054_v23 }
 0x357   : > { %1286 = vrot.lane.b32.xlu1 %v5445_v54, %s5206_s23 }
 0x358   : > { %v1078_v25 = vmul.f32 1.442695, %v1064_v24 }
 0x359   : > { %v4945_v26 = vpop.permute.xlu1 %4944 }
 0x35a   : > { %5032 = vpow2.f32 %v1078_v25  ;;  %v4947_v28 = vunpack.i.h.bf16 %v4945_v26  ;;  %v4946_v29 = vunpack.i.l.bf16 %v4945_v26 }
 0x35b   : > { %1290 = vrot.lane.b32.xlu1 %v5453_v56, %s5206_s23 }
 0x35c   : > { %v4775_v17 = vpack.c.bf16 %v4947_v28, %v4946_v29 }
 0x35e   : > { %4776 = vmatprep.subr.bf16.mxu0 %v4775_v17 }
 0x35f   : > { %4778 = vmatpush3.bf16.msra.mxu0 %v4775_v17 }
 0x364   : > { %v5033_v50 = vpop.eup %5032 }
 0x365   : > { %v1100_v52 = vsel %vm1033_vm3, %v5033_v50, 0.0 }
 0x366   : > { %1101 = vadd.xlane.f32.xlu0 %v1100_v52 }
 0x37c   : > { %4954 = vrot.lane.b32.xlu0 %v5395_v22, %s5205_s0 }
 0x380   : > { %1280 = vrot.lane.b32.xlu0 %v5431_v51, %s5206_s23 }
 0x384   : > { %1284 = vrot.lane.b32.xlu0 %v5439_v53, %s5206_s23 }
 0x388   : > { %1288 = vrot.lane.b32.xlu0 %v5447_v55, %s5206_s23 }
 0x389   : > { %v1087_v54 = vpop.xlane.xlu0 %1086 }
 0x38a   : > { %5034 = vrcp.f32 %v1087_v54  ;;  %v1084_v56 = vpop.xlane.xlu1 %1083 }
 0x38b   : > { %5036 = vrcp.f32 %v1084_v56 }
 0x38e   : > { %v4950_v11 = vpop.permute.xlu1 %4949 }
 0x38f   : > { %v4952_v30 = vunpack.i.h.bf16 %v4950_v11  ;;  %v4951_v31 = vunpack.i.l.bf16 %v4950_v11 }
 0x391   : > { %v4779_v33 = vpack.c.bf16 %v4952_v30, %v4951_v31 }
 0x392   : > { %v1090_v34 = vpop.xlane.xlu0 %1089 }
 0x393   : > { %5038 = vrcp.f32 %v1090_v34  ;;  %4781 = vmatprep.subr.msk.bf16.mxu0 %vm5409_vm2, %v4779_v33 }
 0x394   : > { %v5035_v51 = vpop.eup %5034 }
 0x395   : > { %v5037_v35 = vpop.eup %5036  ;;  %v1115_v37 = vmul.f32 %v5035_v51, %v5481_v38 }
 0x396   : > { %v1114_v53 = vmul.f32 %v5037_v35, %v5483_v39  ;;  %v1099_v41 = vpop.xlane.xlu0 %1098 }
 0x398   : > { %4469 = vmatprep.mubr.msk.f32.mxu0 %vm1033_vm3, %v1114_v53 }
 0x399   : > { %4470 = vmatmul.mubr.msk.f32.vlgmr.msra.gmra.mrb[8].mxu0 %vm1033_vm3, %v1115_v37 }
 0x39a   : > { %4784 = vmatpush3.bf16.xpose.msk.msra.mxu0 %vm5409_vm2, %v4779_v33 }
 0x39d   : > { %v5039_v55 = vpop.eup %5038 }
 0x39e   : > { %v1116_v40 = vmul.f32 %v5039_v55, %v5489_v47 }
 0x3a0   : > { %4472 = vmatprep.mubr.msk.f32.mxu0 %vm1033_vm3, %v1116_v40 }
 0x3be   : > { %v1096_v42 = vpop.xlane.xlu0 %1095 }
 0x3bf   : > { %5040 = vrcp.f32 %v1096_v42  ;;  %v1093_v43 = vpop.xlane.xlu1 %1092 }
 0x3c0   : > { %5042 = vrcp.f32 %v1093_v43 }
 0x3c1   : > { %5044 = vrcp.f32 %v1099_v41 }
 0x3c2   : > { %v1105_v48 = vpop.xlane.xlu0 %1104 }
 0x3c3   : > { %5046 = vrcp.f32 %v1105_v48  ;;  %v4960_v58 = vpop.permute.xlu1 %4959 }
 0x3c4   : > { %v4962_v60 = vunpack.i.h.bf16 %v4960_v58  ;;  %v4961_v62 = vunpack.i.l.bf16 %v4960_v58 }
 0x3c6   : > { %v4791_v12 = vpack.c.bf16 %v4962_v60, %v4961_v62 }
 0x3c7   : > { %v4965_v13 = vpop.permute.xlu1 %4964 }
 0x3c8   : > { %v4967_v18 = vunpack.i.h.bf16 %v4965_v13 }
 0x3c9   : > { %v5041_v39 = vpop.eup %5040 }
 0x3ca   : > { %v5043_v38 = vpop.eup %5042  ;;  %v1118_v46 = vmul.f32 %v5041_v39, %v5504_v61 }
 0x3cb   : > { %v1117_v44 = vmul.f32 %v5043_v38, %v5502_v19  ;;  %v5045_v45 = vpop.eup %5044  ;;  %v4966_v19 = vunpack.i.l.bf16 %v4965_v13  ;;  %v1277_v9 = vpop.permute.xlu1 %1276 }
 0x3cc   : > { %v1119_v47 = vmul.f32 %v5045_v45, %v5493_v57 }
 0x3cd   : > { %4473 = vmatmul.mubr.msk.f32.gmra.mrb[10].mxu0 %vm1033_vm3, %v1117_v44  ;;  %v5047_v14 = vpop.eup %5046  ;;  %v4797_v1 = vpack.c.bf16 %v4967_v18, %v4966_v19 }
 0x3ce   : > { %4475 = vmatprep.mubr.msk.f32.mxu0 %vm1033_vm3, %v1118_v46  ;;  %v1121_v61 = vmul.f32 %v5047_v14, %v5508_v20 }
 0x3cf   : > { %v1279_v21 = vpop.permute.xlu1 %1278 }
 0x3d1   : > { %4476 = vmatmul.mubr.msk.f32.gmra.mrb[12].mxu0 %vm1033_vm3, %v1119_v47 }
 0x3d3   : > { %v1283_v20 = vpop.permute.xlu1 %1282 }
 0x3d7   : > { %v1287_v25 = vpop.permute.xlu1 %1286 }
 0x3db   : > { %v1291_v28 = vpop.permute.xlu1 %1290 }
 0x3f3   : > { %v1102_v49 = vpop.xlane.xlu0 %1101 }
 0x3f4   : > { %5048 = vrcp.f32 %v1102_v49 }
 0x3f7   : > { %v4955_v59 = vpop.permute.xlu0 %4954 }
 0x3f8   : > { %v4957_v63 = vunpack.i.h.bf16 %v4955_v59  ;;  %v4956_v0 = vunpack.i.l.bf16 %v4955_v59 }
 0x3fa   : > { %v4785_v2 = vpack.c.bf16 %v4957_v63, %v4956_v0 }
 0x3fb   : > { %v1281_v23 = vpop.permute.xlu0 %1280 }
 0x3fc   : > { %4787 = vmatprep.subr.msk.bf16.mxu0 %vm5409_vm2, %v4785_v2 }
 0x3fd   : > { %4790 = vmatpush3.bf16.xpose.msk.msra.mxu0 %vm5409_vm2, %v4785_v2 }
 0x3fe   : > { %v5049_v57 = vpop.eup %5048  ;;  %4793 = vmatprep.subr.msk.bf16.mxu0 %vm5409_vm2, %v4791_v12 }
 0x3ff   : > { %v1120_v15 = vmul.f32 %v5049_v57, %v5033_v50  ;;  %v1285_v24 = vpop.permute.xlu0 %1284 }
 0x401   : > { %4478 = vmatprep.mubr.msk.f32.mxu0 %vm1033_vm3, %v1120_v15 }
 0x402   : > { %4479 = vmatmul.mubr.msk.f32.gmra.mrb[14].mxu0 %vm1033_vm3, %v1121_v61 }
 0x403   : > { %4497 = vmatprep.mubr.msk.f32.mxu0 %vm887_vm1, %v1277_v9  ;;  %v1289_v26 = vpop.permute.xlu0 %1288 }
 0x405   : > { %4796 = vmatpush3.bf16.xpose.msk.msra.mxu0 %vm5409_vm2, %v4791_v12 }
 0x406   : > { %4799 = vmatprep.subr.msk.bf16.mxu0 %vm5409_vm2, %v4797_v1 }
 0x40d   : > { %4802 = vmatpush3.bf16.xpose.msk.msra.mxu0 %vm5409_vm2, %v4797_v1 }
 0x414   : > { %4498 = vmatmul.mubr.msk.f32.vlgmr.msra.gmra.mrb[16].mxu0 %vm887_vm1, %v1279_v21 }
 0x415   : > { %4500 = vmatprep.mubr.msk.f32.mxu0 %vm887_vm1, %v1281_v23 }
 0x418   : > { %4501 = vmatmul.mubr.msk.f32.gmra.mrb[18].mxu0 %vm887_vm1, %v1283_v20 }
 0x419   : > { %4503 = vmatprep.mubr.msk.f32.mxu0 %vm887_vm1, %v1285_v24 }
 0x41c   : > { %4504 = vmatmul.mubr.msk.f32.gmra.mrb[20].mxu0 %vm887_vm1, %v1287_v25 }
 0x41d   : > { %4506 = vmatprep.mubr.msk.f32.mxu0 %vm887_vm1, %v1289_v26 }
 0x420   : > { %4507 = vmatmul.mubr.msk.f32.gmra.mrb[22].mxu0 %vm887_vm1, %v1291_v28 }
 0x46c   : > { %v5577_v29 = vpop.f32.mrb[8].mxu0 }
 0x46d   : > { %v5579_v17 = vpop.f32.mrb[9].mxu0 }
 0x4a0   : > { %v5581_v50 = vpop.f32.mrb[10].mxu0 }
 0x4a1   : > { %v5583_v52 = vpop.f32.mrb[11].mxu0 }
 0x4a4   : > { %v5585_v54 = vpop.f32.mrb[12].mxu0 }
 0x4a5   : > { %v5587_v56 = vpop.f32.mrb[13].mxu0 }
 0x4d5   : > { %v5589_v11 = vpop.f32.mrb[14].mxu0 }
 0x4d6   : > { %v5591_v30 = vpop.f32.mrb[15].mxu0 }
 0x4e7   : > { %v4499_v31 = vpop.f32.mrb[16].mxu0 }
 0x4e8   : > { %v1406_v33 = vpop.f32.mrb[17].mxu0  ;;  %v1448_v34 = vsel %vm1033_vm3, %v4499_v31, -inf }
 0x4e9   : > { %1449 = vmax.xlane.f32.xlu1 %v1448_v34  ;;  %v1445_v51 = vsel %vm1033_vm3, %v1406_v33, -inf }
 0x4ea   : > { %1446 = vmax.xlane.f32.xlu0 %v1445_v51 }
 0x4eb   : > { %v4502_v35 = vpop.f32.mrb[18].mxu0 }
 0x4ec   : > { %v1416_v53 = vpop.f32.mrb[19].mxu0  ;;  %v1454_v41 = vsel %vm1033_vm3, %v4502_v35, -inf }
 0x4ed   : > { %v1451_v37 = vsel %vm1033_vm3, %v1416_v53, -inf }
 0x4ee   : > { %1452 = vmax.xlane.f32.xlu0 %v1451_v37 }
 0x4ef   : > { %v4505_v55 = vpop.f32.mrb[20].mxu0 }
 0x4f0   : > { %v1426_v40 = vpop.f32.mrb[21].mxu0  ;;  %v1460_v38 = vsel %vm1033_vm3, %v4505_v55, -inf }
 0x4f1   : > { %v1457_v42 = vsel %vm1033_vm3, %v1426_v40, -inf }
 0x4f2   : > { %1455 = vmax.xlane.f32.xlu0 %v1454_v41  ;;  %1458 = vmax.xlane.f32.xlu1 %v1457_v42 }
 0x4f3   : > { %v4508_v43 = vpop.f32.mrb[22].mxu0 }
 0x4f4   : > { %v1436_v39 = vpop.f32.mrb[23].mxu0  ;;  %v1466_v45 = vsel %vm1033_vm3, %v4508_v43, -inf }
 0x4f5   : > { %v1463_v44 = vsel %vm1033_vm3, %v1436_v39, -inf }
 0x4f6   : > { %1461 = vmax.xlane.f32.xlu0 %v1460_v38  ;;  %1464 = vmax.xlane.f32.xlu1 %v1463_v44 }
 0x4fa   : > { %1467 = vmax.xlane.f32.xlu0 %v1466_v45 }
 0x507   : > { %4969 = vrot.lane.b32.xlu1 %v5387_v16, %s5207_s5 }
 0x576   : > { %v1450_v46 = vpop.xlane.xlu1 %1449 }
 0x577   : > { %v1470_v47 = vsub.f32 %v4499_v31, %v1450_v46  ;;  %v1447_v48 = vpop.xlane.xlu0 %1446 }
 0x578   : > { %v1469_v49 = vsub.f32 %v1406_v33, %v1447_v48 }
 0x579   : > { %v1479_v58 = vmul.f32 1.442695, %v1470_v47 }
 0x57a   : > { %v1477_v59 = vmul.f32 1.442695, %v1469_v49 }
 0x57b   : > { %5050 = vpow2.f32 %v1479_v58  ;;  %v1453_v60 = vpop.xlane.xlu0 %1452 }
 0x57c   : > { %5052 = vpow2.f32 %v1477_v59  ;;  %v1471_v62 = vsub.f32 %v1416_v53, %v1453_v60 }
 0x57e   : > { %v1481_v63 = vmul.f32 1.442695, %v1471_v62 }
 0x57f   : > { %v1456_v0 = vpop.xlane.xlu0 %1455  ;;  %v1459_v2 = vpop.xlane.xlu1 %1458 }
 0x580   : > { %5054 = vpow2.f32 %v1481_v63  ;;  %v1472_v12 = vsub.f32 %v4502_v35, %v1456_v0  ;;  %v1473_v13 = vsub.f32 %v1426_v40, %v1459_v2 }
 0x582   : > { %v1483_v14 = vmul.f32 1.442695, %v1472_v12  ;;  %v1485_v57 = vmul.f32 1.442695, %v1473_v13 }
 0x583   : > { %v1462_v15 = vpop.xlane.xlu0 %1461  ;;  %v1465_v16 = vpop.xlane.xlu1 %1464 }
 0x584   : > { %5056 = vpow2.f32 %v1483_v14  ;;  %v1474_v18 = vsub.f32 %v4505_v55, %v1462_v15  ;;  %v1475_v1 = vsub.f32 %v1436_v39, %v1465_v16 }
 0x585   : > { %v5603_v19 = vpop.eup %5050  ;;  %5058 = vpow2.f32 %v1485_v57 }
 0x586   : > { %v5053_v61 = vpop.eup %5052  ;;  %v1487_v9 = vmul.f32 1.442695, %v1474_v18  ;;  %v1496_v21 = vsel %vm1033_vm3, %v5603_v19, 0.0  ;;  %v1489_v33 = vmul.f32 1.442695, %v1475_v1 }
 0x587   : > { %1497 = vadd.xlane.f32.xlu0 %v1496_v21  ;;  %v1468_v23 = vpop.xlane.xlu0 %1467  ;;  %v4970_v20 = vpop.permute.xlu1 %4969  ;;  %v1493_v24 = vsel %vm1033_vm3, %v5053_v61, 0.0 }
 0x588   : > { %5060 = vpow2.f32 %v1487_v9  ;;  %v1476_v25 = vsub.f32 %v4508_v43, %v1468_v23  ;;  %v4972_v26 = vunpack.i.h.bf16 %v4970_v20  ;;  %v4971_v28 = vunpack.i.l.bf16 %v4970_v20  ;;  %1494 = vadd.xlane.f32.xlu1 %v1493_v24  ;;  %v1686_v9 = vld [vmem:[%s6291_s26 + $0x8] sm:$0xff] }
 0x58a   : > { %v5608_v31 = vpop.eup %5054  ;;  %v1491_v34 = vmul.f32 1.442695, %v1476_v25  ;;  %v4803_v51 = vpack.c.bf16 %v4972_v26, %v4971_v28 }
 0x58b   : > { %v1499_v35 = vsel %vm1033_vm3, %v5608_v31, 0.0 }
 0x58c   : > { %5062 = vpow2.f32 %v1491_v34  ;;  %1500 = vadd.xlane.f32.xlu1 %v1499_v35  ;;  %4804 = vmatprep.subr.bf16.mxu1 %v4803_v51  ;;  %v1275_v35 = vld [vmem:[%s6291_s26] sm:$0xff] }
 0x58d   : > { %4806 = vmatpush3.bf16.msra.mxu1 %v4803_v51  ;;  %5064 = vpow2.f32 %v1489_v33 }
 0x58e   : > { %v5612_v53 = vpop.eup %5056 }
 0x58f   : > { %v5614_v37 = vpop.eup %5058  ;;  %v1502_v55 = vsel %vm1033_vm3, %v5612_v53, 0.0 }
 0x590   : > { %1503 = vadd.xlane.f32.xlu0 %v1502_v55  ;;  %v1505_v40 = vsel %vm1033_vm3, %v5614_v37, 0.0 }
 0x591   : > { %1506 = vadd.xlane.f32.xlu1 %v1505_v40 }
 0x592   : > { %v5620_v41 = vpop.eup %5060 }
 0x593   : > { %v1508_v42 = vsel %vm1033_vm3, %v5620_v41, 0.0 }
 0x594   : > { %1509 = vadd.xlane.f32.xlu0 %v1508_v42 }
 0x596   : > { %v5624_v43 = vpop.eup %5062 }
 0x597   : > { %v1514_v39 = vsel %vm1033_vm3, %v5624_v43, 0.0  ;;  %v5628_v38 = vpop.eup %5064 }
 0x598   : > { %1515 = vadd.xlane.f32.xlu0 %v1514_v39  ;;  %v1511_v44 = vsel %vm1033_vm3, %v5628_v38, 0.0 }
 0x59c   : > { %1512 = vadd.xlane.f32.xlu0 %v1511_v44 }
 0x5a2   : > { %4979 = vrot.lane.b32.xlu1 %v5399_v27, %s5207_s5 }
 0x5a6   : > { %4984 = vrot.lane.b32.xlu1 %v5403_v32, %s5207_s5 }
 0x5b2   : > { %4974 = vrot.lane.b32.xlu0 %v5395_v22, %s5207_s5 }
 0x614   : > { %v1498_v46 = vpop.xlane.xlu0 %1497 }
 0x615   : > { %v1495_v45 = vpop.xlane.xlu1 %1494 }
 0x616   : > { %5066 = vrcp.f32 %v1495_v45 }
 0x617   : > { %5068 = vrcp.f32 %v1498_v46 }
 0x619   : > { %v1501_v47 = vpop.xlane.xlu1 %1500 }
 0x61a   : > { %5070 = vrcp.f32 %v1501_v47 }
 0x61d   : > { %v1504_v48 = vpop.xlane.xlu0 %1503 }
 0x61e   : > { %v1507_v60 = vpop.xlane.xlu1 %1506  ;;  %5072 = vrcp.f32 %v1504_v48 }
 0x61f   : > { %5074 = vrcp.f32 %v1507_v60 }
 0x620   : > { %v5067_v49 = vpop.eup %5066 }
 0x621   : > { %v1510_v58 = vpop.xlane.xlu0 %1509  ;;  %v1525_v59 = vmul.f32 %v5067_v49, %v5053_v61  ;;  %v5069_v61 = vpop.eup %5068 }
 0x622   : > { %v4980_v63 = vpop.permute.xlu1 %4979  ;;  %5076 = vrcp.f32 %v1510_v58  ;;  %v1526_v21 = vmul.f32 %v5069_v61, %v5603_v19 }
 0x623   : > { %4525 = vmatprep.mubr.msk.f32.mxu1 %vm1033_vm3, %v1525_v59  ;;  %v4982_v2 = vunpack.i.h.bf16 %v4980_v63  ;;  %v4981_v32 = vunpack.i.l.bf16 %v4980_v63 }
 0x624   : > { %v5071_v1 = vpop.eup %5070 }
 0x625   : > { %v1516_v62 = vpop.xlane.xlu0 %1515  ;;  %v4811_v57 = vpack.c.bf16 %v4982_v2, %v4981_v32  ;;  %v1527_v20 = vmul.f32 %v5071_v1, %v5608_v31 }
 0x626   : > { %v4985_v22 = vpop.permute.xlu1 %4984 }
 0x627   : > { %v4987_v15 = vunpack.i.h.bf16 %v4985_v22  ;;  %v4986_v16 = vunpack.i.l.bf16 %v4985_v22  ;;  %v5194_v22 = vld [vmem:[%s5345_s25 + $0x30] sm:$0xff]  ;;  %s698_s25 = scalar_lea.vmem %s6294_s1, %s4211_s30 }
 0x628   : > { %v5073_v23 = vpop.eup %5072 }
 0x629   : > { %v1513_v27 = vpop.xlane.xlu0 %1512  ;;  %v4815_v18 = vpack.c.bf16 %v4987_v15, %v4986_v16  ;;  %v5075_v24 = vpop.eup %5074  ;;  %v1528_v25 = vmul.f32 %v5073_v23, %v5612_v53 }
 0x62a   : > { %5078 = vrcp.f32 %v1513_v27  ;;  %v1529_v28 = vmul.f32 %v5075_v24, %v5614_v37 }
 0x62b   : > { %5080 = vrcp.f32 %v1516_v62 }
 0x62c   : > { %v5077_v26 = vpop.eup %5076 }
 0x62d   : > { %v4975_v0 = vpop.permute.xlu0 %4974  ;;  %v1530_v19 = vmul.f32 %v5077_v26, %v5620_v41 }
 0x62e   : > { %v4977_v12 = vunpack.i.h.bf16 %v4975_v0  ;;  %v4976_v13 = vunpack.i.l.bf16 %v4975_v0 }
 0x630   : > { %v4807_v14 = vpack.c.bf16 %v4977_v12, %v4976_v13 }
 0x632   : > { %4808 = vmatprep.subr.bf16.mxu1 %v4807_v14 }
 0x633   : > { %4810 = vmatpush3.bf16.msra.mxu1 %v4807_v14 }
 0x634   : > { %4812 = vmatprep.subr.bf16.mxu1 %v4811_v57  ;;  %v5079_v33 = vpop.eup %5078 }
 0x635   : > { %v5081_v34 = vpop.eup %5080  ;;  %v1531_v31 = vmul.f32 %v5079_v33, %v5628_v38 }
 0x636   : > { %v1532_v51 = vmul.f32 %v5081_v34, %v5624_v43 }
 0x637   : > { %4814 = vmatpush3.bf16.msra.mxu1 %v4811_v57 }
 0x638   : > { %4816 = vmatprep.subr.bf16.mxu1 %v4815_v18 }
 0x63b   : > { %4818 = vmatpush3.bf16.msra.mxu1 %v4815_v18 }
 0x63c   : > { %4537 = vmatprep.subr.mxu1 %v1686_v9 }
 0x63e   : > { %4526 = vmatmul.mubr.msk.f32.vlgmr.msra.gmra.mrb[8].mxu1 %vm1033_vm3, %v1526_v21 }
 0x63f   : > { %4528 = vmatprep.mubr.msk.f32.mxu1 %vm1033_vm3, %v1527_v20  ;;  %4538 = vmatpush3.msra.mxu1 %v1686_v9 }
 0x640   : > { %4551 = vmatprep.subr.mxu1 %v1275_v35 }
 0x642   : > { %4529 = vmatmul.mubr.msk.f32.gmra.mrb[10].mxu1 %vm1033_vm3, %v1528_v25 }
 0x643   : > { %4531 = vmatprep.mubr.msk.f32.mxu1 %vm1033_vm3, %v1529_v28 }
 0x646   : > { %4532 = vmatmul.mubr.msk.f32.gmra.mrb[12].mxu1 %vm1033_vm3, %v1530_v19 }
 0x647   : > { %4534 = vmatprep.mubr.msk.f32.mxu1 %vm1033_vm3, %v1531_v31 }
 0x64a   : > { %4535 = vmatmul.mubr.msk.f32.gmra.mrb[14].mxu1 %vm1033_vm3, %v1532_v51 }
 0x711   : > { %v4527_v53 = vpop.f32.mrb[8].mxu1 }
 0x712   : > { %v1647_v37 = vpop.f32.mrb[9].mxu1 }
 0x713   : > { %4539 = vmatprep.mubr.msk.f32.mxu1 %vm887_vm1, %v1647_v37 }
 0x714   : > { %4540 = vmatmul.mubr.msk.f32.vlgmr.msra.gmra.mrb[16].mxu1 %vm887_vm1, %v4527_v53 }
 0x715   : > { %v4530_v55 = vpop.f32.mrb[10].mxu1  ;;  %4552 = vmatpush3.msra.mxu1 %v1275_v35 }
 0x716   : > { %v1657_v40 = vpop.f32.mrb[11].mxu1 }
 0x717   : > { %4542 = vmatprep.mubr.msk.f32.mxu1 %vm887_vm1, %v1657_v40 }
 0x718   : > { %4543 = vmatmul.mubr.msk.f32.gmra.mrb[18].mxu1 %vm887_vm1, %v4530_v55 }
 0x719   : > { %v4533_v41 = vpop.f32.mrb[12].mxu1 }
 0x71a   : > { %v1667_v42 = vpop.f32.mrb[13].mxu1 }
 0x71b   : > { %4545 = vmatprep.mubr.msk.f32.mxu1 %vm887_vm1, %v1667_v42 }
 0x71c   : > { %4546 = vmatmul.mubr.msk.f32.gmra.mrb[20].mxu1 %vm887_vm1, %v4533_v41 }
 0x71d   : > { %v4536_v43 = vpop.f32.mrb[14].mxu1 }
 0x71e   : > { %v1677_v39 = vpop.f32.mrb[15].mxu1 }
 0x71f   : > { %4548 = vmatprep.mubr.msk.f32.mxu1 %vm887_vm1, %v1677_v39 }
 0x720   : > { %4549 = vmatmul.mubr.msk.f32.gmra.mrb[22].mxu1 %vm887_vm1, %v4536_v43 }
 0x721   : > { %4553 = vmatprep.mubr.msk.f32.mxu1 %vm887_vm1, %v5579_v17 }
 0x724   : > { %4554 = vmatmul.mubr.msk.f32.vlgmr.msra.gmra.mrb[16].mxu1 %vm887_vm1, %v5577_v29  ;;  %v4112_v29 = vld [vmem:[%s6292_s24] ss:$0 sm:$0xff] }
 0x725   : > { %4556 = vmatprep.mubr.msk.f32.mxu1 %vm887_vm1, %v5583_v52 }
 0x728   : > { %4557 = vmatmul.mubr.msk.f32.gmra.mrb[18].mxu1 %vm887_vm1, %v5581_v50 }
 0x729   : > { %4559 = vmatprep.mubr.msk.f32.mxu1 %vm887_vm1, %v5587_v56 }
 0x72c   : > { %4560 = vmatmul.mubr.msk.f32.gmra.mrb[20].mxu1 %vm887_vm1, %v5585_v54 }
 0x72d   : > { %4562 = vmatprep.mubr.msk.f32.mxu1 %vm887_vm1, %v5591_v30 }
 0x730   : > { %4563 = vmatmul.mubr.msk.f32.gmra.mrb[22].mxu1 %vm887_vm1, %v5589_v11 }
 0x7f7   : > { %v4555_v17 = vpop.f32.mrb[16].mxu1 }
 0x7f8   : > { %v1953_v52 = vadd.f32 %v4555_v17, %v4112_v29  ;;  %v1906_v38 = vpop.f32.mrb[17].mxu1 }
 0x7f9   : > { %v1952_v50 = vadd.f32 %v4112_v29, %v1906_v38 }
 0x7fa   : > { %v1961_v44 = vadd.f32 %v1953_v52, %v5351_v4 }
 0x7fb   : > { %v4558_v56 = vpop.f32.mrb[18].mxu1  ;;  %v1960_v45 = vadd.f32 %v1952_v50, %v5348_v3 }
 0x7fc   : > { %v1955_v54 = vadd.f32 %v4558_v56, %v4112_v29  ;;  %v1916_v46 = vpop.f32.mrb[19].mxu1  ;;  %v1971_v30 = vsel %vm725_vm0, %v1961_v44, 0.0 }
 0x7fd   : > { %v1954_v47 = vadd.f32 %v4112_v29, %v1916_v46  ;;  %1972 = vadd.xlane.f32.xlu0 %v1971_v30  ;;  %v1968_v11 = vsel %vm725_vm0, %v1960_v45, 0.0 }
 0x7fe   : > { %1969 = vadd.xlane.f32.xlu1 %v1968_v11  ;;  %v1963_v48 = vadd.f32 %v1955_v54, %v5363_v6  ;;  %v2104_v11 = vld [vmem:[%s6261_s8 + $0x8] sm:$0xff] }
 0x7ff   : > { %v4561_v49 = vpop.f32.mrb[20].mxu1  ;;  %v1962_v58 = vadd.f32 %v1954_v47, %v5354_v5  ;;  %v2103_v47 = vld [vmem:[%s6261_s8] sm:$0xff] }
 0x800   : > { %v1957_v59 = vadd.f32 %v4561_v49, %v4112_v29  ;;  %v1926_v60 = vpop.f32.mrb[21].mxu1  ;;  %v1977_v4 = vsel %vm725_vm0, %v1963_v48, 0.0  ;;  %v2241_v49 = vld [vmem:[%s6263_s10] sm:$0xff] }
 0x801   : > { %v1956_v3 = vadd.f32 %v4112_v29, %v1926_v60  ;;  %1978 = vadd.xlane.f32.xlu0 %v1977_v4  ;;  %v1974_v62 = vsel %vm725_vm0, %v1962_v58, 0.0 }
 0x802   : > { %1975 = vadd.xlane.f32.xlu1 %v1974_v62  ;;  %v1965_v63 = vadd.f32 %v1957_v59, %v5373_v8 }
 0x803   : > { %v4564_v27 = vpop.f32.mrb[22].mxu1  ;;  %v1964_v0 = vadd.f32 %v1956_v3, %v5366_v7 }
 0x804   : > { %v1959_v2 = vadd.f32 %v4564_v27, %v4112_v29  ;;  %v1936_v6 = vpop.f32.mrb[23].mxu1  ;;  %v1983_v32 = vsel %vm725_vm0, %v1965_v63, 0.0 }
 0x805   : > { %v1958_v5 = vadd.f32 %v4112_v29, %v1936_v6  ;;  %1984 = vadd.xlane.f32.xlu0 %v1983_v32  ;;  %v1980_v12 = vsel %vm725_vm0, %v1964_v0, 0.0 }
 0x806   : > { %1981 = vadd.xlane.f32.xlu1 %v1980_v12  ;;  %v1967_v13 = vadd.f32 %v1959_v2, %v5380_v10 }
 0x807   : > { %v1966_v14 = vadd.f32 %v5194_v22, %v1958_v5 }
 0x808   : > { %v1989_v57 = vsel %vm725_vm0, %v1967_v13, 0.0 }
 0x809   : > { %1990 = vadd.xlane.f32.xlu0 %v1989_v57  ;;  %v1986_v8 = vsel %vm725_vm0, %v1966_v14, 0.0 }
 0x80a   : > { %1987 = vadd.xlane.f32.xlu1 %v1986_v8 }
 0x88a   : > { %v1973_v7 = vpop.xlane.xlu0 %1972 }
 0x88b   : > { %v1994_v15 = vmul.f32 0.0625, %v1973_v7  ;;  %v1970_v16 = vpop.xlane.xlu1 %1969 }
 0x88c   : > { %v1993_v18 = vmul.f32 0.0625, %v1970_v16 }
 0x88d   : > { %v5702_v61 = vsub.f32 %v1961_v44, %v1994_v15 }
 0x88e   : > { %v5704_v9 = vsub.f32 %v1960_v45, %v1993_v18  ;;  %v1979_v1 = vpop.xlane.xlu0 %1978 }
 0x88f   : > { %v1996_v21 = vmul.f32 0.0625, %v1979_v1  ;;  %v1976_v23 = vpop.xlane.xlu1 %1975  ;;  %v2010_v10 = vmul.f32 %v5702_v61, %v5702_v61 }
 0x890   : > { %v1995_v20 = vmul.f32 0.0625, %v1976_v23  ;;  %v2009_v24 = vmul.f32 %v5704_v9, %v5704_v9  ;;  %v4113_v23 = vld [vmem:[%s6293_s6] ss:$0 sm:$0xff] }
 0x891   : > { %v5710_v25 = vsub.f32 %v1963_v48, %v1996_v21  ;;  %v2020_v26 = vsel %vm725_vm0, %v2010_v10, 0.0  ;;  %v4819_v48 = vpack.c.bf16 %v2104_v11, %v2103_v47 }
 0x892   : > { %v5713_v28 = vsub.f32 %v1962_v58, %v1995_v20  ;;  %v1985_v33 = vpop.xlane.xlu0 %1984  ;;  %2021 = vadd.xlane.f32.xlu0 %v2020_v26  ;;  %v2017_v19 = vsel %vm725_vm0, %v2009_v24, 0.0  ;;  %v2242_v58 = vld [vmem:[%s6263_s10 + $0x8] sm:$0xff] }
 0x893   : > { %v1998_v34 = vmul.f32 0.0625, %v1985_v33  ;;  %v1982_v31 = vpop.xlane.xlu1 %1981  ;;  %2018 = vadd.xlane.f32.xlu1 %v2017_v19  ;;  %v2012_v51 = vmul.f32 %v5710_v25, %v5710_v25  ;;  %4820 = vmatprep.subr.bf16.mxu0 %v4819_v48  ;;  %v4823_v59 = vpack.c.bf16 %v2242_v58, %v2241_v49  ;;  %v4114_v19 = vld [vmem:[%s6260_s7] ss:$0 sm:$0xff]  ;;  %v714_v49 = vld [vmem:[%s698_s25 + $0x10] sm:$0xff]  ;;  %v715_v58 = vld [vmem:[%s698_s25 + $0x18] sm:$0xff] }
 0x894   : > { %v1997_v35 = vmul.f32 0.0625, %v1982_v31  ;;  %v2011_v53 = vmul.f32 %v5713_v28, %v5713_v28  ;;  %4822 = vmatpush3.bf16.msra.mxu0 %v4819_v48  ;;  %v712_v48 = vld [vmem:[%s698_s25] sm:$0xff] }
 0x895   : > { %v5720_v37 = vsub.f32 %v1965_v63, %v1998_v34  ;;  %v2026_v55 = vsel %vm725_vm0, %v2012_v51, 0.0  ;;  %4824 = vmatprep.subr.bf16.mxu0 %v4823_v59 }
 0x896   : > { %v5723_v40 = vsub.f32 %v1964_v0, %v1997_v35  ;;  %2027 = vadd.xlane.f32.xlu0 %v2026_v55  ;;  %v1991_v41 = vpop.xlane.xlu0 %1990  ;;  %v2023_v42 = vsel %vm725_vm0, %v2011_v53, 0.0 }
 0x897   : > { %v2000_v43 = vmul.f32 0.0625, %v1991_v41  ;;  %2024 = vadd.xlane.f32.xlu1 %v2023_v42  ;;  %v1988_v39 = vpop.xlane.xlu1 %1987  ;;  %v2014_v29 = vmul.f32 %v5720_v37, %v5720_v37 }
 0x898   : > { %v1999_v17 = vmul.f32 0.0625, %v1988_v39  ;;  %v2013_v52 = vmul.f32 %v5723_v40, %v5723_v40 }
 0x899   : > { %v5730_v38 = vsub.f32 %v1967_v13, %v2000_v43  ;;  %v2032_v50 = vsel %vm725_vm0, %v2014_v29, 0.0 }
 0x89a   : > { %v5733_v44 = vsub.f32 %v1966_v14, %v1999_v17  ;;  %2033 = vadd.xlane.f32.xlu0 %v2032_v50  ;;  %v2029_v56 = vsel %vm725_vm0, %v2013_v52, 0.0 }
 0x89b   : > { %2030 = vadd.xlane.f32.xlu1 %v2029_v56  ;;  %v2016_v45 = vmul.f32 %v5730_v38, %v5730_v38 }
 0x89c   : > { %v2015_v54 = vmul.f32 %v5733_v44, %v5733_v44 }
 0x89d   : > { %v2038_v46 = vsel %vm725_vm0, %v2016_v45, 0.0 }
 0x89e   : > { %2039 = vadd.xlane.f32.xlu0 %v2038_v46  ;;  %v2035_v30 = vsel %vm725_vm0, %v2015_v54, 0.0 }
 0x89f   : > { %2036 = vadd.xlane.f32.xlu1 %v2035_v30 }
 0x91f   : > { %v2022_v60 = vpop.xlane.xlu0 %2021 }
 0x920   : > { %v2042_v4 = vmul.f32 0.0625, %v2022_v60  ;;  %v2019_v3 = vpop.xlane.xlu1 %2018 }
 0x921   : > { %v2041_v62 = vmul.f32 0.0625, %v2019_v3 }
 0x922   : > { %v2050_v63 = vadd.f32 1e-05, %v2042_v4 }
 0x923   : > { %v2049_v27 = vadd.f32 1e-05, %v2041_v62  ;;  %v2028_v0 = vpop.xlane.xlu0 %2027 }
 0x924   : > { %5082 = vrsqrt.f32 %v2050_v63  ;;  %v2044_v2 = vmul.f32 0.0625, %v2028_v0  ;;  %v2025_v6 = vpop.xlane.xlu1 %2024 }
 0x925   : > { %5084 = vrsqrt.f32 %v2049_v27  ;;  %v2043_v32 = vmul.f32 0.0625, %v2025_v6 }
 0x926   : > { %v2052_v5 = vadd.f32 1e-05, %v2044_v2 }
 0x927   : > { %v2051_v12 = vadd.f32 1e-05, %v2043_v32  ;;  %v2034_v13 = vpop.xlane.xlu0 %2033 }
 0x928   : > { %5086 = vrsqrt.f32 %v2052_v5  ;;  %v2046_v22 = vmul.f32 0.0625, %v2034_v13  ;;  %v2031_v14 = vpop.xlane.xlu1 %2030  ;;  %v4124_v5 = vld [vmem:[%s6264_s11] ss:$0 sm:$0xff] }
 0x929   : > { %5088 = vrsqrt.f32 %v2051_v12  ;;  %v2045_v57 = vmul.f32 0.0625, %v2031_v14 }
 0x92a   : > { %v2054_v8 = vadd.f32 1e-05, %v2046_v22 }
 0x92b   : > { %v2053_v7 = vadd.f32 1e-05, %v2045_v57  ;;  %v2040_v15 = vpop.xlane.xlu0 %2039 }
 0x92c   : > { %5090 = vrsqrt.f32 %v2054_v8  ;;  %v2048_v16 = vmul.f32 0.0625, %v2040_v15  ;;  %v2037_v18 = vpop.xlane.xlu1 %2036 }
 0x92d   : > { %5092 = vrsqrt.f32 %v2053_v7  ;;  %v2047_v1 = vmul.f32 0.0625, %v2037_v18 }
 0x92e   : > { %v5083_v21 = vpop.eup %5082  ;;  %v2056_v10 = vadd.f32 1e-05, %v2048_v16 }
 0x92f   : > { %v5085_v20 = vpop.eup %5084  ;;  %v2066_v24 = vmul.f32 %v5083_v21, %v5702_v61  ;;  %v2055_v26 = vadd.f32 1e-05, %v2047_v1 }
 0x930   : > { %5094 = vrsqrt.f32 %v2056_v10  ;;  %v2065_v33 = vmul.f32 %v5085_v20, %v5704_v9 }
 0x931   : > { %v2081_v34 = vmul.f32 %v4113_v23, %v2066_v24  ;;  %5096 = vrsqrt.f32 %v2055_v26 }
 0x932   : > { %v5087_v31 = vpop.eup %5086  ;;  %v2080_v51 = vmul.f32 %v4113_v23, %v2065_v33 }
 0x933   : > { %v5089_v35 = vpop.eup %5088  ;;  %v2068_v53 = vmul.f32 %v5087_v31, %v5710_v25  ;;  %v5766_v61 = vadd.f32 %v4114_v19, %v2081_v34 }
 0x934   : > { %v5763_v55 = vadd.f32 %v4114_v19, %v2080_v51  ;;  %v2067_v41 = vmul.f32 %v5089_v35, %v5713_v28 }
 0x935   : > { %v2083_v42 = vmul.f32 %v4113_v23, %v2068_v53 }
 0x936   : > { %v5091_v43 = vpop.eup %5090  ;;  %4569 = vmatprep.mubr.msk.f32.mxu0 %vm725_vm0, %v5763_v55  ;;  %v2082_v9 = vmul.f32 %v4113_v23, %v2067_v41 }
 0x937   : > { %v5093_v39 = vpop.eup %5092  ;;  %4570 = vmatmul.mubr.msk.f32.vlgmr.msra.gmra.mrb[24].mxu0 %vm725_vm0, %v5766_v61  ;;  %v2070_v29 = vmul.f32 %v5091_v43, %v5720_v37  ;;  %v5776_v28 = vadd.f32 %v4114_v19, %v2083_v42 }
 0x938   : > { %v5773_v25 = vadd.f32 %v4114_v19, %v2082_v9  ;;  %v2069_v17 = vmul.f32 %v5093_v39, %v5723_v40  ;;  %4826 = vmatpush3.bf16.msra.mxu0 %v4823_v59  ;;  %v4115_v59 = vld [vmem:[%s6262_s9] ss:$0 sm:$0xff] }
 0x939   : > { %v2085_v52 = vmul.f32 %v4113_v23, %v2070_v29 }
 0x93a   : > { %v5095_v50 = vpop.eup %5094  ;;  %4572 = vmatprep.mubr.msk.f32.mxu0 %vm725_vm0, %v5773_v25  ;;  %v2084_v56 = vmul.f32 %v4113_v23, %v2069_v17 }
 0x93b   : > { %v5097_v45 = vpop.eup %5096  ;;  %4573 = vmatmul.mubr.msk.f32.gmra.mrb[26].mxu0 %vm725_vm0, %v5776_v28  ;;  %v2072_v54 = vmul.f32 %v5095_v50, %v5730_v38  ;;  %v5787_v46 = vadd.f32 %v4114_v19, %v2085_v52 }
 0x93c   : > { %v5784_v37 = vadd.f32 %v4114_v19, %v2084_v56  ;;  %v2071_v40 = vmul.f32 %v5097_v45, %v5733_v44  ;;  %v713_v44 = vld [vmem:[%s698_s25 + $0x8] sm:$0xff] }
 0x93d   : > { %v2087_v30 = vmul.f32 %v4113_v23, %v2072_v54 }
 0x93e   : > { %4575 = vmatprep.mubr.msk.f32.mxu0 %vm725_vm0, %v5784_v37  ;;  %v2086_v47 = vmul.f32 %v4113_v23, %v2071_v40 }
 0x93f   : > { %4576 = vmatmul.mubr.msk.f32.gmra.mrb[28].mxu0 %vm725_vm0, %v5787_v46  ;;  %v5798_v11 = vadd.f32 %v4114_v19, %v2087_v30 }
 0x940   : > { %v5796_v38 = vadd.f32 %v4114_v19, %v2086_v47 }
 0x942   : > { %4578 = vmatprep.mubr.msk.f32.mxu0 %vm725_vm0, %v5796_v38 }
 0x943   : > { %4579 = vmatmul.mubr.msk.f32.gmra.mrb[30].mxu0 %vm725_vm0, %v5798_v11 }
 0x944   : > { %4585 = vmatprep.mubr.msk.f32.mxu0 %vm725_vm0, %v712_v48 }
 0x947   : > { %4586 = vmatmul.mubr.msk.f32.vlgmr.msra.gmra.mrb[32].mxu0 %vm725_vm0, %v713_v44 }
 0x948   : > { %4588 = vmatprep.mubr.msk.f32.mxu0 %vm725_vm0, %v714_v49 }
 0x94b   : > { %4589 = vmatmul.mubr.msk.f32.gmra.mrb[34].mxu0 %vm725_vm0, %v715_v58 }
 0xa0a   : > { %v4571_v60 = vpop.f32.mrb[24].mxu0 }
 0xa0b   : > { %v2202_v4 = vpop.f32.mrb[25].mxu0  ;;  %v2208_v23 = vadd.f32 %v4571_v60, %v4115_v59 }
 0xa0c   : > { %v2203_v3 = vadd.f32 %v4115_v59, %v2202_v4 }
 0xa0d   : > { %v5830_v20 = vmul.f32 0.35355338, %v2208_v23 }
 0xa0e   : > { %v5811_v62 = vmul.f32 0.35355338, %v2203_v3  ;;  %v4574_v63 = vpop.f32.mrb[26].mxu0 }
 0xa0f   : > { %v2212_v27 = vpop.f32.mrb[27].mxu0  ;;  %v2218_v24 = vadd.f32 %v4574_v63, %v4115_v59 }
 0xa10   : > { %4599 = vmatprep.mubr.msk.f32.mxu1 %vm887_vm1, %v5811_v62  ;;  %v2213_v10 = vadd.f32 %v4115_v59, %v2212_v27 }
 0xa11   : > { %v5838_v19 = vmul.f32 0.35355338, %v2218_v24 }
 0xa12   : > { %v4577_v0 = vpop.f32.mrb[28].mxu0  ;;  %v5832_v26 = vmul.f32 0.35355338, %v2213_v10 }
 0xa13   : > { %v2222_v2 = vpop.f32.mrb[29].mxu0  ;;  %v2228_v34 = vadd.f32 %v4577_v0, %v4115_v59 }
 0xa14   : > { %v2223_v33 = vadd.f32 %v4115_v59, %v2222_v2 }
 0xa15   : > { %v5846_v35 = vmul.f32 0.35355338, %v2228_v34 }
 0xa16   : > { %v4580_v6 = vpop.f32.mrb[30].mxu0  ;;  %v5840_v31 = vmul.f32 0.35355338, %v2223_v33 }
 0xa17   : > { %v2232_v32 = vpop.f32.mrb[31].mxu0  ;;  %v2238_v53 = vadd.f32 %v4580_v6, %v4115_v59 }
 0xa18   : > { %v2233_v51 = vadd.f32 %v4115_v59, %v2232_v32 }
 0xa19   : > { %v5854_v42 = vmul.f32 0.35355338, %v2238_v53 }
 0xa1a   : > { %v4587_v12 = vpop.f32.mrb[32].mxu0  ;;  %v5848_v41 = vmul.f32 0.35355338, %v2233_v51 }
 0xa1b   : > { %v2334_v13 = vadd.f32 %v4587_v12, %v4124_v5  ;;  %v2328_v22 = vpop.f32.mrb[33].mxu0 }
 0xa1c   : > { %v2329_v14 = vadd.f32 %v4124_v5, %v2328_v22 }
 0xa1e   : > { %v4827_v57 = vpack.c.bf16 %v2334_v13, %v2329_v14  ;;  %v4590_v8 = vpop.f32.mrb[34].mxu0  ;;  %v5818_v7 = vpack.i.bf16 %v2334_v13, %v2329_v14 }
 0xa1f   : > { %v2344_v15 = vadd.f32 %v4590_v8, %v4124_v5  ;;  %v2338_v16 = vpop.f32.mrb[35].mxu0 }
 0xa20   : > { %4829 = vmatprep.subr.msk.bf16.mxu1 %vm5409_vm2, %v4827_v57  ;;  %v2339_v18 = vadd.f32 %v4124_v5, %v2338_v16 }
 0xa21   : > { %4832 = vmatpush3.bf16.xpose.msk.msra.mxu1 %vm5409_vm2, %v4827_v57 }
 0xa22   : > { %v4833_v1 = vpack.c.bf16 %v2344_v15, %v2339_v18  ;;  %v5824_v21 = vpack.i.bf16 %v2344_v15, %v2339_v18 }
 0xa24   : > { %4835 = vmatprep.subr.msk.bf16.mxu1 %vm5409_vm2, %v4833_v1 }
 0xa29   : > { %4838 = vmatpush3.bf16.xpose.msk.msra.mxu1 %vm5409_vm2, %v4833_v1 }
 0xa30   : > { %4600 = vmatmul.mubr.msk.f32.vlgmr.msra.gmra.mrb[24].mxu1 %vm887_vm1, %v5830_v20 }
 0xa31   : > { %4602 = vmatprep.mubr.msk.f32.mxu1 %vm887_vm1, %v5832_v26 }
 0xa34   : > { %4603 = vmatmul.mubr.msk.f32.gmra.mrb[26].mxu1 %vm887_vm1, %v5838_v19 }
 0xa35   : > { %4605 = vmatprep.mubr.msk.f32.mxu1 %vm887_vm1, %v5840_v31 }
 0xa38   : > { %4606 = vmatmul.mubr.msk.f32.gmra.mrb[28].mxu1 %vm887_vm1, %v5846_v35 }
 0xa39   : > { %4608 = vmatprep.mubr.msk.f32.mxu1 %vm887_vm1, %v5848_v41 }
 0xa3c   : > { %4609 = vmatmul.mubr.msk.f32.gmra.mrb[30].mxu1 %vm887_vm1, %v5854_v42 }
 0xb03   : > { %v4601_v43 = vpop.f32.mrb[24].mxu1 }
 0xb04   : > { %v2457_v9 = vpop.f32.mrb[25].mxu1  ;;  %v2500_v39 = vsel %vm2496_vm4, %v4601_v43, -inf }
 0xb05   : > { %2501 = vmax.xlane.f32.xlu0 %v2500_v39  ;;  %v2497_v29 = vsel %vm2496_vm4, %v2457_v9, -inf }
 0xb06   : > { %2498 = vmax.xlane.f32.xlu1 %v2497_v29 }
 0xb07   : > { %v4604_v17 = vpop.f32.mrb[26].mxu1 }
 0xb08   : > { %v2467_v52 = vpop.f32.mrb[27].mxu1  ;;  %v2506_v50 = vsel %vm2496_vm4, %v4604_v17, -inf }
 0xb09   : > { %2507 = vmax.xlane.f32.xlu0 %v2506_v50  ;;  %v2503_v56 = vsel %vm2496_vm4, %v2467_v52, -inf }
 0xb0a   : > { %2504 = vmax.xlane.f32.xlu1 %v2503_v56 }
 0xb0b   : > { %v4607_v45 = vpop.f32.mrb[28].mxu1 }
 0xb0c   : > { %v2477_v54 = vpop.f32.mrb[29].mxu1  ;;  %v2512_v40 = vsel %vm2496_vm4, %v4607_v45, -inf }
 0xb0d   : > { %2513 = vmax.xlane.f32.xlu0 %v2512_v40  ;;  %v2509_v30 = vsel %vm2496_vm4, %v2477_v54, -inf }
 0xb0e   : > { %2510 = vmax.xlane.f32.xlu1 %v2509_v30 }
 0xb0f   : > { %v4610_v47 = vpop.f32.mrb[30].mxu1 }
 0xb10   : > { %v5864_v48 = vpop.f32.mrb[31].mxu1  ;;  %v2518_v44 = vsel %vm2496_vm4, %v4610_v47, -inf }
 0xb11   : > { %2519 = vmax.xlane.f32.xlu0 %v2518_v44  ;;  %v2515_v49 = vsel %vm2496_vm4, %v5864_v48, -inf }
 0xb1f   : > { %4989 = vrot.lane.b32.xlu1 %v5818_v7, %s5203_s29 }
 0xb23   : > { %4999 = vrot.lane.b32.xlu1 %v5818_v7, %s5206_s23 }
 0xb27   : > { %4994 = vrot.lane.b32.xlu0 %v5824_v21, %s5203_s29  ;;  %s6226_s29 = scalar_lea.vmem %s6275_s22, %s6295_s2 }
 0xb47   : > { %2516 = vmax.xlane.f32.xlu1 %v2515_v49 }
 0xb58   : > { %5004 = vrot.lane.b32.xlu1 %v5824_v21, %s5206_s23 }
 0xb92   : > { %v2502_v58 = vpop.xlane.xlu0 %2501 }
 0xb93   : > { %v2522_v59 = vsub.f32 %v4601_v43, %v2502_v58  ;;  %v2499_v60 = vpop.xlane.xlu1 %2498 }
 0xb94   : > { %v2521_v4 = vsub.f32 %v2457_v9, %v2499_v60 }
 0xb95   : > { %v2531_v3 = vmul.f32 1.442695, %v2522_v59 }
 0xb96   : > { %v2529_v63 = vmul.f32 1.442695, %v2521_v4  ;;  %v2508_v27 = vpop.xlane.xlu0 %2507 }
 0xb97   : > { %5098 = vpow2.f32 %v2531_v3  ;;  %v2524_v0 = vsub.f32 %v4604_v17, %v2508_v27  ;;  %v2505_v2 = vpop.xlane.xlu1 %2504 }
 0xb98   : > { %5100 = vpow2.f32 %v2529_v63  ;;  %v2523_v6 = vsub.f32 %v2467_v52, %v2505_v2 }
 0xb99   : > { %v2535_v32 = vmul.f32 1.442695, %v2524_v0 }
 0xb9a   : > { %v2533_v5 = vmul.f32 1.442695, %v2523_v6  ;;  %v2514_v12 = vpop.xlane.xlu0 %2513 }
 0xb9b   : > { %5102 = vpow2.f32 %v2535_v32  ;;  %v2526_v13 = vsub.f32 %v4607_v45, %v2514_v12  ;;  %v2511_v22 = vpop.xlane.xlu1 %2510 }
 0xb9c   : > { %5104 = vpow2.f32 %v2533_v5  ;;  %v2525_v14 = vsub.f32 %v2477_v54, %v2511_v22 }
 0xb9d   : > { %v2539_v57 = vmul.f32 1.442695, %v2526_v13 }
 0xb9e   : > { %v2537_v8 = vmul.f32 1.442695, %v2525_v14  ;;  %v2520_v15 = vpop.xlane.xlu0 %2519 }
 0xb9f   : > { %5106 = vpow2.f32 %v2539_v57  ;;  %v2528_v16 = vsub.f32 %v4610_v47, %v2520_v15  ;;  %v4990_v18 = vpop.permute.xlu1 %4989 }
 0xba0   : > { %5108 = vpow2.f32 %v2537_v8  ;;  %v4992_v1 = vunpack.i.h.bf16 %v4990_v18  ;;  %v4991_v23 = vunpack.i.l.bf16 %v4990_v18 }
 0xba1   : > { %v5877_v10 = vpop.eup %5098  ;;  %v2543_v24 = vmul.f32 1.442695, %v2528_v16 }
 0xba2   : > { %v5879_v33 = vpop.eup %5100  ;;  %v4839_v34 = vpack.c.bf16 %v4992_v1, %v4991_v23  ;;  %v4995_v51 = vpop.permute.xlu0 %4994  ;;  %v2548_v53 = vsel %vm2496_vm4, %v5877_v10, 0.0 }
 0xba3   : > { %5110 = vpow2.f32 %v2543_v24  ;;  %v4997_v43 = vunpack.i.h.bf16 %v4995_v51  ;;  %v4996_v9 = vunpack.i.l.bf16 %v4995_v51  ;;  %v5000_v39 = vpop.permute.xlu1 %4999  ;;  %2549 = vadd.xlane.f32.xlu0 %v2548_v53  ;;  %v2545_v29 = vsel %vm2496_vm4, %v5879_v33, 0.0 }
 0xba4   : > { %v5002_v17 = vunpack.i.h.bf16 %v5000_v39  ;;  %v5001_v52 = vunpack.i.l.bf16 %v5000_v39  ;;  %4840 = vmatprep.subr.bf16.mxu0 %v4839_v34  ;;  %2546 = vadd.xlane.f32.xlu1 %v2545_v29 }
 0xba5   : > { %v5885_v50 = vpop.eup %5102  ;;  %v4843_v56 = vpack.c.bf16 %v4997_v43, %v4996_v9  ;;  %4842 = vmatpush3.bf16.msra.mxu0 %v4839_v34 }
 0xba6   : > { %v5105_v45 = vpop.eup %5104  ;;  %v2554_v54 = vsel %vm2496_vm4, %v5885_v50, 0.0  ;;  %v4847_v30 = vpack.c.bf16 %v5002_v17, %v5001_v52 }
 0xba7   : > { %2555 = vadd.xlane.f32.xlu0 %v2554_v54  ;;  %4844 = vmatprep.subr.bf16.mxu0 %v4843_v56  ;;  %v2551_v40 = vsel %vm2496_vm4, %v5105_v45, 0.0 }
 0xba8   : > { %2552 = vadd.xlane.f32.xlu1 %v2551_v40 }
 0xba9   : > { %v5107_v47 = vpop.eup %5106  ;;  %4846 = vmatpush3.bf16.msra.mxu0 %v4843_v56 }
 0xbaa   : > { %v5109_v44 = vpop.eup %5108  ;;  %4849 = vmatprep.subr.msk.bf16.mxu0 %vm5409_vm2, %v4847_v30  ;;  %v2560_v49 = vsel %vm2496_vm4, %v5107_v47, 0.0 }
 0xbab   : > { %2561 = vadd.xlane.f32.xlu0 %v2560_v49  ;;  %v2557_v58 = vsel %vm2496_vm4, %v5109_v44, 0.0 }
 0xbac   : > { %2558 = vadd.xlane.f32.xlu1 %v2557_v58 }
 0xbad   : > { %v5894_v59 = vpop.eup %5110 }
 0xbae   : > { %v2566_v60 = vsel %vm2496_vm4, %v5894_v59, 0.0 }
 0xbaf   : > { %2567 = vadd.xlane.f32.xlu0 %v2566_v60 }
 0xbbd   : > { %2729 = vrot.lane.b32.xlu1 %v5830_v20, %s5206_s23 }
 0xbc5   : > { %2727 = vrot.lane.b32.xlu0 %v5811_v62, %s5206_s23 }
 0xbc9   : > { %2731 = vrot.lane.b32.xlu0 %v5832_v26, %s5206_s23 }
 0xbcd   : > { %2735 = vrot.lane.b32.xlu0 %v5840_v31, %s5206_s23 }
 0xbd1   : > { %2739 = vrot.lane.b32.xlu0 %v5848_v41, %s5206_s23 }
 0xbd4   : > { %v2517_v4 = vpop.xlane.xlu1 %2516 }
 0xbd5   : > { %v2527_v3 = vsub.f32 %v5864_v48, %v2517_v4 }
 0xbd7   : > { %v2541_v63 = vmul.f32 1.442695, %v2527_v3 }
 0xbd8   : > { %v5005_v62 = vpop.permute.xlu1 %5004 }
 0xbd9   : > { %5112 = vpow2.f32 %v2541_v63  ;;  %v5007_v32 = vunpack.i.h.bf16 %v5005_v62 }
 0xbe3   : > { %v5113_v27 = vpop.eup %5112 }
 0xbe4   : > { %v2563_v20 = vsel %vm2496_vm4, %v5113_v27, 0.0 }
 0xbe5   : > { %2564 = vadd.xlane.f32.xlu1 %v2563_v20 }
 0xbf6   : > { %2733 = vrot.lane.b32.xlu1 %v5838_v19, %s5206_s23 }
 0xbfa   : > { %2737 = vrot.lane.b32.xlu1 %v5846_v35, %s5206_s23  ;;  %v5006_v35 = vunpack.i.l.bf16 %v5005_v62 }
 0xbfc   : > { %v4853_v22 = vpack.c.bf16 %v5007_v32, %v5006_v35 }
 0xbfe   : > { %2741 = vrot.lane.b32.xlu1 %v5854_v42, %s5206_s23 }
 0xc30   : > { %v2550_v26 = vpop.xlane.xlu0 %2549 }
 0xc31   : > { %5114 = vrcp.f32 %v2550_v26  ;;  %v2547_v31 = vpop.xlane.xlu1 %2546 }
 0xc32   : > { %5116 = vrcp.f32 %v2547_v31 }
 0xc34   : > { %v2556_v41 = vpop.xlane.xlu0 %2555 }
 0xc35   : > { %5118 = vrcp.f32 %v2556_v41  ;;  %v2553_v48 = vpop.xlane.xlu1 %2552 }
 0xc36   : > { %5120 = vrcp.f32 %v2553_v48 }
 0xc38   : > { %v2562_v0 = vpop.xlane.xlu0 %2561 }
 0xc39   : > { %5122 = vrcp.f32 %v2562_v0  ;;  %v2559_v2 = vpop.xlane.xlu1 %2558 }
 0xc3a   : > { %5124 = vrcp.f32 %v2559_v2 }
 0xc3b   : > { %v5115_v19 = vpop.eup %5114 }
 0xc3c   : > { %v5117_v6 = vpop.eup %5116  ;;  %v2578_v42 = vmul.f32 %v5115_v19, %v5877_v10  ;;  %v2568_v23 = vpop.xlane.xlu0 %2567 }
 0xc3d   : > { %v2577_v5 = vmul.f32 %v5117_v6, %v5879_v33  ;;  %v2730_v1 = vpop.permute.xlu1 %2729  ;;  %5126 = vrcp.f32 %v2568_v23 }
 0xc3f   : > { %v5119_v12 = vpop.eup %5118  ;;  %4619 = vmatprep.mubr.msk.f32.mxu0 %vm2496_vm4, %v2577_v5 }
 0xc40   : > { %v5121_v13 = vpop.eup %5120  ;;  %4620 = vmatmul.mubr.msk.f32.vlgmr.msra.gmra.mrb[36].mxu0 %vm2496_vm4, %v2578_v42  ;;  %v2580_v57 = vmul.f32 %v5119_v12, %v5885_v50  ;;  %v2728_v24 = vpop.permute.xlu0 %2727 }
 0xc41   : > { %4852 = vmatpush3.bf16.xpose.msk.msra.mxu0 %vm5409_vm2, %v4847_v30  ;;  %v2579_v14 = vmul.f32 %v5121_v13, %v5105_v45 }
 0xc42   : > { %4855 = vmatprep.subr.msk.bf16.mxu0 %vm5409_vm2, %v4853_v22 }
 0xc43   : > { %v5123_v8 = vpop.eup %5122  ;;  %4622 = vmatprep.mubr.msk.f32.mxu0 %vm2496_vm4, %v2579_v14 }
 0xc44   : > { %v5125_v15 = vpop.eup %5124  ;;  %4623 = vmatmul.mubr.msk.f32.gmra.mrb[38].mxu0 %vm2496_vm4, %v2580_v57  ;;  %v2582_v18 = vmul.f32 %v5123_v8, %v5107_v47  ;;  %v2732_v43 = vpop.permute.xlu0 %2731 }
 0xc45   : > { %v2581_v16 = vmul.f32 %v5125_v15, %v5109_v44 }
 0xc47   : > { %4625 = vmatprep.mubr.msk.f32.mxu0 %vm2496_vm4, %v2581_v16  ;;  %v5127_v33 = vpop.eup %5126 }
 0xc48   : > { %4626 = vmatmul.mubr.msk.f32.gmra.mrb[40].mxu0 %vm2496_vm4, %v2582_v18  ;;  %v2584_v53 = vmul.f32 %v5127_v33, %v5894_v59  ;;  %v2736_v9 = vpop.permute.xlu0 %2735 }
 0xc49   : > { %4858 = vmatpush3.bf16.xpose.msk.msra.mxu0 %vm5409_vm2, %v4853_v22 }
 0xc4c   : > { %v2740_v29 = vpop.permute.xlu0 %2739 }
 0xc72   : > { %v2565_v10 = vpop.xlane.xlu1 %2564 }
 0xc73   : > { %5128 = vrcp.f32 %v2565_v10 }
 0xc76   : > { %v2734_v36 = vpop.permute.xlu1 %2733 }
 0xc7a   : > { %v2738_v39 = vpop.permute.xlu1 %2737 }
 0xc7d   : > { %v5129_v34 = vpop.eup %5128 }
 0xc7e   : > { %v2583_v51 = vmul.f32 %v5129_v34, %v5113_v27  ;;  %v2742_v17 = vpop.permute.xlu1 %2741 }
 0xc80   : > { %4628 = vmatprep.mubr.msk.f32.mxu0 %vm2496_vm4, %v2583_v51 }
 0xc81   : > { %4629 = vmatmul.mubr.msk.f32.gmra.mrb[42].mxu0 %vm2496_vm4, %v2584_v53 }
 0xc82   : > { %4639 = vmatprep.mubr.msk.f32.mxu0 %vm887_vm1, %v2728_v24 }
 0xc85   : > { %4640 = vmatmul.mubr.msk.f32.vlgmr.msra.gmra.mrb[44].mxu0 %vm887_vm1, %v2730_v1 }
 0xc86   : > { %4642 = vmatprep.mubr.msk.f32.mxu0 %vm887_vm1, %v2732_v43 }
 0xc89   : > { %4643 = vmatmul.mubr.msk.f32.gmra.mrb[46].mxu0 %vm887_vm1, %v2734_v36 }
 0xc8a   : > { %4645 = vmatprep.mubr.msk.f32.mxu0 %vm887_vm1, %v2736_v9 }
 0xc8d   : > { %4646 = vmatmul.mubr.msk.f32.gmra.mrb[48].mxu0 %vm887_vm1, %v2738_v39 }
 0xc8e   : > { %4648 = vmatprep.mubr.msk.f32.mxu0 %vm887_vm1, %v2740_v29 }
 0xc91   : > { %4649 = vmatmul.mubr.msk.f32.gmra.mrb[50].mxu0 %vm887_vm1, %v2742_v17 }
 0xd13   : > { %v5942_v52 = vpop.f32.mrb[36].mxu0 }
 0xd14   : > { %v5944_v50 = vpop.f32.mrb[37].mxu0 }
 0xd17   : > { %v5946_v56 = vpop.f32.mrb[38].mxu0 }
 0xd18   : > { %v5948_v45 = vpop.f32.mrb[39].mxu0 }
 0xd1b   : > { %v5950_v54 = vpop.f32.mrb[40].mxu0 }
 0xd1c   : > { %v5952_v40 = vpop.f32.mrb[41].mxu0 }
 0xd54   : > { %v5954_v30 = vpop.f32.mrb[42].mxu0 }
 0xd55   : > { %v5956_v47 = vpop.f32.mrb[43].mxu0 }
 0xd58   : > { %v4641_v44 = vpop.f32.mrb[44].mxu0 }
 0xd59   : > { %v2841_v49 = vpop.f32.mrb[45].mxu0  ;;  %v2883_v58 = vsel %vm2496_vm4, %v4641_v44, -inf }
 0xd5a   : > { %2884 = vmax.xlane.f32.xlu1 %v2883_v58  ;;  %v2880_v59 = vsel %vm2496_vm4, %v2841_v49, -inf }
 0xd5b   : > { %2881 = vmax.xlane.f32.xlu0 %v2880_v59 }
 0xd5c   : > { %v4644_v60 = vpop.f32.mrb[46].mxu0 }
 0xd5d   : > { %v2851_v4 = vpop.f32.mrb[47].mxu0  ;;  %v2889_v20 = vsel %vm2496_vm4, %v4644_v60, -inf }
 0xd5e   : > { %v2886_v3 = vsel %vm2496_vm4, %v2851_v4, -inf }
 0xd5f   : > { %2887 = vmax.xlane.f32.xlu0 %v2886_v3 }
 0xd60   : > { %v4647_v63 = vpop.f32.mrb[48].mxu0 }
 0xd61   : > { %v2861_v27 = vpop.f32.mrb[49].mxu0  ;;  %v2895_v41 = vsel %vm2496_vm4, %v4647_v63, -inf }
 0xd62   : > { %v2892_v62 = vsel %vm2496_vm4, %v2861_v27, -inf }
 0xd63   : > { %2890 = vmax.xlane.f32.xlu0 %v2889_v20  ;;  %2893 = vmax.xlane.f32.xlu1 %v2892_v62  ;;  %v3109_v62 = vld [vmem:[%s6265_s12 + $0x8] sm:$0xff] }
 0xd64   : > { %v4650_v26 = vpop.f32.mrb[50].mxu0  ;;  %4671 = vmatprep.subr.mxu0 %v3109_v62 }
 0xd65   : > { %v2871_v31 = vpop.f32.mrb[51].mxu0  ;;  %v2901_v0 = vsel %vm2496_vm4, %v4650_v26, -inf  ;;  %4672 = vmatpush3.msra.mxu0 %v3109_v62 }
 0xd66   : > { %v2898_v48 = vsel %vm2496_vm4, %v2871_v31, -inf }
 0xd67   : > { %2896 = vmax.xlane.f32.xlu0 %v2895_v41  ;;  %2899 = vmax.xlane.f32.xlu1 %v2898_v48 }
 0xd6b   : > { %2902 = vmax.xlane.f32.xlu0 %v2901_v0 }
 0xde7   : > { %v2885_v2 = vpop.xlane.xlu1 %2884 }
 0xde8   : > { %v2905_v19 = vsub.f32 %v4641_v44, %v2885_v2  ;;  %v2882_v6 = vpop.xlane.xlu0 %2881 }
 0xde9   : > { %v2904_v32 = vsub.f32 %v2841_v49, %v2882_v6 }
 0xdea   : > { %v2914_v35 = vmul.f32 1.442695, %v2905_v19 }
 0xdeb   : > { %v2912_v5 = vmul.f32 1.442695, %v2904_v32 }
 0xdec   : > { %5130 = vpow2.f32 %v2914_v35  ;;  %v2888_v42 = vpop.xlane.xlu0 %2887 }
 0xded   : > { %5132 = vpow2.f32 %v2912_v5  ;;  %v2906_v12 = vsub.f32 %v2851_v4, %v2888_v42 }
 0xdef   : > { %v2916_v13 = vmul.f32 1.442695, %v2906_v12 }
 0xdf0   : > { %v2891_v22 = vpop.xlane.xlu0 %2890  ;;  %v2894_v14 = vpop.xlane.xlu1 %2893 }
 0xdf1   : > { %5134 = vpow2.f32 %v2916_v13  ;;  %v2907_v57 = vsub.f32 %v4644_v60, %v2891_v22  ;;  %v2908_v8 = vsub.f32 %v2861_v27, %v2894_v14 }
 0xdf3   : > { %v2918_v15 = vmul.f32 1.442695, %v2907_v57  ;;  %v2920_v16 = vmul.f32 1.442695, %v2908_v8 }
 0xdf4   : > { %v2897_v18 = vpop.xlane.xlu0 %2896  ;;  %v2900_v1 = vpop.xlane.xlu1 %2899 }
 0xdf5   : > { %5136 = vpow2.f32 %v2918_v15  ;;  %v2909_v23 = vsub.f32 %v4647_v63, %v2897_v18  ;;  %v2910_v10 = vsub.f32 %v2871_v31, %v2900_v1 }
 0xdf6   : > { %v5966_v24 = vpop.eup %5130  ;;  %5138 = vpow2.f32 %v2920_v16 }
 0xdf7   : > { %v5133_v33 = vpop.eup %5132  ;;  %v2922_v34 = vmul.f32 1.442695, %v2909_v23  ;;  %v2924_v51 = vmul.f32 1.442695, %v2910_v10  ;;  %v2931_v53 = vsel %vm2496_vm4, %v5966_v24, 0.0 }
 0xdf8   : > { %2932 = vadd.xlane.f32.xlu0 %v2931_v53  ;;  %v2903_v43 = vpop.xlane.xlu0 %2902  ;;  %v2928_v36 = vsel %vm2496_vm4, %v5133_v33, 0.0 }
 0xdf9   : > { %5140 = vpow2.f32 %v2922_v34  ;;  %v2911_v9 = vsub.f32 %v4650_v26, %v2903_v43  ;;  %2929 = vadd.xlane.f32.xlu1 %v2928_v36  ;;  %v2726_v36 = vld [vmem:[%s6265_s12] sm:$0xff] }
 0xdfa   : > { %5142 = vpow2.f32 %v2924_v51  ;;  %4685 = vmatprep.subr.mxu0 %v2726_v36 }
 0xdfb   : > { %v5135_v39 = vpop.eup %5134  ;;  %v2926_v29 = vmul.f32 1.442695, %v2911_v9 }
 0xdfc   : > { %v2934_v17 = vsel %vm2496_vm4, %v5135_v39, 0.0 }
 0xdfd   : > { %5144 = vpow2.f32 %v2926_v29  ;;  %2935 = vadd.xlane.f32.xlu1 %v2934_v17 }
 0xdff   : > { %v5137_v44 = vpop.eup %5136 }
 0xe00   : > { %v5139_v49 = vpop.eup %5138  ;;  %v2937_v58 = vsel %vm2496_vm4, %v5137_v44, 0.0 }
 0xe01   : > { %2938 = vadd.xlane.f32.xlu0 %v2937_v58  ;;  %v2940_v59 = vsel %vm2496_vm4, %v5139_v49, 0.0 }
 0xe02   : > { %2941 = vadd.xlane.f32.xlu1 %v2940_v59 }
 0xe03   : > { %v5141_v60 = vpop.eup %5140 }
 0xe04   : > { %v5143_v4 = vpop.eup %5142  ;;  %v2943_v3 = vsel %vm2496_vm4, %v5141_v60, 0.0 }
 0xe05   : > { %2944 = vadd.xlane.f32.xlu0 %v2943_v3  ;;  %v2946_v63 = vsel %vm2496_vm4, %v5143_v4, 0.0 }
 0xe06   : > { %2947 = vadd.xlane.f32.xlu1 %v2946_v63 }
 0xe07   : > { %v5145_v27 = vpop.eup %5144 }
 0xe08   : > { %v2949_v20 = vsel %vm2496_vm4, %v5145_v27, 0.0 }
 0xe09   : > { %2950 = vadd.xlane.f32.xlu0 %v2949_v20 }
 0xe17   : > { %5009 = vrot.lane.b32.xlu1 %v5818_v7, %s5205_s0 }
 0xe1f   : > { %5014 = vrot.lane.b32.xlu0 %v5824_v21, %s5205_s0 }
 0xe85   : > { %v2933_v31 = vpop.xlane.xlu0 %2932 }
 0xe86   : > { %v2930_v26 = vpop.xlane.xlu1 %2929 }
 0xe87   : > { %5146 = vrcp.f32 %v2930_v26 }
 0xe88   : > { %5148 = vrcp.f32 %v2933_v31 }
 0xe8a   : > { %v2936_v41 = vpop.xlane.xlu1 %2935 }
 0xe8b   : > { %5150 = vrcp.f32 %v2936_v41 }
 0xe8e   : > { %v2939_v48 = vpop.xlane.xlu0 %2938 }
 0xe8f   : > { %v2942_v0 = vpop.xlane.xlu1 %2941  ;;  %5152 = vrcp.f32 %v2939_v48 }
 0xe90   : > { %5154 = vrcp.f32 %v2942_v0 }
 0xe91   : > { %v5147_v2 = vpop.eup %5146 }
 0xe92   : > { %v2945_v19 = vpop.xlane.xlu0 %2944  ;;  %v2960_v6 = vmul.f32 %v5147_v2, %v5133_v33  ;;  %v5149_v57 = vpop.eup %5148 }
 0xe93   : > { %v2948_v32 = vpop.xlane.xlu1 %2947  ;;  %5156 = vrcp.f32 %v2945_v19  ;;  %v2961_v15 = vmul.f32 %v5149_v57, %v5966_v24 }
 0xe94   : > { %4659 = vmatprep.mubr.msk.f32.mxu1 %vm2496_vm4, %v2960_v6  ;;  %5158 = vrcp.f32 %v2948_v32 }
 0xe95   : > { %v5151_v8 = vpop.eup %5150 }
 0xe96   : > { %v2951_v7 = vpop.xlane.xlu0 %2950  ;;  %v2962_v18 = vmul.f32 %v5151_v8, %v5135_v39 }
 0xe97   : > { %v5010_v21 = vpop.permute.xlu1 %5009  ;;  %5160 = vrcp.f32 %v2951_v7 }
 0xe98   : > { %v5012_v35 = vunpack.i.h.bf16 %v5010_v21  ;;  %v5011_v5 = vunpack.i.l.bf16 %v5010_v21 }
 0xe99   : > { %v5153_v16 = vpop.eup %5152 }
 0xe9a   : > { %v4859_v42 = vpack.c.bf16 %v5012_v35, %v5011_v5  ;;  %v5015_v12 = vpop.permute.xlu0 %5014  ;;  %v5155_v1 = vpop.eup %5154  ;;  %v2963_v23 = vmul.f32 %v5153_v16, %v5137_v44 }
 0xe9b   : > { %v5017_v13 = vunpack.i.h.bf16 %v5015_v12  ;;  %v5016_v22 = vunpack.i.l.bf16 %v5015_v12  ;;  %v2964_v33 = vmul.f32 %v5155_v1, %v5139_v49 }
 0xe9c   : > { %4860 = vmatprep.subr.bf16.mxu1 %v4859_v42 }
 0xe9d   : > { %v4863_v14 = vpack.c.bf16 %v5017_v13, %v5016_v22  ;;  %4862 = vmatpush3.bf16.msra.mxu1 %v4859_v42  ;;  %v5157_v10 = vpop.eup %5156 }
 0xe9e   : > { %v5159_v34 = vpop.eup %5158  ;;  %v2965_v51 = vmul.f32 %v5157_v10, %v5141_v60 }
 0xe9f   : > { %4864 = vmatprep.subr.bf16.mxu1 %v4863_v14  ;;  %v2966_v43 = vmul.f32 %v5159_v34, %v5143_v4 }
 0xea1   : > { %4866 = vmatpush3.bf16.msra.mxu1 %v4863_v14  ;;  %v5161_v53 = vpop.eup %5160 }
 0xea2   : > { %v2967_v24 = vmul.f32 %v5161_v53, %v5145_v27 }
 0xea4   : > { %4660 = vmatmul.mubr.msk.f32.vlgmr.msra.gmra.mrb[32].mxu1 %vm2496_vm4, %v2961_v15 }
 0xea5   : > { %4662 = vmatprep.mubr.msk.f32.mxu1 %vm2496_vm4, %v2962_v18 }
 0xea8   : > { %4663 = vmatmul.mubr.msk.f32.gmra.mrb[34].mxu1 %vm2496_vm4, %v2963_v23 }
 0xea9   : > { %4665 = vmatprep.mubr.msk.f32.mxu1 %vm2496_vm4, %v2964_v33 }
 0xeac   : > { %4666 = vmatmul.mubr.msk.f32.gmra.mrb[36].mxu1 %vm2496_vm4, %v2965_v51 }
 0xead   : > { %4668 = vmatprep.mubr.msk.f32.mxu1 %vm2496_vm4, %v2966_v43 }
 0xeb0   : > { %4669 = vmatmul.mubr.msk.f32.gmra.mrb[38].mxu1 %vm2496_vm4, %v2967_v24 }
 0xf77   : > { %v4661_v9 = vpop.f32.mrb[32].mxu1 }
 0xf78   : > { %v3070_v39 = vpop.f32.mrb[33].mxu1 }
 0xf79   : > { %4673 = vmatprep.mubr.msk.f32.mxu0 %vm887_vm1, %v3070_v39 }
 0xf7a   : > { %4674 = vmatmul.mubr.msk.f32.vlgmr.msra.gmra.mrb[52].mxu0 %vm887_vm1, %v4661_v9 }
 0xf7b   : > { %v4664_v29 = vpop.f32.mrb[34].mxu1  ;;  %4686 = vmatpush3.msra.mxu0 %v2726_v36 }
 0xf7c   : > { %v3080_v17 = vpop.f32.mrb[35].mxu1 }
 0xf7d   : > { %4676 = vmatprep.mubr.msk.f32.mxu0 %vm887_vm1, %v3080_v17 }
 0xf7e   : > { %4677 = vmatmul.mubr.msk.f32.gmra.mrb[54].mxu0 %vm887_vm1, %v4664_v29 }
 0xf7f   : > { %v4667_v44 = vpop.f32.mrb[36].mxu1 }
 0xf80   : > { %v3090_v49 = vpop.f32.mrb[37].mxu1 }
 0xf81   : > { %4679 = vmatprep.mubr.msk.f32.mxu0 %vm887_vm1, %v3090_v49 }
 0xf82   : > { %4680 = vmatmul.mubr.msk.f32.gmra.mrb[56].mxu0 %vm887_vm1, %v4667_v44 }
 0xf83   : > { %v4670_v58 = vpop.f32.mrb[38].mxu1 }
 0xf84   : > { %v3100_v59 = vpop.f32.mrb[39].mxu1 }
 0xf85   : > { %4682 = vmatprep.mubr.msk.f32.mxu0 %vm887_vm1, %v3100_v59 }
 0xf86   : > { %4683 = vmatmul.mubr.msk.f32.gmra.mrb[58].mxu0 %vm887_vm1, %v4670_v58 }
 0xf87   : > { %4687 = vmatprep.mubr.msk.f32.mxu0 %vm887_vm1, %v5944_v50 }
 0xf8a   : > { %4688 = vmatmul.mubr.msk.f32.vlgmr.msra.gmra.mrb[52].mxu0 %vm887_vm1, %v5942_v52  ;;  %v4185_v52 = vld [vmem:[%s6266_s13] ss:$0 sm:$0xff] }
 0xf8b   : > { %4690 = vmatprep.mubr.msk.f32.mxu0 %vm887_vm1, %v5948_v45 }
 0xf8e   : > { %4691 = vmatmul.mubr.msk.f32.gmra.mrb[54].mxu0 %vm887_vm1, %v5946_v56 }
 0xf8f   : > { %4693 = vmatprep.mubr.msk.f32.mxu0 %vm887_vm1, %v5952_v40 }
 0xf92   : > { %4694 = vmatmul.mubr.msk.f32.gmra.mrb[56].mxu0 %vm887_vm1, %v5950_v54 }
 0xf93   : > { %4696 = vmatprep.mubr.msk.f32.mxu0 %vm887_vm1, %v5956_v47 }
 0xf96   : > { %4697 = vmatmul.mubr.msk.f32.gmra.mrb[58].mxu0 %vm887_vm1, %v5954_v30 }
0x105d   : > { %v4689_v50 = vpop.f32.mrb[52].mxu0 }
0x105e   : > { %v3376_v45 = vadd.f32 %v4689_v50, %v4185_v52  ;;  %v3329_v60 = vpop.f32.mrb[53].mxu0 }
0x105f   : > { %v3375_v56 = vadd.f32 %v4185_v52, %v3329_v60 }
0x1060   : > { %v3384_v4 = vadd.f32 %v3376_v45, %v5766_v61 }
0x1061   : > { %v3383_v40 = vadd.f32 %v3375_v56, %v5763_v55  ;;  %v4692_v3 = vpop.f32.mrb[54].mxu0 }
0x1062   : > { %v3378_v54 = vadd.f32 %v4692_v3, %v4185_v52  ;;  %v3339_v63 = vpop.f32.mrb[55].mxu0  ;;  %v3394_v47 = vsel %vm725_vm0, %v3384_v4, 0.0 }
0x1063   : > { %v3377_v27 = vadd.f32 %v4185_v52, %v3339_v63  ;;  %3395 = vadd.xlane.f32.xlu0 %v3394_v47  ;;  %v3391_v30 = vsel %vm725_vm0, %v3383_v40, 0.0  ;;  %v3525_v63 = vld [vmem:[%s6269_s16] sm:$0xff]  ;;  %v3526_v47 = vld [vmem:[%s6269_s16 + $0x8] sm:$0xff] }
0x1064   : > { %v3386_v20 = vadd.f32 %v3378_v54, %v5776_v28  ;;  %3392 = vadd.xlane.f32.xlu1 %v3391_v30  ;;  %v3671_v30 = vld [vmem:[%s6271_s18] sm:$0xff] }
0x1065   : > { %v3385_v62 = vadd.f32 %v3377_v27, %v5773_v25  ;;  %v4695_v26 = vpop.f32.mrb[56].mxu0  ;;  %v4867_v27 = vpack.c.bf16 %v3526_v47, %v3525_v63 }
0x1066   : > { %v3380_v31 = vadd.f32 %v4695_v26, %v4185_v52  ;;  %v3349_v41 = vpop.f32.mrb[57].mxu0  ;;  %v3400_v61 = vsel %vm725_vm0, %v3386_v20, 0.0 }
0x1067   : > { %v3379_v55 = vadd.f32 %v4185_v52, %v3349_v41  ;;  %3401 = vadd.xlane.f32.xlu0 %v3400_v61  ;;  %v3397_v48 = vsel %vm725_vm0, %v3385_v62, 0.0  ;;  %4868 = vmatprep.subr.bf16.mxu1 %v4867_v27 }
0x1068   : > { %v3388_v0 = vadd.f32 %v3380_v31, %v5787_v46  ;;  %3398 = vadd.xlane.f32.xlu1 %v3397_v48  ;;  %4870 = vmatpush3.bf16.msra.mxu1 %v4867_v27 }
0x1069   : > { %v3387_v2 = vadd.f32 %v3379_v55, %v5784_v37  ;;  %v4698_v19 = vpop.f32.mrb[58].mxu0 }
0x106a   : > { %v3382_v6 = vadd.f32 %v4698_v19, %v4185_v52  ;;  %v3359_v28 = vpop.f32.mrb[59].mxu0  ;;  %v3406_v32 = vsel %vm725_vm0, %v3388_v0, 0.0 }
0x106b   : > { %v3381_v25 = vadd.f32 %v4185_v52, %v3359_v28  ;;  %3407 = vadd.xlane.f32.xlu0 %v3406_v32  ;;  %v3403_v7 = vsel %vm725_vm0, %v3387_v2, 0.0 }
0x106c   : > { %v3390_v21 = vadd.f32 %v3382_v6, %v5798_v11  ;;  %3404 = vadd.xlane.f32.xlu1 %v3403_v7 }
0x106d   : > { %v3389_v35 = vadd.f32 %v3381_v25, %v5796_v38 }
0x106e   : > { %v3412_v5 = vsel %vm725_vm0, %v3390_v21, 0.0 }
0x106f   : > { %3413 = vadd.xlane.f32.xlu0 %v3412_v5  ;;  %v3409_v46 = vsel %vm725_vm0, %v3389_v35, 0.0 }
0x1070   : > { %3410 = vadd.xlane.f32.xlu1 %v3409_v46 }
0x10f0   : > { %v3396_v37 = vpop.xlane.xlu0 %3395 }
0x10f1   : > { %v3416_v42 = vmul.f32 0.0625, %v3396_v37  ;;  %v3393_v12 = vpop.xlane.xlu1 %3392 }
0x10f2   : > { %v3415_v13 = vmul.f32 0.0625, %v3393_v12 }
0x10f3   : > { %v6039_v22 = vsub.f32 %v3384_v4, %v3416_v42 }
0x10f4   : > { %v6041_v14 = vsub.f32 %v3383_v40, %v3415_v13  ;;  %v3402_v57 = vpop.xlane.xlu0 %3401 }
0x10f5   : > { %v3418_v8 = vmul.f32 0.0625, %v3402_v57  ;;  %v3399_v11 = vpop.xlane.xlu1 %3398  ;;  %v3432_v38 = vmul.f32 %v6039_v22, %v6039_v22 }
0x10f6   : > { %v3417_v15 = vmul.f32 0.0625, %v3399_v11  ;;  %v3431_v16 = vmul.f32 %v6041_v14, %v6041_v14 }
0x10f7   : > { %v6047_v18 = vsub.f32 %v3386_v20, %v3418_v8  ;;  %v3442_v1 = vsel %vm725_vm0, %v3432_v38, 0.0  ;;  %v3672_v20 = vld [vmem:[%s6271_s18 + $0x8] sm:$0xff]  ;;  %v4186_v8 = vld [vmem:[%s6267_s14] ss:$0 sm:$0xff] }
0x10f8   : > { %v6050_v23 = vsub.f32 %v3385_v62, %v3417_v15  ;;  %v3408_v10 = vpop.xlane.xlu0 %3407  ;;  %3443 = vadd.xlane.f32.xlu0 %v3442_v1  ;;  %v3439_v33 = vsel %vm725_vm0, %v3431_v16, 0.0  ;;  %v4871_v62 = vpack.c.bf16 %v3672_v20, %v3671_v30  ;;  %v4188_v30 = vld [vmem:[%s6270_s17] ss:$0 sm:$0xff] }
0x10f9   : > { %v3420_v34 = vmul.f32 0.0625, %v3408_v10  ;;  %v3405_v51 = vpop.xlane.xlu1 %3404  ;;  %3440 = vadd.xlane.f32.xlu1 %v3439_v33  ;;  %v3434_v53 = vmul.f32 %v6047_v18, %v6047_v18  ;;  %v4187_v10 = vld [vmem:[%s6268_s15] ss:$0 sm:$0xff] }
0x10fa   : > { %v3419_v43 = vmul.f32 0.0625, %v3405_v51  ;;  %v3433_v24 = vmul.f32 %v6050_v23, %v6050_v23  ;;  %4872 = vmatprep.subr.bf16.mxu1 %v4871_v62 }
0x10fb   : > { %v6057_v36 = vsub.f32 %v3388_v0, %v3420_v34  ;;  %v3448_v9 = vsel %vm725_vm0, %v3434_v53, 0.0 }
0x10fc   : > { %v6060_v39 = vsub.f32 %v3387_v2, %v3419_v43  ;;  %3449 = vadd.xlane.f32.xlu0 %v3448_v9  ;;  %v3414_v29 = vpop.xlane.xlu0 %3413  ;;  %v3445_v17 = vsel %vm725_vm0, %v3433_v24, 0.0 }
0x10fd   : > { %v3422_v44 = vmul.f32 0.0625, %v3414_v29  ;;  %3446 = vadd.xlane.f32.xlu1 %v3445_v17  ;;  %v3411_v49 = vpop.xlane.xlu1 %3410  ;;  %v3436_v58 = vmul.f32 %v6057_v36, %v6057_v36 }
0x10fe   : > { %v3421_v59 = vmul.f32 0.0625, %v3411_v49  ;;  %v3435_v52 = vmul.f32 %v6060_v39, %v6060_v39 }
0x10ff   : > { %v6067_v50 = vsub.f32 %v3390_v21, %v3422_v44  ;;  %v3454_v45 = vsel %vm725_vm0, %v3436_v58, 0.0 }
0x1100   : > { %v6070_v60 = vsub.f32 %v3389_v35, %v3421_v59  ;;  %3455 = vadd.xlane.f32.xlu0 %v3454_v45  ;;  %v3451_v56 = vsel %vm725_vm0, %v3435_v52, 0.0 }
0x1101   : > { %3452 = vadd.xlane.f32.xlu1 %v3451_v56  ;;  %v3438_v4 = vmul.f32 %v6067_v50, %v6067_v50 }
0x1102   : > { %v3437_v40 = vmul.f32 %v6070_v60, %v6070_v60 }
0x1103   : > { %v3460_v3 = vsel %vm725_vm0, %v3438_v4, 0.0 }
0x1104   : > { %3461 = vadd.xlane.f32.xlu0 %v3460_v3  ;;  %v3457_v54 = vsel %vm725_vm0, %v3437_v40, 0.0 }
0x1105   : > { %3458 = vadd.xlane.f32.xlu1 %v3457_v54 }
0x1185   : > { %v3444_v26 = vpop.xlane.xlu0 %3443 }
0x1186   : > { %v3464_v31 = vmul.f32 0.0625, %v3444_v26  ;;  %v3441_v41 = vpop.xlane.xlu1 %3440 }
0x1187   : > { %v3463_v61 = vmul.f32 0.0625, %v3441_v41 }
0x1188   : > { %v3472_v55 = vadd.f32 1e-05, %v3464_v31 }
0x1189   : > { %v3471_v48 = vadd.f32 1e-05, %v3463_v61  ;;  %v3450_v0 = vpop.xlane.xlu0 %3449 }
0x118a   : > { %5162 = vrsqrt.f32 %v3472_v55  ;;  %v3466_v2 = vmul.f32 0.0625, %v3450_v0  ;;  %v3447_v19 = vpop.xlane.xlu1 %3446 }
0x118b   : > { %5164 = vrsqrt.f32 %v3471_v48  ;;  %v3465_v6 = vmul.f32 0.0625, %v3447_v19 }
0x118c   : > { %v3474_v28 = vadd.f32 1e-05, %v3466_v2 }
0x118d   : > { %v3473_v32 = vadd.f32 1e-05, %v3465_v6  ;;  %v3456_v25 = vpop.xlane.xlu0 %3455 }
0x118e   : > { %5166 = vrsqrt.f32 %v3474_v28  ;;  %v3468_v7 = vmul.f32 0.0625, %v3456_v25  ;;  %v3453_v21 = vpop.xlane.xlu1 %3452 }
0x118f   : > { %5168 = vrsqrt.f32 %v3473_v32  ;;  %v3467_v35 = vmul.f32 0.0625, %v3453_v21 }
0x1190   : > { %v3476_v5 = vadd.f32 1e-05, %v3468_v7 }
0x1191   : > { %v3475_v46 = vadd.f32 1e-05, %v3467_v35  ;;  %v3462_v37 = vpop.xlane.xlu0 %3461 }
0x1192   : > { %5170 = vrsqrt.f32 %v3476_v5  ;;  %v3470_v42 = vmul.f32 0.0625, %v3462_v37  ;;  %v3459_v12 = vpop.xlane.xlu1 %3458 }
0x1193   : > { %5172 = vrsqrt.f32 %v3475_v46  ;;  %v3469_v13 = vmul.f32 0.0625, %v3459_v12 }
0x1194   : > { %v5163_v57 = vpop.eup %5162  ;;  %v3478_v11 = vadd.f32 1e-05, %v3470_v42 }
0x1195   : > { %v5165_v38 = vpop.eup %5164  ;;  %v3488_v15 = vmul.f32 %v5163_v57, %v6039_v22  ;;  %v3477_v16 = vadd.f32 1e-05, %v3469_v13  ;;  %v4197_v57 = vld [vmem:[%s6272_s19] ss:$0 sm:$0xff] }
0x1196   : > { %5174 = vrsqrt.f32 %v3478_v11  ;;  %v3487_v1 = vmul.f32 %v5165_v38, %v6041_v14 }
0x1197   : > { %v3503_v33 = vmul.f32 %v4186_v8, %v3488_v15  ;;  %5176 = vrsqrt.f32 %v3477_v16 }
0x1198   : > { %v5167_v34 = vpop.eup %5166  ;;  %v3502_v51 = vmul.f32 %v4186_v8, %v3487_v1 }
0x1199   : > { %v5169_v53 = vpop.eup %5168  ;;  %v3490_v43 = vmul.f32 %v5167_v34, %v6047_v18  ;;  %v6103_v22 = vadd.f32 %v4187_v10, %v3503_v33 }
0x119a   : > { %v6100_v24 = vadd.f32 %v4187_v10, %v3502_v51  ;;  %v3489_v9 = vmul.f32 %v5169_v53, %v6050_v23 }
0x119b   : > { %v3505_v29 = vmul.f32 %v4186_v8, %v3490_v43 }
0x119c   : > { %v5171_v17 = vpop.eup %5170  ;;  %4703 = vmatprep.mubr.msk.f32.mxu1 %vm725_vm0, %v6100_v24  ;;  %v3504_v14 = vmul.f32 %v4186_v8, %v3489_v9 }
0x119d   : > { %v5173_v44 = vpop.eup %5172  ;;  %4704 = vmatmul.mubr.msk.f32.vlgmr.msra.gmra.mrb[40].mxu1 %vm725_vm0, %v6103_v22  ;;  %v3492_v49 = vmul.f32 %v5171_v17, %v6057_v36  ;;  %v6113_v23 = vadd.f32 %v4187_v10, %v3505_v29 }
0x119e   : > { %v6110_v58 = vadd.f32 %v4187_v10, %v3504_v14  ;;  %v3491_v18 = vmul.f32 %v5173_v44, %v6060_v39  ;;  %4874 = vmatpush3.bf16.msra.mxu1 %v4871_v62 }
0x119f   : > { %v3507_v59 = vmul.f32 %v4186_v8, %v3492_v49 }
0x11a0   : > { %v5175_v52 = vpop.eup %5174  ;;  %4706 = vmatprep.mubr.msk.f32.mxu1 %vm725_vm0, %v6110_v58  ;;  %v3506_v45 = vmul.f32 %v4186_v8, %v3491_v18 }
0x11a1   : > { %v5177_v56 = vpop.eup %5176  ;;  %4707 = vmatmul.mubr.msk.f32.gmra.mrb[42].mxu1 %vm725_vm0, %v6113_v23  ;;  %v3494_v4 = vmul.f32 %v5175_v52, %v6067_v50  ;;  %v6123_v39 = vadd.f32 %v4187_v10, %v3507_v59  ;;  %v3673_v50 = vld [vmem:[%s6271_s18 + $0x10] sm:$0xff] }
0x11a2   : > { %v6120_v36 = vadd.f32 %v4187_v10, %v3506_v45  ;;  %v3493_v40 = vmul.f32 %v5177_v56, %v6070_v60  ;;  %v3674_v60 = vld [vmem:[%s6271_s18 + $0x18] sm:$0xff] }
0x11a3   : > { %v3509_v3 = vmul.f32 %v4186_v8, %v3494_v4  ;;  %v4875_v27 = vpack.c.bf16 %v3674_v60, %v3673_v50 }
0x11a4   : > { %4709 = vmatprep.mubr.msk.f32.mxu1 %vm725_vm0, %v6120_v36  ;;  %v3508_v54 = vmul.f32 %v4186_v8, %v3493_v40 }
0x11a5   : > { %4710 = vmatmul.mubr.msk.f32.gmra.mrb[44].mxu1 %vm725_vm0, %v6123_v39  ;;  %v6131_v47 = vadd.f32 %v4187_v10, %v3509_v3  ;;  %4876 = vmatprep.subr.bf16.mxu1 %v4875_v27 }
0x11a6   : > { %v6129_v63 = vadd.f32 %v4187_v10, %v3508_v54  ;;  %4878 = vmatpush3.bf16.msra.mxu1 %v4875_v27 }
0x11a8   : > { %4712 = vmatprep.mubr.msk.f32.mxu1 %vm725_vm0, %v6129_v63 }
0x11a9   : > { %4713 = vmatmul.mubr.msk.f32.gmra.mrb[46].mxu1 %vm725_vm0, %v6131_v47 }
0x1270   : > { %v4705_v20 = vpop.f32.mrb[40].mxu1 }
0x1271   : > { %v3630_v62 = vadd.f32 %v4705_v20, %v4188_v30  ;;  %v3624_v26 = vpop.f32.mrb[41].mxu1 }
0x1272   : > { %v3625_v31 = vadd.f32 %v4188_v30, %v3624_v26 }
0x1273   : > { %v3664_v55 = vmax.f32 %v3630_v62, 0.0 }
0x1274   : > { %v3663_v41 = vmax.f32 %v3625_v31, 0.0  ;;  %v4708_v61 = vpop.f32.mrb[42].mxu1 }
0x1275   : > { %v3640_v48 = vadd.f32 %v4708_v61, %v4188_v30  ;;  %v3634_v0 = vpop.f32.mrb[43].mxu1 }
0x1276   : > { %v3635_v2 = vadd.f32 %v4188_v30, %v3634_v0  ;;  %4723 = vmatprep.mubr.msk.f32.mxu1 %vm2496_vm4, %v3663_v41 }
0x1277   : > { %4724 = vmatmul.mubr.msk.f32.vlgmr.msra.gmra.mrb[48].mxu1 %vm2496_vm4, %v3664_v55  ;;  %v3666_v28 = vmax.f32 %v3640_v48, 0.0 }
0x1278   : > { %v3665_v19 = vmax.f32 %v3635_v2, 0.0  ;;  %v4711_v6 = vpop.f32.mrb[44].mxu1 }
0x1279   : > { %v3650_v32 = vadd.f32 %v4711_v6, %v4188_v30  ;;  %v3644_v25 = vpop.f32.mrb[45].mxu1 }
0x127a   : > { %v3645_v7 = vadd.f32 %v4188_v30, %v3644_v25  ;;  %4726 = vmatprep.mubr.msk.f32.mxu1 %vm2496_vm4, %v3665_v19 }
0x127b   : > { %4727 = vmatmul.mubr.msk.f32.gmra.mrb[50].mxu1 %vm2496_vm4, %v3666_v28  ;;  %v3668_v5 = vmax.f32 %v3650_v32, 0.0 }
0x127c   : > { %v3667_v21 = vmax.f32 %v3645_v7, 0.0  ;;  %v4714_v35 = vpop.f32.mrb[46].mxu1 }
0x127d   : > { %v3660_v46 = vadd.f32 %v4714_v35, %v4188_v30  ;;  %v3654_v37 = vpop.f32.mrb[47].mxu1 }
0x127e   : > { %v3655_v42 = vadd.f32 %v4188_v30, %v3654_v37  ;;  %4729 = vmatprep.mubr.msk.f32.mxu1 %vm2496_vm4, %v3667_v21 }
0x127f   : > { %4730 = vmatmul.mubr.msk.f32.gmra.mrb[52].mxu1 %vm2496_vm4, %v3668_v5  ;;  %v3670_v13 = vmax.f32 %v3660_v46, 0.0 }
0x1280   : > { %v3669_v12 = vmax.f32 %v3655_v42, 0.0 }
0x1282   : > { %4732 = vmatprep.mubr.msk.f32.mxu1 %vm2496_vm4, %v3669_v12 }
0x1283   : > { %4733 = vmatmul.mubr.msk.f32.gmra.mrb[54].mxu1 %vm2496_vm4, %v3670_v13 }
0x134a   : > { %v4725_v8 = vpop.f32.mrb[48].mxu1 }
0x134b   : > { %v3778_v11 = vadd.f32 %v4725_v8, %v4197_v57  ;;  %v3772_v38 = vpop.f32.mrb[49].mxu1 }
0x134c   : > { %v3773_v15 = vadd.f32 %v4197_v57, %v3772_v38 }
0x134d   : > { %v3812_v16 = vadd.f32 %v3778_v11, %v6103_v22 }
0x134e   : > { %v3811_v1 = vadd.f32 %v3773_v15, %v6100_v24  ;;  %v4728_v10 = vpop.f32.mrb[50].mxu1 }
0x134f   : > { %v3788_v33 = vadd.f32 %v4728_v10, %v4197_v57  ;;  %v3782_v34 = vpop.f32.mrb[51].mxu1  ;;  %v3822_v51 = vsel %vm725_vm0, %v3812_v16, 0.0 }
0x1350   : > { %v3783_v53 = vadd.f32 %v4197_v57, %v3782_v34  ;;  %3823 = vadd.xlane.f32.xlu0 %v3822_v51  ;;  %v3819_v43 = vsel %vm725_vm0, %v3811_v1, 0.0 }
0x1351   : > { %v3814_v9 = vadd.f32 %v3788_v33, %v6113_v23  ;;  %3820 = vadd.xlane.f32.xlu1 %v3819_v43 }
0x1352   : > { %v3813_v29 = vadd.f32 %v3783_v53, %v6110_v58  ;;  %v4731_v17 = vpop.f32.mrb[52].mxu1 }
0x1353   : > { %v3798_v14 = vadd.f32 %v4731_v17, %v4197_v57  ;;  %v3792_v44 = vpop.f32.mrb[53].mxu1  ;;  %v3828_v22 = vsel %vm725_vm0, %v3814_v9, 0.0 }
0x1354   : > { %v3793_v24 = vadd.f32 %v4197_v57, %v3792_v44  ;;  %3829 = vadd.xlane.f32.xlu0 %v3828_v22  ;;  %v3825_v49 = vsel %vm725_vm0, %v3813_v29, 0.0 }
0x1355   : > { %v3816_v18 = vadd.f32 %v3798_v14, %v6123_v39  ;;  %3826 = vadd.xlane.f32.xlu1 %v3825_v49 }
0x1356   : > { %v3815_v59 = vadd.f32 %v3793_v24, %v6120_v36  ;;  %v4734_v52 = vpop.f32.mrb[54].mxu1 }
0x1357   : > { %v3808_v45 = vadd.f32 %v4734_v52, %v4197_v57  ;;  %v3802_v23 = vpop.f32.mrb[55].mxu1  ;;  %v3834_v56 = vsel %vm725_vm0, %v3816_v18, 0.0 }
0x1358   : > { %v3803_v58 = vadd.f32 %v4197_v57, %v3802_v23  ;;  %3835 = vadd.xlane.f32.xlu0 %v3834_v56  ;;  %v3831_v4 = vsel %vm725_vm0, %v3815_v59, 0.0 }
0x1359   : > { %v3818_v40 = vadd.f32 %v3808_v45, %v6131_v47  ;;  %3832 = vadd.xlane.f32.xlu1 %v3831_v4 }
0x135a   : > { %v3817_v3 = vadd.f32 %v3803_v58, %v6129_v63 }
0x135b   : > { %v3840_v54 = vsel %vm725_vm0, %v3818_v40, 0.0 }
0x135c   : > { %3841 = vadd.xlane.f32.xlu0 %v3840_v54  ;;  %v3837_v39 = vsel %vm725_vm0, %v3817_v3, 0.0 }
0x135d   : > { %3838 = vadd.xlane.f32.xlu1 %v3837_v39  ;;  %v4206_v39 = vld [vmem:[%s6273_s20] ss:$0 sm:$0xff] }
0x13dd   : > { %v3824_v36 = vpop.xlane.xlu0 %3823 }
0x13de   : > { %v3844_v50 = vmul.f32 0.0625, %v3824_v36  ;;  %v3821_v60 = vpop.xlane.xlu1 %3820 }
0x13df   : > { %v3843_v27 = vmul.f32 0.0625, %v3821_v60 }
0x13e0   : > { %v6173_v30 = vsub.f32 %v3812_v16, %v3844_v50 }
0x13e1   : > { %v6175_v20 = vsub.f32 %v3811_v1, %v3843_v27  ;;  %v3830_v62 = vpop.xlane.xlu0 %3829 }
0x13e2   : > { %v3846_v26 = vmul.f32 0.0625, %v3830_v62  ;;  %v3827_v47 = vpop.xlane.xlu1 %3826  ;;  %v3860_v63 = vmul.f32 %v6173_v30, %v6173_v30  ;;  %v4207_v62 = vld [vmem:[%s6274_s21] ss:$0 sm:$0xff] }
0x13e3   : > { %v3845_v31 = vmul.f32 0.0625, %v3827_v47  ;;  %v3859_v41 = vmul.f32 %v6175_v20, %v6175_v20 }
0x13e4   : > { %v6181_v61 = vsub.f32 %v3814_v9, %v3846_v26  ;;  %v3870_v55 = vsel %vm725_vm0, %v3860_v63, 0.0 }
0x13e5   : > { %v6184_v48 = vsub.f32 %v3813_v29, %v3845_v31  ;;  %v3836_v0 = vpop.xlane.xlu0 %3835  ;;  %3871 = vadd.xlane.f32.xlu0 %v3870_v55  ;;  %v3867_v2 = vsel %vm725_vm0, %v3859_v41, 0.0 }
0x13e6   : > { %v3848_v19 = vmul.f32 0.0625, %v3836_v0  ;;  %v3833_v6 = vpop.xlane.xlu1 %3832  ;;  %3868 = vadd.xlane.f32.xlu1 %v3867_v2  ;;  %v3862_v28 = vmul.f32 %v6181_v61, %v6181_v61 }
0x13e7   : > { %v3847_v32 = vmul.f32 0.0625, %v3833_v6  ;;  %v3861_v25 = vmul.f32 %v6184_v48, %v6184_v48 }
0x13e8   : > { %v6191_v7 = vsub.f32 %v3816_v18, %v3848_v19  ;;  %v3876_v21 = vsel %vm725_vm0, %v3862_v28, 0.0 }
0x13e9   : > { %v6194_v35 = vsub.f32 %v3815_v59, %v3847_v32  ;;  %3877 = vadd.xlane.f32.xlu0 %v3876_v21  ;;  %v3842_v5 = vpop.xlane.xlu0 %3841  ;;  %v3873_v46 = vsel %vm725_vm0, %v3861_v25, 0.0 }
0x13ea   : > { %v3850_v37 = vmul.f32 0.0625, %v3842_v5  ;;  %3874 = vadd.xlane.f32.xlu1 %v3873_v46  ;;  %v3839_v42 = vpop.xlane.xlu1 %3838  ;;  %v3864_v12 = vmul.f32 %v6191_v7, %v6191_v7 }
0x13eb   : > { %v3849_v13 = vmul.f32 0.0625, %v3839_v42  ;;  %v3863_v57 = vmul.f32 %v6194_v35, %v6194_v35 }
0x13ec   : > { %v6201_v8 = vsub.f32 %v3818_v40, %v3850_v37  ;;  %v3882_v11 = vsel %vm725_vm0, %v3864_v12, 0.0 }
0x13ed   : > { %v6204_v38 = vsub.f32 %v3817_v3, %v3849_v13  ;;  %3883 = vadd.xlane.f32.xlu0 %v3882_v11  ;;  %v3879_v15 = vsel %vm725_vm0, %v3863_v57, 0.0 }
0x13ee   : > { %3880 = vadd.xlane.f32.xlu1 %v3879_v15  ;;  %v3866_v16 = vmul.f32 %v6201_v8, %v6201_v8 }
0x13ef   : > { %v3865_v1 = vmul.f32 %v6204_v38, %v6204_v38 }
0x13f0   : > { %v3888_v10 = vsel %vm725_vm0, %v3866_v16, 0.0 }
0x13f1   : > { %3889 = vadd.xlane.f32.xlu0 %v3888_v10  ;;  %v3885_v33 = vsel %vm725_vm0, %v3865_v1, 0.0 }
0x13f2   : > { %3886 = vadd.xlane.f32.xlu1 %v3885_v33 }
0x1472   : > { %v3872_v34 = vpop.xlane.xlu0 %3871 }
0x1473   : > { %v3892_v51 = vmul.f32 0.0625, %v3872_v34  ;;  %v3869_v53 = vpop.xlane.xlu1 %3868 }
0x1474   : > { %v3891_v43 = vmul.f32 0.0625, %v3869_v53 }
0x1475   : > { %v3900_v9 = vadd.f32 1e-05, %v3892_v51 }
0x1476   : > { %v3899_v29 = vadd.f32 1e-05, %v3891_v43  ;;  %v3878_v17 = vpop.xlane.xlu0 %3877 }
0x1477   : > { %5178 = vrsqrt.f32 %v3900_v9  ;;  %v3894_v14 = vmul.f32 0.0625, %v3878_v17  ;;  %v3875_v44 = vpop.xlane.xlu1 %3874 }
0x1478   : > { %5180 = vrsqrt.f32 %v3899_v29  ;;  %v3893_v22 = vmul.f32 0.0625, %v3875_v44 }
0x1479   : > { %v3902_v24 = vadd.f32 1e-05, %v3894_v14 }
0x147a   : > { %v3901_v49 = vadd.f32 1e-05, %v3893_v22  ;;  %v3884_v18 = vpop.xlane.xlu0 %3883 }
0x147b   : > { %5182 = vrsqrt.f32 %v3902_v24  ;;  %v3896_v59 = vmul.f32 0.0625, %v3884_v18  ;;  %v3881_v52 = vpop.xlane.xlu1 %3880 }
0x147c   : > { %5184 = vrsqrt.f32 %v3901_v49  ;;  %v3895_v45 = vmul.f32 0.0625, %v3881_v52 }
0x147d   : > { %v3904_v23 = vadd.f32 1e-05, %v3896_v59 }
0x147e   : > { %v3903_v56 = vadd.f32 1e-05, %v3895_v45  ;;  %v3890_v58 = vpop.xlane.xlu0 %3889 }
0x147f   : > { %5186 = vrsqrt.f32 %v3904_v23  ;;  %v3898_v4 = vmul.f32 0.0625, %v3890_v58  ;;  %v3887_v40 = vpop.xlane.xlu1 %3886 }
0x1480   : > { %5188 = vrsqrt.f32 %v3903_v56  ;;  %v3897_v3 = vmul.f32 0.0625, %v3887_v40 }
0x1481   : > { %v5179_v54 = vpop.eup %5178  ;;  %v3906_v36 = vadd.f32 1e-05, %v3898_v4 }
0x1482   : > { %v5181_v50 = vpop.eup %5180  ;;  %v3916_v60 = vmul.f32 %v5179_v54, %v6173_v30  ;;  %v3905_v27 = vadd.f32 1e-05, %v3897_v3 }
0x1483   : > { %v3915_v26 = vmul.f32 %v5181_v50, %v6175_v20  ;;  %5190 = vrsqrt.f32 %v3906_v36 }
0x1484   : > { %v3931_v47 = vmul.f32 %v4206_v39, %v3916_v60  ;;  %5192 = vrsqrt.f32 %v3905_v27 }
0x1485   : > { %v5183_v63 = vpop.eup %5182  ;;  %v3930_v30 = vmul.f32 %v4206_v39, %v3915_v26 }
0x1486   : > { %v5185_v31 = vpop.eup %5184  ;;  %v3946_v41 = vadd.f32 %v4207_v62, %v3931_v47  ;;  %v3918_v55 = vmul.f32 %v5183_v63, %v6181_v61 }
0x1487   : > { %v3945_v20 = vadd.f32 %v4207_v62, %v3930_v30  ;;  %v3917_v0 = vmul.f32 %v5185_v31, %v6184_v48 }
0x1488   : > { %3954 = vst.msk [vmem:[%s6226_s29 + $0x8] sm:$0xff] %vm725_vm0, %v3946_v41  ;;  %v3933_v2 = vmul.f32 %v4206_v39, %v3918_v55 }
0x1489   : > { %v5187_v19 = vpop.eup %5186  ;;  %3953 = vst.msk [vmem:[%s6226_s29] sm:$0xff] %vm725_vm0, %v3945_v20  ;;  %v3932_v6 = vmul.f32 %v4206_v39, %v3917_v0 }
0x148a   : > { %v5189_v28 = vpop.eup %5188  ;;  %v3948_v32 = vadd.f32 %v4207_v62, %v3933_v2  ;;  %v3920_v25 = vmul.f32 %v5187_v19, %v6191_v7 }
0x148b   : > { %v3947_v21 = vadd.f32 %v4207_v62, %v3932_v6  ;;  %v3919_v61 = vmul.f32 %v5189_v28, %v6194_v35 }
0x148c   : > { %3956 = vst.msk [vmem:[%s6226_s29 + $0x18] sm:$0xff] %vm725_vm0, %v3948_v32  ;;  %v3935_v48 = vmul.f32 %v4206_v39, %v3920_v25 }
0x148d   : > { %v5191_v5 = vpop.eup %5190  ;;  %3955 = vst.msk [vmem:[%s6226_s29 + $0x10] sm:$0xff] %vm725_vm0, %v3947_v21  ;;  %v3934_v46 = vmul.f32 %v4206_v39, %v3919_v61 }
0x148e   : > { %v5193_v37 = vpop.eup %5192  ;;  %v3950_v42 = vadd.f32 %v4207_v62, %v3935_v48  ;;  %v3922_v12 = vmul.f32 %v5191_v5, %v6201_v8 }
0x148f   : > { %v3949_v13 = vadd.f32 %v4207_v62, %v3934_v46  ;;  %v3921_v57 = vmul.f32 %v5193_v37, %v6204_v38 }
0x1490   : > { %3958 = vst.msk [vmem:[%s6226_s29 + $0x28] sm:$0xff] %vm725_vm0, %v3950_v42  ;;  %v3937_v7 = vmul.f32 %v4206_v39, %v3922_v12 }
0x1491   : > { %3957 = vst.msk [vmem:[%s6226_s29 + $0x20] sm:$0xff] %vm725_vm0, %v3949_v13  ;;  %v3936_v35 = vmul.f32 %v4206_v39, %v3921_v57 }
0x1492   : > { %v3952_v11 = vadd.f32 %v4207_v62, %v3937_v7 }
0x1493   : > { %v3951_v15 = vadd.f32 %v4207_v62, %v3936_v35 }
0x1494   : > { %3960 = vst.msk [vmem:[%s6226_s29 + $0x38] sm:$0xff] %vm725_vm0, %v3952_v11 }
0x1495   : > { %3959 = vst.msk [vmem:[%s6226_s29 + $0x30] sm:$0xff] %vm725_vm0, %v3951_v15 }
0x1496 PF: > { %s32_s3 = sadd.s32 1, %s5201_s3  }
0x1497   : > { %p29_p4 = scmp.ge.s32.totalorder %s32_s3, 4  }
0x1499   :  { %31 = sbr.rel (!%p29_p4) target bundleno = 8 (0x8), region = 141 }

// kernel: _lambda_.5
= control target key start
LH: loop header
LB: loop body
LE: loop exit
PB: predicated region body
PF: predicated region fallthrough
CT: control target
= control target key end

     0   :  { %s11512_s27 = smov 0   ;;  %s14758_s0 = inlined_call_operand.vmem [shape: f32[2,326,8], index: 0, kind: input, shape index: {}]   ;;  %s14759_s1 = inlined_call_operand.vmem [shape: f32[9,8,8], index: 1, kind: input, shape index: {}]   ;;  %s14760_s2 = inlined_call_operand.vmem [shape: f32[1,8], index: 2, kind: input, shape index: {}]   ;;  %s14761_s3 = inlined_call_operand.vmem [shape: f32[9,8,8], index: 3, kind: input, shape index: {}]   ;;  %s14762_s4 = inlined_call_operand.vmem [shape: f32[1,8], index: 4, kind: input, shape index: {}]   ;;  %s14763_s5 = inlined_call_operand.vmem [shape: f32[1,8,8], index: 5, kind: input, shape index: {}]   ;;  %s14764_s6 = inlined_call_operand.vmem [shape: f32[1,8], index: 6, kind: input, shape index: {}]   ;;  %s14765_s7 = inlined_call_operand.vmem [shape: f32[288,1], index: 7, kind: input, shape index: {}]   ;;  %s14766_s8 = inlined_call_operand.vmem [shape: f32[2,288,8], index: 8, kind: output, shape index: {}]  }
   0x1 LB: > { %s8209_s28 = sadd.s32 4294967295, %s11463_s27   ;;  %p8213_p0 = scmp.ge.s32.totalorder %s11463_s27, 1  ;;  %s11463_s27 = sphi %s11512_s27, %s18_s27  }
   0x2   : > { %p262_p1 = scmp.lt.s32.totalorder %s11463_s27, 3 }
   0x4   : > { %p263_p2 = pnand %p8213_p0, %p262_p1 }
   0x6   : > { %266 = sbr.rel (%p263_p2) target bundleno = 1765 (0x6e5), region = 52 }
   0xd   : > { %v8216_v0 = vld [vmem:[%s14759_s1 + $0x8] sm:$0xff]  ;;  %p296_p3 = scmp.lt.s32.totalorder %s8209_s28, 1  ;;  %v347_v1 = vld [vmem:[%s14759_s1] sm:$0xff]  ;;  %vm387_vm0 = vcmask 1046528   ;;  %vm461_vm1 = vcmask 64512   ;;  %v11571_v19 = vld [vmem:[%s14759_s1 + $0x10] sm:$0xff] }
   0xe   : > { %9624 = vmatprep.subr.mxu0 %v8216_v0  ;;  %vm1098_vm2 = vcmask 1045504   ;;  %vm1820_vm3 = vcmask 1044480   ;;  %vm2249_vm4 = vcmask 1043456   ;;  %vm2971_vm5 = vcmask 1042432  }
   0xf   : > { %9625 = vmatpush3.msra.mxu0 %v8216_v0  ;;  %s15040_s28 = smov (!%p296_p3, %s8209_s28), 1  ;;  %vm3400_vm6 = vcmask 1041408   ;;  %vm4198_vm7 = vcmask 62464  }
  0x10   : > { %9680 = vmatprep.subr.mxu0 %v347_v1  ;;  %s11374_s11 = smul.u32 328, %s15040_s28 }
  0x11   : > { %s11375_s30 = smul.u32 288, %s15040_s28 }
  0x12   : > { %s11532_s14 = scalar_lea.vmem %s14758_s0, %s11374_s11 }
  0x13   : > { %v11535_v2 = vld [vmem:[%s11532_s14] sm:$0xff]  ;;  %v11538_v3 = vld [vmem:[%s11532_s14 + $0x8] sm:$0xff]  ;;  %v11541_v4 = vld [vmem:[%s11532_s14 + $0x10] sm:$0xff]  ;;  %s14619_s12 = scalar_lea.vmem %s14766_s8, %s11375_s30 }
  0x14   : > { %v388_v5 = vrot.slane %v11535_v2, 1  ;;  %v389_v6 = vrot.slane %v11538_v3, 1  ;;  %v391_v7 = vrot.slane %v11541_v4, 1  ;;  %v11547_v8 = vld [vmem:[%s11532_s14 + $0x18] sm:$0xff]  ;;  %v11550_v9 = vld [vmem:[%s11532_s14 + $0x20] sm:$0xff]  ;;  %v11553_v10 = vld [vmem:[%s11532_s14 + $0x28] sm:$0xff] }
  0x15   : > { %v393_v11 = vrot.slane %v11547_v8, 1  ;;  %v395_v12 = vrot.slane %v11550_v9, 1  ;;  %v397_v15 = vrot.slane %v11553_v10, 1  ;;  %v11561_v16 = vld [vmem:[%s11532_s14 + $0x30] sm:$0xff]  ;;  %v11566_v18 = vld [vmem:[%s11532_s14 + $0x38] sm:$0xff]  ;;  %v11580_v24 = vld [vmem:[%s11532_s14 + $0x40] sm:$0xff] }
  0x16   : > { %v390_v13 = vsel %vm387_vm0, %v388_v5, %v389_v6  ;;  %v392_v14 = vsel %vm387_vm0, %v389_v6, %v391_v7  ;;  %v399_v21 = vrot.slane %v11561_v16, 1  ;;  %v401_v23 = vrot.slane %v11566_v18, 1  ;;  %v11584_v25 = vld [vmem:[%s11532_s14 + $0x48] sm:$0xff]  ;;  %v11593_v30 = vld [vmem:[%s11532_s14 + $0x50] sm:$0xff]  ;;  %v11596_v31 = vld [vmem:[%s11532_s14 + $0x58] sm:$0xff] }
  0x17   : > { %9626 = vmatprep.mubr.msk.f32.mxu0 %vm461_vm1, %v390_v13  ;;  %v394_v17 = vsel %vm387_vm0, %v391_v7, %v393_v11  ;;  %v396_v20 = vsel %vm387_vm0, %v393_v11, %v395_v12  ;;  %v398_v22 = vsel %vm387_vm0, %v395_v12, %v397_v15  ;;  %v403_v27 = vrot.slane %v11580_v24, 1  ;;  %v11605_v36 = vld [vmem:[%s11532_s14 + $0x60] sm:$0xff]  ;;  %v11608_v37 = vld [vmem:[%s11532_s14 + $0x68] sm:$0xff]  ;;  %v11617_v42 = vld [vmem:[%s11532_s14 + $0x70] sm:$0xff] }
  0x18   : > { %9627 = vmatmul.mubr.msk.f32.vlgmr.msra.gmra.mrb[0].mxu0 %vm461_vm1, %v392_v14  ;;  %v400_v26 = vsel %vm387_vm0, %v397_v15, %v399_v21  ;;  %v402_v28 = vsel %vm387_vm0, %v399_v21, %v401_v23  ;;  %v405_v29 = vrot.slane %v11584_v25, 1  ;;  %v407_v33 = vrot.slane %v11593_v30, 1  ;;  %v11620_v43 = vld [vmem:[%s11532_s14 + $0x78] sm:$0xff]  ;;  %v11629_v48 = vld [vmem:[%s11532_s14 + $0x80] sm:$0xff]  ;;  %v11632_v49 = vld [vmem:[%s11532_s14 + $0x88] sm:$0xff] }
  0x19   : > { %9681 = vmatpush3.msra.mxu0 %v347_v1  ;;  %9629 = vmatprep.mubr.msk.f32.mxu0 %vm461_vm1, %v394_v17  ;;  %v404_v32 = vsel %vm387_vm0, %v401_v23, %v403_v27  ;;  %v409_v35 = vrot.slane %v11596_v31, 1  ;;  %v411_v39 = vrot.slane %v11605_v36, 1  ;;  %v413_v41 = vrot.slane %v11608_v37, 1  ;;  %v11641_v54 = vld [vmem:[%s11532_s14 + $0x90] sm:$0xff]  ;;  %v11644_v55 = vld [vmem:[%s11532_s14 + $0x98] sm:$0xff]  ;;  %v11653_v60 = vld [vmem:[%s11532_s14 + $0xa0] sm:$0xff] }
  0x1a   : > { %9736 = vmatprep.subr.mxu0 %v11571_v19  ;;  %v406_v34 = vsel %vm387_vm0, %v403_v27, %v405_v29  ;;  %v408_v38 = vsel %vm387_vm0, %v405_v29, %v407_v33  ;;  %v415_v45 = vrot.slane %v11617_v42, 1  ;;  %v417_v47 = vrot.slane %v11620_v43, 1  ;;  %v11656_v61 = vld [vmem:[%s11532_s14 + $0xa8] sm:$0xff]  ;;  %v11665_v5 = vld [vmem:[%s11532_s14 + $0xb0] sm:$0xff]  ;;  %v11668_v6 = vld [vmem:[%s11532_s14 + $0xb8] sm:$0xff] }
  0x1b   : > { %v410_v40 = vsel %vm387_vm0, %v407_v33, %v409_v35  ;;  %v412_v44 = vsel %vm387_vm0, %v409_v35, %v411_v39  ;;  %v414_v46 = vsel %vm387_vm0, %v411_v39, %v413_v41  ;;  %v419_v51 = vrot.slane %v11629_v48, 1  ;;  %14860 = vst [vmem:[#allocation3_spill] sm:$0xff] %v11665_v5  ;;  %14861 = vst [vmem:[#allocation4_spill] sm:$0xff] %v11668_v6  ;;  %v11677_v14 = vld [vmem:[%s11532_s14 + $0xc0] sm:$0xff]  ;;  %v11680_v15 = vld [vmem:[%s11532_s14 + $0xc8] sm:$0xff] }
  0x1c   : > { %9630 = vmatmul.mubr.msk.f32.gmra.mrb[2].mxu0 %vm461_vm1, %v396_v20  ;;  %v416_v50 = vsel %vm387_vm0, %v413_v41, %v415_v45  ;;  %v418_v52 = vsel %vm387_vm0, %v415_v45, %v417_v47  ;;  %v421_v53 = vrot.slane %v11632_v49, 1  ;;  %v423_v57 = vrot.slane %v11641_v54, 1  ;;  %14862 = vst [vmem:[#allocation5_spill] sm:$0xff] %v11677_v14  ;;  %14863 = vst [vmem:[#allocation6_spill] sm:$0xff] %v11680_v15  ;;  %v11689_v23 = vld [vmem:[%s11532_s14 + $0xd0] sm:$0xff]  ;;  %v11701_v33 = vld [vmem:[%s11532_s14 + $0xe0] sm:$0xff] }
  0x1d   : > { %9632 = vmatprep.mubr.msk.f32.mxu0 %vm461_vm1, %v398_v22  ;;  %v420_v56 = vsel %vm387_vm0, %v417_v47, %v419_v51  ;;  %v425_v59 = vrot.slane %v11644_v55, 1  ;;  %v427_v63 = vrot.slane %v11653_v60, 1  ;;  %v429_v1 = vrot.slane %v11656_v61, 1  ;;  %14864 = vst [vmem:[#allocation7_spill] sm:$0xff] %v11689_v23  ;;  %14866 = vst [vmem:[#allocation9_spill] sm:$0xff] %v11701_v33  ;;  %v11713_v41 = vld [vmem:[%s11532_s14 + $0xf0] sm:$0xff] }
  0x1e   : > { %v422_v58 = vsel %vm387_vm0, %v419_v51, %v421_v53  ;;  %v424_v62 = vsel %vm387_vm0, %v421_v53, %v423_v57  ;;  %v431_v11 = vrot.slane %v11665_v5, 1  ;;  %v433_v13 = vrot.slane %v11668_v6, 1  ;;  %14868 = vst [vmem:[#allocation11_spill] sm:$0xff] %v11713_v41  ;;  %v11725_v51 = vld [vmem:[%s11532_s14 + $0x100] sm:$0xff] }
  0x1f   : > { %v426_v0 = vsel %vm387_vm0, %v423_v57, %v425_v59  ;;  %v428_v7 = vsel %vm387_vm0, %v425_v59, %v427_v63  ;;  %v430_v12 = vsel %vm387_vm0, %v427_v63, %v429_v1  ;;  %v435_v20 = vrot.slane %v11677_v14, 1  ;;  %v11737_v59 = vld [vmem:[%s11532_s14 + $0x110] sm:$0xff] }
  0x20   : > { %9633 = vmatmul.mubr.msk.f32.gmra.mrb[4].mxu0 %vm461_vm1, %v400_v26  ;;  %v432_v17 = vsel %vm387_vm0, %v429_v1, %v431_v11  ;;  %v434_v21 = vsel %vm387_vm0, %v431_v11, %v433_v13  ;;  %v437_v22 = vrot.slane %v11680_v15, 1  ;;  %v11692_v26 = vld [vmem:[%s11532_s14 + $0xd8] sm:$0xff]  ;;  %v11749_v11 = vld [vmem:[%s11532_s14 + $0x120] sm:$0xff] }
  0x21   : > { %9635 = vmatprep.mubr.msk.f32.mxu0 %vm461_vm1, %v402_v28  ;;  %14865 = vst [vmem:[#allocation8_spill] sm:$0xff] %v11692_v26  ;;  %v436_v27 = vsel %vm387_vm0, %v433_v13, %v435_v20  ;;  %v439_v28 = vrot.slane %v11689_v23, 1  ;;  %v459_v13 = vrot.slane %v11749_v11, 1 }
  0x22   : > { %v438_v29 = vsel %vm387_vm0, %v435_v20, %v437_v22 }
  0x23   : > { %v440_v35 = vsel %vm387_vm0, %v437_v22, %v439_v28  ;;  %v1100_v22 = vrot.slane %v11538_v3, 2 }
  0x24   : > { %9636 = vmatmul.mubr.msk.f32.gmra.mrb[6].mxu0 %vm461_vm1, %v404_v32  ;;  %v441_v32 = vrot.slane %v11692_v26, 1 }
  0x25   : > { %9638 = vmatprep.mubr.msk.f32.mxu0 %vm461_vm1, %v406_v34  ;;  %v11704_v34 = vld [vmem:[%s11532_s14 + $0xe8] sm:$0xff] }
  0x26   : > { %14867 = vst [vmem:[#allocation10_spill] sm:$0xff] %v11704_v34  ;;  %v442_v39 = vsel %vm387_vm0, %v439_v28, %v441_v32 }
  0x28   : > { %9639 = vmatmul.mubr.msk.f32.gmra.mrb[8].mxu0 %vm461_vm1, %v408_v38  ;;  %v443_v38 = vrot.slane %v11701_v33, 1 }
  0x29   : > { %9641 = vmatprep.mubr.msk.f32.mxu0 %vm461_vm1, %v410_v40  ;;  %v445_v40 = vrot.slane %v11704_v34, 1 }
  0x2a   : > { %v444_v45 = vsel %vm387_vm0, %v441_v32, %v443_v38 }
  0x2b   : > { %v446_v47 = vsel %vm387_vm0, %v443_v38, %v445_v40  ;;  %v11851_v38 = vld [vmem:[%s14759_s1 + $0x20] sm:$0xff] }
  0x2c   : > { %9642 = vmatmul.mubr.msk.f32.gmra.mrb[10].mxu0 %vm461_vm1, %v412_v44  ;;  %v11716_v44 = vld [vmem:[%s11532_s14 + $0xf8] sm:$0xff] }
  0x2d   : > { %9644 = vmatprep.mubr.msk.f32.mxu0 %vm461_vm1, %v414_v46  ;;  %14869 = vst [vmem:[#allocation12_spill] sm:$0xff] %v11716_v44  ;;  %v447_v46 = vrot.slane %v11713_v41, 1 }
  0x2f   : > { %v448_v53 = vsel %vm387_vm0, %v445_v40, %v447_v46  ;;  %v1110_v40 = vrot.slane %v11561_v16, 2 }
  0x30   : > { %9645 = vmatmul.mubr.msk.f32.gmra.mrb[12].mxu0 %vm461_vm1, %v416_v50  ;;  %v449_v50 = vrot.slane %v11716_v44, 1 }
  0x31   : > { %9647 = vmatprep.mubr.msk.f32.mxu0 %vm461_vm1, %v418_v52  ;;  %v11728_v52 = vld [vmem:[%s11532_s14 + $0x108] sm:$0xff] }
  0x32   : > { %14870 = vst [vmem:[#allocation13_spill] sm:$0xff] %v11728_v52  ;;  %v450_v57 = vsel %vm387_vm0, %v447_v46, %v449_v50  ;;  %v1112_v46 = vrot.slane %v11566_v18, 2 }
  0x34   : > { %9648 = vmatmul.mubr.msk.f32.gmra.mrb[14].mxu0 %vm461_vm1, %v420_v56  ;;  %v451_v56 = vrot.slane %v11725_v51, 1 }
  0x35   : > { %9650 = vmatprep.mubr.msk.f32.mxu0 %vm461_vm1, %v422_v58  ;;  %v453_v58 = vrot.slane %v11728_v52, 1 }
  0x36   : > { %v452_v63 = vsel %vm387_vm0, %v449_v50, %v451_v56  ;;  %v1114_v50 = vrot.slane %v11580_v24, 2 }
  0x37   : > { %v454_v1 = vsel %vm387_vm0, %v451_v56, %v453_v58  ;;  %v1116_v56 = vrot.slane %v11584_v25, 2 }
  0x38   : > { %9651 = vmatmul.mubr.msk.f32.gmra.mrb[16].mxu0 %vm461_vm1, %v424_v62  ;;  %v11740_v62 = vld [vmem:[%s11532_s14 + $0x118] sm:$0xff] }
  0x39   : > { %9653 = vmatprep.mubr.msk.f32.mxu0 %vm461_vm1, %v426_v0  ;;  %v455_v0 = vrot.slane %v11737_v59, 1 }
  0x3c   : > { %9654 = vmatmul.mubr.msk.f32.gmra.mrb[18].mxu0 %vm461_vm1, %v428_v7  ;;  %v457_v7 = vrot.slane %v11740_v62, 1 }
  0x3d   : > { %9656 = vmatprep.mubr.msk.f32.mxu0 %vm461_vm1, %v430_v12  ;;  %v456_v12 = vsel %vm387_vm0, %v453_v58, %v455_v0  ;;  %v1118_v58 = vrot.slane %v11593_v30, 2 }
  0x3e   : > { %v460_v20 = vsel %vm387_vm0, %v457_v7, %v459_v13  ;;  %v1124_v13 = vrot.slane %v11608_v37, 2 }
  0x40   : > { %9657 = vmatmul.mubr.msk.f32.gmra.mrb[20].mxu0 %vm461_vm1, %v432_v17  ;;  %v458_v17 = vsel %vm387_vm0, %v455_v0, %v457_v7  ;;  %v1120_v0 = vrot.slane %v11596_v31, 2  ;;  %v1122_v7 = vrot.slane %v11605_v36, 2 }
  0x41   : > { %9659 = vmatprep.mubr.msk.f32.mxu0 %vm461_vm1, %v434_v21  ;;  %v8326_v21 = vld [vmem:[%s14759_s1 + $0x18] sm:$0xff] }
  0x44   : > { %9660 = vmatmul.mubr.msk.f32.gmra.mrb[22].mxu0 %vm461_vm1, %v436_v27  ;;  %v1102_v27 = vrot.slane %v11541_v4, 2 }
  0x45   : > { %9662 = vmatprep.mubr.msk.f32.mxu0 %vm461_vm1, %v438_v29  ;;  %v1104_v29 = vrot.slane %v11547_v8, 2 }
  0x47   : > { %v11845_v32 = vsel %vm1098_vm2, %v1102_v27, %v1104_v29 }
  0x48   : > { %9663 = vmatmul.mubr.msk.f32.gmra.mrb[24].mxu0 %vm461_vm1, %v440_v35  ;;  %v1108_v35 = vrot.slane %v11553_v10, 2 }
  0x49   : > { %9665 = vmatprep.mubr.msk.f32.mxu0 %vm461_vm1, %v442_v39 }
  0x4c   : > { %9666 = vmatmul.mubr.msk.f32.gmra.mrb[26].mxu0 %vm461_vm1, %v444_v45 }
  0x4d   : > { %9668 = vmatprep.mubr.msk.f32.mxu0 %vm461_vm1, %v446_v47  ;;  %v11870_v47 = vsel %vm1098_vm2, %v1108_v35, %v1110_v40 }
  0x50   : > { %9669 = vmatmul.mubr.msk.f32.gmra.mrb[28].mxu0 %vm461_vm1, %v448_v53  ;;  %v11874_v53 = vsel %vm1098_vm2, %v1110_v40, %v1112_v46  ;;  %v1136_v40 = vrot.slane %v11644_v55, 2 }
  0x51   : > { %9671 = vmatprep.mubr.msk.f32.mxu0 %vm461_vm1, %v450_v57  ;;  %v11882_v57 = vsel %vm1098_vm2, %v1112_v46, %v1114_v50 }
  0x54   : > { %9672 = vmatmul.mubr.msk.f32.gmra.mrb[30].mxu0 %vm461_vm1, %v452_v63  ;;  %v11886_v63 = vsel %vm1098_vm2, %v1114_v50, %v1116_v56  ;;  %v1138_v50 = vrot.slane %v11653_v60, 2 }
  0x55   : > { %9674 = vmatprep.mubr.msk.f32.mxu0 %vm461_vm1, %v454_v1  ;;  %v11894_v1 = vsel %vm1098_vm2, %v1116_v56, %v1118_v58 }
  0x58   : > { %9675 = vmatmul.mubr.msk.f32.gmra.mrb[32].mxu0 %vm461_vm1, %v456_v12  ;;  %v11898_v12 = vsel %vm1098_vm2, %v1118_v58, %v1120_v0  ;;  %v1140_v58 = vrot.slane %v11656_v61, 2 }
  0x59   : > { %9677 = vmatprep.mubr.msk.f32.mxu0 %vm461_vm1, %v458_v17  ;;  %v11906_v17 = vsel %vm1098_vm2, %v1120_v0, %v1122_v7  ;;  %v11954_v0 = vsel %vm1098_vm2, %v1136_v40, %v1138_v50 }
  0x5c   : > { %9678 = vmatmul.mubr.msk.f32.gmra.mrb[34].mxu0 %vm461_vm1, %v460_v20  ;;  %v1126_v20 = vrot.slane %v11617_v42, 2 }
  0x5d   : > { %9682 = vmatprep.mubr.msk.f32.mxu0 %vm461_vm1, %v11535_v2 }
  0x60   : > { %9683 = vmatmul.mubr.msk.f32.vlgmr.msra.gmra.mrb[0].mxu0 %vm461_vm1, %v11538_v3  ;;  %v1106_v3 = vrot.slane %v11550_v9, 2 }
  0x61   : > { %9737 = vmatpush3.msra.mxu0 %v11571_v19  ;;  %9685 = vmatprep.mubr.msk.f32.mxu0 %vm461_vm1, %v11541_v4  ;;  %v1099_v19 = vrot.slane %v11535_v2, 2  ;;  %v1103_v2 = vsel %vm1098_vm2, %v1100_v22, %v1102_v27  ;;  %v1130_v27 = vrot.slane %v11629_v48, 2 }
  0x62   : > { %9792 = vmatprep.subr.mxu0 %v8326_v21  ;;  %v11857_v39 = vsel %vm1098_vm2, %v1104_v29, %v1106_v3  ;;  %v11861_v45 = vsel %vm1098_vm2, %v1106_v3, %v1108_v35  ;;  %v1132_v29 = vrot.slane %v11632_v49, 2  ;;  %v1134_v3 = vrot.slane %v11641_v54, 2 }
  0x63   : > { %v1101_v28 = vsel %vm1098_vm2, %v1099_v19, %v1100_v22  ;;  %v1128_v19 = vrot.slane %v11620_v43, 2  ;;  %v11918_v22 = vsel %vm1098_vm2, %v1124_v13, %v1126_v20 }
  0x64   : > { %9686 = vmatmul.mubr.msk.f32.gmra.mrb[2].mxu0 %vm461_vm1, %v11547_v8  ;;  %v11934_v35 = vsel %vm1098_vm2, %v1130_v27, %v1132_v29  ;;  %v11942_v46 = vsel %vm1098_vm2, %v1132_v29, %v1134_v3  ;;  %v11946_v56 = vsel %vm1098_vm2, %v1134_v3, %v1136_v40  ;;  %v1148_v3 = vrot.slane %v11680_v15, 2 }
  0x65   : > { %9688 = vmatprep.mubr.msk.f32.mxu0 %vm461_vm1, %v11550_v9 }
  0x68   : > { %9689 = vmatmul.mubr.msk.f32.gmra.mrb[4].mxu0 %vm461_vm1, %v11553_v10 }
  0x69   : > { %9691 = vmatprep.mubr.msk.f32.mxu0 %vm461_vm1, %v11561_v16 }
  0x6c   : > { %9692 = vmatmul.mubr.msk.f32.gmra.mrb[6].mxu0 %vm461_vm1, %v11566_v18 }
  0x6d   : > { %9694 = vmatprep.mubr.msk.f32.mxu0 %vm461_vm1, %v11580_v24 }
  0x70   : > { %9695 = vmatmul.mubr.msk.f32.gmra.mrb[8].mxu0 %vm461_vm1, %v11584_v25 }
  0x71   : > { %9697 = vmatprep.mubr.msk.f32.mxu0 %vm461_vm1, %v11593_v30 }
  0x74   : > { %9698 = vmatmul.mubr.msk.f32.gmra.mrb[10].mxu0 %vm461_vm1, %v11596_v31 }
  0x75   : > { %9700 = vmatprep.mubr.msk.f32.mxu0 %vm461_vm1, %v11605_v36 }
  0x78   : > { %9701 = vmatmul.mubr.msk.f32.gmra.mrb[12].mxu0 %vm461_vm1, %v11608_v37 }
  0x79   : > { %9703 = vmatprep.mubr.msk.f32.mxu0 %vm461_vm1, %v11617_v42 }
  0x7c   : > { %9704 = vmatmul.mubr.msk.f32.gmra.mrb[14].mxu0 %vm461_vm1, %v11620_v43 }
  0x7d   : > { %9706 = vmatprep.mubr.msk.f32.mxu0 %vm461_vm1, %v11629_v48 }
  0x80   : > { %9707 = vmatmul.mubr.msk.f32.gmra.mrb[16].mxu0 %vm461_vm1, %v11632_v49 }
  0x81   : > { %9709 = vmatprep.mubr.msk.f32.mxu0 %vm461_vm1, %v11641_v54 }
  0x84   : > { %9710 = vmatmul.mubr.msk.f32.gmra.mrb[18].mxu0 %vm461_vm1, %v11644_v55 }
  0x85   : > { %9712 = vmatprep.mubr.msk.f32.mxu0 %vm461_vm1, %v11653_v60 }
  0x88   : > { %9713 = vmatmul.mubr.msk.f32.gmra.mrb[20].mxu0 %vm461_vm1, %v11656_v61 }
  0x89   : > { %9715 = vmatprep.mubr.msk.f32.mxu0 %vm461_vm1, %v11665_v5 }
  0x8c   : > { %9716 = vmatmul.mubr.msk.f32.gmra.mrb[22].mxu0 %vm461_vm1, %v11668_v6 }
  0x8d   : > { %9718 = vmatprep.mubr.msk.f32.mxu0 %vm461_vm1, %v11677_v14 }
  0x90   : > { %9719 = vmatmul.mubr.msk.f32.gmra.mrb[24].mxu0 %vm461_vm1, %v11680_v15  ;;  %v1154_v15 = vrot.slane %v11701_v33, 2 }
  0x91   : > { %9721 = vmatprep.mubr.msk.f32.mxu0 %vm461_vm1, %v11689_v23 }
  0x94   : > { %9722 = vmatmul.mubr.msk.f32.gmra.mrb[26].mxu0 %vm461_vm1, %v11692_v26 }
  0x95   : > { %9724 = vmatprep.mubr.msk.f32.mxu0 %vm461_vm1, %v11701_v33  ;;  %v1164_v33 = vrot.slane %v11728_v52, 2 }
  0x98   : > { %9725 = vmatmul.mubr.msk.f32.gmra.mrb[28].mxu0 %vm461_vm1, %v11704_v34 }
  0x99   : > { %9727 = vmatprep.mubr.msk.f32.mxu0 %vm461_vm1, %v11713_v41 }
  0x9c   : > { %9728 = vmatmul.mubr.msk.f32.gmra.mrb[30].mxu0 %vm461_vm1, %v11716_v44 }
  0x9d   : > { %9730 = vmatprep.mubr.msk.f32.mxu0 %vm461_vm1, %v11725_v51 }
  0xa0   : > { %9731 = vmatmul.mubr.msk.f32.gmra.mrb[32].mxu0 %vm461_vm1, %v11728_v52 }
  0xa1   : > { %9733 = vmatprep.mubr.msk.f32.mxu0 %vm461_vm1, %v11737_v59 }
  0xa4   : > { %9734 = vmatmul.mubr.msk.f32.gmra.mrb[34].mxu0 %vm461_vm1, %v11740_v62 }
  0xa5   : > { %9738 = vmatprep.mubr.msk.f32.mxu0 %vm461_vm1, %v1101_v28  ;;  %v11922_v28 = vsel %vm1098_vm2, %v1126_v20, %v1128_v19  ;;  %v1144_v20 = vrot.slane %v11668_v6, 2  ;;  %v1152_v6 = vrot.slane %v11692_v26, 2 }
  0xa8   : > { %9739 = vmatmul.mubr.msk.f32.vlgmr.msra.gmra.mrb[0].mxu0 %vm461_vm1, %v1103_v2  ;;  %v11930_v2 = vsel %vm1098_vm2, %v1128_v19, %v1130_v27  ;;  %v1146_v27 = vrot.slane %v11677_v14, 2 }
  0xa9   : > { %9793 = vmatpush3.msra.mxu0 %v8326_v21  ;;  %9741 = vmatprep.mubr.msk.f32.mxu0 %vm461_vm1, %v11845_v32  ;;  %v11910_v21 = vsel %vm1098_vm2, %v1122_v7, %v1124_v13  ;;  %v1142_v7 = vrot.slane %v11665_v5, 2  ;;  %v11958_v13 = vsel %vm1098_vm2, %v1138_v50, %v1140_v58  ;;  %v1150_v50 = vrot.slane %v11689_v23, 2 }
  0xaa   : > { %9848 = vmatprep.subr.mxu0 %v11851_v38  ;;  %v1147_v40 = vsel %vm1098_vm2, %v1144_v20, %v1146_v27  ;;  %v1156_v5 = vrot.slane %v11704_v34, 2  ;;  %v1160_v23 = vrot.slane %v11716_v44, 2 }
  0xab   : > { %v11966_v19 = vsel %vm1098_vm2, %v1140_v58, %v1142_v7  ;;  %v11970_v29 = vsel %vm1098_vm2, %v1142_v7, %v1144_v20  ;;  %v1149_v58 = vsel %vm1098_vm2, %v1146_v27, %v1148_v3  ;;  %v1151_v7 = vsel %vm1098_vm2, %v1148_v3, %v1150_v50 }
  0xac   : > { %9742 = vmatmul.mubr.msk.f32.gmra.mrb[2].mxu0 %vm461_vm1, %v11857_v39  ;;  %v1153_v14 = vsel %vm1098_vm2, %v1150_v50, %v1152_v6  ;;  %v1155_v20 = vsel %vm1098_vm2, %v1152_v6, %v1154_v15  ;;  %v1158_v27 = vrot.slane %v11713_v41, 2  ;;  %v1157_v26 = vsel %vm1098_vm2, %v1154_v15, %v1156_v5 }
  0xad   : > { %9744 = vmatprep.mubr.msk.f32.mxu0 %vm461_vm1, %v11861_v45  ;;  %v1162_v50 = vrot.slane %v11725_v51, 2  ;;  %v1166_v15 = vrot.slane %v11737_v59, 2  ;;  %v1168_v41 = vrot.slane %v11740_v62, 2 }
  0xae   : > { %v1159_v3 = vsel %vm1098_vm2, %v1156_v5, %v1158_v27  ;;  %v1161_v34 = vsel %vm1098_vm2, %v1158_v27, %v1160_v23  ;;  %v1170_v27 = vrot.slane %v11749_v11, 2 }
  0xaf   : > { %v1163_v6 = vsel %vm1098_vm2, %v1160_v23, %v1162_v50  ;;  %v1165_v44 = vsel %vm1098_vm2, %v1162_v50, %v1164_v33  ;;  %v1167_v5 = vsel %vm1098_vm2, %v1164_v33, %v1166_v15  ;;  %v1169_v52 = vsel %vm1098_vm2, %v1166_v15, %v1168_v41  ;;  %v8400_v50 = vld [vmem:[%s14759_s1 + $0x28] sm:$0xff] }
  0xb0   : > { %9745 = vmatmul.mubr.msk.f32.gmra.mrb[4].mxu0 %vm461_vm1, %v11870_v47  ;;  %v1171_v23 = vsel %vm1098_vm2, %v1168_v41, %v1170_v27  ;;  %v12069_v33 = vld [vmem:[%s11532_s14 + $0x128] sm:$0xff]  ;;  %v1850_v15 = vrot.slane %v11632_v49, 3 }
  0xb1   : > { %9747 = vmatprep.mubr.msk.f32.mxu0 %vm461_vm1, %v11874_v53  ;;  %v1529_v41 = vrot.slane %v12069_v33, 2 }
  0xb4   : > { %9748 = vmatmul.mubr.msk.f32.gmra.mrb[6].mxu0 %vm461_vm1, %v11882_v57 }
  0xb5   : > { %9750 = vmatprep.mubr.msk.f32.mxu0 %vm461_vm1, %v11886_v63 }
  0xb8   : > { %9751 = vmatmul.mubr.msk.f32.gmra.mrb[8].mxu0 %vm461_vm1, %v11894_v1 }
  0xb9   : > { %9753 = vmatprep.mubr.msk.f32.mxu0 %vm461_vm1, %v11898_v12 }
  0xbc   : > { %9754 = vmatmul.mubr.msk.f32.gmra.mrb[10].mxu0 %vm461_vm1, %v11906_v17 }
  0xbd   : > { %9756 = vmatprep.mubr.msk.f32.mxu0 %vm461_vm1, %v11910_v21 }
  0xc0   : > { %9757 = vmatmul.mubr.msk.f32.gmra.mrb[12].mxu0 %vm461_vm1, %v11918_v22 }
  0xc1   : > { %9759 = vmatprep.mubr.msk.f32.mxu0 %vm461_vm1, %v11922_v28 }
  0xc4   : > { %9760 = vmatmul.mubr.msk.f32.gmra.mrb[14].mxu0 %vm461_vm1, %v11930_v2 }
  0xc5   : > { %9762 = vmatprep.mubr.msk.f32.mxu0 %vm461_vm1, %v11934_v35 }
  0xc8   : > { %9763 = vmatmul.mubr.msk.f32.gmra.mrb[16].mxu0 %vm461_vm1, %v11942_v46 }
  0xc9   : > { %9765 = vmatprep.mubr.msk.f32.mxu0 %vm461_vm1, %v11946_v56 }
  0xcc   : > { %9766 = vmatmul.mubr.msk.f32.gmra.mrb[18].mxu0 %vm461_vm1, %v11954_v0 }
  0xcd   : > { %9768 = vmatprep.mubr.msk.f32.mxu0 %vm461_vm1, %v11958_v13 }
  0xd0   : > { %9769 = vmatmul.mubr.msk.f32.gmra.mrb[20].mxu0 %vm461_vm1, %v11966_v19 }
  0xd1   : > { %9771 = vmatprep.mubr.msk.f32.mxu0 %vm461_vm1, %v11970_v29 }
  0xd4   : > { %9772 = vmatmul.mubr.msk.f32.gmra.mrb[22].mxu0 %vm461_vm1, %v1147_v40 }
  0xd5   : > { %9774 = vmatprep.mubr.msk.f32.mxu0 %vm461_vm1, %v1149_v58 }
  0xd8   : > { %9775 = vmatmul.mubr.msk.f32.gmra.mrb[24].mxu0 %vm461_vm1, %v1151_v7 }
  0xd9   : > { %9777 = vmatprep.mubr.msk.f32.mxu0 %vm461_vm1, %v1153_v14 }
  0xdc   : > { %9778 = vmatmul.mubr.msk.f32.gmra.mrb[26].mxu0 %vm461_vm1, %v1155_v20 }
  0xdd   : > { %9780 = vmatprep.mubr.msk.f32.mxu0 %vm461_vm1, %v1157_v26 }
  0xe0   : > { %9781 = vmatmul.mubr.msk.f32.gmra.mrb[28].mxu0 %vm461_vm1, %v1159_v3 }
  0xe1   : > { %9783 = vmatprep.mubr.msk.f32.mxu0 %vm461_vm1, %v1161_v34 }
  0xe4   : > { %9784 = vmatmul.mubr.msk.f32.gmra.mrb[30].mxu0 %vm461_vm1, %v1163_v6 }
  0xe5   : > { %9786 = vmatprep.mubr.msk.f32.mxu0 %vm461_vm1, %v1165_v44 }
  0xe8   : > { %9787 = vmatmul.mubr.msk.f32.gmra.mrb[32].mxu0 %vm461_vm1, %v1167_v5 }
  0xe9   : > { %9789 = vmatprep.mubr.msk.f32.mxu0 %vm461_vm1, %v1169_v52 }
  0xec   : > { %9790 = vmatmul.mubr.msk.f32.gmra.mrb[34].mxu0 %vm461_vm1, %v1171_v23 }
  0xed   : > { %9794 = vmatprep.mubr.msk.f32.mxu0 %vm461_vm1, %v11845_v32  ;;  %v12075_v32 = vld [vmem:[%s11532_s14 + $0x130] sm:$0xff] }
  0xf0   : > { %9795 = vmatmul.mubr.msk.f32.vlgmr.msra.gmra.mrb[0].mxu0 %vm461_vm1, %v11857_v39  ;;  %v1824_v39 = vrot.slane %v11550_v9, 3 }
  0xf1   : > { %9849 = vmatpush3.msra.mxu0 %v11851_v38  ;;  %9797 = vmatprep.mubr.msk.f32.mxu0 %vm461_vm1, %v11861_v45  ;;  %v1822_v38 = vrot.slane %v11547_v8, 3 }
  0xf2   : > { %9904 = vmatprep.subr.mxu0 %v8400_v50 }
  0xf4   : > { %9798 = vmatmul.mubr.msk.f32.gmra.mrb[2].mxu0 %vm461_vm1, %v11870_v47  ;;  %v12095_v47 = vsel %vm1820_vm3, %v1822_v38, %v1824_v39 }
  0xf5   : > { %9800 = vmatprep.mubr.msk.f32.mxu0 %vm461_vm1, %v11874_v53  ;;  %14872 = vst [vmem:[#allocation15_spill] sm:$0xff] %v12095_v47  ;;  %v1828_v53 = vrot.slane %v11561_v16, 3 }
  0xf8   : > { %9801 = vmatmul.mubr.msk.f32.gmra.mrb[4].mxu0 %vm461_vm1, %v11882_v57 }
  0xf9   : > { %9803 = vmatprep.mubr.msk.f32.mxu0 %vm461_vm1, %v11886_v63  ;;  %v1830_v63 = vrot.slane %v11566_v18, 3 }
  0xfc   : > { %9804 = vmatmul.mubr.msk.f32.gmra.mrb[6].mxu0 %vm461_vm1, %v11894_v1  ;;  %v12105_v1 = vld [vmem:[%s14759_s1 + $0x30] sm:$0xff] }
  0xfd   : > { %9806 = vmatprep.mubr.msk.f32.mxu0 %vm461_vm1, %v11898_v12 }
 0x100   : > { %9807 = vmatmul.mubr.msk.f32.gmra.mrb[8].mxu0 %vm461_vm1, %v11906_v17  ;;  %v1832_v17 = vrot.slane %v11580_v24, 3 }
 0x101   : > { %9809 = vmatprep.mubr.msk.f32.mxu0 %vm461_vm1, %v11910_v21  ;;  %v12116_v21 = vsel %vm1820_vm3, %v1828_v53, %v1830_v63 }
 0x102   : > { %14875 = vst [vmem:[#allocation18_spill] sm:$0xff] %v12116_v21 }
 0x104   : > { %9810 = vmatmul.mubr.msk.f32.gmra.mrb[10].mxu0 %vm461_vm1, %v11918_v22  ;;  %v1834_v22 = vrot.slane %v11584_v25, 3 }
 0x105   : > { %9812 = vmatprep.mubr.msk.f32.mxu0 %vm461_vm1, %v11922_v28  ;;  %v12125_v28 = vsel %vm1820_vm3, %v1830_v63, %v1832_v17 }
 0x106   : > { %14876 = vst [vmem:[#allocation19_spill] sm:$0xff] %v12125_v28 }
 0x108   : > { %9813 = vmatmul.mubr.msk.f32.gmra.mrb[12].mxu0 %vm461_vm1, %v11930_v2  ;;  %v1836_v2 = vrot.slane %v11593_v30, 3 }
 0x109   : > { %9815 = vmatprep.mubr.msk.f32.mxu0 %vm461_vm1, %v11934_v35  ;;  %v12129_v35 = vsel %vm1820_vm3, %v1832_v17, %v1834_v22 }
 0x10a   : > { %14877 = vst [vmem:[#allocation20_spill] sm:$0xff] %v12129_v35 }
 0x10c   : > { %9816 = vmatmul.mubr.msk.f32.gmra.mrb[14].mxu0 %vm461_vm1, %v11942_v46  ;;  %v1838_v46 = vrot.slane %v11596_v31, 3 }
 0x10d   : > { %9818 = vmatprep.mubr.msk.f32.mxu0 %vm461_vm1, %v11946_v56  ;;  %v12137_v56 = vsel %vm1820_vm3, %v1834_v22, %v1836_v2  ;;  %v14893_v22 = vld [vmem:[#allocation5_spill] sm:$0xff] }
 0x10e   : > { %14878 = vst [vmem:[#allocation21_spill] sm:$0xff] %v12137_v56 }
 0x110   : > { %9819 = vmatmul.mubr.msk.f32.gmra.mrb[16].mxu0 %vm461_vm1, %v11954_v0  ;;  %v1840_v0 = vrot.slane %v11605_v36, 3 }
 0x111   : > { %9821 = vmatprep.mubr.msk.f32.mxu0 %vm461_vm1, %v11958_v13  ;;  %v12141_v13 = vsel %vm1820_vm3, %v1836_v2, %v1838_v46  ;;  %v1864_v2 = vrot.slane %v14893_v22, 3 }
 0x112   : > { %14879 = vst [vmem:[#allocation22_spill] sm:$0xff] %v12141_v13 }
 0x114   : > { %9822 = vmatmul.mubr.msk.f32.gmra.mrb[18].mxu0 %vm461_vm1, %v11966_v19  ;;  %v1842_v19 = vrot.slane %v11608_v37, 3 }
 0x115   : > { %9824 = vmatprep.mubr.msk.f32.mxu0 %vm461_vm1, %v11970_v29  ;;  %v12149_v29 = vsel %vm1820_vm3, %v1838_v46, %v1840_v0 }
 0x116   : > { %14880 = vst [vmem:[#allocation23_spill] sm:$0xff] %v12149_v29 }
 0x118   : > { %9825 = vmatmul.mubr.msk.f32.gmra.mrb[20].mxu0 %vm461_vm1, %v1147_v40  ;;  %v1844_v40 = vrot.slane %v11617_v42, 3 }
 0x119   : > { %9827 = vmatprep.mubr.msk.f32.mxu0 %vm461_vm1, %v1149_v58  ;;  %v12153_v58 = vsel %vm1820_vm3, %v1840_v0, %v1842_v19  ;;  %v14895_v0 = vld [vmem:[#allocation6_spill] sm:$0xff] }
 0x11a   : > { %14881 = vst [vmem:[#allocation24_spill] sm:$0xff] %v12153_v58 }
 0x11c   : > { %9828 = vmatmul.mubr.msk.f32.gmra.mrb[22].mxu0 %vm461_vm1, %v1151_v7  ;;  %v1846_v7 = vrot.slane %v11620_v43, 3 }
 0x11d   : > { %9830 = vmatprep.mubr.msk.f32.mxu0 %vm461_vm1, %v1153_v14  ;;  %v1531_v14 = vrot.slane %v12075_v32, 2 }
 0x120   : > { %9831 = vmatmul.mubr.msk.f32.gmra.mrb[24].mxu0 %vm461_vm1, %v1155_v20  ;;  %v12161_v20 = vsel %vm1820_vm3, %v1842_v19, %v1844_v40  ;;  %v1866_v19 = vrot.slane %v14895_v0, 3 }
 0x121   : > { %9833 = vmatprep.mubr.msk.f32.mxu0 %vm461_vm1, %v1157_v26  ;;  %v1530_v26 = vsel %vm1098_vm2, %v1170_v27, %v1529_v41  ;;  %14882 = vst [vmem:[#allocation25_spill] sm:$0xff] %v12161_v20  ;;  %v1852_v27 = vrot.slane %v11641_v54, 3 }
 0x124   : > { %9834 = vmatmul.mubr.msk.f32.gmra.mrb[26].mxu0 %vm461_vm1, %v1159_v3  ;;  %v1848_v3 = vrot.slane %v11629_v48, 3 }
 0x125   : > { %9836 = vmatprep.mubr.msk.f32.mxu0 %vm461_vm1, %v1161_v34  ;;  %v1821_v34 = vrot.slane %v11541_v4, 3 }
 0x127   : > { %v12088_v45 = vsel %vm1820_vm3, %v1821_v34, %v1822_v38  ;;  %v1858_v34 = vrot.slane %v11656_v61, 3 }
 0x128   : > { %9837 = vmatmul.mubr.msk.f32.gmra.mrb[28].mxu0 %vm461_vm1, %v1163_v6  ;;  %14871 = vst [vmem:[#allocation14_spill] sm:$0xff] %v12088_v45  ;;  %v12165_v6 = vsel %vm1820_vm3, %v1844_v40, %v1846_v7 }
 0x129   : > { %9839 = vmatprep.mubr.msk.f32.mxu0 %vm461_vm1, %v1165_v44  ;;  %v1532_v44 = vsel %vm1098_vm2, %v1529_v41, %v1531_v14  ;;  %14883 = vst [vmem:[#allocation26_spill] sm:$0xff] %v12165_v6  ;;  %v12185_v41 = vsel %vm1820_vm3, %v1850_v15, %v1852_v27  ;;  %v1856_v14 = vrot.slane %v11653_v60, 3 }
 0x12a   : > { %14886 = vst [vmem:[#allocation29_spill] sm:$0xff] %v12185_v41 }
 0x12c   : > { %9840 = vmatmul.mubr.msk.f32.gmra.mrb[30].mxu0 %vm461_vm1, %v1167_v5  ;;  %v12173_v5 = vsel %vm1820_vm3, %v1846_v7, %v1848_v3  ;;  %v14897_v7 = vld [vmem:[#allocation7_spill] sm:$0xff] }
 0x12d   : > { %9842 = vmatprep.mubr.msk.f32.mxu0 %vm461_vm1, %v1169_v52  ;;  %v1826_v52 = vrot.slane %v11553_v10, 3  ;;  %14884 = vst [vmem:[#allocation27_spill] sm:$0xff] %v12173_v5 }
 0x12f   : > { %v12099_v57 = vsel %vm1820_vm3, %v1824_v39, %v1826_v52  ;;  %v12112_v12 = vsel %vm1820_vm3, %v1826_v52, %v1828_v53  ;;  %v12201_v52 = vsel %vm1820_vm3, %v1856_v14, %v1858_v34  ;;  %v14891_v53 = vld [vmem:[#allocation4_spill] sm:$0xff] }
 0x130   : > { %9843 = vmatmul.mubr.msk.f32.gmra.mrb[32].mxu0 %vm461_vm1, %v1171_v23  ;;  %14873 = vst [vmem:[#allocation16_spill] sm:$0xff] %v12099_v57  ;;  %14874 = vst [vmem:[#allocation17_spill] sm:$0xff] %v12112_v12  ;;  %v12177_v23 = vsel %vm1820_vm3, %v1848_v3, %v1850_v15  ;;  %v1862_v63 = vrot.slane %v14891_v53, 3  ;;  %v1868_v3 = vrot.slane %v14897_v7, 3  ;;  %v12225_v15 = vsel %vm1820_vm3, %v1864_v2, %v1866_v19 }
 0x131   : > { %9845 = vmatprep.mubr.msk.f32.mxu0 %vm461_vm1, %v1530_v26  ;;  %14885 = vst [vmem:[#allocation28_spill] sm:$0xff] %v12177_v23  ;;  %14898 = vst [vmem:[#allocation7_spill] sm:$0xff] %v12225_v15 }
 0x132   : > { %v12221_v40 = vsel %vm1820_vm3, %v1862_v63, %v1864_v2 }
 0x133   : > { %14896 = vst [vmem:[#allocation6_spill] sm:$0xff] %v12221_v40 }
 0x134   : > { %9846 = vmatmul.mubr.msk.f32.gmra.mrb[34].mxu0 %vm461_vm1, %v1532_v44  ;;  %v14889_v44 = vld [vmem:[#allocation3_spill] sm:$0xff] }
 0x135   : > { %9850 = vmatprep.mubr.msk.f32.mxu0 %vm461_vm1, %v12088_v45  ;;  %v1860_v39 = vrot.slane %v14889_v44, 3  ;;  %14890 = vst [vmem:[#allocation3_spill] sm:$0xff] %v12201_v52 }
 0x137   : > { %v12209_v17 = vsel %vm1820_vm3, %v1858_v34, %v1860_v39  ;;  %v12213_v46 = vsel %vm1820_vm3, %v1860_v39, %v1862_v63  ;;  %v14901_v34 = vld [vmem:[#allocation9_spill] sm:$0xff] }
 0x138   : > { %9851 = vmatmul.mubr.msk.f32.vlgmr.msra.gmra.mrb[0].mxu0 %vm461_vm1, %v12095_v47  ;;  %14892 = vst [vmem:[#allocation4_spill] sm:$0xff] %v12209_v17  ;;  %14894 = vst [vmem:[#allocation5_spill] sm:$0xff] %v12213_v46  ;;  %v1872_v39 = vrot.slane %v14901_v34, 3 }
 0x139   : > { %9905 = vmatpush3.msra.mxu0 %v8400_v50  ;;  %9853 = vmatprep.mubr.msk.f32.mxu0 %vm461_vm1, %v12099_v57  ;;  %v1854_v50 = vrot.slane %v11644_v55, 3 }
 0x13a   : > { %9960 = vmatprep.subr.mxu0 %v12105_v1 }
 0x13b   : > { %v12189_v26 = vsel %vm1820_vm3, %v1852_v27, %v1854_v50  ;;  %v12197_v38 = vsel %vm1820_vm3, %v1854_v50, %v1856_v14  ;;  %v14899_v27 = vld [vmem:[#allocation8_spill] sm:$0xff]  ;;  %v12233_v14 = vsel %vm1820_vm3, %v1866_v19, %v1868_v3 }
 0x13c   : > { %9854 = vmatmul.mubr.msk.f32.gmra.mrb[2].mxu0 %vm461_vm1, %v12112_v12  ;;  %14887 = vst [vmem:[#allocation30_spill] sm:$0xff] %v12189_v26  ;;  %14888 = vst [vmem:[#allocation31_spill] sm:$0xff] %v12197_v38  ;;  %v1870_v50 = vrot.slane %v14899_v27, 3 }
 0x13d   : > { %9856 = vmatprep.mubr.msk.f32.mxu0 %vm461_vm1, %v12116_v21  ;;  %14900 = vst [vmem:[#allocation8_spill] sm:$0xff] %v12233_v14 }
 0x13e   : > { %v12237_v63 = vsel %vm1820_vm3, %v1868_v3, %v1870_v50  ;;  %v12245_v2 = vsel %vm1820_vm3, %v1870_v50, %v1872_v39 }
 0x13f   : > { %14902 = vst [vmem:[#allocation9_spill] sm:$0xff] %v12237_v63 }
 0x140   : > { %9857 = vmatmul.mubr.msk.f32.gmra.mrb[4].mxu0 %vm461_vm1, %v12125_v28 }
 0x141   : > { %9859 = vmatprep.mubr.msk.f32.mxu0 %vm461_vm1, %v12129_v35 }
 0x144   : > { %9860 = vmatmul.mubr.msk.f32.gmra.mrb[6].mxu0 %vm461_vm1, %v12137_v56 }
 0x145   : > { %9862 = vmatprep.mubr.msk.f32.mxu0 %vm461_vm1, %v12141_v13 }
 0x148   : > { %9863 = vmatmul.mubr.msk.f32.gmra.mrb[8].mxu0 %vm461_vm1, %v12149_v29 }
 0x149   : > { %9865 = vmatprep.mubr.msk.f32.mxu0 %vm461_vm1, %v12153_v58 }
 0x14c   : > { %9866 = vmatmul.mubr.msk.f32.gmra.mrb[10].mxu0 %vm461_vm1, %v12161_v20 }
 0x14d   : > { %9868 = vmatprep.mubr.msk.f32.mxu0 %vm461_vm1, %v12165_v6 }
 0x150   : > { %9869 = vmatmul.mubr.msk.f32.gmra.mrb[12].mxu0 %vm461_vm1, %v12173_v5 }
 0x151   : > { %9871 = vmatprep.mubr.msk.f32.mxu0 %vm461_vm1, %v12177_v23 }
 0x154   : > { %9872 = vmatmul.mubr.msk.f32.gmra.mrb[14].mxu0 %vm461_vm1, %v12185_v41  ;;  %v3918_v41 = vld [vmem:[%s14765_s7 + $0x60] sm:$0xff] }
 0x155   : > { %9874 = vmatprep.mubr.msk.f32.mxu0 %vm461_vm1, %v12189_v26 }
 0x158   : > { %9875 = vmatmul.mubr.msk.f32.gmra.mrb[16].mxu0 %vm461_vm1, %v12197_v38 }
 0x159   : > { %9877 = vmatprep.mubr.msk.f32.mxu0 %vm461_vm1, %v12201_v52  ;;  %v14907_v52 = vld [vmem:[#allocation12_spill] sm:$0xff] }
 0x15a   : > { %v1878_v38 = vrot.slane %v14907_v52, 3 }
 0x15c   : > { %9878 = vmatmul.mubr.msk.f32.gmra.mrb[18].mxu0 %vm461_vm1, %v12209_v17 }
 0x15d   : > { %9880 = vmatprep.mubr.msk.f32.mxu0 %vm461_vm1, %v12213_v46  ;;  %v14903_v46 = vld [vmem:[#allocation10_spill] sm:$0xff] }
 0x15e   : > { %v1874_v17 = vrot.slane %v14903_v46, 3  ;;  %14904 = vst [vmem:[#allocation10_spill] sm:$0xff] %v12245_v2 }
 0x160   : > { %9881 = vmatmul.mubr.msk.f32.gmra.mrb[20].mxu0 %vm461_vm1, %v12221_v40  ;;  %v12249_v19 = vsel %vm1820_vm3, %v1872_v39, %v1874_v17 }
 0x161   : > { %9883 = vmatprep.mubr.msk.f32.mxu0 %vm461_vm1, %v12225_v15  ;;  %v14905_v15 = vld [vmem:[#allocation11_spill] sm:$0xff] }
 0x162   : > { %v1876_v40 = vrot.slane %v14905_v15, 3  ;;  %14906 = vst [vmem:[#allocation11_spill] sm:$0xff] %v12249_v19 }
 0x164   : > { %9884 = vmatmul.mubr.msk.f32.gmra.mrb[22].mxu0 %vm461_vm1, %v12233_v14  ;;  %v12257_v3 = vsel %vm1820_vm3, %v1874_v17, %v1876_v40  ;;  %v12261_v50 = vsel %vm1820_vm3, %v1876_v40, %v1878_v38  ;;  %v14910_v14 = vld [vmem:[#allocation13_spill] sm:$0xff] }
 0x165   : > { %9886 = vmatprep.mubr.msk.f32.mxu0 %vm461_vm1, %v12237_v63  ;;  %14908 = vst [vmem:[#allocation12_spill] sm:$0xff] %v12257_v3  ;;  %v1880_v63 = vrot.slane %v11725_v51, 3  ;;  %14909 = vst [vmem:[#allocation32_spill] sm:$0xff] %v12261_v50  ;;  %v1882_v26 = vrot.slane %v14910_v14, 3 }
 0x167   : > { %v12269_v39 = vsel %vm1820_vm3, %v1878_v38, %v1880_v63  ;;  %v12273_v17 = vsel %vm1820_vm3, %v1880_v63, %v1882_v26 }
 0x168   : > { %9887 = vmatmul.mubr.msk.f32.gmra.mrb[24].mxu0 %vm461_vm1, %v12245_v2  ;;  %14911 = vst [vmem:[#allocation13_spill] sm:$0xff] %v12269_v39  ;;  %14912 = vst [vmem:[#allocation33_spill] sm:$0xff] %v12273_v17  ;;  %v1886_v2 = vrot.slane %v11740_v62, 3 }
 0x169   : > { %9889 = vmatprep.mubr.msk.f32.mxu0 %vm461_vm1, %v12249_v19  ;;  %v1884_v19 = vrot.slane %v11737_v59, 3 }
 0x16b   : > { %v12281_v40 = vsel %vm1820_vm3, %v1882_v26, %v1884_v19  ;;  %v12285_v38 = vsel %vm1820_vm3, %v1884_v19, %v1886_v2  ;;  %v2251_v19 = vrot.slane %v11547_v8, 4  ;;  %v2257_v8 = vrot.slane %v11561_v16, 4 }
 0x16c   : > { %9890 = vmatmul.mubr.msk.f32.gmra.mrb[26].mxu0 %vm461_vm1, %v12257_v3  ;;  %14913 = vst [vmem:[#allocation34_spill] sm:$0xff] %v12281_v40  ;;  %14914 = vst [vmem:[#allocation35_spill] sm:$0xff] %v12285_v38  ;;  %v1890_v3 = vrot.slane %v12069_v33, 3  ;;  %v2261_v16 = vrot.slane %v11580_v24, 4 }
 0x16d   : > { %9892 = vmatprep.mubr.msk.f32.mxu0 %vm461_vm1, %v12261_v50  ;;  %v1888_v50 = vrot.slane %v11749_v11, 3 }
 0x16f   : > { %v12293_v63 = vsel %vm1820_vm3, %v1886_v2, %v1888_v50  ;;  %v12297_v26 = vsel %vm1820_vm3, %v1888_v50, %v1890_v3  ;;  %v2253_v2 = vrot.slane %v11550_v9, 4  ;;  %v2255_v50 = vrot.slane %v11553_v10, 4  ;;  %v12323_v9 = vld [vmem:[%s14759_s1 + $0x38] sm:$0xff] }
 0x170   : > { %9893 = vmatmul.mubr.msk.f32.gmra.mrb[28].mxu0 %vm461_vm1, %v12269_v39  ;;  %14915 = vst [vmem:[#allocation36_spill] sm:$0xff] %v12293_v63  ;;  %14916 = vst [vmem:[#allocation37_spill] sm:$0xff] %v12297_v26  ;;  %v2250_v39 = vrot.slane %v11541_v4, 4 }
 0x171   : > { %9895 = vmatprep.mubr.msk.f32.mxu0 %vm461_vm1, %v12273_v17  ;;  %v1892_v17 = vrot.slane %v12075_v32, 3  ;;  %v2254_v4 = vsel %vm2249_vm4, %v2251_v19, %v2253_v2  ;;  %v12330_v10 = vsel %vm2249_vm4, %v2255_v50, %v2257_v8 }
 0x174   : > { %9896 = vmatmul.mubr.msk.f32.gmra.mrb[30].mxu0 %vm461_vm1, %v12281_v40  ;;  %v2252_v40 = vsel %vm2249_vm4, %v2250_v39, %v2251_v19  ;;  %v2269_v19 = vrot.slane %v11605_v36, 4  ;;  %v2275_v36 = vrot.slane %v11620_v43, 4 }
 0x175   : > { %9898 = vmatprep.mubr.msk.f32.mxu0 %vm461_vm1, %v12285_v38  ;;  %v12306_v38 = vsel %vm1820_vm3, %v1890_v3, %v1892_v17  ;;  %v2259_v3 = vrot.slane %v11566_v18, 4  ;;  %v2263_v18 = vrot.slane %v11584_v25, 4  ;;  %v2265_v17 = vrot.slane %v11593_v30, 4 }
 0x176   : > { %14917 = vst [vmem:[#allocation38_spill] sm:$0xff] %v12306_v38  ;;  %v2271_v30 = vrot.slane %v11608_v37, 4 }
 0x177   : > { %v12334_v39 = vsel %vm2249_vm4, %v2257_v8, %v2259_v3  ;;  %v12347_v24 = vsel %vm2249_vm4, %v2261_v16, %v2263_v18  ;;  %v12355_v25 = vsel %vm2249_vm4, %v2263_v18, %v2265_v17  ;;  %v2277_v8 = vrot.slane %v11629_v48, 4 }
 0x178   : > { %9899 = vmatmul.mubr.msk.f32.gmra.mrb[32].mxu0 %vm461_vm1, %v12293_v63  ;;  %v2283_v48 = vrot.slane %v11644_v55, 4 }
 0x179   : > { %9901 = vmatprep.mubr.msk.f32.mxu0 %vm461_vm1, %v12297_v26  ;;  %v12317_v26 = vsel %vm2249_vm4, %v2253_v2, %v2255_v50  ;;  %v2273_v50 = vrot.slane %v11617_v42, 4  ;;  %v2279_v42 = vrot.slane %v11632_v49, 4  ;;  %v12391_v43 = vsel %vm2249_vm4, %v2275_v36, %v2277_v8 }
 0x17b   : > { %v12379_v37 = vsel %vm2249_vm4, %v2271_v30, %v2273_v50  ;;  %v12395_v18 = vsel %vm2249_vm4, %v2277_v8, %v2279_v42  ;;  %v2297_v8 = vrot.slane %v14897_v7, 4 }
 0x17c   : > { %9902 = vmatmul.mubr.msk.f32.gmra.mrb[34].mxu0 %vm461_vm1, %v12306_v38 }
 0x17d   : > { %9906 = vmatprep.mubr.msk.f32.mxu0 %vm461_vm1, %v2252_v40  ;;  %v2267_v40 = vrot.slane %v11596_v31, 4 }
 0x17f   : > { %v12359_v2 = vsel %vm2249_vm4, %v2265_v17, %v2267_v40  ;;  %v12367_v31 = vsel %vm2249_vm4, %v2267_v40, %v2269_v19  ;;  %v2285_v17 = vrot.slane %v11653_v60, 4  ;;  %v2291_v60 = vrot.slane %v14891_v53, 4 }
 0x180   : > { %9907 = vmatmul.mubr.msk.f32.vlgmr.msra.gmra.mrb[0].mxu0 %vm461_vm1, %v2254_v4  ;;  %v12371_v4 = vsel %vm2249_vm4, %v2269_v19, %v2271_v30  ;;  %v2289_v19 = vrot.slane %v14889_v44, 4  ;;  %v2295_v44 = vrot.slane %v14895_v0, 4 }
 0x181   : > { %9961 = vmatpush3.msra.mxu0 %v12105_v1  ;;  %9909 = vmatprep.mubr.msk.f32.mxu0 %vm461_vm1, %v12317_v26  ;;  %v12343_v1 = vsel %vm2249_vm4, %v2259_v3, %v2261_v16  ;;  %v12383_v3 = vsel %vm2249_vm4, %v2273_v50, %v2275_v36  ;;  %v2281_v16 = vrot.slane %v11641_v54, 4  ;;  %v2287_v54 = vrot.slane %v11656_v61, 4 }
 0x182   : > { %10016 = vmatprep.subr.mxu0 %v12323_v9  ;;  %v12415_v55 = vsel %vm2249_vm4, %v2283_v48, %v2285_v17  ;;  %v2293_v50 = vrot.slane %v14893_v22, 4  ;;  %v12431_v36 = vsel %vm2249_vm4, %v2289_v19, %v2291_v60  ;;  %v2299_v22 = vrot.slane %v14899_v27, 4 }
 0x183   : > { %v12403_v49 = vsel %vm2249_vm4, %v2279_v42, %v2281_v16  ;;  %v12407_v40 = vsel %vm2249_vm4, %v2281_v16, %v2283_v48  ;;  %v12419_v30 = vsel %vm2249_vm4, %v2285_v17, %v2287_v54  ;;  %v12427_v61 = vsel %vm2249_vm4, %v2287_v54, %v2289_v19 }
 0x184   : > { %9910 = vmatmul.mubr.msk.f32.gmra.mrb[2].mxu0 %vm461_vm1, %v12330_v10  ;;  %v12439_v53 = vsel %vm2249_vm4, %v2291_v60, %v2293_v50  ;;  %v12443_v42 = vsel %vm2249_vm4, %v2293_v50, %v2295_v44  ;;  %v2298_v0 = vsel %vm2249_vm4, %v2295_v44, %v2297_v8  ;;  %v2301_v16 = vrot.slane %v14901_v34, 4 }
 0x185   : > { %9912 = vmatprep.mubr.msk.f32.mxu0 %vm461_vm1, %v12334_v39  ;;  %v2300_v48 = vsel %vm2249_vm4, %v2297_v8, %v2299_v22  ;;  %v2303_v17 = vrot.slane %v14903_v46, 4  ;;  %v2305_v27 = vrot.slane %v14905_v15, 4  ;;  %v2307_v19 = vrot.slane %v14907_v52, 4 }
 0x186   : > { %v2302_v7 = vsel %vm2249_vm4, %v2299_v22, %v2301_v16  ;;  %v2309_v46 = vrot.slane %v11725_v51, 4  ;;  %v2311_v50 = vrot.slane %v14910_v14, 4  ;;  %v2313_v52 = vrot.slane %v11737_v59, 4 }
 0x187   : > { %v2304_v54 = vsel %vm2249_vm4, %v2301_v16, %v2303_v17  ;;  %v2306_v34 = vsel %vm2249_vm4, %v2303_v17, %v2305_v27  ;;  %v2308_v60 = vsel %vm2249_vm4, %v2305_v27, %v2307_v19  ;;  %v2315_v8 = vrot.slane %v11740_v62, 4  ;;  %v12492_v27 = vld [vmem:[%s14759_s1 + $0x40] sm:$0xff] }
 0x188   : > { %9913 = vmatmul.mubr.msk.f32.gmra.mrb[4].mxu0 %vm461_vm1, %v12343_v1  ;;  %v2310_v15 = vsel %vm2249_vm4, %v2307_v19, %v2309_v46  ;;  %v2312_v44 = vsel %vm2249_vm4, %v2309_v46, %v2311_v50  ;;  %v2314_v51 = vsel %vm2249_vm4, %v2311_v50, %v2313_v52  ;;  %v2317_v14 = vrot.slane %v11749_v11, 4 }
 0x189   : > { %9915 = vmatprep.mubr.msk.f32.mxu0 %vm461_vm1, %v12347_v24  ;;  %v2316_v22 = vsel %vm2249_vm4, %v2313_v52, %v2315_v8  ;;  %v2319_v16 = vrot.slane %v12069_v33, 4  ;;  %v2321_v62 = vrot.slane %v12075_v32, 4 }
 0x18a   : > { %v2318_v59 = vsel %vm2249_vm4, %v2315_v8, %v2317_v14 }
 0x18b   : > { %v2320_v17 = vsel %vm2249_vm4, %v2317_v14, %v2319_v16  ;;  %v2322_v11 = vsel %vm2249_vm4, %v2319_v16, %v2321_v62 }
 0x18c   : > { %9916 = vmatmul.mubr.msk.f32.gmra.mrb[6].mxu0 %vm461_vm1, %v12355_v25 }
 0x18d   : > { %9918 = vmatprep.mubr.msk.f32.mxu0 %vm461_vm1, %v12359_v2 }
 0x190   : > { %9919 = vmatmul.mubr.msk.f32.gmra.mrb[8].mxu0 %vm461_vm1, %v12367_v31 }
 0x191   : > { %9921 = vmatprep.mubr.msk.f32.mxu0 %vm461_vm1, %v12371_v4 }
 0x194   : > { %9922 = vmatmul.mubr.msk.f32.gmra.mrb[10].mxu0 %vm461_vm1, %v12379_v37 }
 0x195   : > { %9924 = vmatprep.mubr.msk.f32.mxu0 %vm461_vm1, %v12383_v3 }
 0x198   : > { %9925 = vmatmul.mubr.msk.f32.gmra.mrb[12].mxu0 %vm461_vm1, %v12391_v43 }
 0x199   : > { %9927 = vmatprep.mubr.msk.f32.mxu0 %vm461_vm1, %v12395_v18 }
 0x19c   : > { %9928 = vmatmul.mubr.msk.f32.gmra.mrb[14].mxu0 %vm461_vm1, %v12403_v49 }
 0x19d   : > { %9930 = vmatprep.mubr.msk.f32.mxu0 %vm461_vm1, %v12407_v40 }
 0x1a0   : > { %9931 = vmatmul.mubr.msk.f32.gmra.mrb[16].mxu0 %vm461_vm1, %v12415_v55 }
 0x1a1   : > { %9933 = vmatprep.mubr.msk.f32.mxu0 %vm461_vm1, %v12419_v30 }
 0x1a4   : > { %9934 = vmatmul.mubr.msk.f32.gmra.mrb[18].mxu0 %vm461_vm1, %v12427_v61 }
 0x1a5   : > { %9936 = vmatprep.mubr.msk.f32.mxu0 %vm461_vm1, %v12431_v36 }
 0x1a8   : > { %9937 = vmatmul.mubr.msk.f32.gmra.mrb[20].mxu0 %vm461_vm1, %v12439_v53 }
 0x1a9   : > { %9939 = vmatprep.mubr.msk.f32.mxu0 %vm461_vm1, %v12443_v42 }
 0x1ac   : > { %9940 = vmatmul.mubr.msk.f32.gmra.mrb[22].mxu0 %vm461_vm1, %v2298_v0 }
 0x1ad   : > { %9942 = vmatprep.mubr.msk.f32.mxu0 %vm461_vm1, %v2300_v48 }
 0x1b0   : > { %9943 = vmatmul.mubr.msk.f32.gmra.mrb[24].mxu0 %vm461_vm1, %v2302_v7 }
 0x1b1   : > { %9945 = vmatprep.mubr.msk.f32.mxu0 %vm461_vm1, %v2304_v54 }
 0x1b4   : > { %9946 = vmatmul.mubr.msk.f32.gmra.mrb[26].mxu0 %vm461_vm1, %v2306_v34 }
 0x1b5   : > { %9948 = vmatprep.mubr.msk.f32.mxu0 %vm461_vm1, %v2308_v60 }
 0x1b8   : > { %9949 = vmatmul.mubr.msk.f32.gmra.mrb[28].mxu0 %vm461_vm1, %v2310_v15 }
 0x1b9   : > { %9951 = vmatprep.mubr.msk.f32.mxu0 %vm461_vm1, %v2312_v44 }
 0x1bc   : > { %9952 = vmatmul.mubr.msk.f32.gmra.mrb[30].mxu0 %vm461_vm1, %v2314_v51 }
 0x1bd   : > { %9954 = vmatprep.mubr.msk.f32.mxu0 %vm461_vm1, %v2316_v22 }
 0x1c0   : > { %9955 = vmatmul.mubr.msk.f32.gmra.mrb[32].mxu0 %vm461_vm1, %v2318_v59 }
 0x1c1   : > { %9957 = vmatprep.mubr.msk.f32.mxu0 %vm461_vm1, %v2320_v17 }
 0x1c4   : > { %9958 = vmatmul.mubr.msk.f32.gmra.mrb[34].mxu0 %vm461_vm1, %v2322_v11 }
 0x1c5   : > { %9962 = vmatprep.mubr.msk.f32.mxu0 %vm461_vm1, %v12317_v26  ;;  %v12545_v26 = vld [vmem:[%s11532_s14 + $0x138] sm:$0xff] }
 0x1c8   : > { %9963 = vmatmul.mubr.msk.f32.vlgmr.msra.gmra.mrb[0].mxu0 %vm461_vm1, %v12330_v10  ;;  %v12551_v10 = vld [vmem:[%s11532_s14 + $0x140] sm:$0x3f] }
 0x1c9   : > { %10017 = vmatpush3.msra.mxu0 %v12323_v9  ;;  %9965 = vmatprep.mubr.msk.f32.mxu0 %vm461_vm1, %v12334_v39  ;;  %v2680_v9 = vrot.slane %v12545_v26, 4  ;;  %v2682_v39 = vrot.slane %v12551_v10, 4 }
 0x1ca   : > { %10072 = vmatprep.subr.mxu0 %v12492_v27 }
 0x1cc   : > { %9966 = vmatmul.mubr.msk.f32.gmra.mrb[2].mxu0 %vm461_vm1, %v12343_v1  ;;  %v11465_v1 = vmov 0  }
 0x1cd   : > { %9968 = vmatprep.mubr.msk.f32.mxu0 %vm461_vm1, %v12347_v24  ;;  %11387 = vset.pattern.permute.xlu1 %v11465_v1  ;;  %v3923_v24 = vld [vmem:[%s14765_s7 + $0x88] sm:$0xff] }
 0x1ce   : > { %11386 = vset.pattern.permute.xlu0 %v11465_v1  ;;  %4029 = vperm.xlu1 %11387, %v3923_v24   ;;  %v3932_v24 = vld [vmem:[%s14765_s7 + $0xd0] sm:$0xff] }
 0x1d0   : > { %9969 = vmatmul.mubr.msk.f32.gmra.mrb[4].mxu0 %vm461_vm1, %v12355_v25  ;;  %v2681_v25 = vsel %vm2249_vm4, %v2321_v62, %v2680_v9 }
 0x1d1   : > { %9971 = vmatprep.mubr.msk.f32.mxu0 %vm461_vm1, %v12359_v2  ;;  %v12561_v2 = vld [vmem:[%s11532_s14 + $0x20] sm:$0xff] }
 0x1d4   : > { %9972 = vmatmul.mubr.msk.f32.gmra.mrb[6].mxu0 %vm461_vm1, %v12367_v31  ;;  %v2972_v31 = vrot.slane %v12561_v2, 5 }
 0x1d5   : > { %9974 = vmatprep.mubr.msk.f32.mxu0 %vm461_vm1, %v12371_v4  ;;  %v12565_v4 = vld [vmem:[%s11532_s14 + $0x28] sm:$0xff] }
 0x1d8   : > { %9975 = vmatmul.mubr.msk.f32.gmra.mrb[8].mxu0 %vm461_vm1, %v12379_v37  ;;  %v2973_v37 = vrot.slane %v12565_v4, 5 }
 0x1d9   : > { %9977 = vmatprep.mubr.msk.f32.mxu0 %vm461_vm1, %v12383_v3  ;;  %v3921_v3 = vld [vmem:[%s14765_s7 + $0x78] sm:$0xff] }
 0x1da   : > { %4019 = vperm.xlu0 %11386, %v3921_v3   ;;  %v3931_v3 = vld [vmem:[%s14765_s7 + $0xc8] sm:$0xff] }
 0x1dc   : > { %9978 = vmatmul.mubr.msk.f32.gmra.mrb[10].mxu0 %vm461_vm1, %v12391_v43  ;;  %v2683_v43 = vsel %vm2249_vm4, %v2680_v9, %v2682_v39  ;;  %v12648_v39 = vld [vmem:[%s11532_s14 + $0x70] sm:$0xff] }
 0x1dd   : > { %9980 = vmatprep.mubr.msk.f32.mxu0 %vm461_vm1, %v12395_v18  ;;  %v12575_v18 = vld [vmem:[%s11532_s14 + $0x30] sm:$0xff]  ;;  %v2991_v1 = vrot.slane %v12648_v39, 5 }
 0x1e0   : > { %9981 = vmatmul.mubr.msk.f32.gmra.mrb[12].mxu0 %vm461_vm1, %v12403_v49  ;;  %v2975_v49 = vrot.slane %v12575_v18, 5 }
 0x1e1   : > { %9983 = vmatprep.mubr.msk.f32.mxu0 %vm461_vm1, %v12407_v40  ;;  %v3924_v40 = vld [vmem:[%s14765_s7 + $0x90] sm:$0xff] }
 0x1e2   : > { %4034 = vperm.xlu1 %11387, %v3924_v40   ;;  %v12669_v40 = vld [vmem:[%s11532_s14 + $0x80] sm:$0xff] }
 0x1e4   : > { %9984 = vmatmul.mubr.msk.f32.gmra.mrb[14].mxu0 %vm461_vm1, %v12415_v55  ;;  %v2974_v55 = vsel %vm2971_vm5, %v2972_v31, %v2973_v37  ;;  %v12656_v31 = vld [vmem:[%s11532_s14 + $0x78] sm:$0xff] }
 0x1e5   : > { %9986 = vmatprep.mubr.msk.f32.mxu0 %vm461_vm1, %v12419_v30  ;;  %v12583_v30 = vld [vmem:[%s11532_s14 + $0x38] sm:$0xff] }
 0x1e8   : > { %9987 = vmatmul.mubr.msk.f32.gmra.mrb[16].mxu0 %vm461_vm1, %v12427_v61  ;;  %v2977_v61 = vrot.slane %v12583_v30, 5 }
 0x1e9   : > { %9989 = vmatprep.mubr.msk.f32.mxu0 %vm461_vm1, %v12431_v36  ;;  %v3922_v36 = vld [vmem:[%s14765_s7 + $0x80] sm:$0xff] }
 0x1ea   : > { %4024 = vperm.xlu0 %11386, %v3922_v36   ;;  %v12674_v36 = vld [vmem:[%s11532_s14 + $0x88] sm:$0xff] }
 0x1ec   : > { %9990 = vmatmul.mubr.msk.f32.gmra.mrb[18].mxu0 %vm461_vm1, %v12439_v53  ;;  %v2976_v53 = vsel %vm2971_vm5, %v2973_v37, %v2975_v49  ;;  %v2993_v37 = vrot.slane %v12656_v31, 5 }
 0x1ed   : > { %9992 = vmatprep.mubr.msk.f32.mxu0 %vm461_vm1, %v12443_v42  ;;  %v12593_v42 = vld [vmem:[%s11532_s14 + $0x40] sm:$0xff] }
 0x1f0   : > { %9993 = vmatmul.mubr.msk.f32.gmra.mrb[20].mxu0 %vm461_vm1, %v2298_v0  ;;  %v2979_v0 = vrot.slane %v12593_v42, 5 }
 0x1f1   : > { %9995 = vmatprep.mubr.msk.f32.mxu0 %vm461_vm1, %v2300_v48  ;;  %v3926_v48 = vld [vmem:[%s14765_s7 + $0xa0] sm:$0xff] }
 0x1f2   : > { %4044 = vperm.xlu1 %11387, %v3926_v48   ;;  %v2980_v46 = vsel %vm2971_vm5, %v2977_v61, %v2979_v0  ;;  %v3936_v48 = vld [vmem:[%s14765_s7 + $0xf0] sm:$0xff] }
 0x1f4   : > { %9996 = vmatmul.mubr.msk.f32.gmra.mrb[22].mxu0 %vm461_vm1, %v2302_v7  ;;  %v2978_v7 = vsel %vm2971_vm5, %v2975_v49, %v2977_v61  ;;  %v2994_v61 = vsel %vm2971_vm5, %v2991_v1, %v2993_v37 }
 0x1f5   : > { %9998 = vmatprep.mubr.msk.f32.mxu0 %vm461_vm1, %v2304_v54  ;;  %v12601_v54 = vld [vmem:[%s11532_s14 + $0x48] sm:$0xff] }
 0x1f6   : > { %v2981_v19 = vrot.slane %v12601_v54, 5 }
 0x1f8   : > { %9999 = vmatmul.mubr.msk.f32.gmra.mrb[24].mxu0 %vm461_vm1, %v2306_v34  ;;  %v3925_v34 = vld [vmem:[%s14765_s7 + $0x98] sm:$0xff]  ;;  %v2982_v52 = vsel %vm2971_vm5, %v2979_v0, %v2981_v19 }
 0x1f9   : > { %10001 = vmatprep.mubr.msk.f32.mxu0 %vm461_vm1, %v2308_v60  ;;  %v12612_v60 = vld [vmem:[%s11532_s14 + $0x50] sm:$0xff]  ;;  %4039 = vperm.xlu0 %11386, %v3925_v34   ;;  %v3933_v0 = vld [vmem:[%s14765_s7 + $0xd8] sm:$0xff] }
 0x1fa   : > { %v2983_v50 = vrot.slane %v12612_v60, 5 }
 0x1fc   : > { %10002 = vmatmul.mubr.msk.f32.gmra.mrb[26].mxu0 %vm461_vm1, %v2310_v15  ;;  %v3928_v15 = vld [vmem:[%s14765_s7 + $0xb0] sm:$0xff]  ;;  %v2984_v14 = vsel %vm2971_vm5, %v2981_v19, %v2983_v50 }
 0x1fd   : > { %10004 = vmatprep.mubr.msk.f32.mxu0 %vm461_vm1, %v2312_v44  ;;  %v12620_v44 = vld [vmem:[%s11532_s14 + $0x58] sm:$0xff]  ;;  %4054 = vperm.xlu1 %11387, %v3928_v15   ;;  %v12687_v19 = vld [vmem:[%s11532_s14 + $0x90] sm:$0xff] }
 0x1fe   : > { %v2985_v8 = vrot.slane %v12620_v44, 5  ;;  %v2999_v34 = vrot.slane %v12687_v19, 5 }
 0x200   : > { %10005 = vmatmul.mubr.msk.f32.gmra.mrb[28].mxu0 %vm461_vm1, %v2314_v51  ;;  %v3927_v51 = vld [vmem:[%s14765_s7 + $0xa8] sm:$0xff]  ;;  %v2986_v62 = vsel %vm2971_vm5, %v2983_v50, %v2985_v8  ;;  %v12692_v50 = vld [vmem:[%s11532_s14 + $0x98] sm:$0xff] }
 0x201   : > { %10007 = vmatprep.mubr.msk.f32.mxu0 %vm461_vm1, %v2316_v22  ;;  %v12630_v22 = vld [vmem:[%s11532_s14 + $0x60] sm:$0xff]  ;;  %4049 = vperm.xlu0 %11386, %v3927_v51   ;;  %v3001_v15 = vrot.slane %v12692_v50, 5 }
 0x202   : > { %v2987_v16 = vrot.slane %v12630_v22, 5 }
 0x204   : > { %10008 = vmatmul.mubr.msk.f32.gmra.mrb[30].mxu0 %vm461_vm1, %v2318_v59  ;;  %v3930_v59 = vld [vmem:[%s14765_s7 + $0xc0] sm:$0xff]  ;;  %v2988_v9 = vsel %vm2971_vm5, %v2985_v8, %v2987_v16 }
 0x205   : > { %10010 = vmatprep.mubr.msk.f32.mxu0 %vm461_vm1, %v2320_v17  ;;  %v12638_v17 = vld [vmem:[%s11532_s14 + $0x68] sm:$0xff]  ;;  %4064 = vperm.xlu1 %11387, %v3930_v59   ;;  %v3938_v8 = vld [vmem:[%s14765_s7 + $0x100] sm:$0xff]  ;;  %v3002_v59 = vsel %vm2971_vm5, %v2999_v34, %v3001_v15 }
 0x208   : > { %10011 = vmatmul.mubr.msk.f32.gmra.mrb[32].mxu0 %vm461_vm1, %v2322_v11  ;;  %v2989_v11 = vrot.slane %v12638_v17, 5 }
 0x209   : > { %10013 = vmatprep.mubr.msk.f32.mxu0 %vm461_vm1, %v2681_v25  ;;  %4074 = vperm.xlu1 %11387, %v3932_v24   ;;  %v12723_v24 = vld [vmem:[%s11532_s14 + $0xb0] sm:$0xff] }
 0x20a   : > { %v2990_v25 = vsel %vm2971_vm5, %v2987_v16, %v2989_v11  ;;  %v2992_v49 = vsel %vm2971_vm5, %v2989_v11, %v2991_v1 }
 0x20c   : > { %10014 = vmatmul.mubr.msk.f32.gmra.mrb[34].mxu0 %vm461_vm1, %v2683_v43  ;;  %v3934_v43 = vld [vmem:[%s14765_s7 + $0xe0] sm:$0xff] }
 0x20d   : > { %10018 = vmatprep.mubr.msk.f32.mxu0 %vm461_vm1, %v2974_v55  ;;  %v2995_v55 = vrot.slane %v12669_v40, 5  ;;  %4084 = vperm.xlu1 %11387, %v3934_v43  }
 0x210   : > { %10019 = vmatmul.mubr.msk.f32.vlgmr.msra.gmra.mrb[0].mxu0 %vm461_vm1, %v2976_v53  ;;  %v2997_v53 = vrot.slane %v12674_v36, 5 }
 0x211   : > { %10073 = vmatpush3.msra.mxu0 %v12492_v27  ;;  %10021 = vmatprep.mubr.msk.f32.mxu0 %vm461_vm1, %v2978_v7  ;;  %v3929_v27 = vld [vmem:[%s14765_s7 + $0xb8] sm:$0xff]  ;;  %v2996_v7 = vsel %vm2971_vm5, %v2993_v37, %v2995_v55 }
 0x212   : > { %4059 = vperm.xlu0 %11386, %v3929_v27   ;;  %4094 = vperm.xlu1 %11387, %v3936_v48   ;;  %v3000_v51 = vsel %vm2971_vm5, %v2997_v53, %v2999_v34  ;;  %v3937_v27 = vld [vmem:[%s14765_s7 + $0xf8] sm:$0xff] }
 0x214   : > { %10022 = vmatmul.mubr.msk.f32.gmra.mrb[2].mxu0 %vm461_vm1, %v2980_v46  ;;  %v2998_v46 = vsel %vm2971_vm5, %v2995_v55, %v2997_v53  ;;  %v3907_v55 = vld [vmem:[%s14765_s7 + $0x8] sm:$0xff]  ;;  %v12741_v53 = vld [vmem:[%s11532_s14 + $0xc0] sm:$0xff] }
 0x215   : > { %10024 = vmatprep.mubr.msk.f32.mxu0 %vm461_vm1, %v2982_v52  ;;  %v3935_v52 = vld [vmem:[%s14765_s7 + $0xe8] sm:$0xff] }
 0x216   : > { %4069 = vperm.xlu0 %11386, %v3931_v3   ;;  %4104 = vperm.xlu1 %11387, %v3938_v8   ;;  %v12728_v3 = vld [vmem:[%s11532_s14 + $0xb8] sm:$0xff]  ;;  %v12759_v8 = vld [vmem:[%s11532_s14 + $0xd0] sm:$0xff] }
 0x217   : > { %v3009_v43 = vrot.slane %v12728_v3, 5 }
 0x218   : > { %10025 = vmatmul.mubr.msk.f32.gmra.mrb[4].mxu0 %vm461_vm1, %v2984_v14  ;;  %v12705_v14 = vld [vmem:[%s11532_s14 + $0xa0] sm:$0xff] }
 0x219   : > { %10027 = vmatprep.mubr.msk.f32.mxu0 %vm461_vm1, %v2986_v62  ;;  %v3003_v16 = vrot.slane %v12705_v14, 5  ;;  %v12710_v62 = vld [vmem:[%s11532_s14 + $0xa8] sm:$0xff] }
 0x21a   : > { %4079 = vperm.xlu0 %11386, %v3933_v0   ;;  %v3005_v11 = vrot.slane %v12710_v62, 5  ;;  %v3011_v0 = vrot.slane %v12741_v53, 5 }
 0x21b   : > { %v3004_v1 = vsel %vm2971_vm5, %v3001_v15, %v3003_v16  ;;  %v3909_v15 = vld [vmem:[%s14765_s7 + $0x18] sm:$0xff] }
 0x21c   : > { %10028 = vmatmul.mubr.msk.f32.gmra.mrb[6].mxu0 %vm461_vm1, %v2988_v9  ;;  %v3940_v9 = vld [vmem:[%s14765_s7 + $0x110] sm:$0xff]  ;;  %v3006_v37 = vsel %vm2971_vm5, %v3003_v16, %v3005_v11 }
 0x21d   : > { %10030 = vmatprep.mubr.msk.f32.mxu0 %vm461_vm1, %v2990_v25  ;;  %v3007_v25 = vrot.slane %v12723_v24, 5  ;;  %4114 = vperm.xlu1 %11387, %v3940_v9   ;;  %v3911_v9 = vld [vmem:[%s14765_s7 + $0x28] sm:$0xff] }
 0x21e   : > { %4089 = vperm.xlu0 %11386, %v3935_v52   ;;  %v3012_v52 = vsel %vm2971_vm5, %v3009_v43, %v3011_v0 }
 0x21f   : > { %v3010_v48 = vsel %vm2971_vm5, %v3007_v25, %v3009_v43 }
 0x220   : > { %10031 = vmatmul.mubr.msk.f32.gmra.mrb[8].mxu0 %vm461_vm1, %v2992_v49  ;;  %v3939_v49 = vld [vmem:[%s14765_s7 + $0x108] sm:$0xff] }
 0x221   : > { %10033 = vmatprep.mubr.msk.f32.mxu0 %vm461_vm1, %v2994_v61  ;;  %v3008_v61 = vsel %vm2971_vm5, %v3005_v11, %v3007_v25  ;;  %3949 = vperm.xlu1 %11387, %v3907_v55   ;;  %v12777_v25 = vld [vmem:[%s11532_s14 + $0xe0] sm:$0xff] }
 0x222   : > { %4099 = vperm.xlu0 %11386, %v3937_v27   ;;  %v3908_v27 = vld [vmem:[%s14765_s7 + $0x10] sm:$0xff] }
 0x224   : > { %10034 = vmatmul.mubr.msk.f32.gmra.mrb[10].mxu0 %vm461_vm1, %v2996_v7  ;;  %v12746_v7 = vld [vmem:[%s11532_s14 + $0xc8] sm:$0xff] }
 0x225   : > { %10036 = vmatprep.mubr.msk.f32.mxu0 %vm461_vm1, %v2998_v46  ;;  %v3013_v34 = vrot.slane %v12746_v7, 5  ;;  %v3906_v46 = vld [vmem:[%s14765_s7] sm:$0xff]  ;;  %3959 = vperm.xlu1 %11387, %v3909_v15  }
 0x226   : > { %4109 = vperm.xlu0 %11386, %v3939_v49   ;;  %v12782_v49 = vld [vmem:[%s11532_s14 + $0xe8] sm:$0xff] }
 0x227   : > { %v3014_v16 = vsel %vm2971_vm5, %v3011_v0, %v3013_v34  ;;  %v3021_v55 = vrot.slane %v12782_v49, 5  ;;  %v3913_v0 = vld [vmem:[%s14765_s7 + $0x38] sm:$0xff] }
 0x228   : > { %10037 = vmatmul.mubr.msk.f32.gmra.mrb[12].mxu0 %vm461_vm1, %v3000_v51  ;;  %v3015_v51 = vrot.slane %v12759_v8, 5 }
 0x229   : > { %10039 = vmatprep.mubr.msk.f32.mxu0 %vm461_vm1, %v3002_v59  ;;  %v12764_v59 = vld [vmem:[%s11532_s14 + $0xd8] sm:$0xff]  ;;  %3969 = vperm.xlu1 %11387, %v3911_v9   ;;  %v12813_v9 = vld [vmem:[%s11532_s14 + $0x100] sm:$0xff] }
 0x22a   : > { %v3017_v11 = vrot.slane %v12764_v59, 5  ;;  %3944 = vperm.xlu0 %11386, %v3906_v46  }
 0x22c   : > { %10040 = vmatmul.mubr.msk.f32.gmra.mrb[14].mxu0 %vm461_vm1, %v3004_v1  ;;  %v3016_v1 = vsel %vm2971_vm5, %v3013_v34, %v3015_v51  ;;  %v3018_v43 = vsel %vm2971_vm5, %v3015_v51, %v3017_v11  ;;  %v12795_v34 = vld [vmem:[%s11532_s14 + $0xf0] sm:$0xff] }
 0x22d   : > { %10042 = vmatprep.mubr.msk.f32.mxu0 %vm461_vm1, %v3006_v37  ;;  %v3019_v37 = vrot.slane %v12777_v25, 5  ;;  %v3023_v46 = vrot.slane %v12795_v34, 5  ;;  %3979 = vperm.xlu1 %11387, %v3913_v0   ;;  %v3914_v0 = vld [vmem:[%s14765_s7 + $0x40] sm:$0xff] }
 0x22e   : > { %3954 = vperm.xlu0 %11386, %v3908_v27  }
 0x22f   : > { %v3022_v15 = vsel %vm2971_vm5, %v3019_v37, %v3021_v55  ;;  %v3024_v27 = vsel %vm2971_vm5, %v3021_v55, %v3023_v46  ;;  %v3917_v55 = vld [vmem:[%s14765_s7 + $0x58] sm:$0xff] }
 0x230   : > { %10043 = vmatmul.mubr.msk.f32.gmra.mrb[16].mxu0 %vm461_vm1, %v3008_v61  ;;  %v3910_v61 = vld [vmem:[%s14765_s7 + $0x20] sm:$0xff] }
 0x231   : > { %10045 = vmatprep.mubr.msk.f32.mxu0 %vm461_vm1, %v3010_v48  ;;  %v3020_v48 = vsel %vm2971_vm5, %v3017_v11, %v3019_v37  ;;  %v3915_v11 = vld [vmem:[%s14765_s7 + $0x48] sm:$0xff] }
 0x232   : > { %3964 = vperm.xlu0 %11386, %v3910_v61   ;;  %3989 = vperm.xlu1 %11387, %v3915_v11   ;;  %v12836_v11 = vld [vmem:[%s11532_s14 + $0x118] sm:$0xff] }
 0x233   : > { %v3033_v38 = vrot.slane %v12836_v11, 5 }
 0x234   : > { %10046 = vmatmul.mubr.msk.f32.gmra.mrb[18].mxu0 %vm461_vm1, %v3012_v52  ;;  %v12800_v52 = vld [vmem:[%s11532_s14 + $0xf8] sm:$0xff] }
 0x235   : > { %10048 = vmatprep.mubr.msk.f32.mxu0 %vm461_vm1, %v3014_v16  ;;  %v3025_v51 = vrot.slane %v12800_v52, 5  ;;  %v3912_v16 = vld [vmem:[%s14765_s7 + $0x30] sm:$0xff] }
 0x236   : > { %3974 = vperm.xlu0 %11386, %v3912_v16   ;;  %3999 = vperm.xlu1 %11387, %v3917_v55   ;;  %v3037_v55 = vrot.slane %v12069_v33, 5 }
 0x237   : > { %v3026_v37 = vsel %vm2971_vm5, %v3023_v46, %v3025_v51  ;;  %v12831_v46 = vld [vmem:[%s11532_s14 + $0x110] sm:$0xff] }
 0x238   : > { %10049 = vmatmul.mubr.msk.f32.gmra.mrb[20].mxu0 %vm461_vm1, %v3016_v1  ;;  %v3027_v1 = vrot.slane %v12813_v9, 5 }
 0x239   : > { %10051 = vmatprep.mubr.msk.f32.mxu0 %vm461_vm1, %v3018_v43  ;;  %v12818_v43 = vld [vmem:[%s11532_s14 + $0x108] sm:$0xff] }
 0x23a   : > { %v3029_v61 = vrot.slane %v12818_v43, 5  ;;  %3984 = vperm.xlu0 %11386, %v3914_v0  }
 0x23c   : > { %10052 = vmatmul.mubr.msk.f32.gmra.mrb[22].mxu0 %vm461_vm1, %v3020_v48  ;;  %v3028_v48 = vsel %vm2971_vm5, %v3025_v51, %v3027_v1  ;;  %v3030_v16 = vsel %vm2971_vm5, %v3027_v1, %v3029_v61  ;;  %v3919_v51 = vld [vmem:[%s14765_s7 + $0x68] sm:$0xff] }
 0x23d   : > { %10054 = vmatprep.mubr.msk.f32.mxu0 %vm461_vm1, %v3022_v15  ;;  %v3031_v15 = vrot.slane %v12831_v46, 5  ;;  %4009 = vperm.xlu1 %11387, %v3919_v51  }
 0x23f   : > { %v3032_v1 = vsel %vm2971_vm5, %v3029_v61, %v3031_v15  ;;  %v3034_v0 = vsel %vm2971_vm5, %v3031_v15, %v3033_v38  ;;  %v3039_v15 = vrot.slane %v12075_v32, 5 }
 0x240   : > { %10055 = vmatmul.mubr.msk.f32.gmra.mrb[24].mxu0 %vm461_vm1, %v3024_v27  ;;  %v3916_v27 = vld [vmem:[%s14765_s7 + $0x50] sm:$0xff] }
 0x241   : > { %10057 = vmatprep.mubr.msk.f32.mxu0 %vm461_vm1, %v3026_v37  ;;  %v12849_v37 = vld [vmem:[%s11532_s14 + $0x120] sm:$0xff]  ;;  %3994 = vperm.xlu0 %11386, %v3916_v27   ;;  %v3920_v27 = vld [vmem:[%s14765_s7 + $0x70] sm:$0xff]  ;;  %v3040_v51 = vsel %vm2971_vm5, %v3037_v55, %v3039_v15 }
 0x242   : > { %v3035_v63 = vrot.slane %v12849_v37, 5 }
 0x244   : > { %10058 = vmatmul.mubr.msk.f32.gmra.mrb[26].mxu0 %vm461_vm1, %v3028_v48  ;;  %v3941_v48 = vld [vmem:[%s14765_s7 + $0x118] sm:$0xff]  ;;  %v3036_v61 = vsel %vm2971_vm5, %v3033_v38, %v3035_v63  ;;  %v3038_v33 = vsel %vm2971_vm5, %v3035_v63, %v3037_v55  ;;  %v3043_v38 = vrot.slane %v12551_v10, 5  ;;  %v3401_v63 = vrot.slane %v12561_v2, 6 }
 0x245   : > { %10060 = vmatprep.mubr.msk.f32.mxu0 %vm461_vm1, %v3030_v16  ;;  %v3041_v16 = vrot.slane %v12545_v26, 5  ;;  %4004 = vperm.xlu0 %11386, %v3918_v41  }
 0x246   : > { %4119 = vperm.xlu1 %11387, %v3941_v48   ;;  %v3406_v48 = vrot.slane %v12583_v30, 6  ;;  %v3412_v30 = vrot.slane %v12612_v60, 6 }
 0x247   : > { %v3042_v32 = vsel %vm2971_vm5, %v3039_v15, %v3041_v16  ;;  %v3044_v41 = vsel %vm2971_vm5, %v3041_v16, %v3043_v38  ;;  %v3410_v15 = vrot.slane %v12601_v54, 6  ;;  %v3414_v16 = vrot.slane %v12620_v44, 6 }
 0x248   : > { %10061 = vmatmul.mubr.msk.f32.gmra.mrb[28].mxu0 %vm461_vm1, %v3032_v1  ;;  %v3402_v1 = vrot.slane %v12565_v4, 6  ;;  %v3408_v4 = vrot.slane %v12593_v42, 6  ;;  %v3416_v54 = vrot.slane %v12630_v22, 6  ;;  %v3420_v44 = vrot.slane %v12648_v39, 6 }
 0x249   : > { %10063 = vmatprep.mubr.msk.f32.mxu0 %vm461_vm1, %v3034_v0  ;;  %4014 = vperm.xlu0 %11386, %v3920_v27   ;;  %v3404_v0 = vrot.slane %v12575_v18, 6  ;;  %v3413_v42 = vsel %vm3400_vm6, %v3410_v15, %v3412_v30  ;;  %v3415_v27 = vsel %vm3400_vm6, %v3412_v30, %v3414_v16  ;;  %v3446_v30 = vrot.slane %v12764_v59, 6 }
 0x24a   : > { %v3403_v55 = vsel %vm3400_vm6, %v3401_v63, %v3402_v1  ;;  %v3409_v18 = vsel %vm3400_vm6, %v3406_v48, %v3408_v4  ;;  %v3417_v60 = vsel %vm3400_vm6, %v3414_v16, %v3416_v54  ;;  %v3450_v16 = vrot.slane %v12782_v49, 6 }
 0x24b   : > { %v3405_v2 = vsel %vm3400_vm6, %v3402_v1, %v3404_v0  ;;  %v3426_v1 = vrot.slane %v12674_v36, 6  ;;  %v3432_v36 = vrot.slane %v12705_v14, 6  ;;  %v3452_v59 = vrot.slane %v12795_v34, 6 }
 0x24c   : > { %10064 = vmatmul.mubr.msk.f32.gmra.mrb[30].mxu0 %vm461_vm1, %v3036_v61  ;;  %v3407_v61 = vsel %vm3400_vm6, %v3404_v0, %v3406_v48  ;;  %v3430_v0 = vrot.slane %v12692_v50, 6  ;;  %v3434_v48 = vrot.slane %v12710_v62, 6  ;;  %v3436_v50 = vrot.slane %v12723_v24, 6 }
 0x24d   : > { %10066 = vmatprep.mubr.msk.f32.mxu0 %vm461_vm1, %v3038_v33  ;;  %v3411_v33 = vsel %vm3400_vm6, %v3408_v4, %v3410_v15  ;;  %v3438_v4 = vrot.slane %v12728_v3, 6  ;;  %v3440_v62 = vrot.slane %v12741_v53, 6  ;;  %v3442_v15 = vrot.slane %v12746_v7, 6 }
 0x24e   : > { %v3437_v14 = vsel %vm3400_vm6, %v3434_v48, %v3436_v50  ;;  %v3444_v3 = vrot.slane %v12759_v8, 6  ;;  %v3448_v7 = vrot.slane %v12777_v25, 6  ;;  %v3453_v25 = vsel %vm3400_vm6, %v3450_v16, %v3452_v59 }
 0x24f   : > { %v3441_v24 = vsel %vm3400_vm6, %v3438_v4, %v3440_v62  ;;  %v3456_v49 = vrot.slane %v12813_v9, 6 }
 0x250   : > { %10067 = vmatmul.mubr.msk.f32.gmra.mrb[32].mxu0 %vm461_vm1, %v3040_v51  ;;  %v3418_v51 = vrot.slane %v12638_v17, 6  ;;  %v3424_v17 = vrot.slane %v12669_v40, 6  ;;  %v3445_v53 = vsel %vm3400_vm6, %v3442_v15, %v3444_v3  ;;  %v3449_v8 = vsel %vm3400_vm6, %v3446_v30, %v3448_v7 }
 0x251   : > { %10069 = vmatprep.mubr.msk.f32.mxu0 %vm461_vm1, %v3042_v32  ;;  %v3422_v32 = vrot.slane %v12656_v31, 6  ;;  %v3428_v31 = vrot.slane %v12687_v19, 6  ;;  %v3433_v19 = vsel %vm3400_vm6, %v3430_v0, %v3432_v36 }
 0x252   : > { %v3419_v38 = vsel %vm3400_vm6, %v3416_v54, %v3418_v51  ;;  %v3421_v22 = vsel %vm3400_vm6, %v3418_v51, %v3420_v44  ;;  %v3454_v54 = vrot.slane %v12800_v52, 6  ;;  %v3458_v51 = vrot.slane %v12818_v43, 6 }
 0x253   : > { %v3423_v63 = vsel %vm3400_vm6, %v3420_v44, %v3422_v32  ;;  %v3425_v39 = vsel %vm3400_vm6, %v3422_v32, %v3424_v17  ;;  %v3429_v40 = vsel %vm3400_vm6, %v3426_v1, %v3428_v31  ;;  %v3460_v52 = vrot.slane %v12831_v46, 6  ;;  %v11421_v32 = vld [vmem:[%s11532_s14 + $0x128] sm:$0xff] }
 0x254   : > { %10070 = vmatmul.mubr.msk.f32.gmra.mrb[34].mxu0 %vm461_vm1, %v3044_v41  ;;  %v3427_v41 = vsel %vm3400_vm6, %v3424_v17, %v3426_v1  ;;  %v3457_v34 = vsel %vm3400_vm6, %v3454_v54, %v3456_v49  ;;  %v3462_v44 = vrot.slane %v12836_v11, 6  ;;  %v3464_v43 = vrot.slane %v12849_v37, 6  ;;  %v11422_v17 = vld [vmem:[%s11532_s14 + $0x130] sm:$0xff] }
 0x255   : > { %10074 = vmatprep.mubr.msk.f32.mxu0 %vm461_vm1, %v3403_v55  ;;  %v3431_v55 = vsel %vm3400_vm6, %v3428_v31, %v3430_v0  ;;  %v3461_v9 = vsel %vm3400_vm6, %v3458_v51, %v3460_v52  ;;  %v3468_v11 = vrot.slane %v11422_v17, 6  ;;  %v3470_v1 = vrot.slane %v12545_v26, 6 }
 0x256   : > { %v3465_v46 = vsel %vm3400_vm6, %v3462_v44, %v3464_v43  ;;  %v14810_v0 = vmov 0.0  }
 0x257   : > { %v3471_v31 = vsel %vm3400_vm6, %v3468_v11, %v3470_v1  ;;  %4161 = vst.msk [vmem:[#allocation2 + $0x18] sm:$0xff] %vm461_vm1, %v14810_v0  ;;  %4162 = vst.msk [vmem:[#allocation2 + $0x20] sm:$0xff] %vm461_vm1, %v14810_v0 }
 0x258   : > { %10075 = vmatmul.mubr.msk.f32.vlgmr.msra.gmra.mrb[0].mxu0 %vm461_vm1, %v3405_v2  ;;  %v3435_v2 = vsel %vm3400_vm6, %v3432_v36, %v3434_v48  ;;  %4158 = vst.msk [vmem:[#allocation2] sm:$0xff] %vm461_vm1, %v14810_v0  ;;  %4159 = vst.msk [vmem:[#allocation2 + $0x8] sm:$0xff] %vm461_vm1, %v14810_v0 }
 0x259   : > { %10077 = vmatprep.mubr.msk.f32.mxu0 %vm461_vm1, %v3407_v61  ;;  %v3439_v61 = vsel %vm3400_vm6, %v3436_v50, %v3438_v4  ;;  %4160 = vst.msk [vmem:[#allocation2 + $0x10] sm:$0xff] %vm461_vm1, %v14810_v0  ;;  %4163 = vst.msk [vmem:[#allocation2 + $0x28] sm:$0xff] %vm461_vm1, %v14810_v0  ;;  %v13082_v50 = vpop.permute.xlu1 %4029 }
 0x25a   : > { %4164 = vst.msk [vmem:[#allocation2 + $0x30] sm:$0xff] %vm461_vm1, %v14810_v0  ;;  %4165 = vst.msk [vmem:[#allocation2 + $0x38] sm:$0xff] %vm461_vm1, %v14810_v0 }
 0x25b   : > { %4166 = vst.msk [vmem:[#allocation2 + $0x40] sm:$0xff] %vm461_vm1, %v14810_v0  ;;  %4167 = vst.msk [vmem:[#allocation2 + $0x48] sm:$0xff] %vm461_vm1, %v14810_v0 }
 0x25c   : > { %10078 = vmatmul.mubr.msk.f32.gmra.mrb[2].mxu0 %vm461_vm1, %v3409_v18  ;;  %v3443_v18 = vsel %vm3400_vm6, %v3440_v62, %v3442_v15  ;;  %4168 = vst.msk [vmem:[#allocation2 + $0x50] sm:$0xff] %vm461_vm1, %v14810_v0  ;;  %4169 = vst.msk [vmem:[#allocation2 + $0x58] sm:$0xff] %vm461_vm1, %v14810_v0 }
 0x25d   : > { %10080 = vmatprep.mubr.msk.f32.mxu0 %vm461_vm1, %v3411_v33  ;;  %v3447_v33 = vsel %vm3400_vm6, %v3444_v3, %v3446_v30  ;;  %4170 = vst.msk [vmem:[#allocation2 + $0x60] sm:$0xff] %vm461_vm1, %v14810_v0  ;;  %4171 = vst.msk [vmem:[#allocation2 + $0x68] sm:$0xff] %vm461_vm1, %v14810_v0 }
 0x25e   : > { %4172 = vst.msk [vmem:[#allocation2 + $0x70] sm:$0xff] %vm461_vm1, %v14810_v0  ;;  %4173 = vst.msk [vmem:[#allocation2 + $0x78] sm:$0xff] %vm461_vm1, %v14810_v0 }
 0x25f   : > { %4174 = vst.msk [vmem:[#allocation2 + $0x80] sm:$0xff] %vm461_vm1, %v14810_v0  ;;  %4175 = vst.msk [vmem:[#allocation2 + $0x88] sm:$0xff] %vm461_vm1, %v14810_v0  ;;  %v13067_v26 = vld [vmem:[#allocation2] sm:$0xff] }
 0x260   : > { %10081 = vmatmul.mubr.msk.f32.gmra.mrb[4].mxu0 %vm461_vm1, %v3413_v42  ;;  %v3451_v42 = vsel %vm3400_vm6, %v3448_v7, %v3450_v16  ;;  %4176 = vst.msk [vmem:[#allocation2 + $0x90] sm:$0xff] %vm461_vm1, %v14810_v0  ;;  %4177 = vst.msk [vmem:[#allocation2 + $0x98] sm:$0xff] %vm461_vm1, %v14810_v0 }
 0x261   : > { %10083 = vmatprep.mubr.msk.f32.mxu0 %vm461_vm1, %v3415_v27  ;;  %v3455_v27 = vsel %vm3400_vm6, %v3452_v59, %v3454_v54  ;;  %4178 = vst.msk [vmem:[#allocation2 + $0xa0] sm:$0xff] %vm461_vm1, %v14810_v0  ;;  %4179 = vst.msk [vmem:[#allocation2 + $0xa8] sm:$0xff] %vm461_vm1, %v14810_v0 }
 0x262   : > { %4180 = vst.msk [vmem:[#allocation2 + $0xb0] sm:$0xff] %vm461_vm1, %v14810_v0  ;;  %4181 = vst.msk [vmem:[#allocation2 + $0xb8] sm:$0xff] %vm461_vm1, %v14810_v0 }
 0x263   : > { %4182 = vst.msk [vmem:[#allocation2 + $0xc0] sm:$0xff] %vm461_vm1, %v14810_v0  ;;  %4183 = vst.msk [vmem:[#allocation2 + $0xc8] sm:$0xff] %vm461_vm1, %v14810_v0 }
 0x264   : > { %10084 = vmatmul.mubr.msk.f32.gmra.mrb[6].mxu0 %vm461_vm1, %v3417_v60  ;;  %v3459_v60 = vsel %vm3400_vm6, %v3456_v49, %v3458_v51  ;;  %4184 = vst.msk [vmem:[#allocation2 + $0xd0] sm:$0xff] %vm461_vm1, %v14810_v0  ;;  %4185 = vst.msk [vmem:[#allocation2 + $0xd8] sm:$0xff] %vm461_vm1, %v14810_v0 }
 0x265   : > { %10086 = vmatprep.mubr.msk.f32.mxu0 %vm461_vm1, %v3419_v38  ;;  %v3463_v38 = vsel %vm3400_vm6, %v3460_v52, %v3462_v44  ;;  %4186 = vst.msk [vmem:[#allocation2 + $0xe0] sm:$0xff] %vm461_vm1, %v14810_v0  ;;  %4187 = vst.msk [vmem:[#allocation2 + $0xe8] sm:$0xff] %vm461_vm1, %v14810_v0  ;;  %v13129_v52 = vld [vmem:[%s14760_s2] ss:$0 sm:$0xff] }
 0x266   : > { %4188 = vst.msk [vmem:[#allocation2 + $0xf0] sm:$0xff] %vm461_vm1, %v14810_v0  ;;  %4189 = vst.msk [vmem:[#allocation2 + $0xf8] sm:$0xff] %vm461_vm1, %v14810_v0 }
 0x267   : > { %4190 = vst.msk [vmem:[#allocation2 + $0x100] sm:$0xff] %vm461_vm1, %v14810_v0  ;;  %4191 = vst.msk [vmem:[#allocation2 + $0x108] sm:$0xff] %vm461_vm1, %v14810_v0 }
 0x268   : > { %10087 = vmatmul.mubr.msk.f32.gmra.mrb[8].mxu0 %vm461_vm1, %v3421_v22  ;;  %v3466_v22 = vrot.slane %v11421_v32, 6  ;;  %4192 = vst.msk [vmem:[#allocation2 + $0x110] sm:$0xff] %vm461_vm1, %v14810_v0  ;;  %4193 = vst.msk [vmem:[#allocation2 + $0x118] sm:$0xff] %vm461_vm1, %v14810_v0 }
 0x269   : > { %10089 = vmatprep.mubr.msk.f32.mxu0 %vm461_vm1, %v3423_v63  ;;  %4194 = vst.msk [vmem:[#allocation2 + $0x120] sm:$0xff] %vm461_vm1, %v14810_v0  ;;  %4195 = vst.msk [vmem:[#allocation2 + $0x128] sm:$0xff] %vm461_vm1, %v14810_v0 }
 0x26a   : > { %v3467_v63 = vsel %vm3400_vm6, %v3464_v43, %v3466_v22  ;;  %v3469_v37 = vsel %vm3400_vm6, %v3466_v22, %v3468_v11  ;;  %4196 = vst.msk [vmem:[#allocation2 + $0x130] sm:$0xff] %vm461_vm1, %v14810_v0  ;;  %4197 = vst.msk [vmem:[#allocation2 + $0x138] sm:$0xff] %vm461_vm1, %v14810_v0 }
 0x26c   : > { %10090 = vmatmul.mubr.msk.f32.gmra.mrb[10].mxu0 %vm461_vm1, %v3425_v39  ;;  %v3472_v39 = vrot.slane %v12551_v10, 6  ;;  %v13069_v10 = vld [vmem:[#allocation2 + $0x8] sm:$0xff] }
 0x26d   : > { %10092 = vmatprep.mubr.msk.f32.mxu0 %vm461_vm1, %v3427_v41  ;;  %v4318_v36 = vrot.slane %v13069_v10, 1 }
 0x26e   : > { %v3473_v41 = vsel %vm3400_vm6, %v3470_v1, %v3472_v39 }
 0x270   : > { %10093 = vmatmul.mubr.msk.f32.gmra.mrb[12].mxu0 %vm461_vm1, %v3429_v40  ;;  %v4317_v40 = vrot.slane %v13067_v26, 1 }
 0x271   : > { %10095 = vmatprep.mubr.msk.f32.mxu0 %vm461_vm1, %v3431_v55  ;;  %v8549_v55 = vld [vmem:[%s14761_s3 + $0x8] sm:$0xff] }
 0x272   : > { %10128 = vmatprep.subr.mxu0 %v8549_v55  ;;  %v4319_v48 = vsel %vm387_vm0, %v4317_v40, %v4318_v36  ;;  %10688 = vmatprep.subr.mxu1 %v8549_v55 }
 0x273   : > { %10129 = vmatpush3.msra.mxu0 %v8549_v55  ;;  %10689 = vmatpush3.msra.mxu1 %v8549_v55 }
 0x274   : > { %10096 = vmatmul.mubr.msk.f32.gmra.mrb[14].mxu0 %vm461_vm1, %v3433_v19  ;;  %v13080_v19 = vpop.permute.xlu0 %4019 }
 0x275   : > { %10098 = vmatprep.mubr.msk.f32.mxu0 %vm461_vm1, %v3435_v2  ;;  %v13087_v2 = vld [vmem:[%s14761_s3] sm:$0xff] }
 0x276   : > { %10184 = vmatprep.subr.mxu1 %v13087_v2 }
 0x278   : > { %10099 = vmatmul.mubr.msk.f32.gmra.mrb[16].mxu0 %vm461_vm1, %v3437_v14  ;;  %v13090_v4 = vpop.permute.xlu0 %4024  ;;  %v13092_v14 = vpop.permute.xlu1 %4034 }
 0x279   : > { %10101 = vmatprep.mubr.msk.f32.mxu0 %vm461_vm1, %v3439_v61 }
 0x27c   : > { %10102 = vmatmul.mubr.msk.f32.gmra.mrb[18].mxu0 %vm461_vm1, %v3441_v24  ;;  %v13094_v62 = vpop.permute.xlu0 %4039  ;;  %v13096_v61 = vpop.permute.xlu1 %4044 }
 0x27d   : > { %10104 = vmatprep.mubr.msk.f32.mxu0 %vm461_vm1, %v3443_v18 }
 0x280   : > { %10105 = vmatmul.mubr.msk.f32.gmra.mrb[20].mxu0 %vm461_vm1, %v3445_v53  ;;  %v13098_v15 = vpop.permute.xlu0 %4049  ;;  %v13100_v24 = vpop.permute.xlu1 %4054 }
 0x281   : > { %10107 = vmatprep.mubr.msk.f32.mxu0 %vm461_vm1, %v3447_v33 }
 0x284   : > { %10108 = vmatmul.mubr.msk.f32.gmra.mrb[22].mxu0 %vm461_vm1, %v3449_v8  ;;  %v13104_v18 = vpop.permute.xlu1 %4064 }
 0x285   : > { %10110 = vmatprep.mubr.msk.f32.mxu0 %vm461_vm1, %v3451_v42 }
 0x288   : > { %10111 = vmatmul.mubr.msk.f32.gmra.mrb[24].mxu0 %vm461_vm1, %v3453_v25  ;;  %v13108_v53 = vpop.permute.xlu1 %4074 }
 0x289   : > { %10113 = vmatprep.mubr.msk.f32.mxu0 %vm461_vm1, %v3455_v27 }
 0x28c   : > { %10114 = vmatmul.mubr.msk.f32.gmra.mrb[26].mxu0 %vm461_vm1, %v3457_v34  ;;  %v13112_v33 = vpop.permute.xlu1 %4084 }
 0x28d   : > { %10116 = vmatprep.mubr.msk.f32.mxu0 %vm461_vm1, %v3459_v60 }
 0x290   : > { %10117 = vmatmul.mubr.msk.f32.gmra.mrb[28].mxu0 %vm461_vm1, %v3461_v9 }
 0x291   : > { %10119 = vmatprep.mubr.msk.f32.mxu0 %vm461_vm1, %v3463_v38  ;;  %v13102_v3 = vpop.permute.xlu0 %4059  ;;  %v13116_v8 = vpop.permute.xlu1 %4094 }
 0x294   : > { %10120 = vmatmul.mubr.msk.f32.gmra.mrb[30].mxu0 %vm461_vm1, %v3465_v46 }
 0x295   : > { %10122 = vmatprep.mubr.msk.f32.mxu0 %vm461_vm1, %v3467_v63  ;;  %v13106_v30 = vpop.permute.xlu0 %4069  ;;  %v13120_v42 = vpop.permute.xlu1 %4104 }
 0x298   : > { %10123 = vmatmul.mubr.msk.f32.gmra.mrb[32].mxu0 %vm461_vm1, %v3469_v37 }
 0x299   : > { %10125 = vmatprep.mubr.msk.f32.mxu0 %vm461_vm1, %v3471_v31  ;;  %v13110_v7 = vpop.permute.xlu0 %4079 }
 0x29c   : > { %10126 = vmatmul.mubr.msk.f32.gmra.mrb[34].mxu0 %vm461_vm1, %v3473_v41  ;;  %v13124_v25 = vpop.permute.xlu1 %4114 }
 0x29d   : > { %10130 = vmatprep.mubr.msk.f32.mxu0 %vm461_vm1, %v4319_v48  ;;  %v13114_v16 = vpop.permute.xlu0 %4089 }
 0x2a0   : > { %v3950_v27 = vpop.permute.xlu1 %3949 }
 0x2a1   : > { %v13118_v59 = vpop.permute.xlu0 %4099 }
 0x2a4   : > { %v3960_v34 = vpop.permute.xlu1 %3959 }
 0x2a5   : > { %v13122_v54 = vpop.permute.xlu0 %4109 }
 0x2a8   : > { %v3970_v32 = vpop.permute.xlu1 %3969 }
 0x2a9   : > { %v3945_v49 = vpop.permute.xlu0 %3944 }
 0x2ac   : > { %v3980_v48 = vpop.permute.xlu1 %3979 }
 0x2ad   : > { %v3955_v51 = vpop.permute.xlu0 %3954 }
 0x2b1   : > { %v3965_v43 = vpop.permute.xlu0 %3964 }
 0x2b5   : > { %v3975_v41 = vpop.permute.xlu0 %3974 }
 0x32b   : > { %v10076_v60 = vpop.f32.mrb[0].mxu0 }
 0x32c   : > { %v3835_v44 = vadd.f32 %v10076_v60, %v13129_v52  ;;  %v3612_v9 = vpop.f32.mrb[1].mxu0 }
 0x32d   : > { %v3834_v38 = vadd.f32 %v13129_v52, %v3612_v9 }
 0x32e   : > { %v3871_v22 = vmax.f32 %v3835_v44, 0.0 }
 0x32f   : > { %v3870_v46 = vmax.f32 %v3834_v38, 0.0  ;;  %v10079_v17 = vpop.f32.mrb[2].mxu0 }
 0x330   : > { %v4123_v11 = vmul.f32 %v3950_v27, %v3871_v22  ;;  %v3837_v63 = vadd.f32 %v10079_v17, %v13129_v52  ;;  %v3622_v1 = vpop.f32.mrb[3].mxu0 }
 0x331   : > { %v4122_v37 = vmul.f32 %v3945_v49, %v3870_v46  ;;  %v3836_v39 = vadd.f32 %v13129_v52, %v3622_v1  ;;  %v3985_v1 = vpop.permute.xlu0 %3984 }
 0x332   : > { %4201 = vst.msk [vmem:[#allocation2 + $0x1b] sm:$0xff] %vm461_vm1, %v4123_v11  ;;  %v3873_v31 = vmax.f32 %v3837_v63, 0.0 }
 0x333   : > { %4200 = vst.msk [vmem:[#allocation2 + $0x13] sm:$0xff] %vm461_vm1, %v4122_v37  ;;  %v3872_v40 = vmax.f32 %v3836_v39, 0.0  ;;  %v10082_v55 = vpop.f32.mrb[4].mxu0  ;;  %v3990_v39 = vpop.permute.xlu1 %3989 }
 0x334   : > { %v4125_v60 = vmul.f32 %v3960_v34, %v3873_v31  ;;  %v3839_v44 = vadd.f32 %v10082_v55, %v13129_v52  ;;  %v3632_v9 = vpop.f32.mrb[5].mxu0 }
 0x335   : > { %v4124_v27 = vmul.f32 %v3955_v51, %v3872_v40  ;;  %v3838_v38 = vadd.f32 %v13129_v52, %v3632_v9 }
 0x336   : > { %4203 = vst.msk [vmem:[#allocation2 + $0x2b] sm:$0xff] %vm461_vm1, %v4125_v60  ;;  %v3875_v49 = vmax.f32 %v3839_v44, 0.0 }
 0x337   : > { %4202 = vst.msk [vmem:[#allocation2 + $0x23] sm:$0xff] %vm461_vm1, %v4124_v27  ;;  %v3874_v22 = vmax.f32 %v3838_v38, 0.0  ;;  %v10085_v46 = vpop.f32.mrb[6].mxu0 }
 0x338   : > { %v4127_v17 = vmul.f32 %v3970_v32, %v3875_v49  ;;  %v3841_v11 = vadd.f32 %v10085_v46, %v13129_v52  ;;  %v3642_v63 = vpop.f32.mrb[7].mxu0 }
 0x339   : > { %v4126_v37 = vmul.f32 %v3965_v43, %v3874_v22  ;;  %v3840_v34 = vadd.f32 %v13129_v52, %v3642_v63  ;;  %v3995_v63 = vpop.permute.xlu0 %3994 }
 0x33a   : > { %4205 = vst.msk [vmem:[#allocation2 + $0x3b] sm:$0xff] %vm461_vm1, %v4127_v17  ;;  %v3877_v51 = vmax.f32 %v3841_v11, 0.0  ;;  %v13144_v31 = vld [vmem:[#allocation2 + $0x10] sm:$0xff]  ;;  %v13146_v40 = vld [vmem:[#allocation2 + $0x18] sm:$0xff] }
 0x33b   : > { %4204 = vst.msk [vmem:[#allocation2 + $0x33] sm:$0xff] %vm461_vm1, %v4126_v37  ;;  %v3876_v55 = vmax.f32 %v3840_v34, 0.0  ;;  %v10088_v60 = vpop.f32.mrb[8].mxu0  ;;  %v4320_v32 = vrot.slane %v13144_v31, 1  ;;  %v4322_v44 = vrot.slane %v13146_v40, 1  ;;  %v4000_v34 = vpop.permute.xlu1 %3999  ;;  %v5031_v13 = vrot.slane %v13146_v40, 2 }
 0x33c   : > { %v4129_v9 = vmul.f32 %v3980_v48, %v3877_v51  ;;  %v3843_v43 = vadd.f32 %v10088_v60, %v13129_v52  ;;  %v3652_v27 = vpop.f32.mrb[9].mxu0 }
 0x33d   : > { %v4128_v38 = vmul.f32 %v3975_v41, %v3876_v55  ;;  %v3842_v49 = vadd.f32 %v13129_v52, %v3652_v27  ;;  %v4321_v22 = vsel %vm387_vm0, %v4318_v36, %v4320_v32  ;;  %v4323_v46 = vsel %vm387_vm0, %v4320_v32, %v4322_v44 }
 0x33e   : > { %4207 = vst.msk [vmem:[#allocation2 + $0x4b] sm:$0xff] %vm461_vm1, %v4129_v9  ;;  %v3879_v17 = vmax.f32 %v3843_v43, 0.0  ;;  %10131 = vmatmul.mubr.msk.f32.vlgmr.msra.gmra.mrb[36].mxu0 %vm461_vm1, %v4321_v22  ;;  %v13159_v11 = vld [vmem:[#allocation2 + $0x20] sm:$0xff]  ;;  %v13161_v48 = vld [vmem:[#allocation2 + $0x28] sm:$0xff] }
 0x33f   : > { %4206 = vst.msk [vmem:[#allocation2 + $0x43] sm:$0xff] %vm461_vm1, %v4128_v38  ;;  %v3878_v41 = vmax.f32 %v3842_v49, 0.0  ;;  %v10091_v37 = vpop.f32.mrb[10].mxu0  ;;  %10133 = vmatprep.mubr.msk.f32.mxu0 %vm461_vm1, %v4323_v46  ;;  %v4324_v36 = vrot.slane %v13159_v11, 1  ;;  %v4326_v51 = vrot.slane %v13161_v48, 1  ;;  %v4010_v0 = vpop.permute.xlu1 %4009  ;;  %v5033_v56 = vrot.slane %v13159_v11, 2 }
 0x340   : > { %v4131_v55 = vmul.f32 %v3990_v39, %v3879_v17  ;;  %v3845_v60 = vadd.f32 %v10091_v37, %v13129_v52  ;;  %v3662_v32 = vpop.f32.mrb[11].mxu0 }
 0x341   : > { %v4130_v9 = vmul.f32 %v3985_v1, %v3878_v41  ;;  %v3844_v43 = vadd.f32 %v13129_v52, %v3662_v32  ;;  %v4325_v27 = vsel %vm387_vm0, %v4322_v44, %v4324_v36  ;;  %v4327_v38 = vsel %vm387_vm0, %v4324_v36, %v4326_v51 }
 0x342   : > { %4209 = vst.msk [vmem:[#allocation2 + $0x5b] sm:$0xff] %vm461_vm1, %v4131_v55  ;;  %v3881_v49 = vmax.f32 %v3845_v60, 0.0  ;;  %10134 = vmatmul.mubr.msk.f32.gmra.mrb[38].mxu0 %vm461_vm1, %v4325_v27  ;;  %v13173_v22 = vld [vmem:[#allocation2 + $0x30] sm:$0xff]  ;;  %v13175_v46 = vld [vmem:[#allocation2 + $0x38] sm:$0xff]  ;;  %v4005_v55 = vpop.permute.xlu0 %4004 }
 0x343   : > { %4208 = vst.msk [vmem:[#allocation2 + $0x53] sm:$0xff] %vm461_vm1, %v4130_v9  ;;  %v3880_v39 = vmax.f32 %v3844_v43, 0.0  ;;  %v10094_v17 = vpop.f32.mrb[12].mxu0  ;;  %10136 = vmatprep.mubr.msk.f32.mxu0 %vm461_vm1, %v4327_v38  ;;  %v4328_v1 = vrot.slane %v13173_v22, 1  ;;  %v4330_v44 = vrot.slane %v13175_v46, 1 }
 0x344   : > { %v4133_v41 = vmul.f32 %v4000_v34, %v3881_v49  ;;  %v3847_v37 = vadd.f32 %v10094_v17, %v13129_v52  ;;  %v3672_v36 = vpop.f32.mrb[13].mxu0 }
 0x345   : > { %v4132_v60 = vmul.f32 %v3995_v63, %v3880_v39  ;;  %v3846_v32 = vadd.f32 %v13129_v52, %v3672_v36  ;;  %v4329_v27 = vsel %vm387_vm0, %v4326_v51, %v4328_v1  ;;  %v4331_v9 = vsel %vm387_vm0, %v4328_v1, %v4330_v44 }
 0x346   : > { %4211 = vst.msk [vmem:[#allocation2 + $0x6b] sm:$0xff] %vm461_vm1, %v4133_v41  ;;  %v3883_v43 = vmax.f32 %v3847_v37, 0.0  ;;  %10137 = vmatmul.mubr.msk.f32.gmra.mrb[40].mxu0 %vm461_vm1, %v4329_v27  ;;  %v13187_v38 = vld [vmem:[#allocation2 + $0x40] sm:$0xff]  ;;  %v13189_v34 = vld [vmem:[#allocation2 + $0x48] sm:$0xff] }
 0x347   : > { %4210 = vst.msk [vmem:[#allocation2 + $0x63] sm:$0xff] %vm461_vm1, %v4132_v60  ;;  %v3882_v49 = vmax.f32 %v3846_v32, 0.0  ;;  %v10097_v63 = vpop.f32.mrb[14].mxu0  ;;  %10139 = vmatprep.mubr.msk.f32.mxu0 %vm461_vm1, %v4331_v9  ;;  %v4332_v51 = vrot.slane %v13187_v38, 1  ;;  %v4334_v39 = vrot.slane %v13189_v34, 1  ;;  %v4015_v32 = vpop.permute.xlu0 %4014 }
 0x348   : > { %v4135_v17 = vmul.f32 %v4010_v0, %v3883_v43  ;;  %v3849_v1 = vadd.f32 %v10097_v63, %v13129_v52  ;;  %v3682_v41 = vpop.f32.mrb[15].mxu0 }
 0x349   : > { %v4134_v37 = vmul.f32 %v4005_v55, %v3882_v49  ;;  %v3848_v36 = vadd.f32 %v13129_v52, %v3682_v41  ;;  %v4333_v27 = vsel %vm387_vm0, %v4330_v44, %v4332_v51  ;;  %v4335_v23 = vsel %vm387_vm0, %v4332_v51, %v4334_v39 }
 0x34a   : > { %4213 = vst.msk [vmem:[#allocation2 + $0x7b] sm:$0xff] %vm461_vm1, %v4135_v17  ;;  %v3885_v60 = vmax.f32 %v3849_v1, 0.0  ;;  %10140 = vmatmul.mubr.msk.f32.gmra.mrb[42].mxu0 %vm461_vm1, %v4333_v27  ;;  %v13201_v9 = vld [vmem:[#allocation2 + $0x50] sm:$0xff]  ;;  %v13203_v5 = vld [vmem:[#allocation2 + $0x58] sm:$0xff] }
 0x34b   : > { %4212 = vst.msk [vmem:[#allocation2 + $0x73] sm:$0xff] %vm461_vm1, %v4134_v37  ;;  %v3884_v0 = vmax.f32 %v3848_v36, 0.0  ;;  %v10100_v55 = vpop.f32.mrb[16].mxu0  ;;  %10142 = vmatprep.mubr.msk.f32.mxu0 %vm461_vm1, %v4335_v23  ;;  %v4336_v44 = vrot.slane %v13201_v9, 1  ;;  %v4338_v43 = vrot.slane %v13203_v5, 1  ;;  %v5047_v35 = vrot.slane %v13203_v5, 2 }
 0x34c   : > { %v4137_v49 = vmul.f32 %v13080_v19, %v3885_v60  ;;  %v3851_v63 = vadd.f32 %v10100_v55, %v13129_v52  ;;  %v3692_v51 = vpop.f32.mrb[17].mxu0 }
 0x34d   : > { %v4136_v17 = vmul.f32 %v4015_v32, %v3884_v0  ;;  %v3850_v1 = vadd.f32 %v13129_v52, %v3692_v51  ;;  %v4337_v41 = vsel %vm387_vm0, %v4334_v39, %v4336_v44  ;;  %v4339_v37 = vsel %vm387_vm0, %v4336_v44, %v4338_v43 }
 0x34e   : > { %4215 = vst.msk [vmem:[#allocation2 + $0x8b] sm:$0xff] %vm461_vm1, %v4137_v49  ;;  %v3887_v36 = vmax.f32 %v3851_v63, 0.0  ;;  %10143 = vmatmul.mubr.msk.f32.gmra.mrb[44].mxu0 %vm461_vm1, %v4337_v41  ;;  %v13216_v23 = vld [vmem:[#allocation2 + $0x60] sm:$0xff]  ;;  %v13218_v27 = vld [vmem:[#allocation2 + $0x68] sm:$0xff] }
 0x34f   : > { %4214 = vst.msk [vmem:[#allocation2 + $0x83] sm:$0xff] %vm461_vm1, %v4136_v17  ;;  %v3886_v19 = vmax.f32 %v3850_v1, 0.0  ;;  %v10103_v60 = vpop.f32.mrb[18].mxu0  ;;  %10145 = vmatprep.mubr.msk.f32.mxu0 %vm461_vm1, %v4339_v37  ;;  %v4340_v32 = vrot.slane %v13216_v23, 1  ;;  %v4342_v39 = vrot.slane %v13218_v27, 1  ;;  %v5049_v28 = vrot.slane %v13216_v23, 2 }
 0x350   : > { %v4139_v0 = vmul.f32 %v13082_v50, %v3887_v36  ;;  %v3853_v55 = vadd.f32 %v10103_v60, %v13129_v52  ;;  %v3702_v44 = vpop.f32.mrb[19].mxu0  ;;  %v5051_v21 = vrot.slane %v13218_v27, 2 }
 0x351   : > { %v4138_v49 = vmul.f32 %v13090_v4, %v3886_v19  ;;  %v3852_v63 = vadd.f32 %v13129_v52, %v3702_v44  ;;  %v4341_v51 = vsel %vm387_vm0, %v4338_v43, %v4340_v32  ;;  %v4343_v17 = vsel %vm387_vm0, %v4340_v32, %v4342_v39 }
 0x352   : > { %4217 = vst.msk [vmem:[#allocation2 + $0x9b] sm:$0xff] %vm461_vm1, %v4139_v0  ;;  %v3889_v1 = vmax.f32 %v3853_v55, 0.0  ;;  %10146 = vmatmul.mubr.msk.f32.gmra.mrb[46].mxu0 %vm461_vm1, %v4341_v51  ;;  %v13232_v41 = vld [vmem:[#allocation2 + $0x70] sm:$0xff]  ;;  %v13234_v37 = vld [vmem:[#allocation2 + $0x78] sm:$0xff] }
 0x353   : > { %4216 = vst.msk [vmem:[#allocation2 + $0x93] sm:$0xff] %vm461_vm1, %v4138_v49  ;;  %v3888_v50 = vmax.f32 %v3852_v63, 0.0  ;;  %v10106_v36 = vpop.f32.mrb[20].mxu0  ;;  %10148 = vmatprep.mubr.msk.f32.mxu0 %vm461_vm1, %v4343_v17  ;;  %v4344_v4 = vrot.slane %v13232_v41, 1  ;;  %v4346_v43 = vrot.slane %v13234_v37, 1  ;;  %v5053_v12 = vrot.slane %v13232_v41, 2 }
 0x354   : > { %v4141_v19 = vmul.f32 %v13094_v62, %v3889_v1  ;;  %v3855_v60 = vadd.f32 %v10106_v36, %v13129_v52  ;;  %v3712_v32 = vpop.f32.mrb[21].mxu0  ;;  %v5055_v57 = vrot.slane %v13234_v37, 2 }
 0x355   : > { %v4140_v0 = vmul.f32 %v13092_v14, %v3888_v50  ;;  %v3854_v55 = vadd.f32 %v13129_v52, %v3712_v32  ;;  %v4345_v44 = vsel %vm387_vm0, %v4342_v39, %v4344_v4  ;;  %v4347_v49 = vsel %vm387_vm0, %v4344_v4, %v4346_v43 }
 0x356   : > { %4219 = vst.msk [vmem:[#allocation2 + $0xab] sm:$0xff] %vm461_vm1, %v4141_v19  ;;  %v3891_v63 = vmax.f32 %v3855_v60, 0.0  ;;  %10149 = vmatmul.mubr.msk.f32.gmra.mrb[48].mxu0 %vm461_vm1, %v4345_v44  ;;  %v13248_v51 = vld [vmem:[#allocation2 + $0x80] sm:$0xff]  ;;  %v13250_v17 = vld [vmem:[#allocation2 + $0x88] sm:$0xff] }
 0x357   : > { %4218 = vst.msk [vmem:[#allocation2 + $0xa3] sm:$0xff] %vm461_vm1, %v4140_v0  ;;  %v3890_v62 = vmax.f32 %v3854_v55, 0.0  ;;  %v10109_v1 = vpop.f32.mrb[22].mxu0  ;;  %10151 = vmatprep.mubr.msk.f32.mxu0 %vm461_vm1, %v4347_v49  ;;  %v4348_v14 = vrot.slane %v13248_v51, 1  ;;  %v4350_v39 = vrot.slane %v13250_v17, 1  ;;  %v5057_v47 = vrot.slane %v13248_v51, 2 }
 0x358   : > { %v4143_v50 = vmul.f32 %v13098_v15, %v3891_v63  ;;  %v3857_v36 = vadd.f32 %v10109_v1, %v13129_v52  ;;  %v3722_v4 = vpop.f32.mrb[23].mxu0  ;;  %v5059_v45 = vrot.slane %v13250_v17, 2 }
 0x359   : > { %v4142_v19 = vmul.f32 %v13096_v61, %v3890_v62  ;;  %v3856_v60 = vadd.f32 %v13129_v52, %v3722_v4  ;;  %v4349_v32 = vsel %vm387_vm0, %v4346_v43, %v4348_v14  ;;  %v4351_v0 = vsel %vm387_vm0, %v4348_v14, %v4350_v39 }
 0x35a   : > { %4221 = vst.msk [vmem:[#allocation2 + $0xbb] sm:$0xff] %vm461_vm1, %v4143_v50  ;;  %v3893_v55 = vmax.f32 %v3857_v36, 0.0  ;;  %10152 = vmatmul.mubr.msk.f32.gmra.mrb[50].mxu0 %vm461_vm1, %v4349_v32  ;;  %v13264_v44 = vld [vmem:[#allocation2 + $0x90] sm:$0xff]  ;;  %v13266_v49 = vld [vmem:[#allocation2 + $0x98] sm:$0xff] }
 0x35b   : > { %4220 = vst.msk [vmem:[#allocation2 + $0xb3] sm:$0xff] %vm461_vm1, %v4142_v19  ;;  %v3892_v15 = vmax.f32 %v3856_v60, 0.0  ;;  %v10112_v63 = vpop.f32.mrb[24].mxu0  ;;  %10154 = vmatprep.mubr.msk.f32.mxu0 %vm461_vm1, %v4351_v0  ;;  %v4352_v61 = vrot.slane %v13264_v44, 1  ;;  %v4354_v43 = vrot.slane %v13266_v49, 1 }
 0x35c   : > { %v4145_v62 = vmul.f32 %v13102_v3, %v3893_v55  ;;  %v3859_v1 = vadd.f32 %v10112_v63, %v13129_v52  ;;  %v3732_v14 = vpop.f32.mrb[25].mxu0 }
 0x35d   : > { %v4144_v50 = vmul.f32 %v13100_v24, %v3892_v15  ;;  %v3858_v36 = vadd.f32 %v13129_v52, %v3732_v14  ;;  %v4353_v4 = vsel %vm387_vm0, %v4350_v39, %v4352_v61  ;;  %v4355_v19 = vsel %vm387_vm0, %v4352_v61, %v4354_v43 }
 0x35e   : > { %4223 = vst.msk [vmem:[#allocation2 + $0xcb] sm:$0xff] %vm461_vm1, %v4145_v62  ;;  %v3895_v60 = vmax.f32 %v3859_v1, 0.0  ;;  %10155 = vmatmul.mubr.msk.f32.gmra.mrb[52].mxu0 %vm461_vm1, %v4353_v4  ;;  %10157 = vmatprep.mubr.msk.f32.mxu1 %vm461_vm1, %v4355_v19  ;;  %v13281_v32 = vld [vmem:[#allocation2 + $0xa0] sm:$0xff]  ;;  %v13283_v3 = vld [vmem:[#allocation2 + $0xa8] sm:$0xff] }
 0x35f   : > { %4222 = vst.msk [vmem:[#allocation2 + $0xc3] sm:$0xff] %vm461_vm1, %v4144_v50  ;;  %v3894_v24 = vmax.f32 %v3858_v36, 0.0  ;;  %v10115_v0 = vpop.f32.mrb[26].mxu0  ;;  %v4356_v55 = vrot.slane %v13281_v32, 1  ;;  %v4358_v39 = vrot.slane %v13283_v3, 1  ;;  %v13297_v50 = vld [vmem:[%s14761_s3 + $0x10] sm:$0xff] }
 0x360   : > { %v4147_v15 = vmul.f32 %v13106_v30, %v3895_v60  ;;  %v3861_v63 = vadd.f32 %v10115_v0, %v13129_v52  ;;  %v3742_v61 = vpop.f32.mrb[27].mxu0 }
 0x361   : > { %v4146_v62 = vmul.f32 %v13104_v18, %v3894_v24  ;;  %v3860_v1 = vadd.f32 %v13129_v52, %v3742_v61  ;;  %v4357_v14 = vsel %vm387_vm0, %v4354_v43, %v4356_v55  ;;  %v4359_v4 = vsel %vm387_vm0, %v4356_v55, %v4358_v39 }
 0x362   : > { %4225 = vst.msk [vmem:[#allocation2 + $0xdb] sm:$0xff] %vm461_vm1, %v4147_v15  ;;  %v3897_v36 = vmax.f32 %v3861_v63, 0.0  ;;  %10158 = vmatmul.mubr.msk.f32.vlgmr.msra.gmra.mrb[0].mxu1 %vm461_vm1, %v4357_v14  ;;  %v13301_v30 = vld [vmem:[#allocation2 + $0xb0] sm:$0xff]  ;;  %v13303_v19 = vld [vmem:[#allocation2 + $0xb8] sm:$0xff] }
 0x363   : > { %4224 = vst.msk [vmem:[#allocation2 + $0xd3] sm:$0xff] %vm461_vm1, %v4146_v62  ;;  %v3896_v18 = vmax.f32 %v3860_v1, 0.0  ;;  %10185 = vmatpush3.msra.mxu1 %v13087_v2  ;;  %v10118_v43 = vpop.f32.mrb[28].mxu0  ;;  %10160 = vmatprep.mubr.msk.f32.mxu1 %vm461_vm1, %v4359_v4  ;;  %v4360_v60 = vrot.slane %v13301_v30, 1  ;;  %v4362_v24 = vrot.slane %v13303_v19, 1 }
 0x364   : > { %v4149_v0 = vmul.f32 %v13110_v7, %v3897_v36  ;;  %v3863_v55 = vadd.f32 %v10118_v43, %v13129_v52  ;;  %v3752_v15 = vpop.f32.mrb[29].mxu0  ;;  %10240 = vmatprep.subr.mxu1 %v13297_v50 }
 0x365   : > { %v4148_v63 = vmul.f32 %v13108_v53, %v3896_v18  ;;  %v3862_v61 = vadd.f32 %v13129_v52, %v3752_v15  ;;  %v4361_v2 = vsel %vm387_vm0, %v4358_v39, %v4360_v60  ;;  %v4363_v62 = vsel %vm387_vm0, %v4360_v60, %v4362_v24 }
 0x366   : > { %4227 = vst.msk [vmem:[#allocation2 + $0xeb] sm:$0xff] %vm461_vm1, %v4149_v0  ;;  %v3899_v1 = vmax.f32 %v3863_v55, 0.0  ;;  %10161 = vmatmul.mubr.msk.f32.gmra.mrb[2].mxu1 %vm461_vm1, %v4361_v2  ;;  %v13319_v14 = vld [vmem:[#allocation2 + $0xc0] sm:$0xff]  ;;  %v13321_v7 = vld [vmem:[#allocation2 + $0xc8] sm:$0xff] }
 0x367   : > { %14918 = vst [vmem:[#allocation39_spill] sm:$0xff] %v13321_v7  ;;  %4226 = vst.msk [vmem:[#allocation2 + $0xe3] sm:$0xff] %vm461_vm1, %v4148_v63  ;;  %v3898_v4 = vmax.f32 %v3862_v61, 0.0  ;;  %v10121_v36 = vpop.f32.mrb[30].mxu0  ;;  %10163 = vmatprep.mubr.msk.f32.mxu1 %vm461_vm1, %v4363_v62  ;;  %v4364_v53 = vrot.slane %v13319_v14, 1  ;;  %v4366_v39 = vrot.slane %v13321_v7, 1 }
 0x368   : > { %v4151_v18 = vmul.f32 %v13114_v16, %v3899_v1  ;;  %v3865_v43 = vadd.f32 %v10121_v36, %v13129_v52  ;;  %v3762_v60 = vpop.f32.mrb[31].mxu0 }
 0x369   : > { %v4150_v0 = vmul.f32 %v13112_v33, %v3898_v4  ;;  %v3864_v55 = vadd.f32 %v13129_v52, %v3762_v60  ;;  %v4365_v15 = vsel %vm387_vm0, %v4362_v24, %v4364_v53  ;;  %v4367_v63 = vsel %vm387_vm0, %v4364_v53, %v4366_v39 }
 0x36a   : > { %4229 = vst.msk [vmem:[#allocation2 + $0xfb] sm:$0xff] %vm461_vm1, %v4151_v18  ;;  %v3901_v61 = vmax.f32 %v3865_v43, 0.0  ;;  %10164 = vmatmul.mubr.msk.f32.gmra.mrb[4].mxu1 %vm461_vm1, %v4365_v15  ;;  %v13335_v2 = vld [vmem:[#allocation2 + $0xd0] sm:$0xff]  ;;  %v13337_v62 = vld [vmem:[#allocation2 + $0xd8] sm:$0xff] }
 0x36b   : > { %14919 = vst [vmem:[#allocation40_spill] sm:$0xff] %v13335_v2  ;;  %14920 = vst [vmem:[#allocation41_spill] sm:$0xff] %v13337_v62  ;;  %v3900_v16 = vmax.f32 %v3864_v55, 0.0  ;;  %v10124_v1 = vpop.f32.mrb[32].mxu0  ;;  %10166 = vmatprep.mubr.msk.f32.mxu1 %vm461_vm1, %v4367_v63  ;;  %v4368_v33 = vrot.slane %v13335_v2, 1  ;;  %v4370_v24 = vrot.slane %v13337_v62, 1 }
 0x36c   : > { %4228 = vst.msk [vmem:[#allocation2 + $0xf3] sm:$0xff] %vm461_vm1, %v4150_v0  ;;  %v4153_v4 = vmul.f32 %v13118_v59, %v3901_v61  ;;  %v3867_v36 = vadd.f32 %v10124_v1, %v13129_v52  ;;  %v3772_v53 = vpop.f32.mrb[33].mxu0 }
 0x36d   : > { %v4152_v18 = vmul.f32 %v13116_v8, %v3900_v16  ;;  %v3866_v43 = vadd.f32 %v13129_v52, %v3772_v53  ;;  %v4369_v60 = vsel %vm387_vm0, %v4366_v39, %v4368_v33  ;;  %v4371_v0 = vsel %vm387_vm0, %v4368_v33, %v4370_v24 }
 0x36e   : > { %4231 = vst.msk [vmem:[#allocation2 + $0x10b] sm:$0xff] %vm461_vm1, %v4153_v4  ;;  %v3903_v55 = vmax.f32 %v3867_v36, 0.0  ;;  %10167 = vmatmul.mubr.msk.f32.gmra.mrb[6].mxu1 %vm461_vm1, %v4369_v60  ;;  %v13351_v15 = vld [vmem:[#allocation2 + $0xe0] sm:$0xff]  ;;  %v13353_v63 = vld [vmem:[#allocation2 + $0xe8] sm:$0xff] }
 0x36f   : > { %14921 = vst [vmem:[#allocation42_spill] sm:$0xff] %v13351_v15  ;;  %14922 = vst [vmem:[#allocation43_spill] sm:$0xff] %v13353_v63  ;;  %v3902_v59 = vmax.f32 %v3866_v43, 0.0  ;;  %v10127_v61 = vpop.f32.mrb[34].mxu0  ;;  %10169 = vmatprep.mubr.msk.f32.mxu1 %vm461_vm1, %v4371_v0  ;;  %v4372_v8 = vrot.slane %v13351_v15, 1  ;;  %v4374_v39 = vrot.slane %v13353_v63, 1 }
 0x370   : > { %4230 = vst.msk [vmem:[#allocation2 + $0x103] sm:$0xff] %vm461_vm1, %v4152_v18  ;;  %v4155_v16 = vmul.f32 %v13122_v54, %v3903_v55  ;;  %v3869_v1 = vadd.f32 %v10127_v61, %v13129_v52  ;;  %v3782_v33 = vpop.f32.mrb[35].mxu0  ;;  %v4120_v54 = vpop.permute.xlu1 %4119 }
 0x371   : > { %v4154_v4 = vmul.f32 %v13120_v42, %v3902_v59  ;;  %v3868_v36 = vadd.f32 %v13129_v52, %v3782_v33  ;;  %v4373_v53 = vsel %vm387_vm0, %v4370_v24, %v4372_v8  ;;  %v4375_v18 = vsel %vm387_vm0, %v4372_v8, %v4374_v39 }
 0x372   : > { %4233 = vst.msk [vmem:[#allocation2 + $0x11b] sm:$0xff] %vm461_vm1, %v4155_v16  ;;  %v3905_v43 = vmax.f32 %v3869_v1, 0.0  ;;  %10170 = vmatmul.mubr.msk.f32.gmra.mrb[8].mxu1 %vm461_vm1, %v4373_v53 }
 0x373   : > { %v13367_v60 = vld [vmem:[#allocation2 + $0xf0] sm:$0xff]  ;;  %v13369_v0 = vld [vmem:[#allocation2 + $0xf8] sm:$0xff]  ;;  %4232 = vst.msk [vmem:[#allocation2 + $0x113] sm:$0xff] %vm461_vm1, %v4154_v4  ;;  %v3904_v55 = vmax.f32 %v3868_v36, 0.0  ;;  %10172 = vmatprep.mubr.msk.f32.mxu1 %vm461_vm1, %v4375_v18 }
 0x374   : > { %14923 = vst [vmem:[#allocation44_spill] sm:$0xff] %v13367_v60  ;;  %14924 = vst [vmem:[#allocation45_spill] sm:$0xff] %v13369_v0  ;;  %v4376_v42 = vrot.slane %v13367_v60, 1  ;;  %v4378_v52 = vrot.slane %v13369_v0, 1  ;;  %v4157_v24 = vmul.f32 %v4120_v54, %v3905_v43 }
 0x375   : > { %v4156_v59 = vmul.f32 %v13124_v25, %v3904_v55 }
 0x376   : > { %v4377_v61 = vsel %vm387_vm0, %v4374_v39, %v4376_v42  ;;  %v4379_v8 = vsel %vm387_vm0, %v4376_v42, %v4378_v52  ;;  %4235 = vst.msk [vmem:[#allocation2 + $0x12b] sm:$0xff] %vm461_vm1, %v4157_v24 }
 0x377   : > { %10173 = vmatmul.mubr.msk.f32.gmra.mrb[10].mxu1 %vm461_vm1, %v4377_v61  ;;  %v13380_v16 = vld [vmem:[#allocation2 + $0x100] sm:$0xff]  ;;  %v13382_v1 = vld [vmem:[#allocation2 + $0x108] sm:$0xff]  ;;  %4234 = vst.msk [vmem:[#allocation2 + $0x123] sm:$0xff] %vm461_vm1, %v4156_v59 }
 0x378   : > { %14925 = vst [vmem:[#allocation46_spill] sm:$0xff] %v13380_v16  ;;  %14926 = vst [vmem:[#allocation47_spill] sm:$0xff] %v13382_v1  ;;  %10175 = vmatprep.mubr.msk.f32.mxu1 %vm461_vm1, %v4379_v8  ;;  %v4380_v33 = vrot.slane %v13380_v16, 1  ;;  %v4382_v25 = vrot.slane %v13382_v1, 1 }
 0x37a   : > { %v4381_v39 = vsel %vm387_vm0, %v4378_v52, %v4380_v33  ;;  %v4383_v4 = vsel %vm387_vm0, %v4380_v33, %v4382_v25  ;;  %v13391_v36 = vld [vmem:[#allocation2 + $0x110] sm:$0xff]  ;;  %v13393_v53 = vld [vmem:[#allocation2 + $0x118] sm:$0xff] }
 0x37b   : > { %10176 = vmatmul.mubr.msk.f32.gmra.mrb[12].mxu1 %vm461_vm1, %v4381_v39  ;;  %14927 = vst [vmem:[#allocation48_spill] sm:$0xff] %v13391_v36  ;;  %14928 = vst [vmem:[#allocation49_spill] sm:$0xff] %v13393_v53  ;;  %v4384_v18 = vrot.slane %v13391_v36, 1  ;;  %v4386_v43 = vrot.slane %v13393_v53, 1 }
 0x37c   : > { %10178 = vmatprep.mubr.msk.f32.mxu1 %vm461_vm1, %v4383_v4 }
 0x37d   : > { %v4385_v54 = vsel %vm387_vm0, %v4382_v25, %v4384_v18  ;;  %v4387_v55 = vsel %vm387_vm0, %v4384_v18, %v4386_v43  ;;  %v13411_v61 = vld [vmem:[#allocation2 + $0x130] sm:$0xff]  ;;  %v13418_v25 = vld [vmem:[%s14761_s3 + $0x18] sm:$0xff] }
 0x37e   : > { %v13401_v42 = vld [vmem:[#allocation2 + $0x120] sm:$0xff]  ;;  %v13406_v59 = vld [vmem:[#allocation2 + $0x128] sm:$0xff]  ;;  %v5818_v4 = vrot.slane %v13411_v61, 3 }
 0x37f   : > { %10179 = vmatmul.mubr.msk.f32.gmra.mrb[14].mxu1 %vm461_vm1, %v4385_v54  ;;  %v4388_v52 = vrot.slane %v13401_v42, 1  ;;  %v14815_v8 = vrot.slane %v13401_v42, 3  ;;  %v5816_v33 = vrot.slane %v13406_v59, 3  ;;  %v14813_v54 = vrot.slane %v13411_v61, 4 }
 0x380   : > { %10181 = vmatprep.mubr.msk.f32.mxu1 %vm461_vm1, %v4387_v55 }
 0x381   : > { %v4389_v24 = vsel %vm387_vm0, %v4386_v43, %v4388_v52  ;;  %v13425_v39 = vsel %vm1820_vm3, %v14815_v8, %v5816_v33  ;;  %v13433_v18 = vsel %vm1820_vm3, %v5816_v33, %v5818_v4  ;;  %v6244_v43 = vrot.slane %v13406_v59, 4 }
 0x382   : > { %14929 = vst [vmem:[#allocation50_spill] sm:$0xff] %v13425_v39  ;;  %14930 = vst [vmem:[#allocation51_spill] sm:$0xff] %v13433_v18  ;;  %v14818_v33 = vrot.slane %v13401_v42, 5  ;;  %v6961_v4 = vrot.slane %v13406_v59, 5  ;;  %v5079_v18 = vrot.slane %v13337_v62, 2  ;;  %v5081_v39 = vrot.slane %v13351_v15, 2 }
 0x383   : > { %10182 = vmatmul.mubr.msk.f32.gmra.mrb[16].mxu1 %vm461_vm1, %v4389_v24  ;;  %v13464_v52 = vsel %vm2249_vm4, %v6244_v43, %v14813_v54  ;;  %v13480_v24 = vld [vmem:[#allocation2 + $0x138] sm:$0xff] }
 0x384   : > { %10186 = vmatprep.mubr.msk.f32.mxu1 %vm461_vm1, %v13067_v26  ;;  %14932 = vst [vmem:[#allocation53_spill] sm:$0xff] %v13464_v52  ;;  %14933 = vst [vmem:[#allocation54_spill] sm:$0xff] %v13480_v24  ;;  %v13492_v54 = vsel %vm2971_vm5, %v14818_v33, %v6961_v4  ;;  %v14823_v33 = vrot.slane %v13480_v24, 6  ;;  %v5075_v52 = vrot.slane %v13321_v7, 2 }
 0x385   : > { %14934 = vst [vmem:[#allocation55_spill] sm:$0xff] %v13492_v54  ;;  %v5071_v54 = vrot.slane %v13303_v19, 2 }
 0x387   : > { %10187 = vmatmul.mubr.msk.f32.vlgmr.msra.gmra.mrb[18].mxu1 %vm461_vm1, %v13069_v10 }
 0x388   : > { %10241 = vmatpush3.msra.mxu1 %v13297_v50  ;;  %10189 = vmatprep.mubr.msk.f32.mxu1 %vm461_vm1, %v13144_v31  ;;  %v14814_v50 = vrot.slane %v13401_v42, 4 }
 0x389   : > { %10296 = vmatprep.subr.mxu1 %v13418_v25 }
 0x38a   : > { %v13459_v55 = vsel %vm2249_vm4, %v14814_v50, %v6244_v43  ;;  %v6963_v43 = vrot.slane %v13411_v61, 5  ;;  %v14817_v50 = vrot.slane %v13480_v24, 5  ;;  %v5073_v24 = vrot.slane %v13319_v14, 2 }
 0x38b   : > { %10190 = vmatmul.mubr.msk.f32.gmra.mrb[20].mxu1 %vm461_vm1, %v13146_v40  ;;  %14931 = vst [vmem:[#allocation52_spill] sm:$0xff] %v13459_v55  ;;  %v13573_v40 = vsel %vm1098_vm2, %v5031_v13, %v5033_v56  ;;  %v5077_v55 = vrot.slane %v13335_v2, 2 }
 0x38c   : > { %10192 = vmatprep.mubr.msk.f32.mxu1 %vm461_vm1, %v13159_v11  ;;  %v13496_v8 = vsel %vm2971_vm5, %v6961_v4, %v6963_v43  ;;  %v13501_v6 = vsel %vm2971_vm5, %v6963_v43, %v14817_v50  ;;  %v14822_v4 = vrot.slane %v13401_v42, 6  ;;  %v7389_v43 = vrot.slane %v13406_v59, 6 }
 0x38d   : > { %14935 = vst [vmem:[#allocation56_spill] sm:$0xff] %v13496_v8  ;;  %14936 = vst [vmem:[#allocation57_spill] sm:$0xff] %v13501_v6  ;;  %v7391_v50 = vrot.slane %v13411_v61, 6  ;;  %v5037_v11 = vrot.slane %v13173_v22, 2  ;;  %v5067_v6 = vrot.slane %v13283_v3, 2  ;;  %v5069_v8 = vrot.slane %v13301_v30, 2 }
 0x38e   : > { %v13526_v20 = vsel %vm3400_vm6, %v14822_v4, %v7389_v43  ;;  %v5026_v4 = vrot.slane %v13067_v26, 2 }
 0x38f   : > { %10193 = vmatmul.mubr.msk.f32.gmra.mrb[22].mxu1 %vm461_vm1, %v13161_v48  ;;  %14937 = vst [vmem:[#allocation58_spill] sm:$0xff] %v13526_v20  ;;  %v13531_v58 = vsel %vm3400_vm6, %v7389_v43, %v7391_v50  ;;  %v13536_v29 = vsel %vm3400_vm6, %v7391_v50, %v14823_v33  ;;  %v5027_v43 = vrot.slane %v13069_v10, 2  ;;  %v5029_v33 = vrot.slane %v13144_v31, 2  ;;  %v13561_v10 = vld [vmem:[%s14761_s3 + $0x20] sm:$0xff] }
 0x390   : > { %10195 = vmatprep.mubr.msk.f32.mxu1 %vm461_vm1, %v13173_v22  ;;  %14938 = vst [vmem:[#allocation59_spill] sm:$0xff] %v13531_v58  ;;  %14939 = vst [vmem:[#allocation60_spill] sm:$0xff] %v13536_v29  ;;  %v5061_v29 = vrot.slane %v13264_v44, 2  ;;  %v5063_v58 = vrot.slane %v13266_v49, 2  ;;  %v5065_v20 = vrot.slane %v13281_v32, 2 }
 0x391   : > { %v5028_v50 = vsel %vm1098_vm2, %v5026_v4, %v5027_v43  ;;  %v5030_v26 = vsel %vm1098_vm2, %v5027_v43, %v5029_v33  ;;  %v13565_v31 = vsel %vm1098_vm2, %v5029_v33, %v5031_v13  ;;  %v5035_v4 = vrot.slane %v13161_v48, 2 }
 0x392   : > { %v5039_v48 = vrot.slane %v13175_v46, 2  ;;  %v5041_v43 = vrot.slane %v13187_v38, 2 }
 0x393   : > { %10196 = vmatmul.mubr.msk.f32.gmra.mrb[24].mxu1 %vm461_vm1, %v13175_v46  ;;  %v13579_v33 = vsel %vm1098_vm2, %v5033_v56, %v5035_v4 }
 0x394   : > { %10198 = vmatprep.mubr.msk.f32.mxu1 %vm461_vm1, %v13187_v38  ;;  %v13591_v13 = vsel %vm1098_vm2, %v5037_v11, %v5039_v48  ;;  %v13597_v56 = vsel %vm1098_vm2, %v5039_v48, %v5041_v43 }
 0x397   : > { %10199 = vmatmul.mubr.msk.f32.gmra.mrb[26].mxu1 %vm461_vm1, %v13189_v34 }
 0x398   : > { %10201 = vmatprep.mubr.msk.f32.mxu1 %vm461_vm1, %v13201_v9 }
 0x39b   : > { %10202 = vmatmul.mubr.msk.f32.gmra.mrb[28].mxu1 %vm461_vm1, %v13203_v5 }
 0x39c   : > { %10204 = vmatprep.mubr.msk.f32.mxu1 %vm461_vm1, %v13216_v23 }
 0x39f   : > { %10205 = vmatmul.mubr.msk.f32.gmra.mrb[30].mxu1 %vm461_vm1, %v13218_v27 }
 0x3a0   : > { %10207 = vmatprep.mubr.msk.f32.mxu1 %vm461_vm1, %v13232_v41 }
 0x3a3   : > { %10208 = vmatmul.mubr.msk.f32.gmra.mrb[32].mxu1 %vm461_vm1, %v13234_v37 }
 0x3a4   : > { %10210 = vmatprep.mubr.msk.f32.mxu1 %vm461_vm1, %v13248_v51 }
 0x3a7   : > { %10211 = vmatmul.mubr.msk.f32.gmra.mrb[34].mxu1 %vm461_vm1, %v13250_v17 }
 0x3a8   : > { %10213 = vmatprep.mubr.msk.f32.mxu1 %vm461_vm1, %v13264_v44 }
 0x3ab   : > { %10214 = vmatmul.mubr.msk.f32.gmra.mrb[0].mxu1 %vm461_vm1, %v13266_v49 }
 0x3ac   : > { %10216 = vmatprep.mubr.msk.f32.mxu1 %vm461_vm1, %v13281_v32 }
 0x3af   : > { %10217 = vmatmul.mubr.msk.f32.gmra.mrb[2].mxu1 %vm461_vm1, %v13283_v3 }
 0x3b0   : > { %10219 = vmatprep.mubr.msk.f32.mxu1 %vm461_vm1, %v13301_v30 }
 0x3b3   : > { %10220 = vmatmul.mubr.msk.f32.gmra.mrb[4].mxu1 %vm461_vm1, %v13303_v19 }
 0x3b4   : > { %10222 = vmatprep.mubr.msk.f32.mxu1 %vm461_vm1, %v13319_v14 }
 0x3b7   : > { %10223 = vmatmul.mubr.msk.f32.gmra.mrb[6].mxu1 %vm461_vm1, %v13321_v7 }
 0x3b8   : > { %10225 = vmatprep.mubr.msk.f32.mxu1 %vm461_vm1, %v13335_v2  ;;  %v5083_v2 = vrot.slane %v13353_v63, 2 }
 0x3bb   : > { %10226 = vmatmul.mubr.msk.f32.gmra.mrb[8].mxu1 %vm461_vm1, %v13337_v62  ;;  %v5085_v62 = vrot.slane %v13367_v60, 2 }
 0x3bc   : > { %10228 = vmatprep.mubr.msk.f32.mxu1 %vm461_vm1, %v13351_v15  ;;  %v5087_v15 = vrot.slane %v13369_v0, 2 }
 0x3bf   : > { %10229 = vmatmul.mubr.msk.f32.gmra.mrb[10].mxu1 %vm461_vm1, %v13353_v63  ;;  %v5089_v63 = vrot.slane %v13380_v16, 2 }
 0x3c0   : > { %10231 = vmatprep.mubr.msk.f32.mxu1 %vm461_vm1, %v13367_v60  ;;  %v5091_v60 = vrot.slane %v13382_v1, 2 }
 0x3c3   : > { %10232 = vmatmul.mubr.msk.f32.gmra.mrb[12].mxu1 %vm461_vm1, %v13369_v0  ;;  %v5093_v0 = vrot.slane %v13391_v36, 2 }
 0x3c4   : > { %10234 = vmatprep.mubr.msk.f32.mxu1 %vm461_vm1, %v13380_v16  ;;  %v5095_v16 = vrot.slane %v13393_v53, 2 }
 0x3c7   : > { %10235 = vmatmul.mubr.msk.f32.gmra.mrb[14].mxu1 %vm461_vm1, %v13382_v1  ;;  %v14859_v1 = vrot.slane %v13401_v42, 2 }
 0x3c8   : > { %10237 = vmatprep.mubr.msk.f32.mxu1 %vm461_vm1, %v13391_v36 }
 0x3cb   : > { %10238 = vmatmul.mubr.msk.f32.gmra.mrb[16].mxu1 %vm461_vm1, %v13393_v53 }
 0x3cc   : > { %10242 = vmatprep.mubr.msk.f32.mxu1 %vm461_vm1, %v5028_v50  ;;  %v5043_v50 = vrot.slane %v13189_v34, 2 }
 0x3cf   : > { %10243 = vmatmul.mubr.msk.f32.vlgmr.msra.gmra.mrb[18].mxu1 %vm461_vm1, %v5030_v26  ;;  %v5045_v26 = vrot.slane %v13201_v9, 2 }
 0x3d0   : > { %10297 = vmatpush3.msra.mxu1 %v13418_v25  ;;  %10245 = vmatprep.mubr.msk.f32.mxu1 %vm461_vm1, %v13565_v31  ;;  %v13585_v25 = vsel %vm1098_vm2, %v5035_v4, %v5037_v11  ;;  %v13603_v4 = vsel %vm1098_vm2, %v5041_v43, %v5043_v50  ;;  %v13621_v43 = vsel %vm1098_vm2, %v5047_v35, %v5049_v28 }
 0x3d1   : > { %10352 = vmatprep.subr.mxu1 %v13561_v10  ;;  %v13609_v11 = vsel %vm1098_vm2, %v5043_v50, %v5045_v26  ;;  %v13615_v48 = vsel %vm1098_vm2, %v5045_v26, %v5047_v35  ;;  %v13627_v50 = vsel %vm1098_vm2, %v5049_v28, %v5051_v21  ;;  %v13633_v26 = vsel %vm1098_vm2, %v5051_v21, %v5053_v12 }
 0x3d2   : > { %v13639_v35 = vsel %vm1098_vm2, %v5053_v12, %v5055_v57  ;;  %v13645_v28 = vsel %vm1098_vm2, %v5055_v57, %v5057_v47  ;;  %v13651_v21 = vsel %vm1098_vm2, %v5057_v47, %v5059_v45  ;;  %v13657_v12 = vsel %vm1098_vm2, %v5059_v45, %v5061_v29 }
 0x3d3   : > { %10246 = vmatmul.mubr.msk.f32.gmra.mrb[20].mxu1 %vm461_vm1, %v13573_v40  ;;  %v13663_v57 = vsel %vm1098_vm2, %v5061_v29, %v5063_v58  ;;  %v13669_v47 = vsel %vm1098_vm2, %v5063_v58, %v5065_v20  ;;  %v13675_v45 = vsel %vm1098_vm2, %v5065_v20, %v5067_v6  ;;  %v13681_v29 = vsel %vm1098_vm2, %v5067_v6, %v5069_v8 }
 0x3d4   : > { %10248 = vmatprep.mubr.msk.f32.mxu1 %vm461_vm1, %v13579_v33  ;;  %v13687_v58 = vsel %vm1098_vm2, %v5069_v8, %v5071_v54  ;;  %v13693_v20 = vsel %vm1098_vm2, %v5071_v54, %v5073_v24  ;;  %v13699_v6 = vsel %vm1098_vm2, %v5073_v24, %v5075_v52  ;;  %v13705_v8 = vsel %vm1098_vm2, %v5075_v52, %v5077_v55 }
 0x3d5   : > { %v13711_v54 = vsel %vm1098_vm2, %v5077_v55, %v5079_v18  ;;  %v13717_v24 = vsel %vm1098_vm2, %v5079_v18, %v5081_v39  ;;  %v13723_v52 = vsel %vm1098_vm2, %v5081_v39, %v5083_v2  ;;  %v13729_v55 = vsel %vm1098_vm2, %v5083_v2, %v5085_v62 }
 0x3d6   : > { %v13735_v18 = vsel %vm1098_vm2, %v5085_v62, %v5087_v15  ;;  %v13741_v39 = vsel %vm1098_vm2, %v5087_v15, %v5089_v63  ;;  %v5092_v2 = vsel %vm1098_vm2, %v5089_v63, %v5091_v60  ;;  %v5094_v62 = vsel %vm1098_vm2, %v5091_v60, %v5093_v0 }
 0x3d7   : > { %10249 = vmatmul.mubr.msk.f32.gmra.mrb[22].mxu1 %vm461_vm1, %v13585_v25  ;;  %v5096_v15 = vsel %vm1098_vm2, %v5093_v0, %v5095_v16  ;;  %v5098_v63 = vsel %vm1098_vm2, %v5095_v16, %v14859_v1  ;;  %v13769_v0 = vld [vmem:[%s14761_s3 + $0x28] sm:$0xff] }
 0x3d8   : > { %10251 = vmatprep.mubr.msk.f32.mxu1 %vm461_vm1, %v13591_v13 }
 0x3db   : > { %10252 = vmatmul.mubr.msk.f32.gmra.mrb[24].mxu1 %vm461_vm1, %v13597_v56 }
 0x3dc   : > { %10254 = vmatprep.mubr.msk.f32.mxu1 %vm461_vm1, %v13603_v4 }
 0x3df   : > { %10255 = vmatmul.mubr.msk.f32.gmra.mrb[26].mxu1 %vm461_vm1, %v13609_v11 }
 0x3e0   : > { %10257 = vmatprep.mubr.msk.f32.mxu1 %vm461_vm1, %v13615_v48 }
 0x3e3   : > { %10258 = vmatmul.mubr.msk.f32.gmra.mrb[28].mxu1 %vm461_vm1, %v13621_v43 }
 0x3e4   : > { %10260 = vmatprep.mubr.msk.f32.mxu1 %vm461_vm1, %v13627_v50 }
 0x3e7   : > { %10261 = vmatmul.mubr.msk.f32.gmra.mrb[30].mxu1 %vm461_vm1, %v13633_v26 }
 0x3e8   : > { %10263 = vmatprep.mubr.msk.f32.mxu1 %vm461_vm1, %v13639_v35 }
 0x3eb   : > { %10264 = vmatmul.mubr.msk.f32.gmra.mrb[32].mxu1 %vm461_vm1, %v13645_v28 }
 0x3ec   : > { %10266 = vmatprep.mubr.msk.f32.mxu1 %vm461_vm1, %v13651_v21 }
 0x3ef   : > { %10267 = vmatmul.mubr.msk.f32.gmra.mrb[34].mxu1 %vm461_vm1, %v13657_v12 }
 0x3f0   : > { %10269 = vmatprep.mubr.msk.f32.mxu1 %vm461_vm1, %v13663_v57 }
 0x3f3   : > { %10270 = vmatmul.mubr.msk.f32.gmra.mrb[0].mxu1 %vm461_vm1, %v13669_v47 }
 0x3f4   : > { %10272 = vmatprep.mubr.msk.f32.mxu1 %vm461_vm1, %v13675_v45 }
 0x3f7   : > { %10273 = vmatmul.mubr.msk.f32.gmra.mrb[2].mxu1 %vm461_vm1, %v13681_v29 }
 0x3f8   : > { %10275 = vmatprep.mubr.msk.f32.mxu1 %vm461_vm1, %v13687_v58 }
 0x3fb   : > { %10276 = vmatmul.mubr.msk.f32.gmra.mrb[4].mxu1 %vm461_vm1, %v13693_v20 }
 0x3fc   : > { %10278 = vmatprep.mubr.msk.f32.mxu1 %vm461_vm1, %v13699_v6 }
 0x3ff   : > { %10279 = vmatmul.mubr.msk.f32.gmra.mrb[6].mxu1 %vm461_vm1, %v13705_v8 }
 0x400   : > { %10281 = vmatprep.mubr.msk.f32.mxu1 %vm461_vm1, %v13711_v54 }
 0x403   : > { %10282 = vmatmul.mubr.msk.f32.gmra.mrb[8].mxu1 %vm461_vm1, %v13717_v24 }
 0x404   : > { %10284 = vmatprep.mubr.msk.f32.mxu1 %vm461_vm1, %v13723_v52 }
 0x407   : > { %10285 = vmatmul.mubr.msk.f32.gmra.mrb[10].mxu1 %vm461_vm1, %v13729_v55 }
 0x408   : > { %10287 = vmatprep.mubr.msk.f32.mxu1 %vm461_vm1, %v13735_v18 }
 0x40b   : > { %10288 = vmatmul.mubr.msk.f32.gmra.mrb[12].mxu1 %vm461_vm1, %v13741_v39 }
 0x40c   : > { %10290 = vmatprep.mubr.msk.f32.mxu1 %vm461_vm1, %v5092_v2 }
 0x40f   : > { %10291 = vmatmul.mubr.msk.f32.gmra.mrb[14].mxu1 %vm461_vm1, %v5094_v62 }
 0x410   : > { %10293 = vmatprep.mubr.msk.f32.mxu1 %vm461_vm1, %v5096_v15 }
 0x411   : > { %v13754_v36 = vpop.f32.mrb[36].mxu0 }
 0x412   : > { %v13759_v7 = vpop.f32.mrb[37].mxu0 }
 0x413   : > { %14940 = vst [vmem:[#allocation61_spill] sm:$0xff] %v13759_v7  ;;  %10294 = vmatmul.mubr.msk.f32.gmra.mrb[16].mxu1 %vm461_vm1, %v5098_v63 }
 0x414   : > { %10298 = vmatprep.mubr.msk.f32.mxu1 %vm461_vm1, %v13565_v31 }
 0x415   : > { %v13764_v60 = vpop.f32.mrb[38].mxu0 }
 0x416   : > { %v13771_v53 = vpop.f32.mrb[39].mxu0 }
 0x417   : > { %14941 = vst [vmem:[#allocation62_spill] sm:$0xff] %v13771_v53  ;;  %10299 = vmatmul.mubr.msk.f32.vlgmr.msra.gmra.mrb[18].mxu1 %vm461_vm1, %v13573_v40 }
 0x418   : > { %10353 = vmatpush3.msra.mxu1 %v13561_v10  ;;  %10301 = vmatprep.mubr.msk.f32.mxu1 %vm461_vm1, %v13579_v33 }
 0x419   : > { %10408 = vmatprep.subr.mxu1 %v13769_v0  ;;  %v13779_v16 = vpop.f32.mrb[40].mxu0 }
 0x41a   : > { %14942 = vst [vmem:[#allocation63_spill] sm:$0xff] %v13779_v16  ;;  %v13781_v31 = vpop.f32.mrb[41].mxu0 }
 0x41b   : > { %14943 = vst [vmem:[#allocation64_spill] sm:$0xff] %v13781_v31  ;;  %10302 = vmatmul.mubr.msk.f32.gmra.mrb[20].mxu1 %vm461_vm1, %v13585_v25 }
 0x41c   : > { %10304 = vmatprep.mubr.msk.f32.mxu1 %vm461_vm1, %v13591_v13 }
 0x41d   : > { %v13787_v1 = vpop.f32.mrb[42].mxu0 }
 0x41e   : > { %14944 = vst [vmem:[#allocation65_spill] sm:$0xff] %v13787_v1  ;;  %v13789_v40 = vpop.f32.mrb[43].mxu0  ;;  %v6218_v1 = vrot.slane %v13319_v14, 4 }
 0x41f   : > { %14945 = vst [vmem:[#allocation66_spill] sm:$0xff] %v13789_v40  ;;  %10305 = vmatmul.mubr.msk.f32.gmra.mrb[22].mxu1 %vm461_vm1, %v13597_v56 }
 0x420   : > { %10307 = vmatprep.mubr.msk.f32.mxu1 %vm461_vm1, %v13603_v4 }
 0x421   : > { %v13795_v10 = vpop.f32.mrb[44].mxu0 }
 0x422   : > { %14946 = vst [vmem:[#allocation67_spill] sm:$0xff] %v13795_v10  ;;  %v13797_v33 = vpop.f32.mrb[45].mxu0  ;;  %v14146_v10 = vld [vmem:[#allocation2 + $0xb8] sm:$0xff] }
 0x423   : > { %14947 = vst [vmem:[#allocation68_spill] sm:$0xff] %v13797_v33  ;;  %10308 = vmatmul.mubr.msk.f32.gmra.mrb[24].mxu1 %vm461_vm1, %v13609_v11  ;;  %v6216_v40 = vrot.slane %v14146_v10, 4 }
 0x424   : > { %10310 = vmatprep.mubr.msk.f32.mxu1 %vm461_vm1, %v13615_v48 }
 0x425   : > { %v13803_v25 = vpop.f32.mrb[46].mxu0  ;;  %v6219_v16 = vsel %vm2249_vm4, %v6216_v40, %v6218_v1 }
 0x426   : > { %14948 = vst [vmem:[#allocation69_spill] sm:$0xff] %v13803_v25  ;;  %v13805_v13 = vpop.f32.mrb[47].mxu0  ;;  %v14138_v25 = vld [vmem:[#allocation2 + $0xb0] sm:$0xff] }
 0x427   : > { %14949 = vst [vmem:[#allocation70_spill] sm:$0xff] %v13805_v13  ;;  %10311 = vmatmul.mubr.msk.f32.gmra.mrb[26].mxu1 %vm461_vm1, %v13621_v43  ;;  %v6214_v33 = vrot.slane %v14138_v25, 4 }
 0x428   : > { %10313 = vmatprep.mubr.msk.f32.mxu1 %vm461_vm1, %v13627_v50 }
 0x429   : > { %v13811_v56 = vpop.f32.mrb[48].mxu0  ;;  %v6217_v31 = vsel %vm2249_vm4, %v6214_v33, %v6216_v40 }
 0x42a   : > { %14950 = vst [vmem:[#allocation71_spill] sm:$0xff] %v13811_v56  ;;  %v13813_v4 = vpop.f32.mrb[49].mxu0  ;;  %v14130_v56 = vld [vmem:[#allocation2 + $0xa8] sm:$0xff] }
 0x42b   : > { %14951 = vst [vmem:[#allocation72_spill] sm:$0xff] %v13813_v4  ;;  %10314 = vmatmul.mubr.msk.f32.gmra.mrb[28].mxu1 %vm461_vm1, %v13633_v26  ;;  %v5456_v26 = vrot.slane %v13406_v59, 2  ;;  %v6212_v13 = vrot.slane %v14130_v56, 4 }
 0x42c   : > { %10316 = vmatprep.mubr.msk.f32.mxu1 %vm461_vm1, %v13639_v35  ;;  %v5458_v35 = vrot.slane %v13411_v61, 2 }
 0x42d   : > { %v13819_v11 = vpop.f32.mrb[50].mxu0 }
 0x42e   : > { %14952 = vst [vmem:[#allocation73_spill] sm:$0xff] %v13819_v11  ;;  %v13821_v48 = vpop.f32.mrb[51].mxu0  ;;  %v5459_v59 = vsel %vm1098_vm2, %v5456_v26, %v5458_v35  ;;  %v5768_v35 = vrot.slane %v13218_v27, 3  ;;  %v14122_v11 = vld [vmem:[#allocation2 + $0xa0] sm:$0xff] }
 0x42f   : > { %14953 = vst [vmem:[#allocation74_spill] sm:$0xff] %v13821_v48  ;;  %10317 = vmatmul.mubr.msk.f32.gmra.mrb[30].mxu1 %vm461_vm1, %v13645_v28  ;;  %v14956_v28 = vrot.slane %v13401_v42, 2  ;;  %v6210_v4 = vrot.slane %v14122_v11, 4 }
 0x430   : > { %10319 = vmatprep.mubr.msk.f32.mxu1 %vm461_vm1, %v13651_v21 }
 0x431   : > { %v13827_v43 = vpop.f32.mrb[52].mxu0  ;;  %v5457_v21 = vsel %vm1098_vm2, %v14956_v28, %v5456_v26  ;;  %v5766_v26 = vrot.slane %v13216_v23, 3  ;;  %v5770_v28 = vrot.slane %v13232_v41, 3 }
 0x432   : > { %14954 = vst [vmem:[#allocation75_spill] sm:$0xff] %v13827_v43  ;;  %v13829_v50 = vpop.f32.mrb[53].mxu0  ;;  %v14114_v43 = vld [vmem:[#allocation2 + $0x98] sm:$0xff] }
 0x433   : > { %14955 = vst [vmem:[#allocation76_spill] sm:$0xff] %v13829_v50  ;;  %10320 = vmatmul.mubr.msk.f32.gmra.mrb[32].mxu1 %vm461_vm1, %v13657_v12  ;;  %v13870_v12 = vld [vmem:[#allocation2 + $0x10] sm:$0xff]  ;;  %v5771_v23 = vsel %vm1820_vm3, %v5768_v35, %v5770_v28  ;;  %v6208_v48 = vrot.slane %v14114_v43, 4 }
 0x434   : > { %10322 = vmatprep.mubr.msk.f32.mxu1 %vm461_vm1, %v13663_v57  ;;  %v5747_v57 = vrot.slane %v13870_v12, 3 }
 0x437   : > { %10323 = vmatmul.mubr.msk.f32.gmra.mrb[34].mxu1 %vm461_vm1, %v13669_v47  ;;  %v13873_v47 = vld [vmem:[#allocation2 + $0x18] sm:$0xff] }
 0x438   : > { %10325 = vmatprep.mubr.msk.f32.mxu1 %vm461_vm1, %v13675_v45  ;;  %v5748_v45 = vrot.slane %v13873_v47, 3 }
 0x43b   : > { %10326 = vmatmul.mubr.msk.f32.gmra.mrb[0].mxu1 %vm461_vm1, %v13681_v29  ;;  %v13878_v29 = vld [vmem:[#allocation2 + $0x20] sm:$0xff] }
 0x43c   : > { %10328 = vmatprep.mubr.msk.f32.mxu1 %vm461_vm1, %v13687_v58  ;;  %v5750_v58 = vrot.slane %v13878_v29, 3 }
 0x43f   : > { %10329 = vmatmul.mubr.msk.f32.gmra.mrb[2].mxu1 %vm461_vm1, %v13693_v20  ;;  %v5749_v20 = vsel %vm1820_vm3, %v5747_v57, %v5748_v45  ;;  %v5774_v57 = vrot.slane %v13248_v51, 3 }
 0x440   : > { %10331 = vmatprep.mubr.msk.f32.mxu1 %vm461_vm1, %v13699_v6  ;;  %v13883_v6 = vld [vmem:[#allocation2 + $0x28] sm:$0xff] }
 0x443   : > { %10332 = vmatmul.mubr.msk.f32.gmra.mrb[4].mxu1 %vm461_vm1, %v13705_v8  ;;  %v5752_v8 = vrot.slane %v13883_v6, 3 }
 0x444   : > { %10334 = vmatprep.mubr.msk.f32.mxu1 %vm461_vm1, %v13711_v54  ;;  %v5751_v54 = vsel %vm1820_vm3, %v5748_v45, %v5750_v58  ;;  %v5776_v45 = vrot.slane %v13250_v17, 3 }
 0x447   : > { %10335 = vmatmul.mubr.msk.f32.gmra.mrb[6].mxu1 %vm461_vm1, %v13717_v24  ;;  %v5754_v24 = vrot.slane %v13173_v22, 3  ;;  %v5758_v22 = vrot.slane %v13187_v38, 3 }
 0x448   : > { %10337 = vmatprep.mubr.msk.f32.mxu1 %vm461_vm1, %v13723_v52  ;;  %v13892_v52 = vld [vmem:[%s14761_s3 + $0x30] sm:$0xff] }
 0x44b   : > { %10338 = vmatmul.mubr.msk.f32.gmra.mrb[8].mxu1 %vm461_vm1, %v13729_v55  ;;  %v5753_v55 = vsel %vm1820_vm3, %v5750_v58, %v5752_v8  ;;  %v5780_v58 = vrot.slane %v13266_v49, 3 }
 0x44c   : > { %10340 = vmatprep.mubr.msk.f32.mxu1 %vm461_vm1, %v13735_v18  ;;  %v5756_v18 = vrot.slane %v13175_v46, 3 }
 0x44e   : > { %v5759_v46 = vsel %vm1820_vm3, %v5756_v18, %v5758_v22 }
 0x44f   : > { %10341 = vmatmul.mubr.msk.f32.gmra.mrb[10].mxu1 %vm461_vm1, %v13741_v39  ;;  %v5755_v39 = vsel %vm1820_vm3, %v5752_v8, %v5754_v24  ;;  %v5784_v8 = vrot.slane %v13283_v3, 3 }
 0x450   : > { %10343 = vmatprep.mubr.msk.f32.mxu1 %vm461_vm1, %v5092_v2  ;;  %v5757_v2 = vsel %vm1820_vm3, %v5754_v24, %v5756_v18  ;;  %v5788_v24 = vrot.slane %v13303_v19, 3  ;;  %v14957_v18 = vld [vmem:[#allocation39_spill] sm:$0xff] }
 0x453   : > { %10344 = vmatmul.mubr.msk.f32.gmra.mrb[12].mxu1 %vm461_vm1, %v5094_v62  ;;  %v5760_v62 = vrot.slane %v13189_v34, 3 }
 0x454   : > { %10346 = vmatprep.mubr.msk.f32.mxu1 %vm461_vm1, %v5096_v15  ;;  %v5762_v15 = vrot.slane %v13201_v9, 3 }
 0x456   : > { %v5763_v38 = vsel %vm1820_vm3, %v5760_v62, %v5762_v15 }
 0x457   : > { %10347 = vmatmul.mubr.msk.f32.gmra.mrb[14].mxu1 %vm461_vm1, %v5098_v63  ;;  %v5761_v63 = vsel %vm1820_vm3, %v5758_v22, %v5760_v62  ;;  %v14958_v22 = vld [vmem:[#allocation40_spill] sm:$0xff]  ;;  %v14959_v62 = vld [vmem:[#allocation41_spill] sm:$0xff] }
 0x458   : > { %10349 = vmatprep.mubr.msk.f32.mxu1 %vm461_vm1, %v5457_v21  ;;  %v5772_v21 = vrot.slane %v13234_v37, 3  ;;  %v5777_v37 = vsel %vm1820_vm3, %v5774_v57, %v5776_v45  ;;  %v6222_v53 = vrot.slane %v14958_v22, 4  ;;  %v6224_v7 = vrot.slane %v14959_v62, 4 }
 0x45a   : > { %v5773_v27 = vsel %vm1820_vm3, %v5770_v28, %v5772_v21  ;;  %v5775_v41 = vsel %vm1820_vm3, %v5772_v21, %v5774_v57  ;;  %v14963_v21 = vld [vmem:[#allocation45_spill] sm:$0xff] }
 0x45b   : > { %10350 = vmatmul.mubr.msk.f32.gmra.mrb[16].mxu1 %vm461_vm1, %v5459_v59  ;;  %v5778_v59 = vrot.slane %v13264_v44, 3 }
 0x45c   : > { %10354 = vmatprep.mubr.msk.f32.mxu1 %vm461_vm1, %v5749_v20  ;;  %v5782_v20 = vrot.slane %v13281_v32, 3 }
 0x45d   : > { %v5779_v51 = vsel %vm1820_vm3, %v5776_v45, %v5778_v59  ;;  %v5781_v17 = vsel %vm1820_vm3, %v5778_v59, %v5780_v58  ;;  %v14965_v59 = vld [vmem:[#allocation47_spill] sm:$0xff] }
 0x45e   : > { %v5783_v44 = vsel %vm1820_vm3, %v5780_v58, %v5782_v20  ;;  %v5785_v49 = vsel %vm1820_vm3, %v5782_v20, %v5784_v8 }
 0x45f   : > { %10355 = vmatmul.mubr.msk.f32.vlgmr.msra.gmra.mrb[18].mxu1 %vm461_vm1, %v5751_v54  ;;  %v5786_v54 = vrot.slane %v13301_v30, 3 }
 0x460   : > { %10409 = vmatpush3.msra.mxu1 %v13769_v0  ;;  %10357 = vmatprep.mubr.msk.f32.mxu1 %vm461_vm1, %v5753_v55  ;;  %v5764_v0 = vrot.slane %v13203_v5, 3  ;;  %v5769_v5 = vsel %vm1820_vm3, %v5766_v26, %v5768_v35  ;;  %v5790_v55 = vrot.slane %v13319_v14, 3 }
 0x461   : > { %10464 = vmatprep.subr.mxu1 %v13892_v52  ;;  %v5787_v32 = vsel %vm1820_vm3, %v5784_v8, %v5786_v54  ;;  %v5789_v3 = vsel %vm1820_vm3, %v5786_v54, %v5788_v24  ;;  %v14967_v8 = vld [vmem:[#allocation49_spill] sm:$0xff] }
 0x462   : > { %v5765_v34 = vsel %vm1820_vm3, %v5762_v15, %v5764_v0  ;;  %v5767_v9 = vsel %vm1820_vm3, %v5764_v0, %v5766_v26  ;;  %v5791_v30 = vsel %vm1820_vm3, %v5788_v24, %v5790_v55  ;;  %v14961_v26 = vld [vmem:[#allocation43_spill] sm:$0xff]  ;;  %v14968_v24 = vrot.slane %v13401_v42, 3 }
 0x463   : > { %10358 = vmatmul.mubr.msk.f32.gmra.mrb[20].mxu1 %vm461_vm1, %v5755_v39  ;;  %v5792_v39 = vrot.slane %v14957_v18, 3  ;;  %v6228_v40 = vrot.slane %v14961_v26, 4 }
 0x464   : > { %10360 = vmatprep.mubr.msk.f32.mxu1 %vm461_vm1, %v5757_v2  ;;  %v5794_v2 = vrot.slane %v14958_v22, 3 }
 0x465   : > { %v5793_v19 = vsel %vm1820_vm3, %v5790_v55, %v5792_v39  ;;  %v6175_v55 = vrot.slane %v13870_v12, 4 }
 0x466   : > { %v5795_v15 = vsel %vm1820_vm3, %v5792_v39, %v5794_v2  ;;  %v14969_v39 = vld [vmem:[#allocation50_spill] sm:$0xff] }
 0x467   : > { %10361 = vmatmul.mubr.msk.f32.gmra.mrb[22].mxu1 %vm461_vm1, %v5759_v46  ;;  %v5796_v46 = vrot.slane %v14959_v62, 3 }
 0x468   : > { %10363 = vmatprep.mubr.msk.f32.mxu1 %vm461_vm1, %v5761_v63  ;;  %v14960_v63 = vld [vmem:[#allocation42_spill] sm:$0xff] }
 0x469   : > { %v5798_v0 = vrot.slane %v14960_v63, 3 }
 0x46b   : > { %10364 = vmatmul.mubr.msk.f32.gmra.mrb[24].mxu1 %vm461_vm1, %v5763_v38  ;;  %v5797_v38 = vsel %vm1820_vm3, %v5794_v2, %v5796_v46  ;;  %v5799_v35 = vsel %vm1820_vm3, %v5796_v46, %v5798_v0  ;;  %v14970_v2 = vld [vmem:[#allocation51_spill] sm:$0xff]  ;;  %v6180_v46 = vrot.slane %v13883_v6, 4 }
 0x46c   : > { %10366 = vmatprep.mubr.msk.f32.mxu1 %vm461_vm1, %v5765_v34  ;;  %v5800_v34 = vrot.slane %v14961_v26, 3 }
 0x46f   : > { %10367 = vmatmul.mubr.msk.f32.gmra.mrb[26].mxu1 %vm461_vm1, %v5767_v9  ;;  %v14962_v9 = vld [vmem:[#allocation44_spill] sm:$0xff] }
 0x470   : > { %10369 = vmatprep.mubr.msk.f32.mxu1 %vm461_vm1, %v5769_v5  ;;  %v5802_v28 = vrot.slane %v14962_v9, 3  ;;  %v5801_v5 = vsel %vm1820_vm3, %v5798_v0, %v5800_v34  ;;  %v14003_v0 = vld [vmem:[#allocation2 + $0x30] sm:$0xff] }
 0x471   : > { %v6182_v12 = vrot.slane %v14003_v0, 4 }
 0x472   : > { %v5803_v57 = vsel %vm1820_vm3, %v5800_v34, %v5802_v28  ;;  %v14015_v34 = vld [vmem:[#allocation2 + $0x38] sm:$0xff] }
 0x473   : > { %10370 = vmatmul.mubr.msk.f32.gmra.mrb[28].mxu1 %vm461_vm1, %v5771_v23  ;;  %v5804_v23 = vrot.slane %v14963_v21, 3 }
 0x474   : > { %10372 = vmatprep.mubr.msk.f32.mxu1 %vm461_vm1, %v5773_v27  ;;  %v14964_v27 = vld [vmem:[#allocation46_spill] sm:$0xff] }
 0x475   : > { %v5806_v45 = vrot.slane %v14964_v27, 3 }
 0x477   : > { %10373 = vmatmul.mubr.msk.f32.gmra.mrb[30].mxu1 %vm461_vm1, %v5775_v41  ;;  %v5805_v41 = vsel %vm1820_vm3, %v5802_v28, %v5804_v23  ;;  %v5807_v58 = vsel %vm1820_vm3, %v5804_v23, %v5806_v45  ;;  %v14023_v28 = vsel %vm2249_vm4, %v6180_v46, %v6182_v12 }
 0x478   : > { %10375 = vmatprep.mubr.msk.f32.mxu1 %vm461_vm1, %v5777_v37  ;;  %v5808_v37 = vrot.slane %v14965_v59, 3 }
 0x47b   : > { %10376 = vmatmul.mubr.msk.f32.gmra.mrb[32].mxu1 %vm461_vm1, %v5779_v51  ;;  %v14966_v51 = vld [vmem:[#allocation48_spill] sm:$0xff] }
 0x47c   : > { %10378 = vmatprep.mubr.msk.f32.mxu1 %vm461_vm1, %v5781_v17  ;;  %v5810_v20 = vrot.slane %v14966_v51, 3  ;;  %v5809_v17 = vsel %vm1820_vm3, %v5806_v45, %v5808_v37  ;;  %v14033_v45 = vld [vmem:[#allocation2 + $0x48] sm:$0xff] }
 0x47e   : > { %v5811_v54 = vsel %vm1820_vm3, %v5808_v37, %v5810_v20  ;;  %v14041_v37 = vld [vmem:[#allocation2 + $0x50] sm:$0xff] }
 0x47f   : > { %10379 = vmatmul.mubr.msk.f32.gmra.mrb[34].mxu1 %vm461_vm1, %v5783_v44  ;;  %v5812_v44 = vrot.slane %v14967_v8, 3 }
 0x480   : > { %10381 = vmatprep.mubr.msk.f32.mxu1 %vm461_vm1, %v5785_v49 }
 0x481   : > { %v5813_v49 = vsel %vm1820_vm3, %v5810_v20, %v5812_v44 }
 0x483   : > { %10382 = vmatmul.mubr.msk.f32.gmra.mrb[0].mxu1 %vm461_vm1, %v5787_v32  ;;  %v5815_v32 = vsel %vm1820_vm3, %v5812_v44, %v14968_v24  ;;  %v14058_v24 = vld [vmem:[#allocation2 + $0x60] sm:$0xff] }
 0x484   : > { %10384 = vmatprep.mubr.msk.f32.mxu1 %vm461_vm1, %v5789_v3  ;;  %v6176_v3 = vrot.slane %v13873_v47, 4  ;;  %v14009_v47 = vld [vmem:[%s14761_s3 + $0x38] sm:$0xff] }
 0x487   : > { %10385 = vmatmul.mubr.msk.f32.gmra.mrb[2].mxu1 %vm461_vm1, %v5791_v30  ;;  %v6178_v30 = vrot.slane %v13878_v29, 4 }
 0x488   : > { %10387 = vmatprep.mubr.msk.f32.mxu1 %vm461_vm1, %v5793_v19  ;;  %v6177_v19 = vsel %vm2249_vm4, %v6175_v55, %v6176_v3 }
 0x48b   : > { %10388 = vmatmul.mubr.msk.f32.gmra.mrb[4].mxu1 %vm461_vm1, %v5795_v15  ;;  %v6179_v15 = vsel %vm2249_vm4, %v6176_v3, %v6178_v30  ;;  %v14066_v3 = vld [vmem:[#allocation2 + $0x68] sm:$0xff] }
 0x48c   : > { %10390 = vmatprep.mubr.msk.f32.mxu1 %vm461_vm1, %v5797_v38  ;;  %v14013_v38 = vsel %vm2249_vm4, %v6178_v30, %v6180_v46 }
 0x48f   : > { %10391 = vmatmul.mubr.msk.f32.gmra.mrb[6].mxu1 %vm461_vm1, %v5799_v35  ;;  %v6184_v35 = vrot.slane %v14015_v34, 4 }
 0x490   : > { %10393 = vmatprep.mubr.msk.f32.mxu1 %vm461_vm1, %v5801_v5  ;;  %v14025_v5 = vld [vmem:[#allocation2 + $0x40] sm:$0xff] }
 0x491   : > { %v6186_v23 = vrot.slane %v14025_v5, 4 }
 0x493   : > { %10394 = vmatmul.mubr.msk.f32.gmra.mrb[8].mxu1 %vm461_vm1, %v5803_v57  ;;  %v14031_v57 = vsel %vm2249_vm4, %v6182_v12, %v6184_v35 }
 0x494   : > { %10396 = vmatprep.mubr.msk.f32.mxu1 %vm461_vm1, %v5805_v41  ;;  %v14039_v41 = vsel %vm2249_vm4, %v6184_v35, %v6186_v23 }
 0x497   : > { %10397 = vmatmul.mubr.msk.f32.gmra.mrb[10].mxu1 %vm461_vm1, %v5807_v58  ;;  %v6190_v58 = vrot.slane %v14041_v37, 4 }
 0x498   : > { %10399 = vmatprep.mubr.msk.f32.mxu1 %vm461_vm1, %v5809_v17  ;;  %v14049_v17 = vld [vmem:[#allocation2 + $0x58] sm:$0xff] }
 0x499   : > { %v6192_v44 = vrot.slane %v14049_v17, 4 }
 0x49b   : > { %10400 = vmatmul.mubr.msk.f32.gmra.mrb[12].mxu1 %vm461_vm1, %v5811_v54  ;;  %v14971_v54 = vmov 0.0   ;;  %v14064_v55 = vsel %vm2249_vm4, %v6190_v58, %v6192_v44 }
 0x49c   : > { %10402 = vmatprep.mubr.msk.f32.mxu1 %vm461_vm1, %v5813_v49  ;;  %4199 = vst.msk [vmem:[#allocation2 + $0x140] sm:$0x3f] %vm4198_vm7, %v14971_v54 }
 0x49f   : > { %10403 = vmatmul.mubr.msk.f32.gmra.mrb[14].mxu1 %vm461_vm1, %v5815_v32  ;;  %v6194_v32 = vrot.slane %v14058_v24, 4 }
 0x4a0   : > { %10405 = vmatprep.mubr.msk.f32.mxu1 %vm461_vm1, %v14969_v39  ;;  %v6196_v39 = vrot.slane %v14066_v3, 4 }
 0x4a1   : > { %v14072_v30 = vsel %vm2249_vm4, %v6192_v44, %v6194_v32  ;;  %v14098_v44 = vld [vmem:[#allocation2 + $0x88] sm:$0xff] }
 0x4a2   : > { %v14080_v46 = vsel %vm2249_vm4, %v6194_v32, %v6196_v39  ;;  %v6204_v54 = vrot.slane %v14098_v44, 4 }
 0x4a3   : > { %10406 = vmatmul.mubr.msk.f32.gmra.mrb[16].mxu1 %vm461_vm1, %v14970_v2  ;;  %v14074_v2 = vld [vmem:[#allocation2 + $0x70] sm:$0xff] }
 0x4a4   : > { %10410 = vmatprep.mubr.msk.f32.mxu1 %vm461_vm1, %v6177_v19  ;;  %v6198_v19 = vrot.slane %v14074_v2, 4 }
 0x4a6   : > { %v14088_v35 = vsel %vm2249_vm4, %v6196_v39, %v6198_v19  ;;  %v14106_v39 = vld [vmem:[#allocation2 + $0x90] sm:$0xff] }
 0x4a7   : > { %10411 = vmatmul.mubr.msk.f32.vlgmr.msra.gmra.mrb[18].mxu1 %vm461_vm1, %v6179_v15  ;;  %v14082_v15 = vld [vmem:[#allocation2 + $0x78] sm:$0xff]  ;;  %v6206_v50 = vrot.slane %v14106_v39, 4 }
 0x4a8   : > { %10465 = vmatpush3.msra.mxu1 %v13892_v52  ;;  %10413 = vmatprep.mubr.msk.f32.mxu1 %vm461_vm1, %v14013_v38  ;;  %v6188_v52 = vrot.slane %v14033_v45, 4  ;;  %v6200_v12 = vrot.slane %v14082_v15, 4 }
 0x4a9   : > { %10520 = vmatprep.subr.mxu1 %v14009_v47 }
 0x4aa   : > { %v14047_v20 = vsel %vm2249_vm4, %v6186_v23, %v6188_v52  ;;  %v14056_v49 = vsel %vm2249_vm4, %v6188_v52, %v6190_v58  ;;  %v14090_v23 = vld [vmem:[#allocation2 + $0x80] sm:$0xff]  ;;  %v14096_v58 = vsel %vm2249_vm4, %v6198_v19, %v6200_v12 }
 0x4ab   : > { %10414 = vmatmul.mubr.msk.f32.gmra.mrb[20].mxu1 %vm461_vm1, %v14023_v28  ;;  %v6202_v52 = vrot.slane %v14090_v23, 4 }
 0x4ac   : > { %10416 = vmatprep.mubr.msk.f32.mxu1 %vm461_vm1, %v14031_v57 }
 0x4ad   : > { %v14104_v32 = vsel %vm2249_vm4, %v6200_v12, %v6202_v52  ;;  %v14112_v19 = vsel %vm2249_vm4, %v6202_v52, %v6204_v54  ;;  %v14120_v12 = vsel %vm2249_vm4, %v6204_v54, %v6206_v50  ;;  %v14128_v52 = vsel %vm2249_vm4, %v6206_v50, %v6208_v48 }
 0x4ae   : > { %v14136_v54 = vsel %vm2249_vm4, %v6208_v48, %v6210_v4  ;;  %v14144_v50 = vsel %vm2249_vm4, %v6210_v4, %v6212_v13  ;;  %v14152_v48 = vsel %vm2249_vm4, %v6212_v13, %v6214_v33  ;;  %v6220_v4 = vrot.slane %v14957_v18, 4 }
 0x4af   : > { %10417 = vmatmul.mubr.msk.f32.gmra.mrb[22].mxu1 %vm461_vm1, %v14039_v41  ;;  %v6226_v33 = vrot.slane %v14960_v63, 4  ;;  %v6225_v18 = vsel %vm2249_vm4, %v6222_v53, %v6224_v7 }
 0x4b0   : > { %10419 = vmatprep.mubr.msk.f32.mxu1 %vm461_vm1, %v14047_v20  ;;  %v6221_v13 = vsel %vm2249_vm4, %v6218_v1, %v6220_v4  ;;  %v6223_v14 = vsel %vm2249_vm4, %v6220_v4, %v6222_v53  ;;  %v6230_v1 = vrot.slane %v14962_v9, 4  ;;  %v6232_v4 = vrot.slane %v14963_v21, 4 }
 0x4b1   : > { %v6227_v22 = vsel %vm2249_vm4, %v6224_v7, %v6226_v33  ;;  %v6229_v62 = vsel %vm2249_vm4, %v6226_v33, %v6228_v40  ;;  %v6234_v53 = vrot.slane %v14964_v27, 4  ;;  %v6236_v7 = vrot.slane %v14965_v59, 4 }
 0x4b2   : > { %v6231_v63 = vsel %vm2249_vm4, %v6228_v40, %v6230_v1  ;;  %v6233_v26 = vsel %vm2249_vm4, %v6230_v1, %v6232_v4  ;;  %v6238_v33 = vrot.slane %v14966_v51, 4  ;;  %v6240_v40 = vrot.slane %v14967_v8, 4  ;;  %v14974_v8 = vld [vmem:[#allocation53_spill] sm:$0xff] }
 0x4b3   : > { %10420 = vmatmul.mubr.msk.f32.gmra.mrb[24].mxu1 %vm461_vm1, %v14056_v49  ;;  %v6235_v9 = vsel %vm2249_vm4, %v6232_v4, %v6234_v53  ;;  %v6237_v21 = vsel %vm2249_vm4, %v6234_v53, %v6236_v7  ;;  %v14972_v1 = vrot.slane %v13401_v42, 4  ;;  %v14973_v4 = vld [vmem:[#allocation52_spill] sm:$0xff]  ;;  %v8844_v53 = vld [vmem:[%s14761_s3 + $0x40] sm:$0xff] }
 0x4b4   : > { %10422 = vmatprep.mubr.msk.f32.mxu1 %vm461_vm1, %v14064_v55  ;;  %v6239_v27 = vsel %vm2249_vm4, %v6236_v7, %v6238_v33  ;;  %v6241_v59 = vsel %vm2249_vm4, %v6238_v33, %v6240_v40 }
 0x4b5   : > { %v6243_v51 = vsel %vm2249_vm4, %v6240_v40, %v14972_v1  ;;  %v6925_v1 = vrot.slane %v14114_v43, 5 }
 0x4b7   : > { %10423 = vmatmul.mubr.msk.f32.gmra.mrb[26].mxu1 %vm461_vm1, %v14072_v30 }
 0x4b8   : > { %10425 = vmatprep.mubr.msk.f32.mxu1 %vm461_vm1, %v14080_v46 }
 0x4bb   : > { %10426 = vmatmul.mubr.msk.f32.gmra.mrb[28].mxu1 %vm461_vm1, %v14088_v35 }
 0x4bc   : > { %10428 = vmatprep.mubr.msk.f32.mxu1 %vm461_vm1, %v14096_v58 }
 0x4bf   : > { %10429 = vmatmul.mubr.msk.f32.gmra.mrb[30].mxu1 %vm461_vm1, %v14104_v32 }
 0x4c0   : > { %10431 = vmatprep.mubr.msk.f32.mxu1 %vm461_vm1, %v14112_v19 }
 0x4c3   : > { %10432 = vmatmul.mubr.msk.f32.gmra.mrb[32].mxu1 %vm461_vm1, %v14120_v12 }
 0x4c4   : > { %10434 = vmatprep.mubr.msk.f32.mxu1 %vm461_vm1, %v14128_v52 }
 0x4c7   : > { %10435 = vmatmul.mubr.msk.f32.gmra.mrb[34].mxu1 %vm461_vm1, %v14136_v54 }
 0x4c8   : > { %10437 = vmatprep.mubr.msk.f32.mxu1 %vm461_vm1, %v14144_v50 }
 0x4cb   : > { %10438 = vmatmul.mubr.msk.f32.gmra.mrb[0].mxu1 %vm461_vm1, %v14152_v48 }
 0x4cc   : > { %10440 = vmatprep.mubr.msk.f32.mxu1 %vm461_vm1, %v6217_v31 }
 0x4cf   : > { %10441 = vmatmul.mubr.msk.f32.gmra.mrb[2].mxu1 %vm461_vm1, %v6219_v16 }
 0x4d0   : > { %10443 = vmatprep.mubr.msk.f32.mxu1 %vm461_vm1, %v6221_v13 }
 0x4d3   : > { %10444 = vmatmul.mubr.msk.f32.gmra.mrb[4].mxu1 %vm461_vm1, %v6223_v14 }
 0x4d4   : > { %10446 = vmatprep.mubr.msk.f32.mxu1 %vm461_vm1, %v6225_v18 }
 0x4d7   : > { %10447 = vmatmul.mubr.msk.f32.gmra.mrb[6].mxu1 %vm461_vm1, %v6227_v22 }
 0x4d8   : > { %10449 = vmatprep.mubr.msk.f32.mxu1 %vm461_vm1, %v6229_v62 }
 0x4db   : > { %10450 = vmatmul.mubr.msk.f32.gmra.mrb[8].mxu1 %vm461_vm1, %v6231_v63 }
 0x4dc   : > { %10452 = vmatprep.mubr.msk.f32.mxu1 %vm461_vm1, %v6233_v26 }
 0x4df   : > { %10453 = vmatmul.mubr.msk.f32.gmra.mrb[10].mxu1 %vm461_vm1, %v6235_v9 }
 0x4e0   : > { %10455 = vmatprep.mubr.msk.f32.mxu1 %vm461_vm1, %v6237_v21 }
 0x4e3   : > { %10456 = vmatmul.mubr.msk.f32.gmra.mrb[12].mxu1 %vm461_vm1, %v6239_v27 }
 0x4e4   : > { %10458 = vmatprep.mubr.msk.f32.mxu1 %vm461_vm1, %v6241_v59 }
 0x4e7   : > { %10459 = vmatmul.mubr.msk.f32.gmra.mrb[14].mxu1 %vm461_vm1, %v6243_v51 }
 0x4e8   : > { %10461 = vmatprep.mubr.msk.f32.mxu1 %vm461_vm1, %v14973_v4 }
 0x4eb   : > { %10462 = vmatmul.mubr.msk.f32.gmra.mrb[16].mxu1 %vm461_vm1, %v14974_v8 }
 0x4ec   : > { %10466 = vmatprep.mubr.msk.f32.mxu1 %vm461_vm1, %v14013_v38 }
 0x4ef   : > { %10467 = vmatmul.mubr.msk.f32.vlgmr.msra.gmra.mrb[18].mxu1 %vm461_vm1, %v14023_v28  ;;  %v14976_v28 = vrot.slane %v13411_v61, 4 }
 0x4f0   : > { %10521 = vmatpush3.msra.mxu1 %v14009_v47  ;;  %10469 = vmatprep.mubr.msk.f32.mxu1 %vm461_vm1, %v14031_v57 }
 0x4f1   : > { %10576 = vmatprep.subr.mxu1 %v8844_v53 }
 0x4f3   : > { %10470 = vmatmul.mubr.msk.f32.gmra.mrb[20].mxu1 %vm461_vm1, %v14039_v41  ;;  %v6896_v41 = vrot.slane %v13878_v29, 5 }
 0x4f4   : > { %10472 = vmatprep.mubr.msk.f32.mxu1 %vm461_vm1, %v14047_v20  ;;  %v6897_v20 = vrot.slane %v13883_v6, 5 }
 0x4f7   : > { %10473 = vmatmul.mubr.msk.f32.gmra.mrb[22].mxu1 %vm461_vm1, %v14056_v49 }
 0x4f8   : > { %10475 = vmatprep.mubr.msk.f32.mxu1 %vm461_vm1, %v14064_v55  ;;  %v6899_v55 = vrot.slane %v14003_v0, 5 }
 0x4fa   : > { %v6900_v61 = vsel %vm2971_vm5, %v6897_v20, %v6899_v55 }
 0x4fb   : > { %10476 = vmatmul.mubr.msk.f32.gmra.mrb[24].mxu1 %vm461_vm1, %v14072_v30  ;;  %v6898_v30 = vsel %vm2971_vm5, %v6896_v41, %v6897_v20  ;;  %v14331_v20 = vld [vmem:[#allocation2 + $0xc0] sm:$0xff] }
 0x4fc   : > { %10478 = vmatprep.mubr.msk.f32.mxu1 %vm461_vm1, %v14080_v46  ;;  %v6901_v46 = vrot.slane %v14015_v34, 5 }
 0x4ff   : > { %10479 = vmatmul.mubr.msk.f32.gmra.mrb[26].mxu1 %vm461_vm1, %v14088_v35  ;;  %v6903_v35 = vrot.slane %v14025_v5, 5 }
 0x500   : > { %10481 = vmatprep.mubr.msk.f32.mxu1 %vm461_vm1, %v14096_v58  ;;  %v14281_v58 = vld [vmem:[%s14763_s5] sm:$0xff] }
 0x503   : > { %10482 = vmatmul.mubr.msk.f32.gmra.mrb[28].mxu1 %vm461_vm1, %v14104_v32  ;;  %v6902_v32 = vsel %vm2971_vm5, %v6899_v55, %v6901_v46 }
 0x504   : > { %10484 = vmatprep.mubr.msk.f32.mxu1 %vm461_vm1, %v14112_v19  ;;  %v6905_v19 = vrot.slane %v14033_v45, 5 }
 0x507   : > { %10485 = vmatmul.mubr.msk.f32.gmra.mrb[30].mxu1 %vm461_vm1, %v14120_v12  ;;  %v6904_v12 = vsel %vm2971_vm5, %v6901_v46, %v6903_v35 }
 0x508   : > { %10487 = vmatprep.mubr.msk.f32.mxu1 %vm461_vm1, %v14128_v52  ;;  %v6907_v52 = vrot.slane %v14041_v37, 5 }
 0x50b   : > { %10488 = vmatmul.mubr.msk.f32.gmra.mrb[32].mxu1 %vm461_vm1, %v14136_v54  ;;  %v6906_v54 = vsel %vm2971_vm5, %v6903_v35, %v6905_v19  ;;  %v14341_v35 = vld [vmem:[#allocation2 + $0xd0] sm:$0xff] }
 0x50c   : > { %10490 = vmatprep.mubr.msk.f32.mxu1 %vm461_vm1, %v14144_v50  ;;  %v6909_v50 = vrot.slane %v14049_v17, 5 }
 0x50f   : > { %10491 = vmatmul.mubr.msk.f32.gmra.mrb[34].mxu1 %vm461_vm1, %v14152_v48  ;;  %v6908_v48 = vsel %vm2971_vm5, %v6905_v19, %v6907_v52 }
 0x510   : > { %10493 = vmatprep.mubr.msk.f32.mxu1 %vm461_vm1, %v6217_v31  ;;  %v14975_v31 = vld [vmem:[#allocation54_spill] sm:$0xff] }
 0x511   : > { %v6605_v47 = vrot.slane %v14975_v31, 4 }
 0x513   : > { %10494 = vmatmul.mubr.msk.f32.gmra.mrb[0].mxu1 %vm461_vm1, %v6219_v16  ;;  %v14255_v16 = vld [vmem:[#allocation2 + $0x140] sm:$0x3f]  ;;  %v6606_v57 = vsel %vm2249_vm4, %v14976_v28, %v6605_v47 }
 0x514   : > { %10496 = vmatprep.mubr.msk.f32.mxu1 %vm461_vm1, %v6221_v13  ;;  %v6607_v38 = vrot.slane %v14255_v16, 4  ;;  %v6911_v13 = vrot.slane %v14058_v24, 5 }
 0x516   : > { %v6608_v49 = vsel %vm2249_vm4, %v6605_v47, %v6607_v38  ;;  %v6931_v38 = vrot.slane %v14138_v25, 5 }
 0x517   : > { %10497 = vmatmul.mubr.msk.f32.gmra.mrb[2].mxu1 %vm461_vm1, %v6223_v14  ;;  %v6910_v14 = vsel %vm2971_vm5, %v6907_v52, %v6909_v50 }
 0x518   : > { %10499 = vmatprep.mubr.msk.f32.mxu1 %vm461_vm1, %v6225_v18  ;;  %v6913_v18 = vrot.slane %v14066_v3, 5 }
 0x51b   : > { %10500 = vmatmul.mubr.msk.f32.gmra.mrb[4].mxu1 %vm461_vm1, %v6227_v22  ;;  %v6912_v22 = vsel %vm2971_vm5, %v6909_v50, %v6911_v13  ;;  %v14351_v50 = vld [vmem:[#allocation2 + $0xe0] sm:$0xff] }
 0x51c   : > { %10502 = vmatprep.mubr.msk.f32.mxu1 %vm461_vm1, %v6229_v62  ;;  %v6915_v62 = vrot.slane %v14074_v2, 5 }
 0x51e   : > { %v6916_v7 = vsel %vm2971_vm5, %v6913_v18, %v6915_v62 }
 0x51f   : > { %10503 = vmatmul.mubr.msk.f32.gmra.mrb[6].mxu1 %vm461_vm1, %v6231_v63  ;;  %v6914_v63 = vsel %vm2971_vm5, %v6911_v13, %v6913_v18 }
 0x520   : > { %10505 = vmatprep.mubr.msk.f32.mxu1 %vm461_vm1, %v6233_v26  ;;  %v6917_v26 = vrot.slane %v14082_v15, 5 }
 0x522   : > { %v6918_v33 = vsel %vm2971_vm5, %v6915_v62, %v6917_v26  ;;  %v14361_v62 = vld [vmem:[#allocation2 + $0xf0] sm:$0xff] }
 0x523   : > { %10506 = vmatmul.mubr.msk.f32.gmra.mrb[8].mxu1 %vm461_vm1, %v6235_v9  ;;  %v6919_v9 = vrot.slane %v14090_v23, 5 }
 0x524   : > { %10508 = vmatprep.mubr.msk.f32.mxu1 %vm461_vm1, %v6237_v21  ;;  %v6921_v21 = vrot.slane %v14098_v44, 5 }
 0x525   : > { %v6920_v40 = vsel %vm2971_vm5, %v6917_v26, %v6919_v9 }
 0x527   : > { %10509 = vmatmul.mubr.msk.f32.gmra.mrb[10].mxu1 %vm461_vm1, %v6239_v27  ;;  %v6923_v27 = vrot.slane %v14106_v39, 5 }
 0x528   : > { %10511 = vmatprep.mubr.msk.f32.mxu1 %vm461_vm1, %v6241_v59  ;;  %v6922_v59 = vsel %vm2971_vm5, %v6919_v9, %v6921_v21 }
 0x52b   : > { %10512 = vmatmul.mubr.msk.f32.gmra.mrb[12].mxu1 %vm461_vm1, %v6243_v51  ;;  %v6924_v51 = vsel %vm2971_vm5, %v6921_v21, %v6923_v27  ;;  %v14371_v21 = vld [vmem:[#allocation2 + $0x100] sm:$0xff] }
 0x52c   : > { %10514 = vmatprep.mubr.msk.f32.mxu1 %vm461_vm1, %v14973_v4  ;;  %v6927_v4 = vrot.slane %v14122_v11, 5 }
 0x52e   : > { %v6928_v47 = vsel %vm2971_vm5, %v6925_v1, %v6927_v4 }
 0x52f   : > { %10515 = vmatmul.mubr.msk.f32.gmra.mrb[14].mxu1 %vm461_vm1, %v14974_v8  ;;  %v6926_v8 = vsel %vm2971_vm5, %v6923_v27, %v6925_v1 }
 0x530   : > { %10517 = vmatprep.mubr.msk.f32.mxu1 %vm461_vm1, %v6606_v57  ;;  %v6933_v57 = vrot.slane %v14146_v10, 5 }
 0x532   : > { %v6934_v55 = vsel %vm2971_vm5, %v6931_v38, %v6933_v57 }
 0x533   : > { %10518 = vmatmul.mubr.msk.f32.gmra.mrb[16].mxu1 %vm461_vm1, %v6608_v49  ;;  %v6935_v49 = vrot.slane %v14331_v20, 5 }
 0x534   : > { %10522 = vmatprep.mubr.msk.f32.mxu1 %vm461_vm1, %v6898_v30  ;;  %v14336_v30 = vld [vmem:[#allocation2 + $0xc8] sm:$0xff] }
 0x535   : > { %v6937_v46 = vrot.slane %v14336_v30, 5 }
 0x537   : > { %10523 = vmatmul.mubr.msk.f32.vlgmr.msra.gmra.mrb[18].mxu1 %vm461_vm1, %v6900_v61  ;;  %v6936_v61 = vsel %vm2971_vm5, %v6933_v57, %v6935_v49  ;;  %v6938_v19 = vsel %vm2971_vm5, %v6935_v49, %v6937_v46 }
 0x538   : > { %10577 = vmatpush3.msra.mxu1 %v8844_v53  ;;  %10525 = vmatprep.mubr.msk.f32.mxu1 %vm461_vm1, %v6902_v32  ;;  %v6929_v53 = vrot.slane %v14130_v56, 5  ;;  %v6939_v32 = vrot.slane %v14341_v35, 5 }
 0x539   : > { %10632 = vmatprep.subr.mxu1 %v14281_v58 }
 0x53a   : > { %v6930_v28 = vsel %vm2971_vm5, %v6927_v4, %v6929_v53  ;;  %v6932_v41 = vsel %vm2971_vm5, %v6929_v53, %v6931_v38  ;;  %v14381_v4 = vld [vmem:[#allocation2 + $0x110] sm:$0xff] }
 0x53b   : > { %10526 = vmatmul.mubr.msk.f32.gmra.mrb[20].mxu1 %vm461_vm1, %v6904_v12  ;;  %v14346_v12 = vld [vmem:[#allocation2 + $0xd8] sm:$0xff] }
 0x53c   : > { %10528 = vmatprep.mubr.msk.f32.mxu1 %vm461_vm1, %v6906_v54  ;;  %v6941_v52 = vrot.slane %v14346_v12, 5  ;;  %v6940_v54 = vsel %vm2971_vm5, %v6937_v46, %v6939_v32  ;;  %v6967_v46 = vrot.slane %v14255_v16, 5 }
 0x53e   : > { %v6942_v13 = vsel %vm2971_vm5, %v6939_v32, %v6941_v52  ;;  %v7324_v32 = vrot.slane %v13878_v29, 6 }
 0x53f   : > { %10529 = vmatmul.mubr.msk.f32.gmra.mrb[22].mxu1 %vm461_vm1, %v6908_v48  ;;  %v6943_v48 = vrot.slane %v14351_v50, 5 }
 0x540   : > { %10531 = vmatprep.mubr.msk.f32.mxu1 %vm461_vm1, %v6910_v14  ;;  %v14356_v14 = vld [vmem:[#allocation2 + $0xe8] sm:$0xff] }
 0x541   : > { %v6945_v18 = vrot.slane %v14356_v14, 5 }
 0x543   : > { %10532 = vmatmul.mubr.msk.f32.gmra.mrb[24].mxu1 %vm461_vm1, %v6912_v22  ;;  %v6944_v22 = vsel %vm2971_vm5, %v6941_v52, %v6943_v48  ;;  %v6946_v26 = vsel %vm2971_vm5, %v6943_v48, %v6945_v18  ;;  %v14980_v52 = vld [vmem:[#allocation57_spill] sm:$0xff] }
 0x544   : > { %10534 = vmatprep.mubr.msk.f32.mxu1 %vm461_vm1, %v6914_v63  ;;  %v6947_v63 = vrot.slane %v14361_v62, 5 }
 0x547   : > { %10535 = vmatmul.mubr.msk.f32.gmra.mrb[26].mxu1 %vm461_vm1, %v6916_v7  ;;  %v14366_v7 = vld [vmem:[#allocation2 + $0xf8] sm:$0xff] }
 0x548   : > { %10537 = vmatprep.mubr.msk.f32.mxu1 %vm461_vm1, %v6918_v33  ;;  %v6949_v9 = vrot.slane %v14366_v7, 5  ;;  %v6948_v33 = vsel %vm2971_vm5, %v6945_v18, %v6947_v63 }
 0x54a   : > { %v6950_v27 = vsel %vm2971_vm5, %v6947_v63, %v6949_v9 }
 0x54b   : > { %10538 = vmatmul.mubr.msk.f32.gmra.mrb[28].mxu1 %vm461_vm1, %v6920_v40  ;;  %v6951_v40 = vrot.slane %v14371_v21, 5 }
 0x54c   : > { %10540 = vmatprep.mubr.msk.f32.mxu1 %vm461_vm1, %v6922_v59  ;;  %v14376_v59 = vld [vmem:[#allocation2 + $0x108] sm:$0xff] }
 0x54d   : > { %v6953_v1 = vrot.slane %v14376_v59, 5 }
 0x54f   : > { %10541 = vmatmul.mubr.msk.f32.gmra.mrb[30].mxu1 %vm461_vm1, %v6924_v51  ;;  %v6952_v51 = vsel %vm2971_vm5, %v6949_v9, %v6951_v40  ;;  %v6954_v53 = vsel %vm2971_vm5, %v6951_v40, %v6953_v1  ;;  %v7341_v40 = vrot.slane %v14066_v3, 6 }
 0x550   : > { %10543 = vmatprep.mubr.msk.f32.mxu1 %vm461_vm1, %v6926_v8  ;;  %v6955_v8 = vrot.slane %v14381_v4, 5 }
 0x553   : > { %10544 = vmatmul.mubr.msk.f32.gmra.mrb[32].mxu1 %vm461_vm1, %v6928_v47  ;;  %v14386_v47 = vld [vmem:[#allocation2 + $0x118] sm:$0xff] }
 0x554   : > { %10546 = vmatprep.mubr.msk.f32.mxu1 %vm461_vm1, %v6930_v28  ;;  %v6957_v38 = vrot.slane %v14386_v47, 5  ;;  %v6956_v28 = vsel %vm2971_vm5, %v6953_v1, %v6955_v8  ;;  %v7345_v1 = vrot.slane %v14082_v15, 6 }
 0x556   : > { %v6958_v57 = vsel %vm2971_vm5, %v6955_v8, %v6957_v38  ;;  %v7349_v8 = vrot.slane %v14098_v44, 6 }
 0x557   : > { %10547 = vmatmul.mubr.msk.f32.gmra.mrb[34].mxu1 %vm461_vm1, %v6932_v41  ;;  %v14977_v41 = vrot.slane %v13401_v42, 5 }
 0x558   : > { %10549 = vmatprep.mubr.msk.f32.mxu1 %vm461_vm1, %v6934_v55  ;;  %v14978_v55 = vld [vmem:[#allocation55_spill] sm:$0xff] }
 0x559   : > { %v6960_v49 = vsel %vm2971_vm5, %v6957_v38, %v14977_v41  ;;  %v7353_v38 = vrot.slane %v14114_v43, 6  ;;  %v7359_v41 = vrot.slane %v14138_v25, 6 }
 0x55b   : > { %10550 = vmatmul.mubr.msk.f32.gmra.mrb[0].mxu1 %vm461_vm1, %v6936_v61  ;;  %v14979_v61 = vld [vmem:[#allocation56_spill] sm:$0xff] }
 0x55c   : > { %10552 = vmatprep.mubr.msk.f32.mxu1 %vm461_vm1, %v6938_v19  ;;  %v7325_v19 = vrot.slane %v13883_v6, 6  ;;  %v7331_v6 = vrot.slane %v14025_v5, 6  ;;  %v7337_v5 = vrot.slane %v14049_v17, 6 }
 0x55e   : > { %v7326_v18 = vsel %vm3400_vm6, %v7324_v32, %v7325_v19  ;;  %v7369_v32 = vrot.slane %v14346_v12, 6 }
 0x55f   : > { %10553 = vmatmul.mubr.msk.f32.gmra.mrb[2].mxu1 %vm461_vm1, %v6940_v54  ;;  %v14981_v54 = vrot.slane %v14975_v31, 5 }
 0x560   : > { %10555 = vmatprep.mubr.msk.f32.mxu1 %vm461_vm1, %v6942_v13  ;;  %v7327_v13 = vrot.slane %v14003_v0, 6 }
 0x561   : > { %v6968_v48 = vsel %vm2971_vm5, %v14981_v54, %v6967_v46  ;;  %v7365_v46 = vrot.slane %v14336_v30, 6  ;;  %v7375_v54 = vrot.slane %v14361_v62, 6 }
 0x562   : > { %v7328_v29 = vsel %vm3400_vm6, %v7325_v19, %v7327_v13  ;;  %v7371_v19 = vrot.slane %v14351_v50, 6 }
 0x563   : > { %10556 = vmatmul.mubr.msk.f32.gmra.mrb[4].mxu1 %vm461_vm1, %v6944_v22  ;;  %v7329_v22 = vrot.slane %v14015_v34, 6  ;;  %v7335_v34 = vrot.slane %v14041_v37, 6 }
 0x564   : > { %10558 = vmatprep.mubr.msk.f32.mxu1 %vm461_vm1, %v6946_v26  ;;  %v7333_v26 = vrot.slane %v14033_v45, 6  ;;  %v7339_v45 = vrot.slane %v14058_v24, 6 }
 0x565   : > { %v7330_v63 = vsel %vm3400_vm6, %v7327_v13, %v7329_v22  ;;  %v7332_v0 = vsel %vm3400_vm6, %v7329_v22, %v7331_v6  ;;  %v7379_v13 = vrot.slane %v14371_v21, 6  ;;  %v7383_v22 = vrot.slane %v14381_v4, 6 }
 0x566   : > { %v7334_v9 = vsel %vm3400_vm6, %v7331_v6, %v7333_v26  ;;  %v7340_v37 = vsel %vm3400_vm6, %v7337_v5, %v7339_v45  ;;  %v7342_v17 = vsel %vm3400_vm6, %v7339_v45, %v7341_v40  ;;  %v14982_v6 = vrot.slane %v13401_v42, 6  ;;  %v14987_v42 = vld [vmem:[#allocation14_spill] sm:$0xff] }
 0x567   : > { %10559 = vmatmul.mubr.msk.f32.gmra.mrb[6].mxu1 %vm461_vm1, %v6948_v33  ;;  %v7336_v33 = vsel %vm3400_vm6, %v7333_v26, %v7335_v34  ;;  %v14984_v26 = vld [vmem:[#allocation59_spill] sm:$0xff]  ;;  %v14991_v45 = vld [vmem:[#allocation18_spill] sm:$0xff] }
 0x568   : > { %10561 = vmatprep.mubr.msk.f32.mxu1 %vm461_vm1, %v6950_v27  ;;  %v7343_v27 = vrot.slane %v14074_v2, 6 }
 0x56a   : > { %v7344_v24 = vsel %vm3400_vm6, %v7341_v40, %v7343_v27  ;;  %v7346_v3 = vsel %vm3400_vm6, %v7343_v27, %v7345_v1  ;;  %v14994_v40 = vld [vmem:[#allocation21_spill] sm:$0xff]  ;;  %v14996_v27 = vld [vmem:[#allocation23_spill] sm:$0xff] }
 0x56b   : > { %10562 = vmatmul.mubr.msk.f32.gmra.mrb[8].mxu1 %vm461_vm1, %v6952_v51  ;;  %v7347_v51 = vrot.slane %v14090_v23, 6 }
 0x56c   : > { %10564 = vmatprep.mubr.msk.f32.mxu1 %vm461_vm1, %v6954_v53  ;;  %v7351_v53 = vrot.slane %v14106_v39, 6 }
 0x56d   : > { %v7348_v2 = vsel %vm3400_vm6, %v7345_v1, %v7347_v51  ;;  %v7350_v15 = vsel %vm3400_vm6, %v7347_v51, %v7349_v8  ;;  %v14998_v1 = vld [vmem:[#allocation25_spill] sm:$0xff]  ;;  %v15000_v51 = vld [vmem:[#allocation27_spill] sm:$0xff] }
 0x56e   : > { %v7352_v23 = vsel %vm3400_vm6, %v7349_v8, %v7351_v53  ;;  %v7354_v44 = vsel %vm3400_vm6, %v7351_v53, %v7353_v38  ;;  %v15002_v8 = vld [vmem:[#allocation29_spill] sm:$0xff]  ;;  %v15004_v53 = vld [vmem:[#allocation31_spill] sm:$0xff] }
 0x56f   : > { %10565 = vmatmul.mubr.msk.f32.gmra.mrb[10].mxu1 %vm461_vm1, %v6956_v28  ;;  %v7355_v28 = vrot.slane %v14122_v11, 6 }
 0x570   : > { %10567 = vmatprep.mubr.msk.f32.mxu1 %vm461_vm1, %v6958_v57  ;;  %v7357_v57 = vrot.slane %v14130_v56, 6 }
 0x571   : > { %v7356_v39 = vsel %vm3400_vm6, %v7353_v38, %v7355_v28  ;;  %v15006_v38 = vld [vmem:[#allocation4_spill] sm:$0xff] }
 0x572   : > { %v7358_v43 = vsel %vm3400_vm6, %v7355_v28, %v7357_v57  ;;  %v7360_v11 = vsel %vm3400_vm6, %v7357_v57, %v7359_v41  ;;  %v15008_v28 = vld [vmem:[#allocation6_spill] sm:$0xff]  ;;  %v15010_v57 = vld [vmem:[#allocation8_spill] sm:$0xff] }
 0x573   : > { %10568 = vmatmul.mubr.msk.f32.gmra.mrb[12].mxu1 %vm461_vm1, %v6960_v49  ;;  %v7361_v49 = vrot.slane %v14146_v10, 6 }
 0x574   : > { %10570 = vmatprep.mubr.msk.f32.mxu1 %vm461_vm1, %v14978_v55  ;;  %v7363_v55 = vrot.slane %v14331_v20, 6 }
 0x575   : > { %v7362_v56 = vsel %vm3400_vm6, %v7359_v41, %v7361_v49  ;;  %v15012_v41 = vld [vmem:[#allocation10_spill] sm:$0xff] }
 0x576   : > { %v7364_v25 = vsel %vm3400_vm6, %v7361_v49, %v7363_v55  ;;  %v7366_v10 = vsel %vm3400_vm6, %v7363_v55, %v7365_v46  ;;  %v15014_v49 = vld [vmem:[#allocation12_spill] sm:$0xff]  ;;  %v15016_v55 = vld [vmem:[#allocation13_spill] sm:$0xff] }
 0x577   : > { %10571 = vmatmul.mubr.msk.f32.gmra.mrb[14].mxu1 %vm461_vm1, %v14979_v61  ;;  %v7367_v61 = vrot.slane %v14341_v35, 6  ;;  %v7372_v35 = vsel %vm3400_vm6, %v7369_v32, %v7371_v19 }
 0x578   : > { %10573 = vmatprep.mubr.msk.f32.mxu1 %vm461_vm1, %v14980_v52  ;;  %v7373_v52 = vrot.slane %v14356_v14, 6 }
 0x579   : > { %v7368_v20 = vsel %vm3400_vm6, %v7365_v46, %v7367_v61  ;;  %v7370_v30 = vsel %vm3400_vm6, %v7367_v61, %v7369_v32  ;;  %v15018_v46 = vld [vmem:[#allocation34_spill] sm:$0xff]  ;;  %v15020_v61 = vld [vmem:[#allocation36_spill] sm:$0xff] }
 0x57a   : > { %v7374_v12 = vsel %vm3400_vm6, %v7371_v19, %v7373_v52  ;;  %v7376_v50 = vsel %vm3400_vm6, %v7373_v52, %v7375_v54  ;;  %v15022_v32 = vld [vmem:[#allocation38_spill] sm:$0xff]  ;;  %v15023_v52 = vld [vmem:[#allocation61_spill] sm:$0xff] }
 0x57b   : > { %10574 = vmatmul.mubr.msk.f32.gmra.mrb[16].mxu1 %vm461_vm1, %v6968_v48  ;;  %v7377_v48 = vrot.slane %v14366_v7, 6 }
 0x57c   : > { %10578 = vmatprep.mubr.msk.f32.mxu1 %vm461_vm1, %v7326_v18  ;;  %v7381_v18 = vrot.slane %v14376_v59, 6 }
 0x57d   : > { %v7378_v14 = vsel %vm3400_vm6, %v7375_v54, %v7377_v48  ;;  %v7380_v62 = vsel %vm3400_vm6, %v7377_v48, %v7379_v13  ;;  %v15024_v54 = vld [vmem:[#allocation62_spill] sm:$0xff] }
 0x57e   : > { %v7382_v7 = vsel %vm3400_vm6, %v7379_v13, %v7381_v18  ;;  %v7384_v21 = vsel %vm3400_vm6, %v7381_v18, %v7383_v22 }
 0x57f   : > { %10579 = vmatmul.mubr.msk.f32.vlgmr.msra.gmra.mrb[18].mxu1 %vm461_vm1, %v7328_v29  ;;  %v7385_v29 = vrot.slane %v14386_v47, 6  ;;  %v7395_v47 = vrot.slane %v14255_v16, 6  ;;  %v14990_v16 = vld [vmem:[#allocation17_spill] sm:$0xff] }
 0x580   : > { %10633 = vmatpush3.msra.mxu1 %v14281_v58  ;;  %10581 = vmatprep.mubr.msk.f32.mxu1 %vm461_vm1, %v7330_v63  ;;  %v7338_v58 = vsel %vm3400_vm6, %v7335_v34, %v7337_v5  ;;  %v14983_v63 = vld [vmem:[#allocation58_spill] sm:$0xff]  ;;  %v14986_v34 = vrot.slane %v14975_v31, 6  ;;  %v14988_v5 = vld [vmem:[#allocation15_spill] sm:$0xff] }
 0x581   : > { %v7386_v59 = vsel %vm3400_vm6, %v7383_v22, %v7385_v29  ;;  %v7388_v4 = vsel %vm3400_vm6, %v7385_v29, %v14982_v6  ;;  %v14992_v31 = vld [vmem:[#allocation19_spill] sm:$0xff] }
 0x583   : > { %10582 = vmatmul.mubr.msk.f32.gmra.mrb[20].mxu1 %vm461_vm1, %v7332_v0  ;;  %v14985_v0 = vld [vmem:[#allocation60_spill] sm:$0xff] }
 0x584   : > { %10584 = vmatprep.mubr.msk.f32.mxu1 %vm461_vm1, %v7334_v9  ;;  %v7396_v9 = vsel %vm3400_vm6, %v14986_v34, %v7395_v47  ;;  %v15027_v34 = vld [vmem:[#allocation65_spill] sm:$0xff] }
 0x587   : > { %10585 = vmatmul.mubr.msk.f32.gmra.mrb[22].mxu1 %vm461_vm1, %v7336_v33  ;;  %v14989_v33 = vld [vmem:[#allocation16_spill] sm:$0xff] }
 0x588   : > { %10587 = vmatprep.mubr.msk.f32.mxu1 %vm461_vm1, %v7338_v58  ;;  %v14993_v58 = vld [vmem:[#allocation20_spill] sm:$0xff] }
 0x58b   : > { %10588 = vmatmul.mubr.msk.f32.gmra.mrb[24].mxu1 %vm461_vm1, %v7340_v37  ;;  %v14995_v37 = vld [vmem:[#allocation22_spill] sm:$0xff] }
 0x58c   : > { %10590 = vmatprep.mubr.msk.f32.mxu1 %vm461_vm1, %v7342_v17  ;;  %v14997_v17 = vld [vmem:[#allocation24_spill] sm:$0xff] }
 0x58f   : > { %10591 = vmatmul.mubr.msk.f32.gmra.mrb[26].mxu1 %vm461_vm1, %v7344_v24  ;;  %v14999_v24 = vld [vmem:[#allocation26_spill] sm:$0xff] }
 0x590   : > { %10593 = vmatprep.mubr.msk.f32.mxu1 %vm461_vm1, %v7346_v3  ;;  %v15001_v3 = vld [vmem:[#allocation28_spill] sm:$0xff] }
 0x593   : > { %10594 = vmatmul.mubr.msk.f32.gmra.mrb[28].mxu1 %vm461_vm1, %v7348_v2  ;;  %v15003_v2 = vld [vmem:[#allocation30_spill] sm:$0xff] }
 0x594   : > { %10596 = vmatprep.mubr.msk.f32.mxu1 %vm461_vm1, %v7350_v15  ;;  %v15005_v15 = vld [vmem:[#allocation3_spill] sm:$0xff] }
 0x597   : > { %10597 = vmatmul.mubr.msk.f32.gmra.mrb[30].mxu1 %vm461_vm1, %v7352_v23  ;;  %v15007_v23 = vld [vmem:[#allocation5_spill] sm:$0xff] }
 0x598   : > { %10599 = vmatprep.mubr.msk.f32.mxu1 %vm461_vm1, %v7354_v44  ;;  %v15009_v44 = vld [vmem:[#allocation7_spill] sm:$0xff] }
 0x59b   : > { %10600 = vmatmul.mubr.msk.f32.gmra.mrb[32].mxu1 %vm461_vm1, %v7356_v39  ;;  %v15011_v39 = vld [vmem:[#allocation9_spill] sm:$0xff] }
 0x59c   : > { %10602 = vmatprep.mubr.msk.f32.mxu1 %vm461_vm1, %v7358_v43  ;;  %v15013_v43 = vld [vmem:[#allocation11_spill] sm:$0xff] }
 0x59f   : > { %10603 = vmatmul.mubr.msk.f32.gmra.mrb[34].mxu1 %vm461_vm1, %v7360_v11  ;;  %v15015_v11 = vld [vmem:[#allocation32_spill] sm:$0xff] }
 0x5a0   : > { %10605 = vmatprep.mubr.msk.f32.mxu1 %vm461_vm1, %v7362_v56  ;;  %v15017_v56 = vld [vmem:[#allocation33_spill] sm:$0xff] }
 0x5a3   : > { %10606 = vmatmul.mubr.msk.f32.gmra.mrb[0].mxu1 %vm461_vm1, %v7364_v25  ;;  %v15019_v25 = vld [vmem:[#allocation35_spill] sm:$0xff] }
 0x5a4   : > { %10608 = vmatprep.mubr.msk.f32.mxu1 %vm461_vm1, %v7366_v10  ;;  %v15021_v10 = vld [vmem:[#allocation37_spill] sm:$0xff] }
 0x5a7   : > { %10609 = vmatmul.mubr.msk.f32.gmra.mrb[2].mxu1 %vm461_vm1, %v7368_v20  ;;  %v14594_v20 = vld [vmem:[%s14762_s4] ss:$0 sm:$0xff] }
 0x5a8   : > { %10611 = vmatprep.mubr.msk.f32.mxu1 %vm461_vm1, %v7370_v30  ;;  %v10690_v19 = vadd.f32 %v13754_v36, %v14594_v20  ;;  %v10696_v30 = vadd.f32 %v13764_v60, %v14594_v20  ;;  %v15025_v36 = vld [vmem:[#allocation63_spill] sm:$0xff] }
 0x5ab   : > { %10612 = vmatmul.mubr.msk.f32.gmra.mrb[4].mxu1 %vm461_vm1, %v7372_v35  ;;  %v10693_v35 = vadd.f32 %v14594_v20, %v15023_v52  ;;  %v15034_v52 = vld [vmem:[#allocation72_spill] sm:$0xff] }
 0x5ac   : > { %10614 = vmatprep.mubr.msk.f32.mxu1 %vm461_vm1, %v7374_v12  ;;  %v10699_v12 = vadd.f32 %v14594_v20, %v15024_v54 }
 0x5af   : > { %10615 = vmatmul.mubr.msk.f32.gmra.mrb[6].mxu1 %vm461_vm1, %v7376_v50  ;;  %v14608_v50 = vld [vmem:[%s14764_s6] ss:$0 sm:$0xff] }
 0x5b0   : > { %10617 = vmatprep.mubr.msk.f32.mxu1 %vm461_vm1, %v7378_v14  ;;  %v10697_v22 = vadd.f32 %v10696_v30, %v14608_v50  ;;  %v10700_v6 = vadd.f32 %v10699_v12, %v14608_v50 }
 0x5b3   : > { %10618 = vmatmul.mubr.msk.f32.gmra.mrb[8].mxu1 %vm461_vm1, %v7380_v62  ;;  %v10702_v62 = vadd.f32 %v15025_v36, %v14594_v20  ;;  %v15035_v36 = vld [vmem:[#allocation73_spill] sm:$0xff] }
 0x5b4   : > { %10620 = vmatprep.mubr.msk.f32.mxu1 %vm461_vm1, %v7382_v7  ;;  %v15026_v7 = vld [vmem:[#allocation64_spill] sm:$0xff] }
 0x5b5   : > { %v10705_v29 = vadd.f32 %v14594_v20, %v15026_v7  ;;  %v15036_v7 = vld [vmem:[#allocation74_spill] sm:$0xff] }
 0x5b7   : > { %10621 = vmatmul.mubr.msk.f32.gmra.mrb[10].mxu1 %vm461_vm1, %v7384_v21 }
 0x5b8   : > { %10623 = vmatprep.mubr.msk.f32.mxu1 %vm461_vm1, %v7386_v59 }
 0x5bb   : > { %10624 = vmatmul.mubr.msk.f32.gmra.mrb[12].mxu1 %vm461_vm1, %v7388_v4 }
 0x5bc   : > { %10626 = vmatprep.mubr.msk.f32.mxu1 %vm461_vm1, %v14983_v63 }
 0x5bf   : > { %10627 = vmatmul.mubr.msk.f32.gmra.mrb[14].mxu1 %vm461_vm1, %v14984_v26 }
 0x5c0   : > { %10629 = vmatprep.mubr.msk.f32.mxu1 %vm461_vm1, %v14985_v0 }
 0x5c3   : > { %10630 = vmatmul.mubr.msk.f32.gmra.mrb[16].mxu1 %vm461_vm1, %v7396_v9  ;;  %v10708_v9 = vadd.f32 %v15027_v34, %v14594_v20 }
 0x5c4   : > { %10634 = vmatprep.mubr.msk.f32.mxu1 %vm461_vm1, %v14987_v42 }
 0x5c7   : > { %10635 = vmatmul.mubr.msk.f32.vlgmr.msra.gmra.mrb[18].mxu1 %vm461_vm1, %v14988_v5  ;;  %v10703_v5 = vadd.f32 %v10702_v62, %v14608_v50  ;;  %v10732_v62 = vadd.f32 %v15035_v36, %v14594_v20 }
 0x5c8   : > { %10637 = vmatprep.mubr.msk.f32.mxu1 %vm461_vm1, %v14989_v33  ;;  %v15028_v33 = vld [vmem:[#allocation66_spill] sm:$0xff] }
 0x5cb   : > { %10638 = vmatmul.mubr.msk.f32.gmra.mrb[20].mxu1 %vm461_vm1, %v14990_v16  ;;  %v10711_v16 = vadd.f32 %v14594_v20, %v15028_v33 }
 0x5cc   : > { %10640 = vmatprep.mubr.msk.f32.mxu1 %vm461_vm1, %v14991_v45 }
 0x5cf   : > { %10641 = vmatmul.mubr.msk.f32.gmra.mrb[22].mxu1 %vm461_vm1, %v14992_v31 }
 0x5d0   : > { %10643 = vmatprep.mubr.msk.f32.mxu1 %vm461_vm1, %v14993_v58  ;;  %v10706_v58 = vadd.f32 %v10705_v29, %v14608_v50  ;;  %v10735_v29 = vadd.f32 %v14594_v20, %v15036_v7 }
 0x5d3   : > { %10644 = vmatmul.mubr.msk.f32.gmra.mrb[24].mxu1 %vm461_vm1, %v14994_v40 }
 0x5d4   : > { %10646 = vmatprep.mubr.msk.f32.mxu1 %vm461_vm1, %v14995_v37 }
 0x5d7   : > { %10647 = vmatmul.mubr.msk.f32.gmra.mrb[26].mxu1 %vm461_vm1, %v14996_v27 }
 0x5d8   : > { %10649 = vmatprep.mubr.msk.f32.mxu1 %vm461_vm1, %v14997_v17  ;;  %v15029_v17 = vld [vmem:[#allocation67_spill] sm:$0xff] }
 0x5db   : > { %10650 = vmatmul.mubr.msk.f32.gmra.mrb[28].mxu1 %vm461_vm1, %v14998_v1  ;;  %v10714_v1 = vadd.f32 %v15029_v17, %v14594_v20 }
 0x5dc   : > { %10652 = vmatprep.mubr.msk.f32.mxu1 %vm461_vm1, %v14999_v24 }
 0x5df   : > { %10653 = vmatmul.mubr.msk.f32.gmra.mrb[30].mxu1 %vm461_vm1, %v15000_v51  ;;  %v10709_v51 = vadd.f32 %v10708_v9, %v14608_v50  ;;  %v10733_v9 = vadd.f32 %v10732_v62, %v14608_v50 }
 0x5e0   : > { %10655 = vmatprep.mubr.msk.f32.mxu1 %vm461_vm1, %v15001_v3  ;;  %v15030_v3 = vld [vmem:[#allocation68_spill] sm:$0xff] }
 0x5e3   : > { %10656 = vmatmul.mubr.msk.f32.gmra.mrb[32].mxu1 %vm461_vm1, %v15002_v8  ;;  %v10717_v8 = vadd.f32 %v14594_v20, %v15030_v3 }
 0x5e4   : > { %10658 = vmatprep.mubr.msk.f32.mxu1 %vm461_vm1, %v15003_v2 }
 0x5e7   : > { %10659 = vmatmul.mubr.msk.f32.gmra.mrb[34].mxu1 %vm461_vm1, %v15004_v53 }
 0x5e8   : > { %10661 = vmatprep.mubr.msk.f32.mxu1 %vm461_vm1, %v15005_v15  ;;  %v10712_v15 = vadd.f32 %v10711_v16, %v14608_v50 }
 0x5eb   : > { %10662 = vmatmul.mubr.msk.f32.gmra.mrb[0].mxu1 %vm461_vm1, %v15006_v38 }
 0x5ec   : > { %10664 = vmatprep.mubr.msk.f32.mxu1 %vm461_vm1, %v15007_v23 }
 0x5ef   : > { %10665 = vmatmul.mubr.msk.f32.gmra.mrb[2].mxu1 %vm461_vm1, %v15008_v28 }
 0x5f0   : > { %10667 = vmatprep.mubr.msk.f32.mxu1 %vm461_vm1, %v15009_v44  ;;  %v15031_v44 = vld [vmem:[#allocation69_spill] sm:$0xff] }
 0x5f3   : > { %10668 = vmatmul.mubr.msk.f32.gmra.mrb[4].mxu1 %vm461_vm1, %v15010_v57  ;;  %v10720_v57 = vadd.f32 %v15031_v44, %v14594_v20 }
 0x5f4   : > { %10670 = vmatprep.mubr.msk.f32.mxu1 %vm461_vm1, %v15011_v39 }
 0x5f5   : > { %v10721_v30 = vadd.f32 %v10720_v57, %v14608_v50 }
 0x5f7   : > { %10671 = vmatmul.mubr.msk.f32.gmra.mrb[6].mxu1 %vm461_vm1, %v15012_v41  ;;  %v10715_v41 = vadd.f32 %v10714_v1, %v14608_v50 }
 0x5f8   : > { %10673 = vmatprep.mubr.msk.f32.mxu1 %vm461_vm1, %v15013_v43  ;;  %v15032_v43 = vld [vmem:[#allocation70_spill] sm:$0xff] }
 0x5fb   : > { %10674 = vmatmul.mubr.msk.f32.gmra.mrb[8].mxu1 %vm461_vm1, %v15014_v49  ;;  %v10723_v49 = vadd.f32 %v14594_v20, %v15032_v43 }
 0x5fc   : > { %10676 = vmatprep.mubr.msk.f32.mxu1 %vm461_vm1, %v15015_v11 }
 0x5ff   : > { %10677 = vmatmul.mubr.msk.f32.gmra.mrb[10].mxu1 %vm461_vm1, %v15016_v55 }
 0x600   : > { %10679 = vmatprep.mubr.msk.f32.mxu1 %vm461_vm1, %v15017_v56  ;;  %v10718_v56 = vadd.f32 %v10717_v8, %v14608_v50  ;;  %v14693_v8 = vadd.f32 %v14608_v50, %v14594_v20 }
 0x603   : > { %10680 = vmatmul.mubr.msk.f32.gmra.mrb[12].mxu1 %vm461_vm1, %v15018_v46 }
 0x604   : > { %10682 = vmatprep.mubr.msk.f32.mxu1 %vm461_vm1, %v15019_v25 }
 0x607   : > { %10683 = vmatmul.mubr.msk.f32.gmra.mrb[14].mxu1 %vm461_vm1, %v15020_v61 }
 0x608   : > { %10685 = vmatprep.mubr.msk.f32.mxu1 %vm461_vm1, %v15021_v10  ;;  %v15033_v10 = vld [vmem:[#allocation71_spill] sm:$0xff] }
 0x60b   : > { %10686 = vmatmul.mubr.msk.f32.gmra.mrb[16].mxu1 %vm461_vm1, %v15022_v32  ;;  %v10726_v32 = vadd.f32 %v15033_v10, %v14594_v20 }
 0x69a   : > { %v10636_v48 = vpop.f32.mrb[18].mxu1 }
 0x69b   : > { %v10691_v13 = vadd.f32 %v10690_v19, %v10636_v48  ;;  %v7867_v14 = vpop.f32.mrb[19].mxu1  ;;  %v10724_v48 = vadd.f32 %v10723_v49, %v14608_v50 }
 0x69c   : > { %v10694_v18 = vadd.f32 %v10693_v35, %v7867_v14  ;;  %v10729_v35 = vadd.f32 %v14594_v20, %v15034_v52 }
 0x69d   : > { %v10692_v60 = vadd.f32 %v10691_v13, %v14608_v50 }
 0x69e   : > { %v10695_v21 = vadd.f32 %v10694_v18, %v14608_v50  ;;  %v10639_v59 = vpop.f32.mrb[20].mxu1 }
 0x69f   : > { %v8083_v4 = vmax.f32 %v10692_v60, 0.0  ;;  %v10698_v63 = vadd.f32 %v10697_v22, %v10639_v59  ;;  %v7877_v47 = vpop.f32.mrb[21].mxu1  ;;  %v10727_v22 = vadd.f32 %v10726_v32, %v14608_v50 }
 0x6a0   : > { %v8082_v26 = vmax.f32 %v10695_v21, 0.0  ;;  %v10701_v0 = vadd.f32 %v10700_v6, %v7877_v47  ;;  %v10730_v6 = vadd.f32 %v10729_v35, %v14608_v50 }
 0x6a1   : > { %8119 = vst.msk [vmem:[%s14619_s12 + $0x8] sm:$0xff] %vm461_vm1, %v8083_v4  ;;  %v8085_v42 = vmax.f32 %v10698_v63, 0.0 }
 0x6a2   : > { %8118 = vst.msk [vmem:[%s14619_s12] sm:$0xff] %vm461_vm1, %v8082_v26  ;;  %v8084_v45 = vmax.f32 %v10701_v0, 0.0  ;;  %v10642_v31 = vpop.f32.mrb[22].mxu1  ;;  %v15037_v26 = vld [vmem:[#allocation75_spill] sm:$0xff] }
 0x6a3   : > { %8121 = vst.msk [vmem:[%s14619_s12 + $0x18] sm:$0xff] %vm461_vm1, %v8085_v42  ;;  %v10704_v40 = vadd.f32 %v10703_v5, %v10642_v31  ;;  %v7887_v37 = vpop.f32.mrb[23].mxu1  ;;  %v10738_v0 = vadd.f32 %v15037_v26, %v14594_v20  ;;  %v15038_v42 = vld [vmem:[#allocation76_spill] sm:$0xff] }
 0x6a4   : > { %8120 = vst.msk [vmem:[%s14619_s12 + $0x10] sm:$0xff] %vm461_vm1, %v8084_v45  ;;  %v10707_v27 = vadd.f32 %v10706_v58, %v7887_v37  ;;  %v10741_v5 = vadd.f32 %v14594_v20, %v15038_v42  ;;  %v10736_v45 = vadd.f32 %v10735_v29, %v14608_v50 }
 0x6a5   : > { %v8087_v24 = vmax.f32 %v10704_v40, 0.0 }
 0x6a6   : > { %v8086_v2 = vmax.f32 %v10707_v27, 0.0  ;;  %v10645_v53 = vpop.f32.mrb[24].mxu1  ;;  %v10739_v27 = vadd.f32 %v10738_v0, %v14608_v50 }
 0x6a7   : > { %8123 = vst.msk [vmem:[%s14619_s12 + $0x28] sm:$0xff] %vm461_vm1, %v8087_v24  ;;  %v10710_v38 = vadd.f32 %v10709_v51, %v10645_v53  ;;  %v7897_v23 = vpop.f32.mrb[25].mxu1  ;;  %v10742_v24 = vadd.f32 %v10741_v5, %v14608_v50 }
 0x6a8   : > { %8122 = vst.msk [vmem:[%s14619_s12 + $0x20] sm:$0xff] %vm461_vm1, %v8086_v2  ;;  %v10713_v28 = vadd.f32 %v10712_v15, %v7897_v23 }
 0x6a9   : > { %v8089_v39 = vmax.f32 %v10710_v38, 0.0 }
 0x6aa   : > { %v8088_v11 = vmax.f32 %v10713_v28, 0.0  ;;  %v10648_v55 = vpop.f32.mrb[26].mxu1 }
 0x6ab   : > { %8125 = vst.msk [vmem:[%s14619_s12 + $0x38] sm:$0xff] %vm461_vm1, %v8089_v39  ;;  %v10716_v46 = vadd.f32 %v10715_v41, %v10648_v55  ;;  %v7907_v25 = vpop.f32.mrb[27].mxu1 }
 0x6ac   : > { %8124 = vst.msk [vmem:[%s14619_s12 + $0x30] sm:$0xff] %vm461_vm1, %v8088_v11  ;;  %v10719_v61 = vadd.f32 %v10718_v56, %v7907_v25 }
 0x6ad   : > { %v8091_v19 = vmax.f32 %v10716_v46, 0.0 }
 0x6ae   : > { %v8090_v54 = vmax.f32 %v10719_v61, 0.0  ;;  %v10651_v12 = vpop.f32.mrb[28].mxu1 }
 0x6af   : > { %8127 = vst.msk [vmem:[%s14619_s12 + $0x48] sm:$0xff] %vm461_vm1, %v8091_v19  ;;  %v10722_v13 = vadd.f32 %v10721_v30, %v10651_v12  ;;  %v7917_v14 = vpop.f32.mrb[29].mxu1 }
 0x6b0   : > { %8126 = vst.msk [vmem:[%s14619_s12 + $0x40] sm:$0xff] %vm461_vm1, %v8090_v54  ;;  %v10725_v18 = vadd.f32 %v10724_v48, %v7917_v14 }
 0x6b1   : > { %v8093_v60 = vmax.f32 %v10722_v13, 0.0 }
 0x6b2   : > { %v8092_v21 = vmax.f32 %v10725_v18, 0.0  ;;  %v10654_v59 = vpop.f32.mrb[30].mxu1 }
 0x6b3   : > { %8129 = vst.msk [vmem:[%s14619_s12 + $0x58] sm:$0xff] %vm461_vm1, %v8093_v60  ;;  %v10728_v4 = vadd.f32 %v10727_v22, %v10654_v59  ;;  %v7927_v63 = vpop.f32.mrb[31].mxu1 }
 0x6b4   : > { %8128 = vst.msk [vmem:[%s14619_s12 + $0x50] sm:$0xff] %vm461_vm1, %v8092_v21  ;;  %v10731_v47 = vadd.f32 %v10730_v6, %v7927_v63 }
 0x6b5   : > { %v8095_v34 = vmax.f32 %v10728_v4, 0.0 }
 0x6b6   : > { %v8094_v33 = vmax.f32 %v10731_v47, 0.0  ;;  %v10657_v16 = vpop.f32.mrb[32].mxu1 }
 0x6b7   : > { %8131 = vst.msk [vmem:[%s14619_s12 + $0x68] sm:$0xff] %vm461_vm1, %v8095_v34  ;;  %v10734_v31 = vadd.f32 %v10733_v9, %v10657_v16  ;;  %v7937_v58 = vpop.f32.mrb[33].mxu1 }
 0x6b8   : > { %8130 = vst.msk [vmem:[%s14619_s12 + $0x60] sm:$0xff] %vm461_vm1, %v8094_v33  ;;  %v10737_v40 = vadd.f32 %v10736_v45, %v7937_v58 }
 0x6b9   : > { %v8097_v37 = vmax.f32 %v10734_v31, 0.0 }
 0x6ba   : > { %v8096_v17 = vmax.f32 %v10737_v40, 0.0  ;;  %v10660_v1 = vpop.f32.mrb[34].mxu1 }
 0x6bb   : > { %8133 = vst.msk [vmem:[%s14619_s12 + $0x78] sm:$0xff] %vm461_vm1, %v8097_v37  ;;  %v10740_v51 = vadd.f32 %v10739_v27, %v10660_v1  ;;  %v7947_v3 = vpop.f32.mrb[35].mxu1 }
 0x6bc   : > { %8132 = vst.msk [vmem:[%s14619_s12 + $0x70] sm:$0xff] %vm461_vm1, %v8096_v17  ;;  %v10743_v2 = vadd.f32 %v10742_v24, %v7947_v3 }
 0x6bd   : > { %v8099_v53 = vmax.f32 %v10740_v51, 0.0 }
 0x6be   : > { %v8098_v15 = vmax.f32 %v10743_v2, 0.0  ;;  %v10663_v38 = vpop.f32.mrb[0].mxu1 }
 0x6bf   : > { %8135 = vst.msk [vmem:[%s14619_s12 + $0x88] sm:$0xff] %vm461_vm1, %v8099_v53  ;;  %v10745_v23 = vadd.f32 %v14693_v8, %v10663_v38  ;;  %v7957_v28 = vpop.f32.mrb[1].mxu1 }
 0x6c0   : > { %8134 = vst.msk [vmem:[%s14619_s12 + $0x80] sm:$0xff] %vm461_vm1, %v8098_v15  ;;  %v10747_v44 = vadd.f32 %v14693_v8, %v7957_v28 }
 0x6c1   : > { %v8101_v20 = vmax.f32 %v10745_v23, 0.0 }
 0x6c2   : > { %v8100_v50 = vmax.f32 %v10747_v44, 0.0  ;;  %v10666_v57 = vpop.f32.mrb[2].mxu1 }
 0x6c3   : > { %8137 = vst.msk [vmem:[%s14619_s12 + $0x98] sm:$0xff] %vm461_vm1, %v8101_v20  ;;  %v10749_v39 = vadd.f32 %v14693_v8, %v10666_v57  ;;  %v7967_v41 = vpop.f32.mrb[3].mxu1 }
 0x6c4   : > { %8136 = vst.msk [vmem:[%s14619_s12 + $0x90] sm:$0xff] %vm461_vm1, %v8100_v50  ;;  %v10751_v43 = vadd.f32 %v14693_v8, %v7967_v41 }
 0x6c5   : > { %v8103_v49 = vmax.f32 %v10749_v39, 0.0 }
 0x6c6   : > { %v8102_v11 = vmax.f32 %v10751_v43, 0.0  ;;  %v10669_v55 = vpop.f32.mrb[4].mxu1 }
 0x6c7   : > { %8139 = vst.msk [vmem:[%s14619_s12 + $0xa8] sm:$0xff] %vm461_vm1, %v8103_v49  ;;  %v10753_v56 = vadd.f32 %v14693_v8, %v10669_v55  ;;  %v7977_v46 = vpop.f32.mrb[5].mxu1 }
 0x6c8   : > { %8138 = vst.msk [vmem:[%s14619_s12 + $0xa0] sm:$0xff] %vm461_vm1, %v8102_v11  ;;  %v10755_v25 = vadd.f32 %v14693_v8, %v7977_v46 }
 0x6c9   : > { %v8105_v61 = vmax.f32 %v10753_v56, 0.0 }
 0x6ca   : > { %v8104_v10 = vmax.f32 %v10755_v25, 0.0  ;;  %v10672_v32 = vpop.f32.mrb[6].mxu1 }
 0x6cb   : > { %8141 = vst.msk [vmem:[%s14619_s12 + $0xb8] sm:$0xff] %vm461_vm1, %v8105_v61  ;;  %v10757_v19 = vadd.f32 %v14693_v8, %v10672_v32  ;;  %v7987_v30 = vpop.f32.mrb[7].mxu1 }
 0x6cc   : > { %8140 = vst.msk [vmem:[%s14619_s12 + $0xb0] sm:$0xff] %vm461_vm1, %v8104_v10  ;;  %v10759_v52 = vadd.f32 %v14693_v8, %v7987_v30 }
 0x6cd   : > { %v8107_v35 = vmax.f32 %v10757_v19, 0.0 }
 0x6ce   : > { %v8106_v54 = vmax.f32 %v10759_v52, 0.0  ;;  %v10675_v12 = vpop.f32.mrb[8].mxu1 }
 0x6cf   : > { %8143 = vst.msk [vmem:[%s14619_s12 + $0xc8] sm:$0xff] %vm461_vm1, %v8107_v35  ;;  %v10761_v48 = vadd.f32 %v14693_v8, %v10675_v12  ;;  %v7997_v13 = vpop.f32.mrb[9].mxu1 }
 0x6d0   : > { %8142 = vst.msk [vmem:[%s14619_s12 + $0xc0] sm:$0xff] %vm461_vm1, %v8106_v54  ;;  %v10763_v14 = vadd.f32 %v14693_v8, %v7997_v13 }
 0x6d1   : > { %v8109_v18 = vmax.f32 %v10761_v48, 0.0 }
 0x6d2   : > { %v8108_v36 = vmax.f32 %v10763_v14, 0.0  ;;  %v10678_v62 = vpop.f32.mrb[10].mxu1 }
 0x6d3   : > { %8145 = vst.msk [vmem:[%s14619_s12 + $0xd8] sm:$0xff] %vm461_vm1, %v8109_v18  ;;  %v10765_v60 = vadd.f32 %v14693_v8, %v10678_v62  ;;  %v8007_v22 = vpop.f32.mrb[11].mxu1 }
 0x6d4   : > { %8144 = vst.msk [vmem:[%s14619_s12 + $0xd0] sm:$0xff] %vm461_vm1, %v8108_v36  ;;  %v10767_v7 = vadd.f32 %v14693_v8, %v8007_v22 }
 0x6d5   : > { %v8111_v29 = vmax.f32 %v10765_v60, 0.0 }
 0x6d6   : > { %v8110_v21 = vmax.f32 %v10767_v7, 0.0  ;;  %v10681_v59 = vpop.f32.mrb[12].mxu1 }
 0x6d7   : > { %8147 = vst.msk [vmem:[%s14619_s12 + $0xe8] sm:$0xff] %vm461_vm1, %v8111_v29  ;;  %v10769_v6 = vadd.f32 %v14693_v8, %v10681_v59  ;;  %v8017_v4 = vpop.f32.mrb[13].mxu1 }
 0x6d8   : > { %8146 = vst.msk [vmem:[%s14619_s12 + $0xe0] sm:$0xff] %vm461_vm1, %v8110_v21  ;;  %v10771_v63 = vadd.f32 %v14693_v8, %v8017_v4 }
 0x6d9   : > { %v8113_v47 = vmax.f32 %v10769_v6, 0.0 }
 0x6da   : > { %v8112_v26 = vmax.f32 %v10771_v63, 0.0  ;;  %v10684_v0 = vpop.f32.mrb[14].mxu1 }
 0x6db   : > { %8149 = vst.msk [vmem:[%s14619_s12 + $0xf8] sm:$0xff] %vm461_vm1, %v8113_v47  ;;  %v10773_v34 = vadd.f32 %v14693_v8, %v10684_v0  ;;  %v8027_v9 = vpop.f32.mrb[15].mxu1 }
 0x6dc   : > { %8148 = vst.msk [vmem:[%s14619_s12 + $0xf0] sm:$0xff] %vm461_vm1, %v8112_v26  ;;  %v10775_v42 = vadd.f32 %v14693_v8, %v8027_v9 }
 0x6dd   : > { %v8115_v5 = vmax.f32 %v10773_v34, 0.0 }
 0x6de   : > { %v8114_v33 = vmax.f32 %v10775_v42, 0.0  ;;  %v10687_v16 = vpop.f32.mrb[16].mxu1 }
 0x6df   : > { %8151 = vst.msk [vmem:[%s14619_s12 + $0x108] sm:$0xff] %vm461_vm1, %v8115_v5  ;;  %v10777_v45 = vadd.f32 %v14693_v8, %v10687_v16  ;;  %v8037_v31 = vpop.f32.mrb[17].mxu1 }
 0x6e0   : > { %8150 = vst.msk [vmem:[%s14619_s12 + $0x100] sm:$0xff] %vm461_vm1, %v8114_v33  ;;  %v10779_v58 = vadd.f32 %v14693_v8, %v8037_v31 }
 0x6e1   : > { %v8117_v40 = vmax.f32 %v10777_v45, 0.0 }
 0x6e2   : > { %v8116_v37 = vmax.f32 %v10779_v58, 0.0 }
 0x6e3   : > { %8153 = vst.msk [vmem:[%s14619_s12 + $0x118] sm:$0xff] %vm461_vm1, %v8117_v40 }
 0x6e4   : > { %8152 = vst.msk [vmem:[%s14619_s12 + $0x110] sm:$0xff] %vm461_vm1, %v8116_v37 }
 0x6e5 PF: > { %s18_s27 = sadd.s32 1, %s11463_s27  }
 0x6e6   : > { %p15_p4 = scmp.ge.s32.totalorder %s18_s27, 4  }
 0x6e8   :  { %17 = sbr.rel (!%p15_p4) target bundleno = 1 (0x1), region = 98 }

</bundles_post_ra>
